<compile_context>
chip_gen: v5e
topology: v5e:2x2
jax: 0.10.0
libtpu: 0.0.40
codegen_flags: <defaults>
</compile_context>

<pallas_src>
import jax
import jax.numpy as jnp
from jax.experimental import pallas as pl
from jax.experimental.pallas import tpu as pltpu


def _round_up(x, m):
    return ((x + m - 1) // m) * m


# ----------------------------- Pallas kernel -------------------------------

def _vae_fused_kernel(x_ref, eps_ref,
                      w1, b1, w2, b2, w3, b3,
                      w41, b41, w42, b42,
                      w5, b5, w6, b6, w7, b7, w8, b8,
                      recon_ref, mu_ref, logvar_ref):
    """One batch tile of the whole VAE forward; everything VMEM-resident."""

    def leaky(y):                       # LeakyReLU(0.2), fp32
        return jnp.where(y > 0, y, jnp.float32(0.2) * y)

    def dense(h, w_ref, b_ref):
        # bf16 x bf16 matmul on the MXU, fp32 accumulation, fp32 epilogue.
        y = jnp.dot(h.astype(w_ref.dtype), w_ref[...],
                    preferred_element_type=jnp.float32)
        return leaky(y + b_ref[...])

    # ---- encoder (Dropout == identity, eval mode) ----
    h = dense(x_ref[...], w1, b1)               # (Bt, 1024)
    h = dense(h, w2, b2)                        # (Bt, h_dim1)
    h = dense(h, w3, b3)                        # (Bt, h_dim2)
    # Two separate small dots (no merged mu||log_var slab -> no lane-offset
    # slice / XLU select in the sampling path).  LeakyReLU kept per spec.
    mu = dense(h, w41, b41)                     # (Bt, z_dim)
    log_var = dense(h, w42, b42)                # (Bt, z_dim)

    # ---- sampling: z = mu + eps * exp(0.5 * log_var) ----
    z = mu + eps_ref[...] * jnp.exp(jnp.float32(0.5) * log_var)

    # ---- decoder ----
    h = dense(z, w5, b5)                        # (Bt, h_dim2)
    h = dense(h, w6, b6)                        # (Bt, h_dim1)
    h = dense(h, w7, b7)                        # (Bt, 1024)
    h = dense(h, w8, b8)                        # (Bt, x_dim), LeakyReLU per spec
    recon_ref[...] = jax.nn.sigmoid(h).astype(recon_ref.dtype)     # F.sigmoid

    mu_ref[...] = mu.astype(mu_ref.dtype)
    logvar_ref[...] = log_var.astype(logvar_ref.dtype)


_LAYER_NAMES = ("fc1", "fc2", "fc3", "fc41", "fc42", "fc5", "fc6", "fc7", "fc8")


# ----------------------------- VAE forward ---------------------------------

def vae_forward(params, x, eps):
    B, x_dim = x.shape
    z_dim = eps.shape[-1]

    # 128-row batch tiles fill the MXU; pad small batches to a sublane multiple.
    b_tile = min(128, _round_up(B, 8))
    b_pad = _round_up(B, b_tile)
    if b_pad != B:
        x = jnp.pad(x, ((0, b_pad - B), (0, 0)))
        eps = jnp.pad(eps, ((0, b_pad - B), (0, 0)))

    flat, w_specs = [], []
    for name in _LAYER_NAMES:
        w, b = params[name]
        flat += [w, b]
        # Constant index_map -> weights/biases DMA'd once, VMEM-resident
        # across all batch tiles; only x/eps/outputs stream.
        w_specs += [pl.BlockSpec(w.shape, lambda i: (0, 0)),
                    pl.BlockSpec(b.shape, lambda i: (0, 0))]

    grid = (b_pad // b_tile,)

    # Advisory cost hint so XLA can schedule surrounding ops around this call.
    flops = 2 * b_pad * sum(int(params[n][0].shape[0]) * int(params[n][0].shape[1])
                            for n in _LAYER_NAMES)
    weight_bytes = sum(int(t.size) * t.dtype.itemsize for t in flat)
    io_bytes = (int(x.size) + int(eps.size) + b_pad * (x_dim + 2 * z_dim)) * 4
    transcendentals = b_pad * (z_dim + x_dim)          # exp + sigmoid

    recon, mu, log_var = pl.pallas_call(
        _vae_fused_kernel,
        out_shape=(
            jax.ShapeDtypeStruct((b_pad, x_dim), jnp.float32),
            jax.ShapeDtypeStruct((b_pad, z_dim), jnp.float32),
            jax.ShapeDtypeStruct((b_pad, z_dim), jnp.float32),
        ),
        grid_spec=pltpu.PrefetchScalarGridSpec(
            num_scalar_prefetch=0,
            grid=grid,
            in_specs=[pl.BlockSpec((b_tile, x_dim), lambda i: (i, 0)),
                      pl.BlockSpec((b_tile, z_dim), lambda i: (i, 0))] + w_specs,
            out_specs=[pl.BlockSpec((b_tile, x_dim), lambda i: (i, 0)),
                       pl.BlockSpec((b_tile, z_dim), lambda i: (i, 0)),
                       pl.BlockSpec((b_tile, z_dim), lambda i: (i, 0))],
        ),
        compiler_params=pltpu.CompilerParams(
            dimension_semantics=("parallel",)),   # shard B-tiles across v7x's 2 TCs
        cost_estimate=pl.CostEstimate(flops=flops,
                                      transcendentals=transcendentals,
                                      bytes_accessed=weight_bytes + io_bytes),
    )(x, eps, *flat)

    if b_pad != B:
        recon, mu, log_var = recon[:B], mu[:B], log_var[:B]
    return recon, mu, log_var


# ------------------------- pure-JAX reference ------------------------------

def vae_reference(params, x, eps):
    """Mirrors the kernel math (bf16 matmuls, fp32 accumulate/epilogue)."""
    def leaky(y):
        return jnp.where(y > 0, y, 0.2 * y)

    def dense(h, name):
        w, b = params[name]
        y = jnp.dot(h.astype(w.dtype), w, preferred_element_type=jnp.float32)
        return leaky(y + b)

    h = dense(x, "fc1"); h = dense(h, "fc2"); h = dense(h, "fc3")
    mu = dense(h, "fc41"); log_var = dense(h, "fc42")
    z = mu + eps * jnp.exp(0.5 * log_var)
    h = dense(z, "fc5"); h = dense(h, "fc6"); h = dense(h, "fc7")
    h = dense(h, "fc8")
    return jax.nn.sigmoid(h), mu, log_var


# ----------------------------- parameter init ------------------------------

def init_linear(key, in_f, out_f):
    """PyTorch-default uniform(-1/sqrt(fan_in), 1/sqrt(fan_in)) init.

    Weights pre-transposed to (in, out) and stored bf16 for the MXU; biases
    stay fp32 (epilogue math is fp32).
    """
    kw, kb = jax.random.split(key)
    bound = 1.0 / float(in_f) ** 0.5
    w = jax.random.uniform(kw, (in_f, out_f), jnp.float32, -bound, bound)
    b = jax.random.uniform(kb, (1, out_f), jnp.float32, -bound, bound)
    return w.astype(jnp.bfloat16), b


if __name__ == "__main__":
    # Small dims consistent with the module's FC graph (the 1024 hidden size
    # is fixed by the module); B=256 exercises the batched grid (2 x 128 tiles).
    B, x_dim, h_dim1, h_dim2, z_dim = 256, 256, 128, 64, 32

    key = jax.random.PRNGKey(0)
    keys = jax.random.split(key, 11)

    layer_dims = [
        ("fc1", x_dim, 1024), ("fc2", 1024, h_dim1), ("fc3", h_dim1, h_dim2),
        ("fc41", h_dim2, z_dim), ("fc42", h_dim2, z_dim),
        ("fc5", z_dim, h_dim2), ("fc6", h_dim2, h_dim1),
        ("fc7", h_dim1, 1024), ("fc8", 1024, x_dim),
    ]
    params = {name: init_linear(k, i, o)
              for k, (name, i, o) in zip(keys[:9], layer_dims)}

    x = jax.random.uniform(keys[9], (B, x_dim), jnp.float32)
    eps = jax.random.normal(keys[10], (B, z_dim), jnp.float32)   # randn_like(std)

    recon, mu, log_var = jax.jit(vae_forward)(params, x, eps)
    jax.block_until_ready((recon, mu, log_var))

    assert recon.shape == (B, x_dim)
    assert mu.shape == (B, z_dim) and log_var.shape == (B, z_dim)
    assert bool(jnp.all(jnp.isfinite(recon)))
    assert bool(jnp.all((recon >= 0.0) & (recon <= 1.0)))

    # Correctness vs a pure-JAX reference using the same precision path.
    r_ref, mu_r, lv_r = jax.jit(vae_reference)(params, x, eps)
    assert float(jnp.max(jnp.abs(recon - r_ref))) < 5e-2
    assert float(jnp.max(jnp.abs(mu - mu_r))) < 5e-2
    assert float(jnp.max(jnp.abs(log_var - lv_r))) < 5e-2

    print("KERNEL_OK")
</pallas_src>

<mosaic_0001>
module attributes {stable_mosaic.version = 11 : i64} {
  func.func @_vae_fused_kernel(%arg0: i32, %arg1: memref<128x256xf32, #tpu.memory_space<vmem>>, %arg2: memref<128x32xf32, #tpu.memory_space<vmem>>, %arg3: memref<256x1024xbf16, #tpu.memory_space<vmem>>, %arg4: memref<1x1024xf32, #tpu.memory_space<vmem>>, %arg5: memref<1024x128xbf16, #tpu.memory_space<vmem>>, %arg6: memref<1x128xf32, #tpu.memory_space<vmem>>, %arg7: memref<128x64xbf16, #tpu.memory_space<vmem>>, %arg8: memref<1x64xf32, #tpu.memory_space<vmem>>, %arg9: memref<64x32xbf16, #tpu.memory_space<vmem>>, %arg10: memref<1x32xf32, #tpu.memory_space<vmem>>, %arg11: memref<64x32xbf16, #tpu.memory_space<vmem>>, %arg12: memref<1x32xf32, #tpu.memory_space<vmem>>, %arg13: memref<32x64xbf16, #tpu.memory_space<vmem>>, %arg14: memref<1x64xf32, #tpu.memory_space<vmem>>, %arg15: memref<64x128xbf16, #tpu.memory_space<vmem>>, %arg16: memref<1x128xf32, #tpu.memory_space<vmem>>, %arg17: memref<128x1024xbf16, #tpu.memory_space<vmem>>, %arg18: memref<1x1024xf32, #tpu.memory_space<vmem>>, %arg19: memref<1024x256xbf16, #tpu.memory_space<vmem>>, %arg20: memref<1x256xf32, #tpu.memory_space<vmem>>, %arg21: memref<128x256xf32, #tpu.memory_space<vmem>>, %arg22: memref<128x32xf32, #tpu.memory_space<vmem>>, %arg23: memref<128x32xf32, #tpu.memory_space<vmem>>) attributes {dimension_semantics = [#tpu.dimension_semantics<parallel>], iteration_bounds = array<i64: 2>, scalar_prefetch = 0 : i64, scratch_operands = 0 : i64, tpu.core_type = #tpu.core_type<tc>, window_params = [{transform_indices = @transform_0, window_bounds = array<i64: 128, 256>}, {transform_indices = @transform_1, window_bounds = array<i64: 128, 32>}, {pipeline_mode = #tpu.pipeline_mode<synchronous>, transform_indices = @transform_2, window_bounds = array<i64: 256, 1024>}, {pipeline_mode = #tpu.pipeline_mode<synchronous>, transform_indices = @transform_3, window_bounds = array<i64: 1, 1024>}, {pipeline_mode = #tpu.pipeline_mode<synchronous>, transform_indices = @transform_4, window_bounds = array<i64: 1024, 128>}, {pipeline_mode = #tpu.pipeline_mode<synchronous>, transform_indices = @transform_5, window_bounds = array<i64: 1, 128>}, {pipeline_mode = #tpu.pipeline_mode<synchronous>, transform_indices = @transform_6, window_bounds = array<i64: 128, 64>}, {pipeline_mode = #tpu.pipeline_mode<synchronous>, transform_indices = @transform_7, window_bounds = array<i64: 1, 64>}, {pipeline_mode = #tpu.pipeline_mode<synchronous>, transform_indices = @transform_8, window_bounds = array<i64: 64, 32>}, {pipeline_mode = #tpu.pipeline_mode<synchronous>, transform_indices = @transform_9, window_bounds = array<i64: 1, 32>}, {pipeline_mode = #tpu.pipeline_mode<synchronous>, transform_indices = @transform_10, window_bounds = array<i64: 64, 32>}, {pipeline_mode = #tpu.pipeline_mode<synchronous>, transform_indices = @transform_11, window_bounds = array<i64: 1, 32>}, {pipeline_mode = #tpu.pipeline_mode<synchronous>, transform_indices = @transform_12, window_bounds = array<i64: 32, 64>}, {pipeline_mode = #tpu.pipeline_mode<synchronous>, transform_indices = @transform_13, window_bounds = array<i64: 1, 64>}, {pipeline_mode = #tpu.pipeline_mode<synchronous>, transform_indices = @transform_14, window_bounds = array<i64: 64, 128>}, {pipeline_mode = #tpu.pipeline_mode<synchronous>, transform_indices = @transform_15, window_bounds = array<i64: 1, 128>}, {pipeline_mode = #tpu.pipeline_mode<synchronous>, transform_indices = @transform_16, window_bounds = array<i64: 128, 1024>}, {pipeline_mode = #tpu.pipeline_mode<synchronous>, transform_indices = @transform_17, window_bounds = array<i64: 1, 1024>}, {pipeline_mode = #tpu.pipeline_mode<synchronous>, transform_indices = @transform_18, window_bounds = array<i64: 1024, 256>}, {pipeline_mode = #tpu.pipeline_mode<synchronous>, transform_indices = @transform_19, window_bounds = array<i64: 1, 256>}, {transform_indices = @transform_20, window_bounds = array<i64: 128, 256>}, {transform_indices = @transform_21, window_bounds = array<i64: 128, 32>}, {transform_indices = @transform_22, window_bounds = array<i64: 128, 32>}]} {
    %c0 = arith.constant 0 : index
    %c0_0 = arith.constant 0 : index
    %0 = vector.load %arg1[%c0, %c0_0] : memref<128x256xf32, #tpu.memory_space<vmem>>, vector<128x256xf32>
    %1 = arith.truncf %0 : vector<128x256xf32> to vector<128x256xbf16>
    %c0_1 = arith.constant 0 : index
    %c0_2 = arith.constant 0 : index
    %2 = vector.load %arg3[%c0_1, %c0_2] : memref<256x1024xbf16, #tpu.memory_space<vmem>>, vector<256x1024xbf16>
    %cst = arith.constant dense<0.000000e+00> : vector<128x1024xf32>
    %3 = tpu.matmul %1, %2, %cst {dimension_numbers = #tpu.dot_dimension_numbers<[1], [0], [0], [1], [0, 0, 1, 1], [], []>} : vector<128x256xbf16>, vector<256x1024xbf16>, vector<128x1024xf32> -> vector<128x1024xf32>
    %c0_3 = arith.constant 0 : index
    %c0_4 = arith.constant 0 : index
    %4 = vector.load %arg4[%c0_3, %c0_4] : memref<1x1024xf32, #tpu.memory_space<vmem>>, vector<1x1024xf32>
    %5 = vector.broadcast %4 : vector<1x1024xf32> to vector<128x1024xf32>
    %6 = arith.addf %3, %5 : vector<128x1024xf32>
    %cst_5 = arith.constant 0.000000e+00 : f32
    %7 = vector.broadcast %cst_5 : f32 to vector<128x1024xf32>
    %8 = arith.cmpf ogt, %6, %7 : vector<128x1024xf32>
    %cst_6 = arith.constant 2.000000e-01 : f32
    %9 = vector.broadcast %cst_6 : f32 to vector<128x1024xf32>
    %10 = arith.mulf %9, %6 : vector<128x1024xf32>
    %11 = arith.select %8, %6, %10 : vector<128x1024xi1>, vector<128x1024xf32>
    %12 = arith.truncf %11 : vector<128x1024xf32> to vector<128x1024xbf16>
    %c0_7 = arith.constant 0 : index
    %c0_8 = arith.constant 0 : index
    %13 = vector.load %arg5[%c0_7, %c0_8] : memref<1024x128xbf16, #tpu.memory_space<vmem>>, vector<1024x128xbf16>
    %cst_9 = arith.constant dense<0.000000e+00> : vector<128x128xf32>
    %14 = tpu.matmul %12, %13, %cst_9 {dimension_numbers = #tpu.dot_dimension_numbers<[1], [0], [0], [1], [0, 0, 1, 1], [], []>} : vector<128x1024xbf16>, vector<1024x128xbf16>, vector<128x128xf32> -> vector<128x128xf32>
    %c0_10 = arith.constant 0 : index
    %c0_11 = arith.constant 0 : index
    %15 = vector.load %arg6[%c0_10, %c0_11] : memref<1x128xf32, #tpu.memory_space<vmem>>, vector<1x128xf32>
    %16 = vector.broadcast %15 : vector<1x128xf32> to vector<128x128xf32>
    %17 = arith.addf %14, %16 : vector<128x128xf32>
    %cst_12 = arith.constant 0.000000e+00 : f32
    %18 = vector.broadcast %cst_12 : f32 to vector<128x128xf32>
    %19 = arith.cmpf ogt, %17, %18 : vector<128x128xf32>
    %cst_13 = arith.constant 2.000000e-01 : f32
    %20 = vector.broadcast %cst_13 : f32 to vector<128x128xf32>
    %21 = arith.mulf %20, %17 : vector<128x128xf32>
    %22 = arith.select %19, %17, %21 : vector<128x128xi1>, vector<128x128xf32>
    %23 = arith.truncf %22 : vector<128x128xf32> to vector<128x128xbf16>
    %c0_14 = arith.constant 0 : index
    %c0_15 = arith.constant 0 : index
    %24 = vector.load %arg7[%c0_14, %c0_15] : memref<128x64xbf16, #tpu.memory_space<vmem>>, vector<128x64xbf16>
    %cst_16 = arith.constant dense<0.000000e+00> : vector<128x64xf32>
    %25 = tpu.matmul %23, %24, %cst_16 {dimension_numbers = #tpu.dot_dimension_numbers<[1], [0], [0], [1], [0, 0, 1, 1], [], []>} : vector<128x128xbf16>, vector<128x64xbf16>, vector<128x64xf32> -> vector<128x64xf32>
    %c0_17 = arith.constant 0 : index
    %c0_18 = arith.constant 0 : index
    %26 = vector.load %arg8[%c0_17, %c0_18] : memref<1x64xf32, #tpu.memory_space<vmem>>, vector<1x64xf32>
    %27 = vector.broadcast %26 : vector<1x64xf32> to vector<128x64xf32>
    %28 = arith.addf %25, %27 : vector<128x64xf32>
    %cst_19 = arith.constant 0.000000e+00 : f32
    %29 = vector.broadcast %cst_19 : f32 to vector<128x64xf32>
    %30 = arith.cmpf ogt, %28, %29 : vector<128x64xf32>
    %cst_20 = arith.constant 2.000000e-01 : f32
    %31 = vector.broadcast %cst_20 : f32 to vector<128x64xf32>
    %32 = arith.mulf %31, %28 : vector<128x64xf32>
    %33 = arith.select %30, %28, %32 : vector<128x64xi1>, vector<128x64xf32>
    %34 = arith.truncf %33 : vector<128x64xf32> to vector<128x64xbf16>
    %c0_21 = arith.constant 0 : index
    %c0_22 = arith.constant 0 : index
    %35 = vector.load %arg9[%c0_21, %c0_22] : memref<64x32xbf16, #tpu.memory_space<vmem>>, vector<64x32xbf16>
    %cst_23 = arith.constant dense<0.000000e+00> : vector<128x32xf32>
    %36 = tpu.matmul %34, %35, %cst_23 {dimension_numbers = #tpu.dot_dimension_numbers<[1], [0], [0], [1], [0, 0, 1, 1], [], []>} : vector<128x64xbf16>, vector<64x32xbf16>, vector<128x32xf32> -> vector<128x32xf32>
    %c0_24 = arith.constant 0 : index
    %c0_25 = arith.constant 0 : index
    %37 = vector.load %arg10[%c0_24, %c0_25] : memref<1x32xf32, #tpu.memory_space<vmem>>, vector<1x32xf32>
    %38 = vector.broadcast %37 : vector<1x32xf32> to vector<128x32xf32>
    %39 = arith.addf %36, %38 : vector<128x32xf32>
    %cst_26 = arith.constant 0.000000e+00 : f32
    %40 = vector.broadcast %cst_26 : f32 to vector<128x32xf32>
    %41 = arith.cmpf ogt, %39, %40 : vector<128x32xf32>
    %cst_27 = arith.constant 2.000000e-01 : f32
    %42 = vector.broadcast %cst_27 : f32 to vector<128x32xf32>
    %43 = arith.mulf %42, %39 : vector<128x32xf32>
    %44 = arith.select %41, %39, %43 : vector<128x32xi1>, vector<128x32xf32>
    %45 = arith.truncf %33 : vector<128x64xf32> to vector<128x64xbf16>
    %c0_28 = arith.constant 0 : index
    %c0_29 = arith.constant 0 : index
    %46 = vector.load %arg11[%c0_28, %c0_29] : memref<64x32xbf16, #tpu.memory_space<vmem>>, vector<64x32xbf16>
    %cst_30 = arith.constant dense<0.000000e+00> : vector<128x32xf32>
    %47 = tpu.matmul %45, %46, %cst_30 {dimension_numbers = #tpu.dot_dimension_numbers<[1], [0], [0], [1], [0, 0, 1, 1], [], []>} : vector<128x64xbf16>, vector<64x32xbf16>, vector<128x32xf32> -> vector<128x32xf32>
    %c0_31 = arith.constant 0 : index
    %c0_32 = arith.constant 0 : index
    %48 = vector.load %arg12[%c0_31, %c0_32] : memref<1x32xf32, #tpu.memory_space<vmem>>, vector<1x32xf32>
    %49 = vector.broadcast %48 : vector<1x32xf32> to vector<128x32xf32>
    %50 = arith.addf %47, %49 : vector<128x32xf32>
    %cst_33 = arith.constant 0.000000e+00 : f32
    %51 = vector.broadcast %cst_33 : f32 to vector<128x32xf32>
    %52 = arith.cmpf ogt, %50, %51 : vector<128x32xf32>
    %cst_34 = arith.constant 2.000000e-01 : f32
    %53 = vector.broadcast %cst_34 : f32 to vector<128x32xf32>
    %54 = arith.mulf %53, %50 : vector<128x32xf32>
    %55 = arith.select %52, %50, %54 : vector<128x32xi1>, vector<128x32xf32>
    %c0_35 = arith.constant 0 : index
    %c0_36 = arith.constant 0 : index
    %56 = vector.load %arg2[%c0_35, %c0_36] : memref<128x32xf32, #tpu.memory_space<vmem>>, vector<128x32xf32>
    %cst_37 = arith.constant 5.000000e-01 : f32
    %57 = vector.broadcast %cst_37 : f32 to vector<128x32xf32>
    %58 = arith.mulf %57, %55 : vector<128x32xf32>
    %59 = math.exp %58 : vector<128x32xf32>
    %60 = arith.mulf %56, %59 : vector<128x32xf32>
    %61 = arith.addf %44, %60 : vector<128x32xf32>
    %62 = arith.truncf %61 : vector<128x32xf32> to vector<128x32xbf16>
    %c0_38 = arith.constant 0 : index
    %c0_39 = arith.constant 0 : index
    %63 = vector.load %arg13[%c0_38, %c0_39] : memref<32x64xbf16, #tpu.memory_space<vmem>>, vector<32x64xbf16>
    %cst_40 = arith.constant dense<0.000000e+00> : vector<128x64xf32>
    %64 = tpu.matmul %62, %63, %cst_40 {dimension_numbers = #tpu.dot_dimension_numbers<[1], [0], [0], [1], [0, 0, 1, 1], [], []>} : vector<128x32xbf16>, vector<32x64xbf16>, vector<128x64xf32> -> vector<128x64xf32>
    %c0_41 = arith.constant 0 : index
    %c0_42 = arith.constant 0 : index
    %65 = vector.load %arg14[%c0_41, %c0_42] : memref<1x64xf32, #tpu.memory_space<vmem>>, vector<1x64xf32>
    %66 = vector.broadcast %65 : vector<1x64xf32> to vector<128x64xf32>
    %67 = arith.addf %64, %66 : vector<128x64xf32>
    %cst_43 = arith.constant 0.000000e+00 : f32
    %68 = vector.broadcast %cst_43 : f32 to vector<128x64xf32>
    %69 = arith.cmpf ogt, %67, %68 : vector<128x64xf32>
    %cst_44 = arith.constant 2.000000e-01 : f32
    %70 = vector.broadcast %cst_44 : f32 to vector<128x64xf32>
    %71 = arith.mulf %70, %67 : vector<128x64xf32>
    %72 = arith.select %69, %67, %71 : vector<128x64xi1>, vector<128x64xf32>
    %73 = arith.truncf %72 : vector<128x64xf32> to vector<128x64xbf16>
    %c0_45 = arith.constant 0 : index
    %c0_46 = arith.constant 0 : index
    %74 = vector.load %arg15[%c0_45, %c0_46] : memref<64x128xbf16, #tpu.memory_space<vmem>>, vector<64x128xbf16>
    %cst_47 = arith.constant dense<0.000000e+00> : vector<128x128xf32>
    %75 = tpu.matmul %73, %74, %cst_47 {dimension_numbers = #tpu.dot_dimension_numbers<[1], [0], [0], [1], [0, 0, 1, 1], [], []>} : vector<128x64xbf16>, vector<64x128xbf16>, vector<128x128xf32> -> vector<128x128xf32>
    %c0_48 = arith.constant 0 : index
    %c0_49 = arith.constant 0 : index
    %76 = vector.load %arg16[%c0_48, %c0_49] : memref<1x128xf32, #tpu.memory_space<vmem>>, vector<1x128xf32>
    %77 = vector.broadcast %76 : vector<1x128xf32> to vector<128x128xf32>
    %78 = arith.addf %75, %77 : vector<128x128xf32>
    %cst_50 = arith.constant 0.000000e+00 : f32
    %79 = vector.broadcast %cst_50 : f32 to vector<128x128xf32>
    %80 = arith.cmpf ogt, %78, %79 : vector<128x128xf32>
    %cst_51 = arith.constant 2.000000e-01 : f32
    %81 = vector.broadcast %cst_51 : f32 to vector<128x128xf32>
    %82 = arith.mulf %81, %78 : vector<128x128xf32>
    %83 = arith.select %80, %78, %82 : vector<128x128xi1>, vector<128x128xf32>
    %84 = arith.truncf %83 : vector<128x128xf32> to vector<128x128xbf16>
    %c0_52 = arith.constant 0 : index
    %c0_53 = arith.constant 0 : index
    %85 = vector.load %arg17[%c0_52, %c0_53] : memref<128x1024xbf16, #tpu.memory_space<vmem>>, vector<128x1024xbf16>
    %cst_54 = arith.constant dense<0.000000e+00> : vector<128x1024xf32>
    %86 = tpu.matmul %84, %85, %cst_54 {dimension_numbers = #tpu.dot_dimension_numbers<[1], [0], [0], [1], [0, 0, 1, 1], [], []>} : vector<128x128xbf16>, vector<128x1024xbf16>, vector<128x1024xf32> -> vector<128x1024xf32>
    %c0_55 = arith.constant 0 : index
    %c0_56 = arith.constant 0 : index
    %87 = vector.load %arg18[%c0_55, %c0_56] : memref<1x1024xf32, #tpu.memory_space<vmem>>, vector<1x1024xf32>
    %88 = vector.broadcast %87 : vector<1x1024xf32> to vector<128x1024xf32>
    %89 = arith.addf %86, %88 : vector<128x1024xf32>
    %cst_57 = arith.constant 0.000000e+00 : f32
    %90 = vector.broadcast %cst_57 : f32 to vector<128x1024xf32>
    %91 = arith.cmpf ogt, %89, %90 : vector<128x1024xf32>
    %cst_58 = arith.constant 2.000000e-01 : f32
    %92 = vector.broadcast %cst_58 : f32 to vector<128x1024xf32>
    %93 = arith.mulf %92, %89 : vector<128x1024xf32>
    %94 = arith.select %91, %89, %93 : vector<128x1024xi1>, vector<128x1024xf32>
    %95 = arith.truncf %94 : vector<128x1024xf32> to vector<128x1024xbf16>
    %c0_59 = arith.constant 0 : index
    %c0_60 = arith.constant 0 : index
    %96 = vector.load %arg19[%c0_59, %c0_60] : memref<1024x256xbf16, #tpu.memory_space<vmem>>, vector<1024x256xbf16>
    %cst_61 = arith.constant dense<0.000000e+00> : vector<128x256xf32>
    %97 = tpu.matmul %95, %96, %cst_61 {dimension_numbers = #tpu.dot_dimension_numbers<[1], [0], [0], [1], [0, 0, 1, 1], [], []>} : vector<128x1024xbf16>, vector<1024x256xbf16>, vector<128x256xf32> -> vector<128x256xf32>
    %c0_62 = arith.constant 0 : index
    %c0_63 = arith.constant 0 : index
    %98 = vector.load %arg20[%c0_62, %c0_63] : memref<1x256xf32, #tpu.memory_space<vmem>>, vector<1x256xf32>
    %99 = vector.broadcast %98 : vector<1x256xf32> to vector<128x256xf32>
    %100 = arith.addf %97, %99 : vector<128x256xf32>
    %cst_64 = arith.constant 0.000000e+00 : f32
    %101 = vector.broadcast %cst_64 : f32 to vector<128x256xf32>
    %102 = arith.cmpf ogt, %100, %101 : vector<128x256xf32>
    %cst_65 = arith.constant 2.000000e-01 : f32
    %103 = vector.broadcast %cst_65 : f32 to vector<128x256xf32>
    %104 = arith.mulf %103, %100 : vector<128x256xf32>
    %105 = arith.select %102, %100, %104 : vector<128x256xi1>, vector<128x256xf32>
    %106 = arith.negf %105 : vector<128x256xf32>
    %107 = math.exp %106 : vector<128x256xf32>
    %cst_66 = arith.constant 1.000000e+00 : f32
    %108 = vector.broadcast %cst_66 : f32 to vector<128x256xf32>
    %109 = arith.addf %108, %107 : vector<128x256xf32>
    %110 = arith.divf %108, %109 : vector<128x256xf32>
    %c0_67 = arith.constant 0 : index
    %c0_68 = arith.constant 0 : index
    %111 = vector.load %arg21[%c0_67, %c0_68] : memref<128x256xf32, #tpu.memory_space<vmem>>, vector<128x256xf32>
    tpu.vector_store %arg21[%c0_67, %c0_68], %110 {strides = array<i32>} : memref<128x256xf32, #tpu.memory_space<vmem>>, vector<128x256xf32>,
    %c0_69 = arith.constant 0 : index
    %c0_70 = arith.constant 0 : index
    %112 = vector.load %arg22[%c0_69, %c0_70] : memref<128x32xf32, #tpu.memory_space<vmem>>, vector<128x32xf32>
    tpu.vector_store %arg22[%c0_69, %c0_70], %44 {strides = array<i32>} : memref<128x32xf32, #tpu.memory_space<vmem>>, vector<128x32xf32>,
    %c0_71 = arith.constant 0 : index
    %c0_72 = arith.constant 0 : index
    %113 = vector.load %arg23[%c0_71, %c0_72] : memref<128x32xf32, #tpu.memory_space<vmem>>, vector<128x32xf32>
    tpu.vector_store %arg23[%c0_71, %c0_72], %55 {strides = array<i32>} : memref<128x32xf32, #tpu.memory_space<vmem>>, vector<128x32xf32>,
    return
  }
  func.func @transform_0(%arg0: i32) -> (i32, i32) {
    %c0_i32 = arith.constant 0 : i32
    %c0_i32_0 = arith.constant 0 : i32
    return %arg0, %c0_i32 : i32, i32
  }
  func.func @transform_1(%arg0: i32) -> (i32, i32) {
    %c0_i32 = arith.constant 0 : i32
    %c0_i32_0 = arith.constant 0 : i32
    return %arg0, %c0_i32 : i32, i32
  }
  func.func @transform_2(%arg0: i32) -> (i32, i32) {
    %c0_i32 = arith.constant 0 : i32
    %c0_i32_0 = arith.constant 0 : i32
    %c0_i32_1 = arith.constant 0 : i32
    return %c0_i32, %c0_i32_0 : i32, i32
  }
  func.func @transform_3(%arg0: i32) -> (i32, i32) {
    %c0_i32 = arith.constant 0 : i32
    %c0_i32_0 = arith.constant 0 : i32
    %c0_i32_1 = arith.constant 0 : i32
    return %c0_i32, %c0_i32_0 : i32, i32
  }
  func.func @transform_4(%arg0: i32) -> (i32, i32) {
    %c0_i32 = arith.constant 0 : i32
    %c0_i32_0 = arith.constant 0 : i32
    %c0_i32_1 = arith.constant 0 : i32
    return %c0_i32, %c0_i32_0 : i32, i32
  }
  func.func @transform_5(%arg0: i32) -> (i32, i32) {
    %c0_i32 = arith.constant 0 : i32
    %c0_i32_0 = arith.constant 0 : i32
    %c0_i32_1 = arith.constant 0 : i32
    return %c0_i32, %c0_i32_0 : i32, i32
  }
  func.func @transform_6(%arg0: i32) -> (i32, i32) {
    %c0_i32 = arith.constant 0 : i32
    %c0_i32_0 = arith.constant 0 : i32
    %c0_i32_1 = arith.constant 0 : i32
    return %c0_i32, %c0_i32_0 : i32, i32
  }
  func.func @transform_7(%arg0: i32) -> (i32, i32) {
    %c0_i32 = arith.constant 0 : i32
    %c0_i32_0 = arith.constant 0 : i32
    %c0_i32_1 = arith.constant 0 : i32
    return %c0_i32, %c0_i32_0 : i32, i32
  }
  func.func @transform_8(%arg0: i32) -> (i32, i32) {
    %c0_i32 = arith.constant 0 : i32
    %c0_i32_0 = arith.constant 0 : i32
    %c0_i32_1 = arith.constant 0 : i32
    return %c0_i32, %c0_i32_0 : i32, i32
  }
  func.func @transform_9(%arg0: i32) -> (i32, i32) {
    %c0_i32 = arith.constant 0 : i32
    %c0_i32_0 = arith.constant 0 : i32
    %c0_i32_1 = arith.constant 0 : i32
    return %c0_i32, %c0_i32_0 : i32, i32
  }
  func.func @transform_10(%arg0: i32) -> (i32, i32) {
    %c0_i32 = arith.constant 0 : i32
    %c0_i32_0 = arith.constant 0 : i32
    %c0_i32_1 = arith.constant 0 : i32
    return %c0_i32, %c0_i32_0 : i32, i32
  }
  func.func @transform_11(%arg0: i32) -> (i32, i32) {
    %c0_i32 = arith.constant 0 : i32
    %c0_i32_0 = arith.constant 0 : i32
    %c0_i32_1 = arith.constant 0 : i32
    return %c0_i32, %c0_i32_0 : i32, i32
  }
  func.func @transform_12(%arg0: i32) -> (i32, i32) {
    %c0_i32 = arith.constant 0 : i32
    %c0_i32_0 = arith.constant 0 : i32
    %c0_i32_1 = arith.constant 0 : i32
    return %c0_i32, %c0_i32_0 : i32, i32
  }
  func.func @transform_13(%arg0: i32) -> (i32, i32) {
    %c0_i32 = arith.constant 0 : i32
    %c0_i32_0 = arith.constant 0 : i32
    %c0_i32_1 = arith.constant 0 : i32
    return %c0_i32, %c0_i32_0 : i32, i32
  }
  func.func @transform_14(%arg0: i32) -> (i32, i32) {
    %c0_i32 = arith.constant 0 : i32
    %c0_i32_0 = arith.constant 0 : i32
    %c0_i32_1 = arith.constant 0 : i32
    return %c0_i32, %c0_i32_0 : i32, i32
  }
  func.func @transform_15(%arg0: i32) -> (i32, i32) {
    %c0_i32 = arith.constant 0 : i32
    %c0_i32_0 = arith.constant 0 : i32
    %c0_i32_1 = arith.constant 0 : i32
    return %c0_i32, %c0_i32_0 : i32, i32
  }
  func.func @transform_16(%arg0: i32) -> (i32, i32) {
    %c0_i32 = arith.constant 0 : i32
    %c0_i32_0 = arith.constant 0 : i32
    %c0_i32_1 = arith.constant 0 : i32
    return %c0_i32, %c0_i32_0 : i32, i32
  }
  func.func @transform_17(%arg0: i32) -> (i32, i32) {
    %c0_i32 = arith.constant 0 : i32
    %c0_i32_0 = arith.constant 0 : i32
    %c0_i32_1 = arith.constant 0 : i32
    return %c0_i32, %c0_i32_0 : i32, i32
  }
  func.func @transform_18(%arg0: i32) -> (i32, i32) {
    %c0_i32 = arith.constant 0 : i32
    %c0_i32_0 = arith.constant 0 : i32
    %c0_i32_1 = arith.constant 0 : i32
    return %c0_i32, %c0_i32_0 : i32, i32
  }
  func.func @transform_19(%arg0: i32) -> (i32, i32) {
    %c0_i32 = arith.constant 0 : i32
    %c0_i32_0 = arith.constant 0 : i32
    %c0_i32_1 = arith.constant 0 : i32
    return %c0_i32, %c0_i32_0 : i32, i32
  }
  func.func @transform_20(%arg0: i32) -> (i32, i32) {
    %c0_i32 = arith.constant 0 : i32
    %c0_i32_0 = arith.constant 0 : i32
    return %arg0, %c0_i32 : i32, i32
  }
  func.func @transform_21(%arg0: i32) -> (i32, i32) {
    %c0_i32 = arith.constant 0 : i32
    %c0_i32_0 = arith.constant 0 : i32
    return %arg0, %c0_i32 : i32, i32
  }
  func.func @transform_22(%arg0: i32) -> (i32, i32) {
    %c0_i32 = arith.constant 0 : i32
    %c0_i32_0 = arith.constant 0 : i32
    return %arg0, %c0_i32 : i32, i32
  }
}

</mosaic_0001>

<bundles_post_ra>
// kernel: vae_forward.1
= control target key start
LH: loop header
LB: loop body
LE: loop exit
PB: predicated region body
PF: predicated region fallthrough
CT: control target
= control target key end

     0   :  { %s14453_s0 = inlined_call_operand.vmem [shape: f32[256,256], index: 0, kind: input, shape index: {}]   ;;  %s14454_s1 = inlined_call_operand.vmem [shape: f32[256,32], index: 1, kind: input, shape index: {}]   ;;  %s14455_s2 = inlined_call_operand.hbm [shape: bf16[256,1024], index: 2, kind: input, shape index: {}]   ;;  %s14456_s3 = inlined_call_operand.hbm [shape: f32[1,1024], index: 3, kind: input, shape index: {}]   ;;  %s14457_s4 = inlined_call_operand.hbm [shape: bf16[1024,128], index: 4, kind: input, shape index: {}]   ;;  %s14458_s5 = inlined_call_operand.vmem [shape: f32[1,128], index: 5, kind: input, shape index: {}]   ;;  %s14459_s6 = inlined_call_operand.vmem [shape: bf16[128,64], index: 6, kind: input, shape index: {}]   ;;  %s14460_s7 = inlined_call_operand.hbm [shape: f32[1,64], index: 7, kind: input, shape index: {}]   ;;  %s14461_s8 = inlined_call_operand.vmem [shape: bf16[64,32], index: 8, kind: input, shape index: {}]   ;;  %s14462_s9 = inlined_call_operand.hbm [shape: f32[1,32], index: 9, kind: input, shape index: {}]   ;;  %s14463_s10 = inlined_call_operand.vmem [shape: bf16[64,32], index: 10, kind: input, shape index: {}]   ;;  %s14464_s11 = inlined_call_operand.hbm [shape: f32[1,32], index: 11, kind: input, shape index: {}]   ;;  %s14465_s12 = inlined_call_operand.vmem [shape: bf16[32,64], index: 12, kind: input, shape index: {}]   ;;  %s14466_s13 = inlined_call_operand.hbm [shape: f32[1,64], index: 13, kind: input, shape index: {}]   ;;  %s14467_s14 = inlined_call_operand.hbm [shape: bf16[64,128], index: 14, kind: input, shape index: {}]   ;;  %s14468_s15 = inlined_call_operand.hbm [shape: f32[1,128], index: 15, kind: input, shape index: {}]   ;;  %s14469_s16 = inlined_call_operand.hbm [shape: bf16[128,1024], index: 16, kind: input, shape index: {}]   ;;  %s14470_s17 = inlined_call_operand.hbm [shape: f32[1,1024], index: 17, kind: input, shape index: {}]   ;;  %s14471_s18 = inlined_call_operand.hbm [shape: bf16[1024,256], index: 18, kind: input, shape index: {}]   ;;  %s14472_s19 = inlined_call_operand.hbm [shape: f32[1,256], index: 19, kind: input, shape index: {}]   ;;  %s14473_s20 = inlined_call_operand.hbm [shape: f32[256,256], index: 20, kind: output, shape index: {0}]   ;;  %s14474_s21 = inlined_call_operand.vmem [shape: f32[256,32], index: 21, kind: output, shape index: {1}]   ;;  %s14475_s22 = inlined_call_operand.vmem [shape: f32[256,32], index: 22, kind: output, shape index: {2}]  }
   0x1   :  { %14583 = sst [smem:[#allocation90_spill]] %s14453_s0 }
   0x2   :  { %14584 = sst [smem:[#allocation91_spill]] %s14454_s1 }
   0x3   :  { %14585 = sst [smem:[#allocation92_spill]] %s14455_s2 }
   0x4   :  { %14586 = sst [smem:[#allocation93_spill]] %s14456_s3 }
   0x5   :  { %14587 = sst [smem:[#allocation94_spill]] %s14457_s4 }
   0x6   :  { %14588 = sst [smem:[#allocation95_spill]] %s14458_s5 }
   0x7   :  { %14589 = sst [smem:[#allocation96_spill]] %s14459_s6 }
   0x8   :  { %14590 = sst [smem:[#allocation97_spill]] %s14460_s7 }
   0x9   :  { %14591 = sst [smem:[#allocation98_spill]] %s14464_s11 }
   0xa   :  { %14592 = sst [smem:[#allocation99_spill]] %s14467_s14 }
   0xb   :  { %14593 = sst [smem:[#allocation100_spill]] %s14469_s16 }
   0xc   :  { %14594 = sst [smem:[#allocation101_spill]] %s14471_s18 }
   0xd   :  { %14595 = sst [smem:[#allocation102_spill]] %s14473_s20 }
   0xe   :  { %14596 = sst [smem:[#allocation103_spill]] %s14475_s22 }
   0xf   :  { %28 = vsyncpa [#allocation3], 0 }
  0x10   :  { %29 = vsyncpa [#allocation6], 0 }
  0x11   :  { %30 = vsyncpa [#allocation9], 0 }
  0x12   :  { %31 = vsyncpa [#allocation12], 0 }
  0x13   :  { %32 = vsyncpa [#allocation15], 0 }
  0x14   :  { %33 = vsyncpa [#allocation18], 0 }
  0x15   :  { %34 = vsyncpa [#allocation21], 0 }
  0x16   :  { %35 = vsyncpa [#allocation4], 0 }
  0x17   :  { %37 = vsyncpa [#allocation4 + $0x1], 0  ;;  %s11835_s3 = smov 0   ;;  %s11837_s28 = smov 0  }
  0x18   :  { %s11839_s29 = smov 0   ;;  %s11841_s30 = smov 0  }
  0x19 LB: > { %14597 = sst [smem:[#allocation32_spill]] %s11685_s3  ;;  %s11856_s4 = sadd.s32 4294967295, %s11697_s30   ;;  %s11697_s30 = sphi %s11841_s30, %s14881_s30   ;;  %s11693_s29 = sphi %s11839_s29, %s14884_s29   ;;  %s11689_s28 = sphi %s11837_s28, %s14883_s28   ;;  %s11685_s3 = sphi %s11835_s3, %s14882_s3  }
  0x1a   : > { %14598 = sst [smem:[#allocation33_spill]] %s11689_s28  ;;  %s8703_s0 = sadd.s32 4294967294, %s11697_s30  }
  0x1b   : > { %14599 = sst [smem:[#allocation34_spill]] %s11693_s29  ;;  %s11860_s23 = sadd.s32 1, %s11697_s30  }
  0x1c   : > { %14600 = sst [smem:[#allocation35_spill]] %s11697_s30  ;;  %s480_s1 = sadd.s32 1, %s11693_s29 }
  0x1d   : > { %14601 = sst [smem:[#allocation36_spill]] %s11860_s23  ;;  %s477_s5 = ssub.s32 %s11697_s30, %s11860_s23 }
  0x1e   : > { %p490_p0 = scmp.ne.s32.totalorder %s11693_s29, %s11689_s28  ;;  %p478_p1 = scmp.eq.s32.totalorder %s477_s5, 0 }
  0x1f   : > { %p491_p2 = scmp.eq.s32.totalorder %s11856_s4, 1  ;;  %p496_p3 = scmp.ne.s32.totalorder %s11689_s28, %s11685_s3 }
  0x20   : > { %p497_p4 = scmp.eq.s32.totalorder %s8703_s0, 1  ;;  %p8704_p7 = scmp.ge.s32.totalorder %s11697_s30, 1 }
  0x21   : > { %s11871_s24 = scalar_select %p478_p1, %s11693_s29, %s480_s1  }
  0x22   : > { %p11873_p5 = por %p491_p2, %p490_p0  ;;  %p11877_p6 = por %p497_p4, %p496_p3 }
  0x23   : > { %14602 = sst [smem:[#allocation37_spill]] %s11871_s24  ;;  %p556_p8 = scmp.lt.s32.totalorder %s11697_s30, 3 }
  0x24   : > { %s14603_s6 = scalar_select %p11873_p5, 1, 0 }
  0x25   : > { %s14605_s25 = scalar_select %p11877_p6, 1, 0 }
  0x26   : > { %14604 = sst [smem:[#allocation38_spill]] %s14603_s6  ;;  %p10968_p9 = scmp.eq.s32.totalorder %s11856_s4, 0 }
  0x27   : > { %14606 = sst [smem:[#allocation39_spill]] %s14605_s25  ;;  %p11884_p10 = pnand %p8704_p7, %p556_p8 }
  0x28   : > { %s14608_s0 = sld [smem:[#allocation93_spill]]  ;;  %s11699_s5 = smov [#allocation5]  }
  0x29   : > { %p10924_p11 = pneg %p11884_p10  ;;  %s584_s24 = sshll.u32 %s11699_s5, 4  ;;  %s585_s24 = int_to_ptr.vmem [resolvable:$true] %s584_s24 }
  0x2a   : > { %s14609_s7 = sld [smem:[#allocation97_spill]]  ;;  %s11700_s30 = smov [#allocation8]  }
  0x2b   : > { %p11898_p12 = pnand %p10968_p9, %p10924_p11  ;;  %s14611_s11 = sld [smem:[#allocation98_spill]] }
  0x2c   : > { %s616_s5 = sshll.u32 %s11700_s30, 4  ;;  %s11701_s29 = smov [#allocation11]   ;;  %s617_s5 = int_to_ptr.vmem [resolvable:$true] %s616_s5 }
  0x2d   : > { %s646_s23 = sshll.u32 %s11701_s29, 4  ;;  %s14612_s14 = sld [smem:[#allocation99_spill]]  ;;  %s647_s23 = int_to_ptr.vmem [resolvable:$true] %s646_s23 }
  0x2e   : > { %s582_s1 = sshll.u32 %s14608_s0, 4  ;;  %s11702_s2 = smov [#allocation14]   ;;  %s583_s1 = int_to_ptr.hbm [resolvable:$true] %s582_s1 }
  0x2f   : > { %10930 = dma.hbm_to_vmem [thread:$0]  (!%p11898_p12), %s583_s1, 128, %s585_s24, [#allocation6]  }
  0x30   : > { %s614_s25 = sshll.u32 %s14609_s7, 4  ;;  %s672_s30 = sshll.u32 %s11702_s2, 4  ;;  %s615_s25 = int_to_ptr.hbm [resolvable:$true] %s614_s25  ;;  %s673_s30 = int_to_ptr.vmem [resolvable:$true] %s672_s30 }
  0x31   : > { %s644_s0 = sshll.u32 %s14611_s11, 4  ;;  %s14486_s27 = smov 64   ;;  %s645_s0 = int_to_ptr.hbm [resolvable:$true] %s644_s0 }
  0x32   : > { %10936 = dma.hbm_to_vmem [thread:$0]  (!%p11898_p12), %s615_s25, 16, %s617_s5, [#allocation9]  }
  0x33   : > { %s670_s20 = sshll.u32 %s14612_s14, 4  ;;  %s14487_s24 = smov 4   ;;  %s671_s20 = int_to_ptr.hbm [resolvable:$true] %s670_s20 }
  0x34   : > { %10942 = dma.hbm_to_vmem [thread:$0]  (!%p11898_p12), %s645_s0, 16, %s647_s23, [#allocation12]  }
  0x35   : > { %10948 = dma.hbm_to_vmem [thread:$0]  (!%p11898_p12), %s671_s20, 512, %s673_s30, [#allocation15], %s14486_s27, %s14486_s27, %s14487_s24  }
  0x36   : > { %s14613_s16 = sld [smem:[#allocation100_spill]]  ;;  %s11705_s6 = smov [#allocation17]  }
  0x37   : > { %s698_s0 = sshll.u32 %s11705_s6, 4  ;;  %s14614_s18 = sld [smem:[#allocation101_spill]]  ;;  %s699_s0 = int_to_ptr.vmem [resolvable:$true] %s698_s0 }
  0x38   : > { %s11706_s2 = smov 512   ;;  %s11707_s11 = smov 32  }
  0x39   : > { %s11708_s20 = smov [#allocation20]   ;;  %s11709_s25 = smov 128  }
  0x3a   : > { %s724_s30 = sshll.u32 %s11708_s20, 4  ;;  %s11710_s1 = smov 8   ;;  %s725_s30 = int_to_ptr.vmem [resolvable:$true] %s724_s30 }
  0x3b   : > { %s14615_s24 = sld [smem:[#allocation92_spill]]  ;;  %s11711_s5 = smov [#allocation2]  }
  0x3c   : > { %s696_s7 = sshll.u32 %s14613_s16, 4  ;;  %s569_s29 = sshll.u32 %s11711_s5, 4  ;;  %s697_s7 = int_to_ptr.hbm [resolvable:$true] %s696_s7  ;;  %s570_s29 = int_to_ptr.vmem [resolvable:$true] %s569_s29 }
  0x3d   : > { %s722_s23 = sshll.u32 %s14614_s18, 4  ;;  %s11712_s20 = smov [#allocation7]   ;;  %s723_s23 = int_to_ptr.hbm [resolvable:$true] %s722_s23 }
  0x3e   : > { %10954 = dma.hbm_to_vmem [thread:$0]  (!%p11898_p12), %s697_s7, 8192, %s699_s0, [#allocation18], %s11706_s2, %s11706_s2, %s11707_s11  }
  0x3f   : > { %10960 = dma.hbm_to_vmem [thread:$0]  (!%p11898_p12), %s723_s23, 16384, %s725_s30, [#allocation21], %s11709_s25, %s11709_s25, %s11710_s1  }
  0x40   : > { %s14616_s0 = sld [smem:[#allocation94_spill]]  ;;  %s595_s28 = sshll.u32 %s11712_s20, 4  ;;  %s596_s28 = int_to_ptr.vmem [resolvable:$true] %s595_s28 }
  0x41   : > { %s567_s14 = sshll.u32 %s14615_s24, 4  ;;  %s629_s27 = sshll.u32 %s14462_s9, 4  ;;  %s568_s14 = int_to_ptr.hbm [resolvable:$true] %s567_s14  ;;  %s630_s27 = int_to_ptr.hbm [resolvable:$true] %s629_s27 }
  0x42   : > { %10927 = dma.hbm_to_vmem [thread:$0]  (!%p11898_p12), %s568_s14, 16384, %s570_s29, [#allocation3], %s11706_s2, %s11706_s2, %s11707_s11  }
  0x43   : > { %s14617_s24 = smov 4   ;;  %s14618_s30 = smov 64  }
  0x44   : > { %s659_s1 = sshll.u32 %s14466_s13, 4  ;;  %s11713_s11 = smov [#allocation10]   ;;  %s660_s1 = int_to_ptr.hbm [resolvable:$true] %s659_s1 }
  0x45   : > { %s631_s14 = sshll.u32 %s11713_s11, 4  ;;  %s11714_s22 = smov [#allocation13]   ;;  %s632_s14 = int_to_ptr.vmem [resolvable:$true] %s631_s14 }
  0x46   : > { %s593_s18 = sshll.u32 %s14616_s0, 4  ;;  %s661_s2 = sshll.u32 %s11714_s22, 4  ;;  %s594_s18 = int_to_ptr.hbm [resolvable:$true] %s593_s18  ;;  %s662_s2 = int_to_ptr.vmem [resolvable:$true] %s661_s2 }
  0x47   : > { %10933 = dma.hbm_to_vmem [thread:$0]  (!%p11898_p12), %s594_s18, 8192, %s596_s28, [#allocation6], %s14618_s30, %s14618_s30, %s14617_s24  }
  0x48   : > { %10939 = dma.hbm_to_vmem [thread:$0]  (!%p11898_p12), %s630_s27, 16, %s632_s14, [#allocation9]  }
  0x49   : > { %s685_s29 = sshll.u32 %s14468_s15, 4  ;;  %s711_s7 = sshll.u32 %s14470_s17, 4  ;;  %s686_s29 = int_to_ptr.hbm [resolvable:$true] %s685_s29  ;;  %s712_s7 = int_to_ptr.hbm [resolvable:$true] %s711_s7 }
  0x4a   : > { %10945 = dma.hbm_to_vmem [thread:$0]  (!%p11898_p12), %s660_s1, 16, %s662_s2, [#allocation12]  }
  0x4b   : > { %s11715_s0 = smov [#allocation16]   ;;  %s11716_s23 = smov [#allocation19]  }
  0x4c   : > { %s687_s20 = sshll.u32 %s11715_s0, 4  ;;  %s713_s27 = sshll.u32 %s11716_s23, 4  ;;  %s688_s20 = int_to_ptr.vmem [resolvable:$true] %s687_s20  ;;  %s714_s27 = int_to_ptr.vmem [resolvable:$true] %s713_s27 }
  0x4d   : > { %10951 = dma.hbm_to_vmem [thread:$0]  (!%p11898_p12), %s686_s29, 16, %s688_s20, [#allocation15]  }
  0x4e   : > { %s737_s25 = sshll.u32 %s14472_s19, 4  ;;  %s11717_s16 = smov [#allocation22]   ;;  %s738_s25 = int_to_ptr.hbm [resolvable:$true] %s737_s25 }
  0x4f   : > { %10957 = dma.hbm_to_vmem [thread:$0]  (!%p11898_p12), %s712_s7, 128, %s714_s27, [#allocation18]  }
  0x50   : > { %s739_s1 = sshll.u32 %s11717_s16, 4  ;;  %771 = sbr.rel (%p11884_p10) target bundleno = 2481 (0x9b1), region = 100  ;;  %s740_s1 = int_to_ptr.vmem [resolvable:$true] %s739_s1 }
  0x51   : > { %10963 = dma.hbm_to_vmem [thread:$0]  (!%p11898_p12), %s738_s25, 32, %s740_s1, [#allocation21]  }
  0x55   : > { %11652 = dma.done.wait (%p10968_p9), [#allocation3], 16384  }
  0x56   : > { %11654 = vsyncadd (%p10968_p9), [#allocation3], 4294950912 }
  0x57   : > { %11656 = dma.done.wait (%p10968_p9), [#allocation6], 8320  }
  0x58   : > { %11658 = vsyncadd (%p10968_p9), [#allocation6], 4294958976 }
  0x59   : > { %11660 = dma.done.wait (%p10968_p9), [#allocation9], 32  }
  0x5a   : > { %11662 = vsyncadd (%p10968_p9), [#allocation9], 4294967264 }
  0x5b   : > { %11664 = dma.done.wait (%p10968_p9), [#allocation12], 32  }
  0x5c   : > { %11666 = vsyncadd (%p10968_p9), [#allocation12], 4294967264 }
  0x5d   : > { %11668 = dma.done.wait (%p10968_p9), [#allocation15], 528  }
  0x5e   : > { %11670 = vsyncadd (%p10968_p9), [#allocation15], 4294966768 }
  0x5f   : > { %11672 = dma.done.wait (%p10968_p9), [#allocation18], 8320  }
  0x60   : > { %11674 = vsyncadd (%p10968_p9), [#allocation18], 4294958976 }
  0x61   : > { %11676 = dma.done.wait (%p10968_p9), [#allocation21], 16416  }
  0x62   : > { %11678 = vsyncadd (%p10968_p9), [#allocation21], 4294950880  ;;  %v8969_v0 = vld [vmem:[#allocation2 + $0x1c0] sm:$0xf]  ;;  %s8734_s3 = sshll.u32 %s11856_s4, 4  ;;  %s14619_s22 = sld [smem:[#allocation90_spill]] }
  0x63   : > { %v10498_v1 = vld [vmem:[#allocation2 + $0x1dc] sm:$0xf0]  ;;  %p911_p13 = scmp.lt.s32.totalorder %s8734_s3, 31  ;;  %v10494_v27 = vld [vmem:[#allocation2 + $0x1c4] sm:$0xf]  ;;  %s14766_s29 = sld [smem:[#allocation96_spill]] }
  0x64   : > { %v8937_v2 = vld [vmem:[#allocation2 + $0x180] sm:$0xf]  ;;  %v8970_v3 = vor.u32 %v10498_v1, %v8969_v0  ;;  %v8971_v28 = vld [vmem:[#allocation2 + $0x1e0] sm:$0xf0]  ;;  %v8977_v40 = vld [vmem:[#allocation2 + $0x1c8] sm:$0xf] }
  0x65   : > { %v10490_v4 = vld [vmem:[#allocation2 + $0x19c] sm:$0xf0]  ;;  %s14886_s3 = smov (!%p911_p13, %s8734_s3), 31  ;;  %v10558_v36 = vld [vmem:[#allocation2 + $0x3c4] sm:$0xf]  ;;  %v8974_v38 = vor.u32 %v10494_v27, %v8971_v28  ;;  %s14768_s0 = sld [smem:[#allocation95_spill]] }
  0x66   : > { %1771 = vmatpush.bf16.msra.mxu0 %v8970_v3  ;;  %10846 = vmatpush.bf16.msra.mxu1 %v8970_v3  ;;  %v8938_v5 = vor.u32 %v10490_v4, %v8937_v2  ;;  %v8905_v6 = vld [vmem:[#allocation2 + $0x140] sm:$0xf]  ;;  %s10437_s26 = sshll.u32 %s14886_s3, 4  ;;  %v9227_v37 = vld [vmem:[#allocation2 + $0x3e0] sm:$0xf0]  ;;  %s14801_s23 = sld [smem:[#allocation103_spill]] }
  0x67   : > { %10847 = vmatpush.bf16.msra.mxu2 %v8970_v3  ;;  %10848 = vmatpush.bf16.msra.mxu3 %v8970_v3  ;;  %v10482_v7 = vld [vmem:[#allocation2 + $0x15c] sm:$0xf0]  ;;  %v10499_v41 = vld [vmem:[#allocation2 + $0x1e4] sm:$0xf0]  ;;  %v10486_v42 = vld [vmem:[#allocation2 + $0x184] sm:$0xf]  ;;  %v9230_v54 = vor.u32 %v10558_v36, %v9227_v37 }
  0x68   : > { %v8906_v8 = vor.u32 %v10482_v7, %v8905_v6  ;;  %v8873_v9 = vld [vmem:[#allocation2 + $0x100] sm:$0xf]  ;;  %s12004_s2 = scalar_lea.vmem %s14619_s22, %s10437_s26  ;;  %v8939_v45 = vld [vmem:[#allocation2 + $0x1a0] sm:$0xf0]  ;;  %v8945_v52 = vld [vmem:[#allocation2 + $0x188] sm:$0xf]  ;;  %v8978_v55 = vor.u32 %v10499_v41, %v8977_v40 }
  0x69   : > { %v10474_v10 = vld [vmem:[#allocation2 + $0x11c] sm:$0xf0]  ;;  %v939_v24 = vld [vmem:[%s12004_s2 + $0x10] sm:$0xff]  ;;  %v10550_v50 = vld [vmem:[#allocation2 + $0x384] sm:$0xf]  ;;  %v8942_v59 = vor.u32 %v10486_v42, %v8939_v45  ;;  %s14767_s18 = smov %s14766_s29  ;;  %s14802_s25 = sld [smem:[#allocation91_spill]] }
  0x6a   : > { %1772 = vmatpush.bf16.msra.mxu0 %v8938_v5  ;;  %10849 = vmatpush.bf16.msra.mxu1 %v8938_v5  ;;  %v8874_v11 = vor.u32 %v10474_v10, %v8873_v9  ;;  %v8841_v12 = vld [vmem:[#allocation2 + $0xc0] sm:$0xf]  ;;  %v947_v26 = vld [vmem:[%s12004_s2 + $0x50] sm:$0xff]  ;;  %v9195_v51 = vld [vmem:[#allocation2 + $0x3a0] sm:$0xf0]  ;;  %s14839_s1 = sld [smem:[#allocation33_spill]] }
  0x6b   : > { %10850 = vmatpush.bf16.msra.mxu2 %v8938_v5  ;;  %10851 = vmatpush.bf16.msra.mxu3 %v8938_v5  ;;  %v10466_v13 = vld [vmem:[#allocation2 + $0xdc] sm:$0xf0]  ;;  %v955_v33 = vld [vmem:[%s12004_s2 + $0x90] sm:$0xff]  ;;  %v10491_v53 = vld [vmem:[#allocation2 + $0x1a4] sm:$0xf0]  ;;  %v9198_v62 = vor.u32 %v10550_v50, %v9195_v51  ;;  %s10845_s22 = sshll.u32 %s11856_s4, 8 }
  0x6c   : > { %v8842_v14 = vor.u32 %v10466_v13, %v8841_v12  ;;  %v8809_v15 = vld [vmem:[#allocation2 + $0x80] sm:$0xf]  ;;  %v963_v35 = vld [vmem:[%s12004_s2 + $0xd0] sm:$0xff]  ;;  %v10478_v56 = vld [vmem:[#allocation2 + $0x144] sm:$0xf]  ;;  %v8946_v63 = vor.u32 %v10491_v53, %v8945_v52  ;;  %s14876_s5 = sld [smem:[#allocation102_spill]] }
  0x6d   : > { %v10458_v16 = vld [vmem:[#allocation2 + $0x9c] sm:$0xf0]  ;;  %v8907_v57 = vld [vmem:[#allocation2 + $0x160] sm:$0xf0]  ;;  %v8913_v4 = vld [vmem:[#allocation2 + $0x148] sm:$0xf] }
  0x6e   : > { %1773 = vmatpush.bf16.msra.mxu0 %v8906_v8  ;;  %10852 = vmatpush.bf16.msra.mxu1 %v8906_v8  ;;  %v8810_v17 = vor.u32 %v10458_v16, %v8809_v15  ;;  %v8777_v18 = vld [vmem:[#allocation2 + $0x40] sm:$0xf]  ;;  %v10542_v0 = vld [vmem:[#allocation2 + $0x344] sm:$0xf]  ;;  %v8910_v2 = vor.u32 %v10478_v56, %v8907_v57  ;;  %v10483_v5 = vld [vmem:[#allocation2 + $0x164] sm:$0xf0] }
  0x6f   : > { %10853 = vmatpush.bf16.msra.mxu2 %v8906_v8  ;;  %10854 = vmatpush.bf16.msra.mxu3 %v8906_v8  ;;  %v10450_v19 = vld [vmem:[#allocation2 + $0x5c] sm:$0xf0]  ;;  %v9163_v1 = vld [vmem:[#allocation2 + $0x360] sm:$0xf0]  ;;  %v8914_v12 = vor.u32 %v10483_v5, %v8913_v4  ;;  %v10475_v15 = vld [vmem:[#allocation2 + $0x124] sm:$0xf0] }
  0x70   : > { %v8778_v20 = vor.u32 %v10450_v19, %v8777_v18  ;;  %v8745_v21 = vld [vmem:[#allocation2] sm:$0xf]  ;;  %v10470_v6 = vld [vmem:[#allocation2 + $0x104] sm:$0xf]  ;;  %v943_v19 = vld [vmem:[%s12004_s2 + $0x30] sm:$0xff]  ;;  %s893_s26 = sand.u32 1, %s14839_s1  }
  0x71   : > { %v10442_v22 = vld [vmem:[#allocation2 + $0x1c] sm:$0xf0]  ;;  %v8875_v7 = vld [vmem:[#allocation2 + $0x120] sm:$0xf0]  ;;  %v959_v27 = vld [vmem:[%s12004_s2 + $0xb0] sm:$0xff]  ;;  %s14064_s11 = sshll.u32 %s893_s26, 8 }
  0x72   : > { %1774 = vmatpush.bf16.msra.mxu0 %v8874_v11  ;;  %10855 = vmatpush.bf16.msra.mxu1 %v8874_v11  ;;  %v937_v23 = vld [vmem:[%s12004_s2] sm:$0xff]  ;;  %v8746_v31 = vor.u32 %v10442_v22, %v8745_v21  ;;  %v8878_v16 = vor.u32 %v10470_v6, %v8875_v7  ;;  %v951_v21 = vld [vmem:[%s12004_s2 + $0x70] sm:$0xff]  ;;  %v8849_v36 = vld [vmem:[#allocation2 + $0xc8] sm:$0xf]  ;;  %s14072_s14 = scalar_lea.vmem [#allocation23], %s14064_s11  ;;  %s8419_s4 = scalar_lea.sflag [#allocation4], %s893_s26 }
  0x73   : > { %10856 = vmatpush.bf16.msra.mxu2 %v8874_v11  ;;  %10857 = vmatpush.bf16.msra.mxu3 %v8874_v11  ;;  %v945_v25 = vld [vmem:[%s12004_s2 + $0x40] sm:$0xff]  ;;  %v12014_v43 = vpack.c.bf16 %v939_v24, %v937_v23  ;;  %v9166_v11 = vor.u32 %v10542_v0, %v9163_v1  ;;  %v10467_v37 = vld [vmem:[#allocation2 + $0xe4] sm:$0xf0]  ;;  %s8442_s28 = sshll.u32 %s14072_s14, 4  ;;  %s11627_s24 = scalar_lea.hbm %s14876_s5, 512  ;;  %s8443_s28 = int_to_ptr.vmem [resolvable:$true] %s8442_s28 }
  0x74   : > { %v9225_v29 = vld [vmem:[#allocation2 + $0x3c0] sm:$0xf]  ;;  %v12016_v44 = vpack.c.bf16 %v947_v26, %v945_v25  ;;  %v10534_v10 = vld [vmem:[#allocation2 + $0x304] sm:$0xf]  ;;  %v8850_v51 = vor.u32 %v10467_v37, %v8849_v36  ;;  %v8817_v56 = vld [vmem:[#allocation2 + $0x88] sm:$0xf] }
  0x75   : > { %v10562_v30 = vld [vmem:[#allocation2 + $0x3dc] sm:$0xf0]  ;;  %v9131_v13 = vld [vmem:[#allocation2 + $0x320] sm:$0xf0]  ;;  %v10459_v57 = vld [vmem:[#allocation2 + $0xa4] sm:$0xf0] }
  0x76   : > { %1775 = vmatpush.bf16.msra.mxu0 %v8842_v14  ;;  %10858 = vmatpush.bf16.msra.mxu1 %v8842_v14  ;;  %v953_v32 = vld [vmem:[%s12004_s2 + $0x80] sm:$0xff]  ;;  %v9226_v39 = vor.u32 %v10562_v30, %v9225_v29  ;;  %v9134_v29 = vor.u32 %v10534_v10, %v9131_v13  ;;  %v10451_v5 = vld [vmem:[#allocation2 + $0x64] sm:$0xf0]  ;;  %v10495_v10 = vld [vmem:[#allocation2 + $0x1cc] sm:$0xf] }
  0x77   : > { %10859 = vmatpush.bf16.msra.mxu2 %v8842_v14  ;;  %10860 = vmatpush.bf16.msra.mxu3 %v8842_v14  ;;  %v961_v34 = vld [vmem:[%s12004_s2 + $0xc0] sm:$0xff]  ;;  %v12018_v48 = vpack.c.bf16 %v955_v33, %v953_v32  ;;  %v8881_v14 = vld [vmem:[#allocation2 + $0x108] sm:$0xf]  ;;  %v10551_v37 = vld [vmem:[#allocation2 + $0x38c] sm:$0xf] }
  0x78   : > { %v9193_v46 = vld [vmem:[#allocation2 + $0x380] sm:$0xf]  ;;  %v12020_v49 = vpack.c.bf16 %v963_v35, %v961_v34  ;;  %v10462_v22 = vld [vmem:[#allocation2 + $0xc4] sm:$0xf]  ;;  %v8882_v30 = vor.u32 %v10475_v15, %v8881_v14  ;;  %v10563_v13 = vld [vmem:[#allocation2 + $0x3e4] sm:$0xf0] }
  0x79   : > { %v10554_v47 = vld [vmem:[#allocation2 + $0x39c] sm:$0xf0]  ;;  %v8843_v23 = vld [vmem:[#allocation2 + $0xe0] sm:$0xf0] }
  0x7a   : > { %1776 = vmatpush.bf16.msra.mxu0 %v8810_v17  ;;  %10861 = vmatpush.bf16.msra.mxu1 %v8810_v17  ;;  %v9161_v58 = vld [vmem:[#allocation2 + $0x340] sm:$0xf]  ;;  %v9194_v60 = vor.u32 %v10554_v47, %v9193_v46  ;;  %v10526_v32 = vld [vmem:[#allocation2 + $0x2c4] sm:$0xf]  ;;  %v8846_v34 = vor.u32 %v10462_v22, %v8843_v23  ;;  %v938_v22 = vld [vmem:[%s12004_s2 + $0x8] sm:$0xff] }
  0x7b   : > { %10862 = vmatpush.bf16.msra.mxu2 %v8810_v17  ;;  %10863 = vmatpush.bf16.msra.mxu3 %v8810_v17  ;;  %v10546_v61 = vld [vmem:[#allocation2 + $0x35c] sm:$0xf0]  ;;  %v9099_v33 = vld [vmem:[#allocation2 + $0x2e0] sm:$0xf0] }
  0x7c   : > { %v9162_v3 = vor.u32 %v10546_v61, %v9161_v58  ;;  %v9129_v8 = vld [vmem:[#allocation2 + $0x300] sm:$0xf]  ;;  %v8811_v41 = vld [vmem:[#allocation2 + $0xa0] sm:$0xf0]  ;;  %v9102_v50 = vor.u32 %v10526_v32, %v9099_v33  ;;  %v9201_v33 = vld [vmem:[#allocation2 + $0x388] sm:$0xf] }
  0x7d   : > { %v10538_v9 = vld [vmem:[#allocation2 + $0x31c] sm:$0xf0]  ;;  %v10518_v52 = vld [vmem:[#allocation2 + $0x284] sm:$0xf] }
  0x7e   : > { %1777 = vmatpush.bf16.msra.mxu0 %v8778_v20  ;;  %10864 = vmatpush.bf16.msra.mxu1 %v8778_v20  ;;  %v9130_v17 = vor.u32 %v10538_v9, %v9129_v8  ;;  %v941_v18 = vld [vmem:[%s12004_s2 + $0x20] sm:$0xff] }
  0x7f   : > { %10865 = vmatpush.bf16.msra.mxu2 %v8778_v20  ;;  %10866 = vmatpush.bf16.msra.mxu3 %v8778_v20  ;;  %v949_v20 = vld [vmem:[%s12004_s2 + $0x60] sm:$0xff] }
  0x80   : > { %v9097_v24 = vld [vmem:[#allocation2 + $0x2c0] sm:$0xf]  ;;  %v12036_v40 = vpack.c.bf16 %v951_v21, %v949_v20  ;;  %v9067_v53 = vld [vmem:[#allocation2 + $0x2a0] sm:$0xf0]  ;;  %v8753_v20 = vld [vmem:[#allocation2 + $0x8] sm:$0xf] }
  0x81   : > { %v10530_v25 = vld [vmem:[#allocation2 + $0x2dc] sm:$0xf0]  ;;  %v10446_v58 = vld [vmem:[#allocation2 + $0x44] sm:$0xf]  ;;  %v10443_v21 = vld [vmem:[#allocation2 + $0x24] sm:$0xf0] }
  0x82   : > { %1778 = vmatpush.bf16.msra.mxu0 %v8746_v31  ;;  %10867 = vmatpush.bf16.msra.mxu1 %v8746_v31  ;;  %v957_v26 = vld [vmem:[%s12004_s2 + $0xa0] sm:$0xff]  ;;  %v9098_v35 = vor.u32 %v10530_v25, %v9097_v24  ;;  %v10559_v24 = vld [vmem:[#allocation2 + $0x3cc] sm:$0xf] }
  0x83   : > { %10868 = vmatpush.bf16.msra.mxu2 %v8746_v31  ;;  %10869 = vmatpush.bf16.msra.mxu3 %v8746_v31  ;;  %v965_v28 = vld [vmem:[%s12004_s2 + $0xe0] sm:$0xff]  ;;  %v967_v31 = vld [vmem:[%s12004_s2 + $0xf0] sm:$0xff]  ;;  %v12038_v46 = vpack.c.bf16 %v959_v27, %v957_v26  ;;  %v9235_v25 = vld [vmem:[#allocation2 + $0x3e8] sm:$0xf0] }
  0x84   : > { %v9065_v42 = vld [vmem:[#allocation2 + $0x280] sm:$0xf]  ;;  %v12040_v47 = vpack.c.bf16 %v967_v31, %v965_v28  ;;  %v10510_v0 = vld [vmem:[#allocation2 + $0x244] sm:$0xf]  ;;  %v940_v27 = vld [vmem:[%s12004_s2 + $0x18] sm:$0xff]  ;;  %v8754_v31 = vor.u32 %v10443_v21, %v8753_v20  ;;  %v9238_v32 = vor.u32 %v10559_v24, %v9235_v25 }
  0x85   : > { %1779 = vmatmul.bf16.vlgmr.msra.gmra.mxu0 %v12014_v43  ;;  %1789 = vmatmul.bf16.vlgmr.msra.gmra.mxu1 %v12016_v44  ;;  %v10522_v45 = vld [vmem:[#allocation2 + $0x29c] sm:$0xf0]  ;;  %v9035_v1 = vld [vmem:[#allocation2 + $0x260] sm:$0xf0]  ;;  %v10487_v28 = vld [vmem:[#allocation2 + $0x18c] sm:$0xf] }
  0x86   : > { %1820 = vmatpush.bf16.msrb.mxu1 %v9226_v39  ;;  %1799 = vmatmul.bf16.vlgmr.msra.gmra.mxu2 %v12018_v48  ;;  %v12034_v39 = vpack.c.bf16 %v943_v19, %v941_v18  ;;  %v10514_v61 = vld [vmem:[#allocation2 + $0x25c] sm:$0xf0]  ;;  %v10438_v6 = vld [vmem:[#allocation2 + $0x4] sm:$0xf]  ;;  %v9038_v14 = vor.u32 %v10510_v0, %v9035_v1  ;;  %v9139_v1 = vld [vmem:[#allocation2 + $0x328] sm:$0xf0] }
  0x87   : > { %1869 = vmatpush.bf16.msrb.mxu2 %v8974_v38  ;;  %1809 = vmatmul.bf16.vlgmr.msra.gmra.mxu3 %v12020_v49  ;;  %v10454_v38 = vld [vmem:[#allocation2 + $0x84] sm:$0xf]  ;;  %v9001_v8 = vld [vmem:[#allocation2 + $0x200] sm:$0xf]  ;;  %v10455_v21 = vld [vmem:[#allocation2 + $0x8c] sm:$0xf] }
  0x88   : > { %1918 = vmatpush.bf16.msrb.mxu3 %v9230_v54  ;;  %1967 = vmatpush.bf16.msrb.mxu0 %v8978_v55  ;;  %v8814_v54 = vor.u32 %v10454_v38, %v8811_v41  ;;  %v9066_v55 = vor.u32 %v10522_v45, %v9065_v42  ;;  %v8747_v7 = vld [vmem:[#allocation2 + $0x20] sm:$0xf0]  ;;  %v10506_v9 = vld [vmem:[#allocation2 + $0x21c] sm:$0xf0]  ;;  %v9203_v38 = vld [vmem:[#allocation2 + $0x3a8] sm:$0xf0] }
  0x89   : > { %v9002_v18 = vor.u32 %v10506_v9, %v9001_v8  ;;  %v9003_v19 = vld [vmem:[#allocation2 + $0x220] sm:$0xf0]  ;;  %v9206_v42 = vor.u32 %v10551_v37, %v9203_v38  ;;  %v10479_v45 = vld [vmem:[#allocation2 + $0x14c] sm:$0xf] }
  0x8a   : > { %1821 = vmatpush.bf16.msrb.mxu1 %v9194_v60  ;;  %v9033_v60 = vld [vmem:[#allocation2 + $0x240] sm:$0xf]  ;;  %v10463_v9 = vld [vmem:[#allocation2 + $0xcc] sm:$0xf] }
  0x8b   : > { %1870 = vmatpush.bf16.msrb.mxu2 %v8942_v59  ;;  %v8779_v59 = vld [vmem:[#allocation2 + $0x60] sm:$0xf0]  ;;  %v9034_v4 = vor.u32 %v10514_v61, %v9033_v60  ;;  %v10471_v61 = vld [vmem:[#allocation2 + $0x10c] sm:$0xf] }
  0x8c   : > { %1919 = vmatpush.bf16.msrb.mxu3 %v9198_v62  ;;  %1968 = vmatpush.bf16.msrb.mxu0 %v8946_v63  ;;  %v9070_v62 = vor.u32 %v10518_v52, %v9067_v53  ;;  %v8818_v63 = vor.u32 %v10459_v57, %v8817_v56  ;;  %v9171_v53 = vld [vmem:[#allocation2 + $0x368] sm:$0xf0] }
  0x8d   : > { %v9075_v25 = vld [vmem:[#allocation2 + $0x2a8] sm:$0xf0] }
  0x8e   : > { %1822 = vmatpush.bf16.msrb.mxu1 %v9162_v3  ;;  %v8782_v3 = vor.u32 %v10446_v58, %v8779_v59  ;;  %v942_v58 = vld [vmem:[%s12004_s2 + $0x28] sm:$0xff]  ;;  %v944_v59 = vld [vmem:[%s12004_s2 + $0x38] sm:$0xff] }
  0x8f   : > { %1871 = vmatpush.bf16.msrb.mxu2 %v8910_v2  ;;  %v8785_v2 = vld [vmem:[#allocation2 + $0x48] sm:$0xf]  ;;  %v12056_v60 = vpack.c.bf16 %v944_v59, %v942_v58  ;;  %v10447_v37 = vld [vmem:[#allocation2 + $0x4c] sm:$0xf]  ;;  %v10484_v58 = vld [vmem:[#allocation2 + $0x16c] sm:$0xf0] }
  0x90   : > { %1920 = vmatpush.bf16.msrb.mxu3 %v9166_v11  ;;  %1969 = vmatpush.bf16.msrb.mxu0 %v8914_v12  ;;  %v8979_v11 = vld [vmem:[#allocation2 + $0x1e8] sm:$0xf0]  ;;  %v9233_v12 = vld [vmem:[#allocation2 + $0x3c8] sm:$0xf]  ;;  %v8786_v15 = vor.u32 %v10451_v5, %v8785_v2 }
  0x91   : > { %v8982_v23 = vor.u32 %v10495_v10, %v8979_v11  ;;  %v9234_v26 = vor.u32 %v10563_v13, %v9233_v12  ;;  %v9137_v2 = vld [vmem:[#allocation2 + $0x308] sm:$0xf]  ;;  %v8851_v10 = vld [vmem:[#allocation2 + $0xe8] sm:$0xf0] }
  0x92   : > { %1823 = vmatpush.bf16.msrb.mxu1 %v9130_v17  ;;  %v8750_v17 = vor.u32 %v10438_v6, %v8747_v7  ;;  %v946_v6 = vld [vmem:[%s12004_s2 + $0x48] sm:$0xff]  ;;  %v948_v7 = vld [vmem:[%s12004_s2 + $0x58] sm:$0xff]  ;;  %v8854_v12 = vor.u32 %v10463_v9, %v8851_v10 }
  0x93   : > { %1872 = vmatpush.bf16.msrb.mxu2 %v8878_v16  ;;  %v10502_v16 = vld [vmem:[#allocation2 + $0x204] sm:$0xf]  ;;  %v12064_v8 = vpack.c.bf16 %v948_v7, %v946_v6  ;;  %v10527_v11 = vld [vmem:[#allocation2 + $0x2cc] sm:$0xf] }
  0x94   : > { %1921 = vmatpush.bf16.msrb.mxu3 %v9134_v29  ;;  %1970 = vmatpush.bf16.msrb.mxu0 %v8882_v30  ;;  %v8947_v29 = vld [vmem:[#allocation2 + $0x1a8] sm:$0xf0]  ;;  %v9006_v30 = vor.u32 %v10502_v16, %v9003_v19  ;;  %v952_v19 = vld [vmem:[%s12004_s2 + $0x78] sm:$0xff] }
  0x95   : > { %1784 = vmatmul.bf16.gmra.mxu0 %v12034_v39  ;;  %1794 = vmatmul.bf16.gmra.mxu1 %v12036_v40  ;;  %v8950_v36 = vor.u32 %v10487_v28, %v8947_v29  ;;  %v9107_v13 = vld [vmem:[#allocation2 + $0x2e8] sm:$0xf0] }
  0x96   : > { %1824 = vmatpush.bf16.msrb.mxu1 %v9098_v35  ;;  %1804 = vmatmul.bf16.gmra.mxu2 %v12038_v46  ;;  %v12048_v35 = vpack.c.bf16 %v940_v27, %v938_v22  ;;  %v9110_v16 = vor.u32 %v10527_v11, %v9107_v13  ;;  %v8819_v22 = vld [vmem:[#allocation2 + $0xa8] sm:$0xf0]  ;;  %v10523_v27 = vld [vmem:[#allocation2 + $0x2a4] sm:$0xf0]  ;;  %v8825_v13 = vld [vmem:[#allocation2 + $0x90] sm:$0xf] }
  0x97   : > { %1873 = vmatpush.bf16.msrb.mxu2 %v8846_v34  ;;  %1814 = vmatmul.bf16.gmra.mxu3 %v12040_v47  ;;  %v10555_v34 = vld [vmem:[#allocation2 + $0x3a4] sm:$0xf0]  ;;  %v8822_v24 = vor.u32 %v10455_v21, %v8819_v22  ;;  %v8787_v38 = vld [vmem:[#allocation2 + $0x68] sm:$0xf0]  ;;  %v10452_v21 = vld [vmem:[#allocation2 + $0x6c] sm:$0xf0] }
  0x98   : > { %1922 = vmatpush.bf16.msrb.mxu3 %v9102_v50  ;;  %1971 = vmatpush.bf16.msrb.mxu0 %v8850_v51  ;;  %v9202_v41 = vor.u32 %v10555_v34, %v9201_v33  ;;  %v8915_v50 = vld [vmem:[#allocation2 + $0x168] sm:$0xf0]  ;;  %v8985_v33 = vld [vmem:[#allocation2 + $0x1d0] sm:$0xf] }
  0x99   : > { %v10543_v51 = vld [vmem:[#allocation2 + $0x34c] sm:$0xf]  ;;  %v8918_v52 = vor.u32 %v10479_v45, %v8915_v50  ;;  %v10500_v34 = vld [vmem:[#allocation2 + $0x1ec] sm:$0xf0] }
  0x9a   : > { %1825 = vmatpush.bf16.msrb.mxu1 %v9066_v55  ;;  %v10547_v55 = vld [vmem:[#allocation2 + $0x364] sm:$0xf0]  ;;  %v9174_v56 = vor.u32 %v10543_v51, %v9171_v53  ;;  %v9043_v45 = vld [vmem:[#allocation2 + $0x268] sm:$0xf0]  ;;  %v8953_v51 = vld [vmem:[#allocation2 + $0x190] sm:$0xf] }
  0x9b   : > { %1874 = vmatpush.bf16.msrb.mxu2 %v8814_v54  ;;  %v9169_v54 = vld [vmem:[#allocation2 + $0x348] sm:$0xf]  ;;  %v10439_v6 = vld [vmem:[#allocation2 + $0xc] sm:$0xf] }
  0x9c   : > { %1923 = vmatpush.bf16.msrb.mxu3 %v9070_v62  ;;  %1972 = vmatpush.bf16.msrb.mxu0 %v8818_v63  ;;  %v9170_v57 = vor.u32 %v10547_v55, %v9169_v54  ;;  %v8883_v62 = vld [vmem:[#allocation2 + $0x128] sm:$0xf0]  ;;  %v9041_v53 = vld [vmem:[#allocation2 + $0x248] sm:$0xf] }
  0x9d   : > { %v10535_v63 = vld [vmem:[#allocation2 + $0x30c] sm:$0xf]  ;;  %v8886_v0 = vor.u32 %v10471_v61, %v8883_v62  ;;  %v10515_v54 = vld [vmem:[#allocation2 + $0x264] sm:$0xf0]  ;;  %v960_v62 = vld [vmem:[%s12004_s2 + $0xb8] sm:$0xff] }
  0x9e   : > { %1826 = vmatpush.bf16.msrb.mxu1 %v9034_v4  ;;  %v9142_v4 = vor.u32 %v10535_v63, %v9139_v1  ;;  %v958_v61 = vld [vmem:[%s12004_s2 + $0xa8] sm:$0xff]  ;;  %v10476_v1 = vld [vmem:[#allocation2 + $0x12c] sm:$0xf0] }
  0x9f   : > { %1875 = vmatpush.bf16.msrb.mxu2 %v8782_v3  ;;  %v10539_v3 = vld [vmem:[#allocation2 + $0x324] sm:$0xf0]  ;;  %v12088_v63 = vpack.c.bf16 %v960_v62, %v958_v61  ;;  %v8755_v7 = vld [vmem:[#allocation2 + $0x28] sm:$0xf0] }
  0xa0   : > { %1924 = vmatpush.bf16.msrb.mxu3 %v9038_v14  ;;  %1973 = vmatpush.bf16.msrb.mxu0 %v8786_v15  ;;  %v9138_v5 = vor.u32 %v10539_v3, %v9137_v2  ;;  %v9105_v14 = vld [vmem:[#allocation2 + $0x2c8] sm:$0xf]  ;;  %v8857_v3 = vld [vmem:[#allocation2 + $0xd0] sm:$0xf]  ;;  %v10503_v9 = vld [vmem:[#allocation2 + $0x20c] sm:$0xf]  ;;  %v8758_v10 = vor.u32 %v10439_v6, %v8755_v7 }
  0xa1   : > { %v10531_v15 = vld [vmem:[#allocation2 + $0x2e4] sm:$0xf0]  ;;  %v9011_v11 = vld [vmem:[#allocation2 + $0x228] sm:$0xf0]  ;;  %v10488_v7 = vld [vmem:[#allocation2 + $0x194] sm:$0xf] }
  0xa2   : > { %1827 = vmatpush.bf16.msrb.mxu1 %v9002_v18  ;;  %v950_v18 = vld [vmem:[%s12004_s2 + $0x68] sm:$0xff] }
  0xa3   : > { %1876 = vmatpush.bf16.msrb.mxu2 %v8750_v17  ;;  %v9106_v17 = vor.u32 %v10531_v15, %v9105_v14  ;;  %v12072_v20 = vpack.c.bf16 %v952_v19, %v950_v18  ;;  %v10460_v14 = vld [vmem:[#allocation2 + $0xac] sm:$0xf0]  ;;  %v9009_v15 = vld [vmem:[#allocation2 + $0x208] sm:$0xf] }
  0xa4   : > { %1925 = vmatpush.bf16.msrb.mxu3 %v9006_v30  ;;  %1974 = vmatpush.bf16.msrb.mxu0 %v8754_v31  ;;  %v954_v30 = vld [vmem:[%s12004_s2 + $0x88] sm:$0xff]  ;;  %v956_v31 = vld [vmem:[%s12004_s2 + $0x98] sm:$0xff]  ;;  %v8793_v19 = vld [vmem:[#allocation2 + $0x50] sm:$0xf] }
  0xa5   : > { %1828 = vmatmul.bf16.vlgmr.msrb.gmra.mxu1 %v12048_v35  ;;  %v8794_v22 = vor.u32 %v10452_v21, %v8793_v19  ;;  %v10556_v19 = vld [vmem:[#allocation2 + $0x3ac] sm:$0xf0] }
  0xa6   : > { %2016 = vmatpush.bf16.msra.mxu1 %v9234_v26  ;;  %1877 = vmatmul.bf16.vlgmr.msrb.gmra.mxu2 %v12014_v43  ;;  %v9073_v26 = vld [vmem:[#allocation2 + $0x288] sm:$0xf] }
  0xa7   : > { %2065 = vmatpush.bf16.msra.mxu2 %v8982_v23  ;;  %1926 = vmatmul.bf16.vlgmr.msrb.gmra.mxu3 %v12048_v35  ;;  %v10519_v23 = vld [vmem:[#allocation2 + $0x28c] sm:$0xf]  ;;  %v9074_v29 = vor.u32 %v10523_v27, %v9073_v26  ;;  %v8761_v26 = vld [vmem:[#allocation2 + $0x10] sm:$0xf] }
  0xa8   : > { %2114 = vmatpush.bf16.msra.mxu3 %v9238_v32  ;;  %1975 = vmatmul.bf16.vlgmr.msrb.gmra.mxu0 %v12014_v43  ;;  %v9078_v28 = vor.u32 %v10519_v23, %v9075_v25  ;;  %v12080_v32 = vpack.c.bf16 %v956_v31, %v954_v30  ;;  %v962_v23 = vld [vmem:[%s12004_s2 + $0xc8] sm:$0xff]  ;;  %v10444_v27 = vld [vmem:[#allocation2 + $0x2c] sm:$0xf0]  ;;  %v12100_v31 = vld [vmem:[#allocation5] sm:$0xff] }
  0xa9   : > { %v8762_v30 = vor.u32 %v10444_v27, %v8761_v26 }
  0xaa   : > { %2017 = vmatpush.bf16.msra.mxu1 %v9202_v41  ;;  %v10511_v41 = vld [vmem:[#allocation2 + $0x24c] sm:$0xf] }
  0xab   : > { %2066 = vmatpush.bf16.msra.mxu2 %v8950_v36  ;;  %v8986_v36 = vor.u32 %v10500_v34, %v8985_v33  ;;  %v9046_v50 = vor.u32 %v10511_v41, %v9043_v45  ;;  %v10496_v33 = vld [vmem:[#allocation2 + $0x1d4] sm:$0xf] }
  0xac   : > { %2115 = vmatpush.bf16.msra.mxu3 %v9206_v42  ;;  %v8790_v42 = vor.u32 %v10447_v37, %v8787_v38  ;;  %v8987_v34 = vld [vmem:[#allocation2 + $0x1f0] sm:$0xf0] }
  0xad   : > { %2163 = vmatpush.bf16.msra.mxu0 %v8986_v36  ;;  %v12107_v36 = vperm.slane %v12100_v31, 0  ;;  %v8990_v37 = vor.u32 %v10496_v33, %v8987_v34  ;;  %v10560_v38 = vld [vmem:[#allocation2 + $0x3d4] sm:$0xf] }
  0xae   : > { %2018 = vmatpush.bf16.msra.mxu1 %v9170_v57  ;;  %v8921_v57 = vld [vmem:[#allocation2 + $0x150] sm:$0xf]  ;;  %v9243_v41 = vld [vmem:[#allocation2 + $0x3f0] sm:$0xf0] }
  0xaf   : > { %2067 = vmatpush.bf16.msra.mxu2 %v8918_v52  ;;  %v10492_v52 = vld [vmem:[#allocation2 + $0x1ac] sm:$0xf0]  ;;  %v8922_v59 = vor.u32 %v10484_v58, %v8921_v57 }
  0xb0   : > { %2116 = vmatpush.bf16.msra.mxu3 %v9174_v56  ;;  %v8954_v55 = vor.u32 %v10492_v52, %v8953_v51  ;;  %v9042_v56 = vor.u32 %v10515_v54, %v9041_v53  ;;  %v9241_v57 = vld [vmem:[#allocation2 + $0x3d0] sm:$0xf] }
  0xb1   : > { %v10564_v58 = vld [vmem:[#allocation2 + $0x3ec] sm:$0xf0] }
  0xb2   : > { %2019 = vmatpush.bf16.msra.mxu1 %v9138_v5  ;;  %2164 = vmatpush.bf16.msra.mxu0 %v8954_v55  ;;  %v966_v55 = vld [vmem:[%s12004_s2 + $0xe8] sm:$0xff] }
  0xb3   : > { %2068 = vmatpush.bf16.msra.mxu2 %v8886_v0  ;;  %v8889_v0 = vld [vmem:[#allocation2 + $0x110] sm:$0xf] }
  0xb4   : > { %2117 = vmatpush.bf16.msra.mxu3 %v9142_v4  ;;  %v8890_v2 = vor.u32 %v10476_v1, %v8889_v0  ;;  %v10468_v4 = vld [vmem:[#allocation2 + $0xec] sm:$0xf0]  ;;  %v9242_v0 = vor.u32 %v10564_v58, %v9241_v57 }
  0xb5   : > { %1833 = vmatmul.bf16.gmra.mxu1 %v12056_v60  ;;  %v8858_v5 = vor.u32 %v10468_v4, %v8857_v3 }
  0xb6   : > { %1882 = vmatmul.bf16.gmra.mxu2 %v12034_v39  ;;  %2020 = vmatpush.bf16.msra.mxu1 %v9106_v17  ;;  %v8826_v17 = vor.u32 %v10460_v14, %v8825_v13 }
  0xb7   : > { %1931 = vmatmul.bf16.gmra.mxu3 %v12056_v60  ;;  %2069 = vmatpush.bf16.msra.mxu2 %v8854_v12  ;;  %v9014_v12 = vor.u32 %v10503_v9, %v9011_v11  ;;  %v8955_v9 = vld [vmem:[#allocation2 + $0x1b0] sm:$0xf0] }
  0xb8   : > { %1980 = vmatmul.bf16.gmra.mxu0 %v12034_v39  ;;  %2118 = vmatpush.bf16.msra.mxu3 %v9110_v16  ;;  %v10507_v16 = vld [vmem:[#allocation2 + $0x224] sm:$0xf0] }
  0xb9   : > { %2165 = vmatpush.bf16.msra.mxu0 %v8922_v59  ;;  %v9010_v18 = vor.u32 %v10507_v16, %v9009_v15  ;;  %v8958_v15 = vor.u32 %v10488_v7, %v8955_v9  ;;  %v9211_v16 = vld [vmem:[#allocation2 + $0x3b0] sm:$0xf0]  ;;  %v9177_v7 = vld [vmem:[#allocation2 + $0x350] sm:$0xf] }
  0xba   : > { %2021 = vmatpush.bf16.msra.mxu1 %v9074_v29 }
  0xbb   : > { %2070 = vmatpush.bf16.msra.mxu2 %v8822_v24  ;;  %v964_v24 = vld [vmem:[%s12004_s2 + $0xd8] sm:$0xff] }
  0xbc   : > { %2119 = vmatpush.bf16.msra.mxu3 %v9078_v28  ;;  %v12096_v25 = vpack.c.bf16 %v964_v24, %v962_v23 }
  0xbd   : > { %2166 = vmatpush.bf16.msra.mxu0 %v8890_v2 }
  0xbe   : > { %2022 = vmatpush.bf16.msra.mxu1 %v9042_v56  ;;  %v968_v56 = vld [vmem:[%s12004_s2 + $0xf8] sm:$0xff] }
  0xbf   : > { %2071 = vmatpush.bf16.msra.mxu2 %v8790_v42  ;;  %v12119_v62 = vpack.c.bf16 %v968_v56, %v966_v55 }
  0xc0   : > { %2120 = vmatpush.bf16.msra.mxu3 %v9046_v50  ;;  %v9246_v50 = vor.u32 %v10560_v38, %v9243_v41  ;;  %v10480_v38 = vld [vmem:[#allocation2 + $0x154] sm:$0xf] }
  0xc1   : > { %2167 = vmatpush.bf16.msra.mxu0 %v8858_v5  ;;  %v8923_v41 = vld [vmem:[#allocation2 + $0x170] sm:$0xf0] }
  0xc2   : > { %2023 = vmatpush.bf16.msra.mxu1 %v9010_v18  ;;  %v9209_v18 = vld [vmem:[#allocation2 + $0x390] sm:$0xf] }
  0xc3   : > { %2072 = vmatpush.bf16.msra.mxu2 %v8758_v10  ;;  %v10552_v10 = vld [vmem:[#allocation2 + $0x394] sm:$0xf] }
  0xc4   : > { %2121 = vmatpush.bf16.msra.mxu3 %v9014_v12 }
  0xc5   : > { %1838 = vmatmul.bf16.gmra.mxu1 %v12064_v8  ;;  %2168 = vmatpush.bf16.msra.mxu0 %v8826_v17  ;;  %v9214_v17 = vor.u32 %v10552_v10, %v9211_v16  ;;  %v10548_v16 = vld [vmem:[#allocation2 + $0x36c] sm:$0xf0] }
  0xc6   : > { %1887 = vmatmul.bf16.gmra.mxu2 %v12016_v44  ;;  %2212 = vmatpush.bf16.msrb.mxu1 %v9242_v0 }
  0xc7   : > { %1936 = vmatmul.bf16.gmra.mxu3 %v12064_v8  ;;  %2261 = vmatpush.bf16.msrb.mxu2 %v8990_v37 }
  0xc8   : > { %1985 = vmatmul.bf16.gmra.mxu0 %v12016_v44  ;;  %2310 = vmatpush.bf16.msrb.mxu3 %v9246_v50  ;;  %v9179_v50 = vld [vmem:[#allocation2 + $0x370] sm:$0xf0] }
  0xc9   : > { %2169 = vmatpush.bf16.msra.mxu0 %v8794_v22  ;;  %v9210_v22 = vor.u32 %v10556_v19, %v9209_v18  ;;  %v9178_v18 = vor.u32 %v10548_v16, %v9177_v7 }
  0xcb   : > { %2262 = vmatpush.bf16.msrb.mxu2 %v8958_v15  ;;  %2213 = vmatpush.bf16.msrb.mxu1 %v9210_v22 }
  0xcc   : > { %2311 = vmatpush.bf16.msrb.mxu3 %v9214_v17 }
  0xcd   : > { %2170 = vmatpush.bf16.msra.mxu0 %v8762_v30 }
  0xcf   : > { %2214 = vmatpush.bf16.msrb.mxu1 %v9178_v18 }
  0xd5   : > { %1843 = vmatmul.bf16.gmra.mxu1 %v12072_v20 }
  0xd6   : > { %1892 = vmatmul.bf16.gmra.mxu2 %v12036_v40 }
  0xd7   : > { %1941 = vmatmul.bf16.gmra.mxu3 %v12072_v20 }
  0xd8   : > { %1990 = vmatmul.bf16.gmra.mxu0 %v12036_v40 }
  0xe5   : > { %1848 = vmatmul.bf16.gmra.mxu1 %v12080_v32 }
  0xe6   : > { %1897 = vmatmul.bf16.gmra.mxu2 %v12018_v48 }
  0xe7   : > { %1946 = vmatmul.bf16.gmra.mxu3 %v12080_v32 }
  0xe8   : > { %1995 = vmatmul.bf16.gmra.mxu0 %v12018_v48 }
  0xf5   : > { %1853 = vmatmul.bf16.gmra.mxu1 %v12088_v63 }
  0xf6   : > { %1902 = vmatmul.bf16.gmra.mxu2 %v12038_v46 }
  0xf7   : > { %1951 = vmatmul.bf16.gmra.mxu3 %v12088_v63 }
  0xf8   : > { %2000 = vmatmul.bf16.gmra.mxu0 %v12038_v46 }
 0x102   : > { %v1780_v28 = vpop.f32.mrf.mxu0  ;;  %v12098_v29 = vpop.f32.mrf.mxu1 }
 0x103   : > { %v1781_v21 = vadd.f32 %v1780_v28, %v12107_v36  ;;  %v12156_v28 = vperm.slane %v12100_v31, 1 }
 0x105   : > { %1858 = vmatmul.bf16.gmra.mxu1 %v12096_v25 }
 0x106   : > { %1907 = vmatmul.bf16.gmra.mxu2 %v12020_v49 }
 0x107   : > { %1956 = vmatmul.bf16.gmra.mxu3 %v12096_v25 }
 0x108   : > { %2005 = vmatmul.bf16.gmra.mxu0 %v12020_v49 }
 0x109   : > { %v1800_v42 = vpop.f32.mrf.mxu2 }
 0x10a   : > { %v1810_v45 = vpop.f32.mrf.mxu3  ;;  %v12110_v51 = vadd.f32 %v1800_v42, %v12107_v36  ;;  %v1782_v53 = vpop.f32.mrf.mxu0  ;;  %v10544_v42 = vld [vmem:[#allocation2 + $0x354] sm:$0xf] }
 0x10b   : > { %v12113_v52 = vadd.f32 %v1810_v45, %v12107_v36  ;;  %v12115_v54 = vpop.f32.mrf.mxu1  ;;  %v1783_v37 = vadd.f32 %v1782_v53, %v12107_v36  ;;  %v8926_v45 = vor.u32 %v10480_v38, %v8923_v41  ;;  %v9182_v57 = vor.u32 %v10544_v42, %v9179_v50  ;;  %v10472_v41 = vld [vmem:[#allocation2 + $0x114] sm:$0xf] }
 0x10c   : > { %v8891_v42 = vld [vmem:[#allocation2 + $0x130] sm:$0xf0] }
 0x10d   : > { %2263 = vmatpush.bf16.msrb.mxu2 %v8926_v45  ;;  %2312 = vmatpush.bf16.msrb.mxu3 %v9182_v57  ;;  %v10536_v45 = vld [vmem:[#allocation2 + $0x314] sm:$0xf] }
 0x10e   : > { %v9147_v57 = vld [vmem:[#allocation2 + $0x330] sm:$0xf0] }
 0x111   : > { %v1802_v59 = vpop.f32.mrf.mxu2 }
 0x112   : > { %v1812_v61 = vpop.f32.mrf.mxu3  ;;  %v12122_v1 = vadd.f32 %v1802_v59, %v12107_v36  ;;  %v1785_v3 = vpop.f32.mrf.mxu0 }
 0x113   : > { %v12125_v2 = vadd.f32 %v1812_v61, %v12107_v36  ;;  %v12127_v4 = vpop.f32.mrf.mxu1  ;;  %v1786_v9 = vadd.f32 %v1785_v3, %v12107_v36 }
 0x115   : > { %1863 = vmatmul.bf16.gmra.mxu1 %v12119_v62 }
 0x116   : > { %1912 = vmatmul.bf16.gmra.mxu2 %v12040_v47 }
 0x117   : > { %1961 = vmatmul.bf16.gmra.mxu3 %v12119_v62 }
 0x118   : > { %2010 = vmatmul.bf16.gmra.mxu0 %v12040_v47 }
 0x119   : > { %v1805_v5 = vpop.f32.mrf.mxu2 }
 0x11a   : > { %v1815_v6 = vpop.f32.mrf.mxu3  ;;  %v12134_v11 = vadd.f32 %v1805_v5, %v12107_v36  ;;  %v12139_v13 = vpop.f32.mrf.mxu0 }
 0x11b   : > { %v12137_v12 = vadd.f32 %v1815_v6, %v12107_v36  ;;  %v12141_v14 = vpop.f32.mrf.mxu1 }
 0x121   : > { %v1807_v23 = vpop.f32.mrf.mxu2 }
 0x122   : > { %v1817_v24 = vpop.f32.mrf.mxu3  ;;  %v12145_v26 = vadd.f32 %v1807_v23, %v12107_v36 }
 0x123   : > { %v12148_v27 = vadd.f32 %v1817_v24, %v12107_v36  ;;  %v1829_v30 = vpop.f32.mrf.mxu1 }
 0x124   : > { %v1830_v33 = vadd.f32 %v1829_v30, %v1781_v21 }
 0x125   : > { %v12150_v34 = vpop.f32.mrf.mxu0  ;;  %2024 = vmatmul.bf16.vlgmr.msra.gmra.mxu1 %v12048_v35 }
 0x126   : > { %2073 = vmatmul.bf16.vlgmr.msra.gmra.mxu2 %v12014_v43  ;;  %v2683_v61 = vmul.f32 0.2, %v1830_v33  ;;  %vm2555_vm0 = vcmp.gt.f32.partialorder %v1830_v33, 0.0 }
 0x127   : > { %2122 = vmatmul.bf16.vlgmr.msra.gmra.mxu3 %v12048_v35 }
 0x128   : > { %2171 = vmatmul.bf16.vlgmr.msra.gmra.mxu0 %v12014_v43  ;;  %v12164_v10 = vsel %vm2555_vm0, %v1830_v33, %v2683_v61  ;;  %v1788_v33 = vadd.f32 %v12139_v13, %v12107_v36 }
 0x129   : > { %v1878_v55 = vpop.f32.mrf.mxu2 }
 0x12a   : > { %v1927_v56 = vpop.f32.mrf.mxu3  ;;  %v1879_v58 = vadd.f32 %v1878_v55, %v12156_v28 }
 0x12b   : > { %v1831_v59 = vpop.f32.mrf.mxu1 }
 0x12c   : > { %v1832_v0 = vadd.f32 %v1831_v59, %v1783_v37  ;;  %v1928_v5 = vadd.f32 %v1927_v56, %v1879_v58  ;;  %v8894_v56 = vor.u32 %v10472_v41, %v8891_v42 }
 0x12d   : > { %v12161_v53 = vpop.f32.mrf.mxu0 }
 0x12e   : > { %vm2563_vm1 = vcmp.gt.f32.partialorder %v1832_v0, 0.0  ;;  %v2691_v6 = vmul.f32 0.2, %v1832_v0  ;;  %v2684_v30 = vmul.f32 0.2, %v1928_v5  ;;  %vm2556_vm2 = vcmp.gt.f32.partialorder %v1928_v5, 0.0  ;;  %2264 = vmatpush.bf16.msrb.mxu2 %v8894_v56 }
 0x130   : > { %v12166_v15 = vsel %vm2563_vm1, %v1832_v0, %v2691_v6  ;;  %v12179_v50 = vsel %vm2556_vm2, %v1928_v5, %v2684_v30  ;;  %v9150_v0 = vor.u32 %v10536_v45, %v9147_v57 }
 0x131   : > { %v1880_v19 = vpop.f32.mrf.mxu2  ;;  %14620 = vst [vmem:[#allocation40_spill] sm:$0xff] %v12179_v50 }
 0x132   : > { %v1929_v21 = vpop.f32.mrf.mxu3  ;;  %v1881_v22 = vadd.f32 %v1880_v19, %v12156_v28  ;;  %2313 = vmatpush.bf16.msrb.mxu3 %v9150_v0  ;;  %v9145_v19 = vld [vmem:[#allocation2 + $0x310] sm:$0xf]  ;;  %v8859_v0 = vld [vmem:[#allocation2 + $0xf0] sm:$0xf0] }
 0x133   : > { %v1834_v23 = vpop.f32.mrf.mxu1 }
 0x134   : > { %v1835_v24 = vadd.f32 %v1834_v23, %v1786_v9  ;;  %v1930_v37 = vadd.f32 %v1929_v21, %v1881_v22  ;;  %v10540_v21 = vld [vmem:[#allocation2 + $0x32c] sm:$0xf0] }
 0x135   : > { %v12171_v38 = vpop.f32.mrf.mxu0  ;;  %2029 = vmatmul.bf16.gmra.mxu1 %v12056_v60  ;;  %v9146_v30 = vor.u32 %v10540_v21, %v9145_v19  ;;  %v1793_v19 = vadd.f32 %v12115_v54, %v12107_v36  ;;  %v9113_v54 = vld [vmem:[#allocation2 + $0x2d0] sm:$0xf] }
 0x136   : > { %vm2564_vm3 = vcmp.gt.f32.partialorder %v1930_v37, 0.0  ;;  %v2692_v3 = vmul.f32 0.2, %v1930_v37  ;;  %2078 = vmatmul.bf16.gmra.mxu2 %v12034_v39  ;;  %v2699_v7 = vmul.f32 0.2, %v1835_v24  ;;  %vm2571_vm4 = vcmp.gt.f32.partialorder %v1835_v24, 0.0 }
 0x137   : > { %2127 = vmatmul.bf16.gmra.mxu3 %v12056_v60  ;;  %2215 = vmatpush.bf16.msrb.mxu1 %v9146_v30 }
 0x138   : > { %2176 = vmatmul.bf16.gmra.mxu0 %v12034_v39  ;;  %v12181_v55 = vsel %vm2564_vm3, %v1930_v37, %v2692_v3  ;;  %v12188_v22 = vsel %vm2571_vm4, %v1835_v24, %v2699_v7  ;;  %v1791_v3 = vadd.f32 %v12098_v29, %v12107_v36  ;;  %v10464_v29 = vld [vmem:[#allocation2 + $0xd4] sm:$0xf] }
 0x139   : > { %14621 = vst [vmem:[#allocation41_spill] sm:$0xff] %v12181_v55  ;;  %v1883_v59 = vpop.f32.mrf.mxu2  ;;  %v9115_v7 = vld [vmem:[#allocation2 + $0x2f0] sm:$0xf0] }
 0x13a   : > { %v1932_v61 = vpop.f32.mrf.mxu3  ;;  %v1884_v6 = vadd.f32 %v1883_v59, %v12156_v28 }
 0x13b   : > { %v1836_v13 = vpop.f32.mrf.mxu1 }
 0x13c   : > { %v1837_v9 = vadd.f32 %v1836_v13, %v1788_v33  ;;  %v1933_v5 = vadd.f32 %v1932_v61, %v1884_v6  ;;  %v10528_v6 = vld [vmem:[#allocation2 + $0x2d4] sm:$0xf]  ;;  %v8862_v13 = vor.u32 %v10464_v29, %v8859_v0 }
 0x13d   : > { %v12186_v16 = vpop.f32.mrf.mxu0 }
 0x13e   : > { %vm2579_vm5 = vcmp.gt.f32.partialorder %v1837_v9, 0.0  ;;  %v2707_v18 = vmul.f32 0.2, %v1837_v9  ;;  %v2700_v57 = vmul.f32 0.2, %v1933_v5  ;;  %vm2572_vm6 = vcmp.gt.f32.partialorder %v1933_v5, 0.0  ;;  %2265 = vmatpush.bf16.msrb.mxu2 %v8862_v13 }
 0x13f   : > { %v1796_v13 = vadd.f32 %v12127_v4, %v12107_v36  ;;  %v10456_v4 = vld [vmem:[#allocation2 + $0x94] sm:$0xf] }
 0x140   : > { %v12190_v23 = vsel %vm2579_vm5, %v1837_v9, %v2707_v18  ;;  %v12203_v9 = vsel %vm2572_vm6, %v1933_v5, %v2700_v57 }
 0x141   : > { %v1885_v33 = vpop.f32.mrf.mxu2  ;;  %14622 = vst [vmem:[#allocation42_spill] sm:$0xff] %v12203_v9 }
 0x142   : > { %v1934_v41 = vpop.f32.mrf.mxu3  ;;  %v1886_v42 = vadd.f32 %v1885_v33, %v12156_v28 }
 0x143   : > { %v1839_v45 = vpop.f32.mrf.mxu1 }
 0x144   : > { %v1840_v56 = vadd.f32 %v1839_v45, %v1791_v3  ;;  %v1935_v59 = vadd.f32 %v1934_v41, %v1886_v42  ;;  %v9118_v3 = vor.u32 %v10528_v6, %v9115_v7 }
 0x145   : > { %v12197_v24 = vpop.f32.mrf.mxu0  ;;  %2034 = vmatmul.bf16.gmra.mxu1 %v12064_v8 }
 0x146   : > { %vm2580_vm7 = vcmp.gt.f32.partialorder %v1935_v59, 0.0  ;;  %v2708_v61 = vmul.f32 0.2, %v1935_v59  ;;  %2083 = vmatmul.bf16.gmra.mxu2 %v12016_v44  ;;  %v2715_v45 = vmul.f32 0.2, %v1840_v56  ;;  %2314 = vmatpush.bf16.msrb.mxu3 %v9118_v3  ;;  %vm2587_vm8 = vcmp.gt.f32.partialorder %v1840_v56, 0.0 }
 0x147   : > { %2132 = vmatmul.bf16.gmra.mxu3 %v12064_v8 }
 0x148   : > { %2181 = vmatmul.bf16.gmra.mxu0 %v12016_v44  ;;  %v12205_v18 = vsel %vm2580_vm7, %v1935_v59, %v2708_v61  ;;  %v10532_v61 = vld [vmem:[#allocation2 + $0x2ec] sm:$0xf0]  ;;  %v12214_v0 = vsel %vm2587_vm8, %v1840_v56, %v2715_v45 }
 0x149   : > { %14623 = vst [vmem:[#allocation43_spill] sm:$0xff] %v12205_v18  ;;  %v1888_v21 = vpop.f32.mrf.mxu2  ;;  %v9114_v7 = vor.u32 %v10532_v61, %v9113_v54  ;;  %v9083_v61 = vld [vmem:[#allocation2 + $0x2b0] sm:$0xf0]  ;;  %v10493_v18 = vld [vmem:[#allocation2 + $0x1b4] sm:$0xf0] }
 0x14a   : > { %v1937_v30 = vpop.f32.mrf.mxu3  ;;  %v1889_v41 = vadd.f32 %v1888_v21, %v12156_v28 }
 0x14b   : > { %v1841_v42 = vpop.f32.mrf.mxu1  ;;  %2216 = vmatpush.bf16.msrb.mxu1 %v9114_v7 }
 0x14c   : > { %v1842_v29 = vadd.f32 %v1841_v42, %v1793_v19  ;;  %v1938_v5 = vadd.f32 %v1937_v30, %v1889_v41 }
 0x14d   : > { %v12212_v57 = vpop.f32.mrf.mxu0 }
 0x14e   : > { %vm2595_vm9 = vcmp.gt.f32.partialorder %v1842_v29, 0.0  ;;  %v2723_v59 = vmul.f32 0.2, %v1842_v29  ;;  %v2716_v33 = vmul.f32 0.2, %v1938_v5  ;;  %vm2588_vm10 = vcmp.gt.f32.partialorder %v1938_v5, 0.0 }
 0x150   : > { %v12216_v6 = vsel %vm2595_vm9, %v1842_v29, %v2723_v59  ;;  %v8827_v29 = vld [vmem:[#allocation2 + $0xb0] sm:$0xf0]  ;;  %v12229_v7 = vsel %vm2588_vm10, %v1938_v5, %v2716_v33 }
 0x151   : > { %v1890_v19 = vpop.f32.mrf.mxu2  ;;  %v10520_v59 = vld [vmem:[#allocation2 + $0x294] sm:$0xf]  ;;  %v8830_v54 = vor.u32 %v10456_v4, %v8827_v29  ;;  %14624 = vst [vmem:[#allocation44_spill] sm:$0xff] %v12229_v7 }
 0x152   : > { %v1939_v3 = vpop.f32.mrf.mxu3  ;;  %v1891_v30 = vadd.f32 %v1890_v19, %v12156_v28  ;;  %v1798_v19 = vadd.f32 %v12141_v14, %v12107_v36  ;;  %v9081_v36 = vld [vmem:[#allocation2 + $0x290] sm:$0xf] }
 0x153   : > { %v1844_v41 = vpop.f32.mrf.mxu1  ;;  %2266 = vmatpush.bf16.msrb.mxu2 %v8830_v54  ;;  %v10524_v14 = vld [vmem:[#allocation2 + $0x2ac] sm:$0xf0] }
 0x154   : > { %v1845_v42 = vadd.f32 %v1844_v41, %v1796_v13  ;;  %v1940_v58 = vadd.f32 %v1939_v3, %v1891_v30  ;;  %v9086_v41 = vor.u32 %v10520_v59, %v9083_v61  ;;  %v9082_v59 = vor.u32 %v10524_v14, %v9081_v36  ;;  %v8795_v36 = vld [vmem:[#allocation2 + $0x70] sm:$0xf0] }
 0x155   : > { %v12223_v56 = vpop.f32.mrf.mxu0  ;;  %2039 = vmatmul.bf16.gmra.mxu1 %v12072_v20  ;;  %v10512_v14 = vld [vmem:[#allocation2 + $0x254] sm:$0xf] }
 0x156   : > { %vm2596_vm11 = vcmp.gt.f32.partialorder %v1940_v58, 0.0  ;;  %v2724_v45 = vmul.f32 0.2, %v1940_v58  ;;  %2088 = vmatmul.bf16.gmra.mxu2 %v12036_v40  ;;  %v2731_v9 = vmul.f32 0.2, %v1845_v42  ;;  %2315 = vmatpush.bf16.msrb.mxu3 %v9086_v41  ;;  %vm2603_vm12 = vcmp.gt.f32.partialorder %v1845_v42, 0.0 }
 0x157   : > { %2137 = vmatmul.bf16.gmra.mxu3 %v12072_v20  ;;  %2217 = vmatpush.bf16.msrb.mxu1 %v9082_v59 }
 0x158   : > { %2186 = vmatmul.bf16.gmra.mxu0 %v12036_v40  ;;  %v12231_v13 = vsel %vm2596_vm11, %v1940_v58, %v2724_v45  ;;  %v12240_v45 = vsel %vm2603_vm12, %v1845_v42, %v2731_v9  ;;  %v8993_v9 = vld [vmem:[#allocation2 + $0x1d8] sm:$0xf] }
 0x159   : > { %14625 = vst [vmem:[#allocation45_spill] sm:$0xff] %v12231_v13  ;;  %v1893_v3 = vpop.f32.mrf.mxu2  ;;  %v8961_v13 = vld [vmem:[#allocation2 + $0x198] sm:$0xf] }
 0x15a   : > { %v1942_v30 = vpop.f32.mrf.mxu3  ;;  %v1894_v37 = vadd.f32 %v1893_v3, %v12156_v28  ;;  %14626 = vst [vmem:[#allocation46_spill] sm:$0xff] %v12240_v45 }
 0x15b   : > { %v1846_v17 = vpop.f32.mrf.mxu1 }
 0x15c   : > { %v1847_v4 = vadd.f32 %v1846_v17, %v1798_v19  ;;  %v1943_v33 = vadd.f32 %v1942_v30, %v1894_v37 }
 0x15d   : > { %v12238_v58 = vpop.f32.mrf.mxu0 }
 0x15e   : > { %vm2611_vm13 = vcmp.gt.f32.partialorder %v1847_v4, 0.0  ;;  %v2739_v5 = vmul.f32 0.2, %v1847_v4  ;;  %v2732_v30 = vmul.f32 0.2, %v1943_v33  ;;  %vm2604_vm14 = vcmp.gt.f32.partialorder %v1943_v33, 0.0 }
 0x160   : > { %v12242_v29 = vsel %vm2611_vm13, %v1847_v4, %v2739_v5  ;;  %v10501_v4 = vld [vmem:[#allocation2 + $0x1f4] sm:$0xf0]  ;;  %v10448_v5 = vld [vmem:[#allocation2 + $0x54] sm:$0xf] }
 0x161   : > { %14627 = vst [vmem:[#allocation47_spill] sm:$0xff] %v12242_v29  ;;  %v1895_v54 = vpop.f32.mrf.mxu2  ;;  %v8798_v59 = vor.u32 %v10448_v5, %v8795_v36  ;;  %v8929_v5 = vld [vmem:[#allocation2 + $0x158] sm:$0xf]  ;;  %v9049_v36 = vld [vmem:[#allocation2 + $0x250] sm:$0xf] }
 0x162   : > { %v1944_v3 = vpop.f32.mrf.mxu3  ;;  %v1896_v17 = vadd.f32 %v1895_v54, %v12156_v28  ;;  %v9051_v54 = vld [vmem:[#allocation2 + $0x270] sm:$0xf0] }
 0x163   : > { %v1849_v19 = vpop.f32.mrf.mxu1  ;;  %v9054_v7 = vor.u32 %v10512_v14, %v9051_v54  ;;  %2267 = vmatpush.bf16.msrb.mxu2 %v8798_v59  ;;  %v10485_v14 = vld [vmem:[#allocation2 + $0x174] sm:$0xf0] }
 0x164   : > { %v1850_v37 = vadd.f32 %v1849_v19, %v12110_v51  ;;  %v1945_v41 = vadd.f32 %v1944_v3, %v1896_v17  ;;  %v8994_v51 = vor.u32 %v10501_v4, %v8993_v9  ;;  %v12254_v3 = vsel %vm2604_vm14, %v1943_v33, %v2732_v30 }
 0x165   : > { %v12248_v21 = vpop.f32.mrf.mxu0  ;;  %2044 = vmatmul.bf16.gmra.mxu1 %v12080_v32  ;;  %14628 = vst [vmem:[#allocation48_spill] sm:$0xff] %v12254_v3  ;;  %v8962_v9 = vor.u32 %v10493_v18, %v8961_v13  ;;  %2316 = vmatpush.bf16.msrb.mxu3 %v9054_v7  ;;  %v8930_v13 = vor.u32 %v10485_v14, %v8929_v5  ;;  %v8865_v5 = vld [vmem:[#allocation2 + $0xd8] sm:$0xf]  ;;  %v10440_v14 = vld [vmem:[#allocation2 + $0x14] sm:$0xf] }
 0x166   : > { %vm2612_vm15 = vcmp.gt.f32.partialorder %v1945_v41, 0.0  ;;  %v2740_v42 = vmul.f32 0.2, %v1945_v41  ;;  %2093 = vmatmul.bf16.gmra.mxu2 %v12018_v48  ;;  %2359 = vmatpush.bf16.msrb.mxu0 %v8994_v51  ;;  %v2747_v4 = vmul.f32 0.2, %v1850_v37  ;;  %vm2619_vm0 = vcmp.gt.f32.partialorder %v1850_v37, 0.0 }
 0x167   : > { %2142 = vmatmul.bf16.gmra.mxu3 %v12080_v32  ;;  %v10516_v51 = vld [vmem:[#allocation2 + $0x26c] sm:$0xf0]  ;;  %v8833_v3 = vld [vmem:[#allocation2 + $0x98] sm:$0xf] }
 0x168   : > { %2191 = vmatmul.bf16.gmra.mxu0 %v12018_v48  ;;  %v12256_v17 = vsel %vm2612_vm15, %v1945_v41, %v2740_v42  ;;  %v12264_v54 = vsel %vm2619_vm0, %v1850_v37, %v2747_v4  ;;  %v9050_v18 = vor.u32 %v10516_v51, %v9049_v36  ;;  %v10469_v51 = vld [vmem:[#allocation2 + $0xf4] sm:$0xf0] }
 0x169   : > { %14629 = vst [vmem:[#allocation49_spill] sm:$0xff] %v12256_v17  ;;  %v1898_v19 = vpop.f32.mrf.mxu2  ;;  %v10461_v17 = vld [vmem:[#allocation2 + $0xb4] sm:$0xf0] }
 0x16a   : > { %v1947_v61 = vpop.f32.mrf.mxu3  ;;  %v1899_v55 = vadd.f32 %v1898_v19, %v12156_v28  ;;  %2360 = vmatpush.bf16.msrb.mxu0 %v8962_v9  ;;  %14630 = vst [vmem:[#allocation50_spill] sm:$0xff] %v12264_v54  ;;  %2218 = vmatpush.bf16.msrb.mxu1 %v9050_v18  ;;  %v10504_v18 = vld [vmem:[#allocation2 + $0x214] sm:$0xf] }
 0x16b   : > { %v1851_v45 = vpop.f32.mrf.mxu1 }
 0x16c   : > { %v1852_v33 = vadd.f32 %v1851_v45, %v12122_v1  ;;  %v1948_v30 = vadd.f32 %v1947_v61, %v1899_v55  ;;  %v8897_v45 = vld [vmem:[#allocation2 + $0x118] sm:$0xf] }
 0x16d   : > { %v12262_v41 = vpop.f32.mrf.mxu0  ;;  %v10477_v61 = vld [vmem:[#allocation2 + $0x134] sm:$0xf0] }
 0x16e   : > { %vm2627_vm1 = vcmp.gt.f32.partialorder %v1852_v33, 0.0  ;;  %v2755_v42 = vmul.f32 0.2, %v1852_v33  ;;  %2361 = vmatpush.bf16.msrb.mxu0 %v8930_v13  ;;  %v2748_v37 = vmul.f32 0.2, %v1948_v30  ;;  %vm2620_vm2 = vcmp.gt.f32.partialorder %v1948_v30, 0.0 }
 0x170   : > { %v12266_v19 = vsel %vm2627_vm1, %v1852_v33, %v2755_v42  ;;  %v8898_v42 = vor.u32 %v10477_v61, %v8897_v45  ;;  %v12279_v45 = vsel %vm2620_vm2, %v1948_v30, %v2748_v37 }
 0x171   : > { %14631 = vst [vmem:[#allocation51_spill] sm:$0xff] %v12266_v19  ;;  %v1900_v7 = vpop.f32.mrf.mxu2 }
 0x172   : > { %v1949_v55 = vpop.f32.mrf.mxu3  ;;  %v1901_v59 = vadd.f32 %v1900_v7, %v12156_v28  ;;  %2362 = vmatpush.bf16.msrb.mxu0 %v8898_v42  ;;  %v8866_v7 = vor.u32 %v10469_v51, %v8865_v5  ;;  %14632 = vst [vmem:[#allocation52_spill] sm:$0xff] %v12279_v45  ;;  %v8801_v51 = vld [vmem:[#allocation2 + $0x58] sm:$0xf] }
 0x173   : > { %v1854_v9 = vpop.f32.mrf.mxu1 }
 0x174   : > { %v1855_v50 = vadd.f32 %v1854_v9, %v12134_v11  ;;  %v1950_v4 = vadd.f32 %v1949_v55, %v1901_v59  ;;  %v8763_v11 = vld [vmem:[#allocation2 + $0x30] sm:$0xf0] }
 0x175   : > { %v12272_v33 = vpop.f32.mrf.mxu0  ;;  %2049 = vmatmul.bf16.gmra.mxu1 %v12088_v63  ;;  %v8766_v13 = vor.u32 %v10440_v14, %v8763_v11  ;;  %v9019_v55 = vld [vmem:[#allocation2 + $0x230] sm:$0xf0]  ;;  %v9017_v14 = vld [vmem:[#allocation2 + $0x210] sm:$0xf] }
 0x176   : > { %vm2628_vm3 = vcmp.gt.f32.partialorder %v1950_v4, 0.0  ;;  %v2756_v36 = vmul.f32 0.2, %v1950_v4  ;;  %2098 = vmatmul.bf16.gmra.mxu2 %v12038_v46  ;;  %v9022_v1 = vor.u32 %v10504_v18, %v9019_v55  ;;  %v2763_v42 = vmul.f32 0.2, %v1855_v50  ;;  %2363 = vmatpush.bf16.msrb.mxu0 %v8866_v7 }
 0x177   : > { %2147 = vmatmul.bf16.gmra.mxu3 %v12088_v63  ;;  %2268 = vmatpush.bf16.msrb.mxu2 %v8766_v13  ;;  %vm2635_vm4 = vcmp.gt.f32.partialorder %v1855_v50, 0.0  ;;  %v10508_v11 = vld [vmem:[#allocation2 + $0x22c] sm:$0xf0]  ;;  %v10453_v18 = vld [vmem:[#allocation2 + $0x74] sm:$0xf0] }
 0x178   : > { %2196 = vmatmul.bf16.gmra.mxu0 %v12038_v46  ;;  %v12281_v61 = vsel %vm2628_vm3, %v1950_v4, %v2756_v36  ;;  %2317 = vmatpush.bf16.msrb.mxu3 %v9022_v1  ;;  %v8834_v4 = vor.u32 %v10461_v17, %v8833_v3  ;;  %v12289_v55 = vsel %vm2635_vm4, %v1855_v50, %v2763_v42  ;;  %v8769_v7 = vld [vmem:[#allocation2 + $0x18] sm:$0xf] }
 0x179   : > { %14633 = vst [vmem:[#allocation53_spill] sm:$0xff] %v12281_v61  ;;  %v1903_v59 = vpop.f32.mrf.mxu2  ;;  %v9018_v13 = vor.u32 %v10508_v11, %v9017_v14  ;;  %v10445_v3 = vld [vmem:[#allocation2 + $0x34] sm:$0xf0]  ;;  %v8995_v14 = vld [vmem:[#allocation2 + $0x1f8] sm:$0xf0] }
 0x17a   : > { %v1952_v9 = vpop.f32.mrf.mxu3  ;;  %v1904_v19 = vadd.f32 %v1903_v59, %v12156_v28  ;;  %2364 = vmatpush.bf16.msrb.mxu0 %v8834_v4  ;;  %v8770_v4 = vor.u32 %v10445_v3, %v8769_v7  ;;  %v10561_v11 = vld [vmem:[#allocation2 + $0x3dc] sm:$0xf] }
 0x17b   : > { %v1856_v29 = vpop.f32.mrf.mxu1  ;;  %2219 = vmatpush.bf16.msrb.mxu1 %v9018_v13 }
 0x17c   : > { %v1857_v5 = vadd.f32 %v1856_v29, %v12145_v26  ;;  %v1953_v30 = vadd.f32 %v1952_v9, %v1904_v19  ;;  %v8802_v26 = vor.u32 %v10453_v18, %v8801_v51  ;;  %v10497_v51 = vld [vmem:[#allocation2 + $0x1dc] sm:$0xf] }
 0x17d   : > { %v12287_v37 = vpop.f32.mrf.mxu0  ;;  %v9251_v18 = vld [vmem:[#allocation2 + $0x3f8] sm:$0xf0] }
 0x17e   : > { %vm2643_vm5 = vcmp.gt.f32.partialorder %v1857_v5, 0.0  ;;  %v2771_v36 = vmul.f32 0.2, %v1857_v5  ;;  %v2764_v50 = vmul.f32 0.2, %v1953_v30  ;;  %2365 = vmatpush.bf16.msrb.mxu0 %v8802_v26  ;;  %vm2636_vm6 = vcmp.gt.f32.partialorder %v1953_v30, 0.0 }
 0x17f   : > { %v9254_v7 = vor.u32 %v10561_v11, %v9251_v18  ;;  %v10565_v11 = vld [vmem:[#allocation2 + $0x3f4] sm:$0xf0] }
 0x180   : > { %v12291_v59 = vsel %vm2643_vm5, %v1857_v5, %v2771_v36  ;;  %v12303_v13 = vsel %vm2636_vm6, %v1953_v30, %v2764_v50 }
 0x181   : > { %v1905_v19 = vpop.f32.mrf.mxu2  ;;  %14634 = vst [vmem:[#allocation54_spill] sm:$0xff] %v12303_v13  ;;  %2506 = vmatpush.bf16.msra.mxu3 %v9254_v7  ;;  %v9219_v13 = vld [vmem:[#allocation2 + $0x3b8] sm:$0xf0] }
 0x182   : > { %v1954_v1 = vpop.f32.mrf.mxu3  ;;  %v1906_v17 = vadd.f32 %v1905_v19, %v12156_v28  ;;  %2366 = vmatpush.bf16.msrb.mxu0 %v8770_v4 }
 0x183   : > { %v1859_v9 = vpop.f32.mrf.mxu1 }
 0x184   : > { %v1860_v54 = vadd.f32 %v1859_v9, %v12113_v52  ;;  %v1955_v42 = vadd.f32 %v1954_v1, %v1906_v17  ;;  %v8998_v52 = vor.u32 %v10497_v51, %v8995_v14  ;;  %v9249_v14 = vld [vmem:[#allocation2 + $0x3d8] sm:$0xf] }
 0x185   : > { %v12297_v5 = vpop.f32.mrf.mxu0  ;;  %2054 = vmatmul.bf16.gmra.mxu1 %v12096_v25  ;;  %v9250_v3 = vor.u32 %v10565_v11, %v9249_v14  ;;  %v10489_v14 = vld [vmem:[#allocation2 + $0x19c] sm:$0xf] }
 0x186   : > { %vm2644_vm7 = vcmp.gt.f32.partialorder %v1955_v42, 0.0  ;;  %v2772_v36 = vmul.f32 0.2, %v1955_v42  ;;  %2103 = vmatmul.bf16.gmra.mxu2 %v12020_v49  ;;  %v2779_v29 = vmul.f32 0.2, %v1860_v54  ;;  %vm2651_vm8 = vcmp.gt.f32.partialorder %v1860_v54, 0.0 }
 0x187   : > { %2152 = vmatmul.bf16.gmra.mxu3 %v12096_v25  ;;  %2457 = vmatpush.bf16.msra.mxu2 %v8998_v52  ;;  %v8963_v11 = vld [vmem:[#allocation2 + $0x1b8] sm:$0xf0] }
 0x188   : > { %2201 = vmatmul.bf16.gmra.mxu0 %v12020_v49  ;;  %v12305_v26 = vsel %vm2644_vm7, %v1955_v42, %v2772_v36  ;;  %v12313_v42 = vsel %vm2651_vm8, %v1860_v54, %v2779_v29  ;;  %2408 = vmatpush.bf16.msra.mxu1 %v9250_v3  ;;  %v8966_v18 = vor.u32 %v10489_v14, %v8963_v11  ;;  %v10557_v14 = vld [vmem:[#allocation2 + $0x3b4] sm:$0xf0] }
 0x189   : > { %14635 = vst [vmem:[#allocation55_spill] sm:$0xff] %v12305_v26  ;;  %v1908_v19 = vpop.f32.mrf.mxu2  ;;  %v12335_v26 = vperm.slane %v12100_v31, 2 }
 0x18a   : > { %v1957_v1 = vpop.f32.mrf.mxu3  ;;  %v1909_v17 = vadd.f32 %v1908_v19, %v12156_v28  ;;  %14636 = vst [vmem:[#allocation56_spill] sm:$0xff] %v12313_v42 }
 0x18b   : > { %v1861_v9 = vpop.f32.mrf.mxu1  ;;  %2458 = vmatpush.bf16.msra.mxu2 %v8966_v18 }
 0x18c   : > { %v1862_v4 = vadd.f32 %v1861_v9, %v12125_v2  ;;  %v1958_v51 = vadd.f32 %v1957_v1, %v1909_v17 }
 0x18d   : > { %v12311_v30 = vpop.f32.mrf.mxu0 }
 0x18e   : > { %vm2659_vm9 = vcmp.gt.f32.partialorder %v1862_v4, 0.0  ;;  %v2787_v50 = vmul.f32 0.2, %v1862_v4  ;;  %v2780_v17 = vmul.f32 0.2, %v1958_v51  ;;  %vm2652_vm10 = vcmp.gt.f32.partialorder %v1958_v51, 0.0 }
 0x190   : > { %v12315_v36 = vsel %vm2659_vm9, %v1862_v4, %v2787_v50  ;;  %v12327_v4 = vsel %vm2652_vm10, %v1958_v51, %v2780_v17 }
 0x191   : > { %v1910_v52 = vpop.f32.mrf.mxu2  ;;  %14637 = vst [vmem:[#allocation57_spill] sm:$0xff] %v12327_v4 }
 0x192   : > { %v1959_v19 = vpop.f32.mrf.mxu3  ;;  %v1911_v2 = vadd.f32 %v1910_v52, %v12156_v28  ;;  %v10553_v52 = vld [vmem:[#allocation2 + $0x39c] sm:$0xf] }
 0x193   : > { %v1864_v7 = vpop.f32.mrf.mxu1 }
 0x194   : > { %v1865_v1 = vadd.f32 %v1864_v7, %v12137_v12  ;;  %v1960_v9 = vadd.f32 %v1959_v19, %v1911_v2  ;;  %v9217_v19 = vld [vmem:[#allocation2 + $0x398] sm:$0xf] }
 0x195   : > { %v12321_v54 = vpop.f32.mrf.mxu0  ;;  %2059 = vmatmul.bf16.gmra.mxu1 %v12119_v62 }
 0x196   : > { %vm2660_vm11 = vcmp.gt.f32.partialorder %v1960_v9, 0.0  ;;  %v2788_v29 = vmul.f32 0.2, %v1960_v9  ;;  %2108 = vmatmul.bf16.gmra.mxu2 %v12040_v47  ;;  %v2795_v51 = vmul.f32 0.2, %v1865_v1  ;;  %vm2667_vm12 = vcmp.gt.f32.partialorder %v1865_v1, 0.0 }
 0x197   : > { %2157 = vmatmul.bf16.gmra.mxu3 %v12119_v62 }
 0x198   : > { %2206 = vmatmul.bf16.gmra.mxu0 %v12040_v47  ;;  %v12329_v50 = vsel %vm2660_vm11, %v1960_v9, %v2788_v29  ;;  %v9222_v9 = vor.u32 %v10553_v52, %v9219_v13  ;;  %v12342_v11 = vsel %vm2667_vm12, %v1865_v1, %v2795_v51  ;;  %v8931_v1 = vld [vmem:[#allocation2 + $0x178] sm:$0xf0] }
 0x199   : > { %14638 = vst [vmem:[#allocation58_spill] sm:$0xff] %v12329_v50  ;;  %v1913_v12 = vpop.f32.mrf.mxu2  ;;  %v9218_v50 = vor.u32 %v10557_v14, %v9217_v19  ;;  %v9187_v51 = vld [vmem:[#allocation2 + $0x378] sm:$0xf0]  ;;  %v1979_v14 = vadd.f32 %v12161_v53, %v12335_v26  ;;  %v9185_v53 = vld [vmem:[#allocation2 + $0x358] sm:$0xf] }
 0x19a   : > { %v1962_v3 = vpop.f32.mrf.mxu3  ;;  %v1914_v2 = vadd.f32 %v1913_v12, %v12156_v28  ;;  %2507 = vmatpush.bf16.msra.mxu3 %v9222_v9  ;;  %v1977_v12 = vadd.f32 %v12150_v34, %v12335_v26  ;;  %14639 = vst [vmem:[#allocation59_spill] sm:$0xff] %v12342_v11 }
 0x19b   : > { %v1866_v7 = vpop.f32.mrf.mxu1  ;;  %2409 = vmatpush.bf16.msra.mxu1 %v9218_v50  ;;  %v10545_v50 = vld [vmem:[#allocation2 + $0x35c] sm:$0xf] }
 0x19c   : > { %v1867_v17 = vadd.f32 %v1866_v7, %v12148_v27  ;;  %v1963_v29 = vadd.f32 %v1962_v3, %v1914_v2 }
 0x19d   : > { %v12338_v45 = vpop.f32.mrf.mxu0 }
 0x19e   : > { %vm2675_vm13 = vcmp.gt.f32.partialorder %v1867_v17, 0.0  ;;  %v2803_v61 = vmul.f32 0.2, %v1867_v17  ;;  %v2796_v7 = vmul.f32 0.2, %v1963_v29  ;;  %vm2668_vm14 = vcmp.gt.f32.partialorder %v1963_v29, 0.0 }
 0x1a0   : > { %v12344_v4 = vsel %vm2675_vm13, %v1867_v17, %v2803_v61  ;;  %v12355_v61 = vperm.slane %v12100_v31, 3  ;;  %v12358_v17 = vsel %vm2668_vm14, %v1963_v29, %v2796_v7 }
 0x1a1   : > { %14640 = vst [vmem:[#allocation60_spill] sm:$0xff] %v12344_v4  ;;  %v1915_v13 = vpop.f32.mrf.mxu2 }
 0x1a2   : > { %v1964_v3 = vpop.f32.mrf.mxu3  ;;  %v1916_v18 = vadd.f32 %v1915_v13, %v12156_v28  ;;  %v10481_v28 = vld [vmem:[#allocation2 + $0x15c] sm:$0xf]  ;;  %14641 = vst [vmem:[#allocation61_spill] sm:$0xff] %v12358_v17 }
 0x1a3   : > { %v2025_v52 = vpop.f32.mrf.mxu1  ;;  %v8934_v19 = vor.u32 %v10481_v28, %v8931_v1 }
 0x1a4   : > { %v2026_v2 = vadd.f32 %v2025_v52, %v1977_v12  ;;  %v1965_v9 = vadd.f32 %v1964_v3, %v1916_v18  ;;  %v9190_v18 = vor.u32 %v10545_v50, %v9187_v51  ;;  %v10549_v51 = vld [vmem:[#allocation2 + $0x374] sm:$0xf0] }
 0x1a5   : > { %v12349_v42 = vpop.f32.mrf.mxu0  ;;  %2220 = vmatmul.bf16.vlgmr.msrb.gmra.mxu1 %v12048_v35  ;;  %2459 = vmatpush.bf16.msra.mxu2 %v8934_v19 }
 0x1a6   : > { %vm2676_vm15 = vcmp.gt.f32.partialorder %v1965_v9, 0.0  ;;  %v2804_v34 = vmul.f32 0.2, %v1965_v9  ;;  %2269 = vmatmul.bf16.vlgmr.msrb.gmra.mxu2 %v12014_v43  ;;  %v2685_v11 = vmul.f32 0.2, %v2026_v2  ;;  %2508 = vmatpush.bf16.msra.mxu3 %v9190_v18  ;;  %vm2557_vm0 = vcmp.gt.f32.partialorder %v2026_v2, 0.0 }
 0x1a7   : > { %2318 = vmatmul.bf16.vlgmr.msrb.gmra.mxu3 %v12048_v35 }
 0x1a8   : > { %2367 = vmatmul.bf16.vlgmr.msrb.gmra.mxu0 %v12014_v43  ;;  %v12360_v12 = vsel %vm2676_vm15, %v1965_v9, %v2804_v34  ;;  %v1982_v34 = vadd.f32 %v12171_v38, %v12335_v26  ;;  %v12371_v1 = vsel %vm2557_vm0, %v2026_v2, %v2685_v11  ;;  %v10473_v11 = vld [vmem:[#allocation2 + $0x11c] sm:$0xf] }
 0x1a9   : > { %14642 = vst [vmem:[#allocation62_spill] sm:$0xff] %v12360_v12  ;;  %v2074_v13 = vpop.f32.mrf.mxu2  ;;  %v8899_v2 = vld [vmem:[#allocation2 + $0x138] sm:$0xf0] }
 0x1aa   : > { %v2123_v3 = vpop.f32.mrf.mxu3  ;;  %v2075_v52 = vadd.f32 %v2074_v13, %v12355_v61  ;;  %14643 = vst [vmem:[#allocation63_spill] sm:$0xff] %v12371_v1 }
 0x1ab   : > { %v2027_v27 = vpop.f32.mrf.mxu1 }
 0x1ac   : > { %v2028_v28 = vadd.f32 %v2027_v27, %v1979_v14  ;;  %v2124_v29 = vadd.f32 %v2123_v3, %v2075_v52  ;;  %v9186_v27 = vor.u32 %v10549_v51, %v9185_v53  ;;  %v9155_v51 = vld [vmem:[#allocation2 + $0x338] sm:$0xf0] }
 0x1ad   : > { %v12367_v7 = vpop.f32.mrf.mxu0 }
 0x1ae   : > { %vm2565_vm1 = vcmp.gt.f32.partialorder %v2028_v28, 0.0  ;;  %v2693_v9 = vmul.f32 0.2, %v2028_v28  ;;  %2410 = vmatpush.bf16.msra.mxu1 %v9186_v27  ;;  %v2686_v31 = vmul.f32 0.2, %v2124_v29  ;;  %vm2558_vm2 = vcmp.gt.f32.partialorder %v2124_v29, 0.0 }
 0x1af   : > { %v1984_v27 = vadd.f32 %v12186_v16, %v12335_v26  ;;  %v9153_v16 = vld [vmem:[#allocation2 + $0x318] sm:$0xf] }
 0x1b0   : > { %v12373_v50 = vsel %vm2565_vm1, %v2028_v28, %v2693_v9  ;;  %v10537_v28 = vld [vmem:[#allocation2 + $0x31c] sm:$0xf]  ;;  %v12384_v9 = vsel %vm2558_vm2, %v2124_v29, %v2686_v31 }
 0x1b1   : > { %14644 = vst [vmem:[#allocation64_spill] sm:$0xff] %v12373_v50  ;;  %v2076_v14 = vpop.f32.mrf.mxu2 }
 0x1b2   : > { %v2125_v13 = vpop.f32.mrf.mxu3  ;;  %v2077_v3 = vadd.f32 %v2076_v14, %v12355_v61  ;;  %14645 = vst [vmem:[#allocation65_spill] sm:$0xff] %v12384_v9 }
 0x1b3   : > { %v2030_v18 = vpop.f32.mrf.mxu1 }
 0x1b4   : > { %v2031_v52 = vadd.f32 %v2030_v18, %v1982_v34  ;;  %v2126_v17 = vadd.f32 %v2125_v13, %v2077_v3  ;;  %v8902_v34 = vor.u32 %v10473_v11, %v8899_v2  ;;  %v9158_v18 = vor.u32 %v10537_v28, %v9155_v51  ;;  %v10541_v2 = vld [vmem:[#allocation2 + $0x334] sm:$0xf0] }
 0x1b5   : > { %v12378_v12 = vpop.f32.mrf.mxu0  ;;  %2225 = vmatmul.bf16.gmra.mxu1 %v12056_v60  ;;  %v1987_v11 = vadd.f32 %v12197_v24, %v12335_v26  ;;  %v9154_v51 = vor.u32 %v10541_v2, %v9153_v16  ;;  %v9123_v16 = vld [vmem:[#allocation2 + $0x2f8] sm:$0xf0] }
 0x1b6   : > { %vm2566_vm3 = vcmp.gt.f32.partialorder %v2126_v17, 0.0  ;;  %v2694_v38 = vmul.f32 0.2, %v2126_v17  ;;  %2274 = vmatmul.bf16.gmra.mxu2 %v12034_v39  ;;  %v2701_v50 = vmul.f32 0.2, %v2031_v52  ;;  %2509 = vmatpush.bf16.msra.mxu3 %v9158_v18  ;;  %vm2573_vm4 = vcmp.gt.f32.partialorder %v2031_v52, 0.0 }
 0x1b7   : > { %2323 = vmatmul.bf16.gmra.mxu3 %v12056_v60  ;;  %2460 = vmatpush.bf16.msra.mxu2 %v8902_v34 }
 0x1b8   : > { %2372 = vmatmul.bf16.gmra.mxu0 %v12034_v39  ;;  %v12386_v53 = vsel %vm2566_vm3, %v2126_v17, %v2694_v38  ;;  %v12397_v14 = vsel %vm2573_vm4, %v2031_v52, %v2701_v50  ;;  %2411 = vmatpush.bf16.msra.mxu1 %v9154_v51  ;;  %v10465_v50 = vld [vmem:[#allocation2 + $0xdc] sm:$0xf]  ;;  %v1989_v51 = vadd.f32 %v12212_v57, %v12335_v26  ;;  %v9121_v57 = vld [vmem:[#allocation2 + $0x2d8] sm:$0xf] }
 0x1b9   : > { %14646 = vst [vmem:[#allocation66_spill] sm:$0xff] %v12386_v53  ;;  %v2079_v13 = vpop.f32.mrf.mxu2  ;;  %v8867_v52 = vld [vmem:[#allocation2 + $0xf8] sm:$0xf0] }
 0x1ba   : > { %v2128_v3 = vpop.f32.mrf.mxu3  ;;  %v2080_v19 = vadd.f32 %v2079_v13, %v12355_v61  ;;  %14647 = vst [vmem:[#allocation67_spill] sm:$0xff] %v12397_v14 }
 0x1bb   : > { %v2032_v1 = vpop.f32.mrf.mxu1 }
 0x1bc   : > { %v2033_v31 = vadd.f32 %v2032_v1, %v1984_v27  ;;  %v2129_v17 = vadd.f32 %v2128_v3, %v2080_v19 }
 0x1bd   : > { %v12393_v29 = vpop.f32.mrf.mxu0 }
 0x1be   : > { %vm2581_vm5 = vcmp.gt.f32.partialorder %v2033_v31, 0.0  ;;  %v2709_v38 = vmul.f32 0.2, %v2033_v31  ;;  %v2702_v18 = vmul.f32 0.2, %v2129_v17  ;;  %vm2574_vm6 = vcmp.gt.f32.partialorder %v2129_v17, 0.0 }
 0x1c0   : > { %v12399_v28 = vsel %vm2581_vm5, %v2033_v31, %v2709_v38  ;;  %v10529_v31 = vld [vmem:[#allocation2 + $0x2dc] sm:$0xf]  ;;  %v8870_v38 = vor.u32 %v10465_v50, %v8867_v52  ;;  %v10533_v52 = vld [vmem:[#allocation2 + $0x2f4] sm:$0xf0] }
 0x1c1   : > { %14648 = vst [vmem:[#allocation68_spill] sm:$0xff] %v12399_v28  ;;  %v2081_v34 = vpop.f32.mrf.mxu2 }
 0x1c2   : > { %v2130_v27 = vpop.f32.mrf.mxu3  ;;  %v2082_v19 = vadd.f32 %v2081_v34, %v12355_v61  ;;  %2461 = vmatpush.bf16.msra.mxu2 %v8870_v38 }
 0x1c3   : > { %v2035_v13 = vpop.f32.mrf.mxu1 }
 0x1c4   : > { %v2036_v3 = vadd.f32 %v2035_v13, %v1987_v11  ;;  %v2131_v9 = vadd.f32 %v2130_v27, %v2082_v19  ;;  %v12410_v11 = vsel %vm2574_vm6, %v2129_v17, %v2702_v18  ;;  %v9126_v19 = vor.u32 %v10529_v31, %v9123_v16 }
 0x1c5   : > { %v12404_v53 = vpop.f32.mrf.mxu0  ;;  %2230 = vmatmul.bf16.gmra.mxu1 %v12064_v8  ;;  %14649 = vst [vmem:[#allocation69_spill] sm:$0xff] %v12410_v11 }
 0x1c6   : > { %vm2582_vm7 = vcmp.gt.f32.partialorder %v2131_v9, 0.0  ;;  %v2710_v24 = vmul.f32 0.2, %v2131_v9  ;;  %2279 = vmatmul.bf16.gmra.mxu2 %v12016_v44  ;;  %v2717_v28 = vmul.f32 0.2, %v2036_v3  ;;  %2510 = vmatpush.bf16.msra.mxu3 %v9126_v19  ;;  %vm2589_vm8 = vcmp.gt.f32.partialorder %v2036_v3, 0.0 }
 0x1c7   : > { %2328 = vmatmul.bf16.gmra.mxu3 %v12064_v8 }
 0x1c8   : > { %2377 = vmatmul.bf16.gmra.mxu0 %v12016_v44  ;;  %v12412_v2 = vsel %vm2582_vm7, %v2131_v9, %v2710_v24  ;;  %v1992_v24 = vadd.f32 %v12223_v56, %v12335_v26  ;;  %v12423_v31 = vsel %vm2589_vm8, %v2036_v3, %v2717_v28  ;;  %v10457_v28 = vld [vmem:[#allocation2 + $0x9c] sm:$0xf] }
 0x1c9   : > { %14650 = vst [vmem:[#allocation70_spill] sm:$0xff] %v12412_v2  ;;  %v2084_v34 = vpop.f32.mrf.mxu2  ;;  %v8835_v3 = vld [vmem:[#allocation2 + $0xb8] sm:$0xf0] }
 0x1ca   : > { %v2133_v27 = vpop.f32.mrf.mxu3  ;;  %v2085_v1 = vadd.f32 %v2084_v34, %v12355_v61  ;;  %14651 = vst [vmem:[#allocation71_spill] sm:$0xff] %v12423_v31  ;;  %v9122_v34 = vor.u32 %v10533_v52, %v9121_v57  ;;  %v9091_v57 = vld [vmem:[#allocation2 + $0x2b8] sm:$0xf0] }
 0x1cb   : > { %v2037_v14 = vpop.f32.mrf.mxu1 }
 0x1cc   : > { %v2038_v50 = vadd.f32 %v2037_v14, %v1989_v51  ;;  %v2134_v17 = vadd.f32 %v2133_v27, %v2085_v1  ;;  %2412 = vmatpush.bf16.msra.mxu1 %v9122_v34  ;;  %v1994_v34 = vadd.f32 %v12238_v58, %v12335_v26  ;;  %v9089_v58 = vld [vmem:[#allocation2 + $0x298] sm:$0xf] }
 0x1cd   : > { %v12419_v9 = vpop.f32.mrf.mxu0 }
 0x1ce   : > { %vm2597_vm9 = vcmp.gt.f32.partialorder %v2038_v50, 0.0  ;;  %v2725_v18 = vmul.f32 0.2, %v2038_v50  ;;  %v2718_v13 = vmul.f32 0.2, %v2134_v17  ;;  %vm2590_vm10 = vcmp.gt.f32.partialorder %v2134_v17, 0.0 }
 0x1d0   : > { %v12425_v16 = vsel %vm2597_vm9, %v2038_v50, %v2725_v18  ;;  %v10521_v50 = vld [vmem:[#allocation2 + $0x29c] sm:$0xf]  ;;  %v8838_v18 = vor.u32 %v10457_v28, %v8835_v3  ;;  %v10525_v3 = vld [vmem:[#allocation2 + $0x2b4] sm:$0xf0] }
 0x1d1   : > { %14652 = vst [vmem:[#allocation72_spill] sm:$0xff] %v12425_v16  ;;  %v2086_v38 = vpop.f32.mrf.mxu2 }
 0x1d2   : > { %v2135_v51 = vpop.f32.mrf.mxu3  ;;  %v2087_v1 = vadd.f32 %v2086_v38, %v12355_v61  ;;  %2462 = vmatpush.bf16.msra.mxu2 %v8838_v18 }
 0x1d3   : > { %v2040_v27 = vpop.f32.mrf.mxu1 }
 0x1d4   : > { %v2041_v19 = vadd.f32 %v2040_v27, %v1992_v24  ;;  %v2136_v11 = vadd.f32 %v2135_v51, %v2087_v1  ;;  %v12436_v24 = vsel %vm2590_vm10, %v2134_v17, %v2718_v13  ;;  %v9094_v1 = vor.u32 %v10521_v50, %v9091_v57 }
 0x1d5   : > { %v12430_v2 = vpop.f32.mrf.mxu0  ;;  %2235 = vmatmul.bf16.gmra.mxu1 %v12072_v20  ;;  %14653 = vst [vmem:[#allocation73_spill] sm:$0xff] %v12436_v24 }
 0x1d6   : > { %vm2598_vm11 = vcmp.gt.f32.partialorder %v2136_v11, 0.0  ;;  %v2726_v56 = vmul.f32 0.2, %v2136_v11  ;;  %2284 = vmatmul.bf16.gmra.mxu2 %v12036_v40  ;;  %v2733_v16 = vmul.f32 0.2, %v2041_v19  ;;  %2511 = vmatpush.bf16.msra.mxu3 %v9094_v1  ;;  %vm2605_vm12 = vcmp.gt.f32.partialorder %v2041_v19, 0.0 }
 0x1d7   : > { %2333 = vmatmul.bf16.gmra.mxu3 %v12072_v20 }
 0x1d8   : > { %2382 = vmatmul.bf16.gmra.mxu0 %v12036_v40  ;;  %v12438_v52 = vsel %vm2598_vm11, %v2136_v11, %v2726_v56  ;;  %v1997_v56 = vadd.f32 %v12248_v21, %v12335_v26  ;;  %v12449_v50 = vsel %vm2605_vm12, %v2041_v19, %v2733_v16  ;;  %v10573_v16 = vld [vmem:[#allocation7 + $0x38] sm:$0xff]  ;;  %v10449_v19 = vld [vmem:[#allocation2 + $0x5c] sm:$0xf] }
 0x1d9   : > { %14654 = vst [vmem:[#allocation74_spill] sm:$0xff] %v12438_v52  ;;  %v2089_v38 = vpop.f32.mrf.mxu2  ;;  %3519 = vmatpush.bf16.msra.mxu0 %v10573_v16 }
 0x1da   : > { %v2138_v51 = vpop.f32.mrf.mxu3  ;;  %v2090_v14 = vadd.f32 %v2089_v38, %v12355_v61  ;;  %14655 = vst [vmem:[#allocation75_spill] sm:$0xff] %v12449_v50  ;;  %v9090_v38 = vor.u32 %v10525_v3, %v9089_v58 }
 0x1db   : > { %v2042_v31 = vpop.f32.mrf.mxu1 }
 0x1dc   : > { %v2043_v28 = vadd.f32 %v2042_v31, %v1994_v34  ;;  %v2139_v13 = vadd.f32 %v2138_v51, %v2090_v14  ;;  %2413 = vmatpush.bf16.msra.mxu1 %v9090_v38 }
 0x1dd   : > { %v12445_v11 = vpop.f32.mrf.mxu0 }
 0x1de   : > { %vm2613_vm13 = vcmp.gt.f32.partialorder %v2043_v28, 0.0  ;;  %v2741_v17 = vmul.f32 0.2, %v2043_v28  ;;  %v2734_v27 = vmul.f32 0.2, %v2139_v13  ;;  %vm2606_vm14 = vcmp.gt.f32.partialorder %v2139_v13, 0.0 }
 0x1e0   : > { %v12451_v57 = vsel %vm2613_vm13, %v2043_v28, %v2741_v17  ;;  %v8803_v28 = vld [vmem:[#allocation2 + $0x78] sm:$0xf0]  ;;  %v12462_v3 = vsel %vm2606_vm14, %v2139_v13, %v2734_v27  ;;  %v9057_v13 = vld [vmem:[#allocation2 + $0x258] sm:$0xf] }
 0x1e1   : > { %14656 = vst [vmem:[#allocation76_spill] sm:$0xff] %v12451_v57  ;;  %v2091_v18 = vpop.f32.mrf.mxu2  ;;  %v10513_v17 = vld [vmem:[#allocation2 + $0x25c] sm:$0xf]  ;;  %v8806_v58 = vor.u32 %v10449_v19, %v8803_v28 }
 0x1e2   : > { %v2140_v34 = vpop.f32.mrf.mxu3  ;;  %v2092_v14 = vadd.f32 %v2091_v18, %v12355_v61  ;;  %14657 = vst [vmem:[#allocation77_spill] sm:$0xff] %v12462_v3  ;;  %v1999_v18 = vadd.f32 %v12262_v41, %v12335_v26  ;;  %v10572_v19 = vld [vmem:[#allocation7 + $0x30] sm:$0xff] }
 0x1e3   : > { %v2045_v51 = vpop.f32.mrf.mxu1  ;;  %2463 = vmatpush.bf16.msra.mxu2 %v8806_v58  ;;  %3520 = vmatpush.bf16.msra.mxu0 %v10572_v19  ;;  %v10570_v19 = vld [vmem:[#allocation7 + $0x20] sm:$0xff] }
 0x1e4   : > { %v2046_v1 = vadd.f32 %v2045_v51, %v1997_v56  ;;  %v2141_v24 = vadd.f32 %v2140_v34, %v2092_v14  ;;  %v9059_v56 = vld [vmem:[#allocation2 + $0x278] sm:$0xf0] }
 0x1e5   : > { %v12456_v52 = vpop.f32.mrf.mxu0  ;;  %2240 = vmatmul.bf16.gmra.mxu1 %v12080_v32  ;;  %v9062_v51 = vor.u32 %v10513_v17, %v9059_v56  ;;  %v2002_v17 = vadd.f32 %v12272_v33, %v12335_v26  ;;  %v10517_v56 = vld [vmem:[#allocation2 + $0x274] sm:$0xf0] }
 0x1e6   : > { %vm2614_vm15 = vcmp.gt.f32.partialorder %v2141_v24, 0.0  ;;  %v2742_v21 = vmul.f32 0.2, %v2141_v24  ;;  %2289 = vmatmul.bf16.gmra.mxu2 %v12018_v48  ;;  %v2749_v16 = vmul.f32 0.2, %v2046_v1  ;;  %vm2621_vm0 = vcmp.gt.f32.partialorder %v2046_v1, 0.0 }
 0x1e7   : > { %2338 = vmatmul.bf16.gmra.mxu3 %v12080_v32  ;;  %v9058_v31 = vor.u32 %v10517_v56, %v9057_v13 }
 0x1e8   : > { %2387 = vmatmul.bf16.gmra.mxu0 %v12018_v48  ;;  %v12464_v38 = vsel %vm2614_vm15, %v2141_v24, %v2742_v21  ;;  %2512 = vmatpush.bf16.msra.mxu3 %v9062_v51  ;;  %v10571_v21 = vld [vmem:[#allocation7 + $0x28] sm:$0xff] }
 0x1e9   : > { %14658 = vst [vmem:[#allocation78_spill] sm:$0xff] %v12464_v38  ;;  %v2094_v34 = vpop.f32.mrf.mxu2  ;;  %3521 = vmatpush.bf16.msra.mxu0 %v10571_v21  ;;  %2414 = vmatpush.bf16.msra.mxu1 %v9058_v31  ;;  %v10441_v31 = vld [vmem:[#allocation2 + $0x1c] sm:$0xf] }
 0x1ea   : > { %v2143_v14 = vpop.f32.mrf.mxu3  ;;  %v2095_v50 = vadd.f32 %v2094_v34, %v12355_v61  ;;  %v12475_v34 = vsel %vm2621_vm0, %v2046_v1, %v2749_v16  ;;  %v10569_v16 = vld [vmem:[#allocation7 + $0x18] sm:$0xff]  ;;  %v9027_v21 = vld [vmem:[#allocation2 + $0x238] sm:$0xf0] }
 0x1eb   : > { %v2047_v57 = vpop.f32.mrf.mxu1  ;;  %14659 = vst [vmem:[#allocation79_spill] sm:$0xff] %v12475_v34 }
 0x1ec   : > { %v2048_v28 = vadd.f32 %v2047_v57, %v1999_v18  ;;  %v2144_v24 = vadd.f32 %v2143_v14, %v2095_v50 }
 0x1ed   : > { %v12471_v27 = vpop.f32.mrf.mxu0  ;;  %3522 = vmatpush.bf16.msra.mxu0 %v10570_v19 }
 0x1ee   : > { %vm2629_vm1 = vcmp.gt.f32.partialorder %v2048_v28, 0.0  ;;  %v2757_v41 = vmul.f32 0.2, %v2048_v28  ;;  %v2750_v38 = vmul.f32 0.2, %v2144_v24  ;;  %vm2622_vm2 = vcmp.gt.f32.partialorder %v2144_v24, 0.0 }
 0x1f0   : > { %v12477_v58 = vsel %vm2629_vm1, %v2048_v28, %v2757_v41  ;;  %v8771_v28 = vld [vmem:[#allocation2 + $0x38] sm:$0xf0] }
 0x1f1   : > { %v2096_v57 = vpop.f32.mrf.mxu2  ;;  %v10505_v41 = vld [vmem:[#allocation2 + $0x21c] sm:$0xf]  ;;  %v8774_v13 = vor.u32 %v10441_v31, %v8771_v28  ;;  %3523 = vmatpush.bf16.msra.mxu0 %v10569_v16 }
 0x1f2   : > { %v2145_v18 = vpop.f32.mrf.mxu3  ;;  %v2097_v14 = vadd.f32 %v2096_v57, %v12355_v61  ;;  %v2004_v57 = vadd.f32 %v12287_v37, %v12335_v26  ;;  %v10568_v31 = vld [vmem:[#allocation7 + $0x10] sm:$0xff] }
 0x1f3   : > { %v2050_v51 = vpop.f32.mrf.mxu1  ;;  %2464 = vmatpush.bf16.msra.mxu2 %v8774_v13 }
 0x1f4   : > { %v2051_v3 = vadd.f32 %v2050_v51, %v2002_v17  ;;  %v2146_v33 = vadd.f32 %v2145_v18, %v2097_v14  ;;  %v12488_v17 = vsel %vm2622_vm2, %v2144_v24, %v2750_v38  ;;  %v9030_v51 = vor.u32 %v10505_v41, %v9027_v21  ;;  %v10509_v21 = vld [vmem:[#allocation2 + $0x234] sm:$0xf0] }
 0x1f5   : > { %v12482_v4 = vpop.f32.mrf.mxu0  ;;  %2245 = vmatmul.bf16.gmra.mxu1 %v12088_v63  ;;  %14660 = vst [vmem:[#allocation80_spill] sm:$0xff] %v12488_v17  ;;  %3524 = vmatpush.bf16.msra.mxu0 %v10568_v31  ;;  %v2007_v41 = vadd.f32 %v12297_v5, %v12335_v26  ;;  %v10566_v31 = vld [vmem:[#allocation7] sm:$0xff] }
 0x1f6   : > { %vm2630_vm3 = vcmp.gt.f32.partialorder %v2146_v33, 0.0  ;;  %v2758_v1 = vmul.f32 0.2, %v2146_v33  ;;  %2294 = vmatmul.bf16.gmra.mxu2 %v12038_v46  ;;  %v2765_v16 = vmul.f32 0.2, %v2051_v3  ;;  %2513 = vmatpush.bf16.msra.mxu3 %v9030_v51  ;;  %vm2637_vm4 = vcmp.gt.f32.partialorder %v2051_v3, 0.0 }
 0x1f7   : > { %2343 = vmatmul.bf16.gmra.mxu3 %v12088_v63 }
 0x1f8   : > { %2392 = vmatmul.bf16.gmra.mxu0 %v12038_v46  ;;  %v12490_v56 = vsel %vm2630_vm3, %v2146_v33, %v2758_v1  ;;  %v9025_v33 = vld [vmem:[#allocation2 + $0x218] sm:$0xf]  ;;  %v10567_v1 = vld [vmem:[#allocation7 + $0x8] sm:$0xff] }
 0x1f9   : > { %14661 = vst [vmem:[#allocation81_spill] sm:$0xff] %v12490_v56  ;;  %v2099_v18 = vpop.f32.mrf.mxu2  ;;  %v9026_v19 = vor.u32 %v10509_v21, %v9025_v33  ;;  %3525 = vmatpush.bf16.msra.mxu0 %v10567_v1  ;;  %v2009_v1 = vadd.f32 %v12311_v30, %v12335_v26 }
 0x1fa   : > { %v2148_v14 = vpop.f32.mrf.mxu3  ;;  %v2100_v50 = vadd.f32 %v2099_v18, %v12355_v61  ;;  %v12501_v18 = vsel %vm2637_vm4, %v2051_v3, %v2765_v16  ;;  %v10589_v16 = vld [vmem:[#allocation7 + $0xb8] sm:$0xff] }
 0x1fb   : > { %v2052_v34 = vpop.f32.mrf.mxu1  ;;  %2415 = vmatpush.bf16.msra.mxu1 %v9026_v19  ;;  %3617 = vmatpush.bf16.msrb.mxu2 %v10589_v16  ;;  %v10581_v16 = vld [vmem:[#allocation7 + $0x78] sm:$0xff] }
 0x1fc   : > { %v2053_v28 = vadd.f32 %v2052_v34, %v2004_v57  ;;  %v2149_v38 = vadd.f32 %v2148_v14, %v2100_v50 }
 0x1fd   : > { %v12497_v37 = vpop.f32.mrf.mxu0  ;;  %3526 = vmatpush.bf16.msra.mxu0 %v10566_v31 }
 0x1fe   : > { %vm2645_vm5 = vcmp.gt.f32.partialorder %v2053_v28, 0.0  ;;  %v2773_v24 = vmul.f32 0.2, %v2053_v28  ;;  %v2766_v56 = vmul.f32 0.2, %v2149_v38  ;;  %vm2638_vm6 = vcmp.gt.f32.partialorder %v2149_v38, 0.0 }
 0x1ff   : > { %3568 = vmatpush.bf16.msrb.mxu1 %v10581_v16  ;;  %v10596_v16 = vld [vmem:[#allocation7 + $0xf0] sm:$0xff] }
 0x200   : > { %v12503_v13 = vsel %vm2645_vm5, %v2053_v28, %v2773_v24  ;;  %v10597_v28 = vld [vmem:[#allocation7 + $0xf8] sm:$0xff]  ;;  %v12514_v19 = vsel %vm2638_vm6, %v2149_v38, %v2766_v56 }
 0x201   : > { %v2101_v50 = vpop.f32.mrf.mxu2  ;;  %14662 = vst [vmem:[#allocation82_spill] sm:$0xff] %v12514_v19  ;;  %3666 = vmatpush.bf16.msrb.mxu3 %v10597_v28  ;;  %v12547_v28 = vld [vmem:[#allocation5] sm:$0xff] }
 0x202   : > { %v2150_v57 = vpop.f32.mrf.mxu3  ;;  %v2102_v14 = vadd.f32 %v2101_v50, %v12355_v61 }
 0x203   : > { %v2055_v51 = vpop.f32.mrf.mxu1 }
 0x204   : > { %v2056_v17 = vadd.f32 %v2055_v51, %v2007_v41  ;;  %v2151_v5 = vadd.f32 %v2150_v57, %v2102_v14 }
 0x205   : > { %2250 = vmatmul.bf16.gmra.mxu1 %v12096_v25  ;;  %v12512_v24 = vpop.f32.mrf.mxu0  ;;  %3667 = vmatpush.bf16.msrb.mxu3 %v10596_v16 }
 0x206   : > { %vm2646_vm7 = vcmp.gt.f32.partialorder %v2151_v5, 0.0  ;;  %v2774_v3 = vmul.f32 0.2, %v2151_v5  ;;  %2299 = vmatmul.bf16.gmra.mxu2 %v12020_v49  ;;  %v2781_v51 = vmul.f32 0.2, %v2056_v17  ;;  %vm2653_vm8 = vcmp.gt.f32.partialorder %v2056_v17, 0.0 }
 0x207   : > { %2348 = vmatmul.bf16.gmra.mxu3 %v12096_v25 }
 0x208   : > { %2397 = vmatmul.bf16.gmra.mxu0 %v12020_v49  ;;  %v12516_v33 = vsel %vm2646_vm7, %v2151_v5, %v2774_v3  ;;  %v2012_v5 = vadd.f32 %v12321_v54, %v12335_v26  ;;  %v12525_v30 = vsel %vm2653_vm8, %v2056_v17, %v2781_v51 }
 0x209   : > { %v2104_v41 = vpop.f32.mrf.mxu2  ;;  %14663 = vst [vmem:[#allocation83_spill] sm:$0xff] %v12525_v30  ;;  %v10580_v30 = vld [vmem:[#allocation7 + $0x70] sm:$0xff] }
 0x20a   : > { %v2153_v21 = vpop.f32.mrf.mxu3  ;;  %v2105_v57 = vadd.f32 %v2104_v41, %v12355_v61  ;;  %3569 = vmatpush.bf16.msrb.mxu1 %v10580_v30  ;;  %v12569_v30 = vperm.slane %v12547_v28, 5 }
 0x20b   : > { %v2057_v14 = vpop.f32.mrf.mxu1 }
 0x20c   : > { %v2058_v31 = vadd.f32 %v2057_v14, %v2009_v1  ;;  %v2154_v56 = vadd.f32 %v2153_v21, %v2105_v57 }
 0x20d   : > { %v12531_v34 = vpop.f32.mrf.mxu0 }
 0x20e   : > { %vm2661_vm9 = vcmp.gt.f32.partialorder %v2058_v31, 0.0  ;;  %v2789_v38 = vmul.f32 0.2, %v2058_v31  ;;  %v2782_v14 = vmul.f32 0.2, %v2154_v56  ;;  %vm2654_vm10 = vcmp.gt.f32.partialorder %v2154_v56, 0.0 }
 0x210   : > { %v12527_v3 = vsel %vm2661_vm9, %v2058_v31, %v2789_v38  ;;  %v12538_v17 = vsel %vm2654_vm10, %v2154_v56, %v2782_v14  ;;  %v12550_v56 = vperm.slane %v12547_v28, 4 }
 0x211   : > { %14664 = vst [vmem:[#allocation84_spill] sm:$0xff] %v12527_v3  ;;  %v2106_v50 = vpop.f32.mrf.mxu2 }
 0x212   : > { %v2155_v41 = vpop.f32.mrf.mxu3  ;;  %v2107_v1 = vadd.f32 %v2106_v50, %v12355_v61  ;;  %14665 = vst [vmem:[#allocation85_spill] sm:$0xff] %v12538_v17  ;;  %v2014_v50 = vadd.f32 %v12338_v45, %v12335_v26 }
 0x213   : > { %v2060_v21 = vpop.f32.mrf.mxu1 }
 0x214   : > { %v2061_v57 = vadd.f32 %v2060_v21, %v2012_v5  ;;  %v2156_v19 = vadd.f32 %v2155_v41, %v2107_v1  ;;  %v10588_v5 = vld [vmem:[#allocation7 + $0xb0] sm:$0xff] }
 0x215   : > { %2255 = vmatmul.bf16.gmra.mxu1 %v12119_v62  ;;  %3618 = vmatpush.bf16.msrb.mxu2 %v10588_v5  ;;  %v12552_v45 = vpop.f32.mrf.mxu0 }
 0x216   : > { %vm2662_vm11 = vcmp.gt.f32.partialorder %v2156_v19, 0.0  ;;  %v2790_v54 = vmul.f32 0.2, %v2156_v19  ;;  %2304 = vmatmul.bf16.gmra.mxu2 %v12040_v47  ;;  %vm2669_vm12 = vcmp.gt.f32.partialorder %v2061_v57, 0.0 }
 0x217   : > { %2353 = vmatmul.bf16.gmra.mxu3 %v12119_v62 }
 0x218   : > { %2402 = vmatmul.bf16.gmra.mxu0 %v12040_v47  ;;  %v12540_v51 = vsel %vm2662_vm11, %v2156_v19, %v2790_v54  ;;  %v2797_v19 = vmul.f32 0.2, %v2061_v57 }
 0x219   : > { %14666 = vst [vmem:[#allocation86_spill] sm:$0xff] %v12540_v51  ;;  %v2109_v31 = vpop.f32.mrf.mxu2 }
 0x21a   : > { %v2158_v38 = vpop.f32.mrf.mxu3  ;;  %v2110_v1 = vadd.f32 %v2109_v31, %v12355_v61  ;;  %v2173_v31 = vadd.f32 %v12349_v42, %v12550_v56  ;;  %v12556_v41 = vsel %vm2669_vm12, %v2061_v57, %v2797_v19  ;;  %v10595_v19 = vld [vmem:[#allocation7 + $0xe8] sm:$0xff] }
 0x21b   : > { %v2062_v21 = vpop.f32.mrf.mxu1  ;;  %3668 = vmatpush.bf16.msrb.mxu3 %v10595_v19 }
 0x21c   : > { %v2063_v14 = vadd.f32 %v2062_v21, %v2014_v50  ;;  %v2159_v26 = vadd.f32 %v2158_v38, %v2110_v1 }
 0x21d   : > { %v12564_v42 = vpop.f32.mrf.mxu0 }
 0x21e   : > { %vm2677_vm13 = vcmp.gt.f32.partialorder %v2063_v14, 0.0  ;;  %v2805_v54 = vmul.f32 0.2, %v2063_v14  ;;  %v2798_v1 = vmul.f32 0.2, %v2159_v26  ;;  %vm2670_vm14 = vcmp.gt.f32.partialorder %v2159_v26, 0.0 }
 0x220   : > { %v12558_v17 = vsel %vm2677_vm13, %v2063_v14, %v2805_v54  ;;  %v12574_v14 = vsel %vm2670_vm14, %v2159_v26, %v2798_v1  ;;  %v10579_v1 = vld [vmem:[#allocation7 + $0x68] sm:$0xff] }
 0x221   : > { %v2111_v5 = vpop.f32.mrf.mxu2  ;;  %3570 = vmatpush.bf16.msrb.mxu1 %v10579_v1 }
 0x222   : > { %v2160_v16 = vpop.f32.mrf.mxu3  ;;  %v2112_v21 = vadd.f32 %v2111_v5, %v12355_v61  ;;  %v14667_v61 = vpack.c.bf16 %v12166_v15, %v12164_v10 }
 0x223   : > { %v2221_v51 = vpop.f32.mrf.mxu1 }
 0x224   : > { %v2222_v38 = vadd.f32 %v2221_v51, %v2173_v31  ;;  %v2161_v3 = vadd.f32 %v2160_v16, %v2112_v21  ;;  %v10587_v51 = vld [vmem:[#allocation7 + $0xa8] sm:$0xff]  ;;  %v2175_v31 = vadd.f32 %v12367_v7, %v12550_v56  ;;  %v2178_v7 = vadd.f32 %v12378_v12, %v12550_v56 }
 0x225   : > { %2416 = vmatmul.bf16.vlgmr.msra.gmra.mxu1 %v12048_v35  ;;  %3619 = vmatpush.bf16.msrb.mxu2 %v10587_v51  ;;  %v12589_v51 = vpop.f32.mrf.mxu0 }
 0x226   : > { %vm2678_vm15 = vcmp.gt.f32.partialorder %v2161_v3, 0.0  ;;  %v2806_v57 = vmul.f32 0.2, %v2161_v3  ;;  %2465 = vmatmul.bf16.vlgmr.msra.gmra.mxu2 %v12014_v43  ;;  %v2687_v15 = vmul.f32 0.2, %v2222_v38  ;;  %vm2559_vm0 = vcmp.gt.f32.partialorder %v2222_v38, 0.0 }
 0x227   : > { %2514 = vmatmul.bf16.vlgmr.msra.gmra.mxu3 %v12048_v35 }
 0x228   : > { %3527 = vmatmul.bf16.vlgmr.msra.gmra.mxu0 %v14667_v61  ;;  %v12576_v54 = vsel %vm2678_vm15, %v2161_v3, %v2806_v57  ;;  %v12585_v57 = vsel %vm2559_vm0, %v2222_v38, %v2687_v15  ;;  %v14668_v38 = vpack.c.bf16 %v12190_v23, %v12188_v22  ;;  %v10586_v15 = vld [vmem:[#allocation7 + $0xa0] sm:$0xff] }
 0x229   : > { %v2270_v5 = vpop.f32.mrf.mxu2  ;;  %3620 = vmatpush.bf16.msrb.mxu2 %v10586_v15 }
 0x22a   : > { %v2319_v43 = vpop.f32.mrf.mxu3  ;;  %v2271_v16 = vadd.f32 %v2270_v5, %v12569_v30 }
 0x22b   : > { %v2223_v10 = vpop.f32.mrf.mxu1 }
 0x22c   : > { %v2224_v21 = vadd.f32 %v2223_v10, %v2175_v31  ;;  %v2320_v26 = vadd.f32 %v2319_v43, %v2271_v16 }
 0x22e   : > { %vm2567_vm1 = vcmp.gt.f32.partialorder %v2224_v21, 0.0  ;;  %v2695_v3 = vmul.f32 0.2, %v2224_v21  ;;  %v2688_v35 = vmul.f32 0.2, %v2320_v26  ;;  %vm2560_vm2 = vcmp.gt.f32.partialorder %v2320_v26, 0.0 }
 0x230   : > { %v12587_v61 = vsel %vm2567_vm1, %v2224_v21, %v2695_v3  ;;  %v10594_v21 = vld [vmem:[#allocation7 + $0xe0] sm:$0xff]  ;;  %v12600_v3 = vsel %vm2560_vm2, %v2320_v26, %v2688_v35 }
 0x231   : > { %v2272_v5 = vpop.f32.mrf.mxu2  ;;  %3669 = vmatpush.bf16.msrb.mxu3 %v10594_v21 }
 0x232   : > { %v2321_v31 = vpop.f32.mrf.mxu3  ;;  %v2273_v43 = vadd.f32 %v2272_v5, %v12569_v30 }
 0x233   : > { %v2226_v16 = vpop.f32.mrf.mxu1 }
 0x234   : > { %v2227_v10 = vadd.f32 %v2226_v16, %v2178_v7  ;;  %v2322_v50 = vadd.f32 %v2321_v31, %v2273_v43  ;;  %v2180_v7 = vadd.f32 %v12393_v29, %v12550_v56  ;;  %v10578_v16 = vld [vmem:[#allocation7 + $0x60] sm:$0xff]  ;;  %v2183_v29 = vadd.f32 %v12404_v53, %v12550_v56 }
 0x235   : > { %2421 = vmatmul.bf16.gmra.mxu1 %v12056_v60 }
 0x236   : > { %vm2568_vm3 = vcmp.gt.f32.partialorder %v2322_v50, 0.0  ;;  %v2696_v12 = vmul.f32 0.2, %v2322_v50  ;;  %2470 = vmatmul.bf16.gmra.mxu2 %v12034_v39  ;;  %v2703_v43 = vmul.f32 0.2, %v2227_v10  ;;  %vm2575_vm4 = vcmp.gt.f32.partialorder %v2227_v10, 0.0  ;;  %3571 = vmatpush.bf16.msrb.mxu1 %v10578_v16 }
 0x237   : > { %2519 = vmatmul.bf16.gmra.mxu3 %v12056_v60  ;;  %v12608_v60 = vpop.f32.mrf.mxu0 }
 0x238   : > { %3532 = vmatmul.bf16.gmra.mxu0 %v14668_v38  ;;  %v12602_v1 = vsel %vm2568_vm3, %v2322_v50, %v2696_v12  ;;  %v12613_v12 = vsel %vm2575_vm4, %v2227_v10, %v2703_v43  ;;  %v14669_v10 = vpack.c.bf16 %v12216_v6, %v12214_v0  ;;  %v10585_v43 = vld [vmem:[#allocation7 + $0x98] sm:$0xff] }
 0x239   : > { %v2275_v31 = vpop.f32.mrf.mxu2  ;;  %3621 = vmatpush.bf16.msrb.mxu2 %v10585_v43 }
 0x23a   : > { %v2324_v39 = vpop.f32.mrf.mxu3  ;;  %v2276_v22 = vadd.f32 %v2275_v31, %v12569_v30 }
 0x23b   : > { %v2228_v23 = vpop.f32.mrf.mxu1 }
 0x23c   : > { %v2229_v35 = vadd.f32 %v2228_v23, %v2180_v7  ;;  %v2325_v50 = vadd.f32 %v2324_v39, %v2276_v22 }
 0x23e   : > { %vm2583_vm5 = vcmp.gt.f32.partialorder %v2229_v35, 0.0  ;;  %v2711_v26 = vmul.f32 0.2, %v2229_v35  ;;  %v2704_v5 = vmul.f32 0.2, %v2325_v50  ;;  %vm2576_vm6 = vcmp.gt.f32.partialorder %v2325_v50, 0.0 }
 0x23f   : > { %v12620_v22 = vpop.f32.mrf.mxu0 }
 0x240   : > { %v12615_v38 = vsel %vm2583_vm5, %v2229_v35, %v2711_v26  ;;  %v10593_v35 = vld [vmem:[#allocation7 + $0xd8] sm:$0xff]  ;;  %v12628_v26 = vsel %vm2576_vm6, %v2325_v50, %v2704_v5 }
 0x241   : > { %v2277_v21 = vpop.f32.mrf.mxu2  ;;  %3670 = vmatpush.bf16.msrb.mxu3 %v10593_v35 }
 0x242   : > { %v2326_v31 = vpop.f32.mrf.mxu3  ;;  %v2278_v7 = vadd.f32 %v2277_v21, %v12569_v30 }
 0x243   : > { %v2231_v23 = vpop.f32.mrf.mxu1 }
 0x244   : > { %v2232_v39 = vadd.f32 %v2231_v23, %v2183_v29  ;;  %v2327_v19 = vadd.f32 %v2326_v31, %v2278_v7  ;;  %v2185_v29 = vadd.f32 %v12419_v9, %v12550_v56  ;;  %v10577_v23 = vld [vmem:[#allocation7 + $0x58] sm:$0xff]  ;;  %v2188_v9 = vadd.f32 %v12430_v2, %v12550_v56 }
 0x245   : > { %2426 = vmatmul.bf16.gmra.mxu1 %v12064_v8 }
 0x246   : > { %vm2584_vm7 = vcmp.gt.f32.partialorder %v2327_v19, 0.0  ;;  %v2712_v53 = vmul.f32 0.2, %v2327_v19  ;;  %2475 = vmatmul.bf16.gmra.mxu2 %v12016_v44  ;;  %v2719_v6 = vmul.f32 0.2, %v2232_v39  ;;  %vm2591_vm8 = vcmp.gt.f32.partialorder %v2232_v39, 0.0  ;;  %3572 = vmatpush.bf16.msrb.mxu1 %v10577_v23 }
 0x247   : > { %2524 = vmatmul.bf16.gmra.mxu3 %v12064_v8  ;;  %v12637_v50 = vpop.f32.mrf.mxu0  ;;  %v10592_v23 = vld [vmem:[#allocation7 + $0xd0] sm:$0xff] }
 0x248   : > { %3537 = vmatmul.bf16.gmra.mxu0 %v14669_v10  ;;  %v12630_v16 = vsel %vm2584_vm7, %v2327_v19, %v2712_v53  ;;  %v12641_v53 = vsel %vm2591_vm8, %v2232_v39, %v2719_v6  ;;  %v14670_v39 = vld [vmem:[#allocation47_spill] sm:$0xff]  ;;  %v14671_v6 = vld [vmem:[#allocation46_spill] sm:$0xff]  ;;  %3671 = vmatpush.bf16.msrb.mxu3 %v10592_v23 }
 0x249   : > { %v2280_v21 = vpop.f32.mrf.mxu2 }
 0x24a   : > { %v2329_v31 = vpop.f32.mrf.mxu3  ;;  %v2281_v8 = vadd.f32 %v2280_v21, %v12569_v30 }
 0x24b   : > { %v2233_v0 = vpop.f32.mrf.mxu1 }
 0x24c   : > { %v2234_v7 = vadd.f32 %v2233_v0, %v2185_v29  ;;  %v2330_v5 = vadd.f32 %v2329_v31, %v2281_v8 }
 0x24e   : > { %vm2599_vm9 = vcmp.gt.f32.partialorder %v2234_v7, 0.0  ;;  %v2727_v19 = vmul.f32 0.2, %v2234_v7  ;;  %v2720_v0 = vmul.f32 0.2, %v2330_v5  ;;  %vm2592_vm10 = vcmp.gt.f32.partialorder %v2330_v5, 0.0 }
 0x250   : > { %v12643_v10 = vsel %vm2599_vm9, %v2234_v7, %v2727_v19  ;;  %v14672_v7 = vpack.c.bf16 %v14670_v39, %v14671_v6  ;;  %v10584_v19 = vld [vmem:[#allocation7 + $0x90] sm:$0xff] }
 0x251   : > { %v2282_v35 = vpop.f32.mrf.mxu2  ;;  %3622 = vmatpush.bf16.msrb.mxu2 %v10584_v19 }
 0x252   : > { %v2331_v29 = vpop.f32.mrf.mxu3  ;;  %v2283_v21 = vadd.f32 %v2282_v35, %v12569_v30  ;;  %v12654_v35 = vpop.f32.mrf.mxu0 }
 0x253   : > { %v2236_v31 = vpop.f32.mrf.mxu1 }
 0x254   : > { %v2237_v8 = vadd.f32 %v2236_v31, %v2188_v9  ;;  %v2332_v44 = vadd.f32 %v2331_v29, %v2283_v21  ;;  %v12656_v9 = vsel %vm2592_vm10, %v2330_v5, %v2720_v0  ;;  %v2190_v21 = vadd.f32 %v12445_v11, %v12550_v56  ;;  %v10576_v0 = vld [vmem:[#allocation7 + $0x50] sm:$0xff] }
 0x255   : > { %2431 = vmatmul.bf16.gmra.mxu1 %v12072_v20  ;;  %14673 = vst [vmem:[#allocation47_spill] sm:$0xff] %v12656_v9  ;;  %v2193_v11 = vadd.f32 %v12456_v52, %v12550_v56 }
 0x256   : > { %vm2600_vm11 = vcmp.gt.f32.partialorder %v2332_v44, 0.0  ;;  %v2728_v2 = vmul.f32 0.2, %v2332_v44  ;;  %2480 = vmatmul.bf16.gmra.mxu2 %v12036_v40  ;;  %v2735_v6 = vmul.f32 0.2, %v2237_v8  ;;  %vm2607_vm12 = vcmp.gt.f32.partialorder %v2237_v8, 0.0  ;;  %3573 = vmatpush.bf16.msrb.mxu1 %v10576_v0 }
 0x257   : > { %2529 = vmatmul.bf16.gmra.mxu3 %v12072_v20  ;;  %v10583_v0 = vld [vmem:[#allocation7 + $0x88] sm:$0xff] }
 0x258   : > { %3542 = vmatmul.bf16.gmra.mxu0 %v14672_v7  ;;  %v12658_v29 = vsel %vm2600_vm11, %v2332_v44, %v2728_v2  ;;  %v12667_v2 = vsel %vm2607_vm12, %v2237_v8, %v2735_v6  ;;  %v10605_v8 = vld [vmem:[#allocation7 + $0x138] sm:$0xff]  ;;  %v14675_v6 = vld [vmem:[#allocation51_spill] sm:$0xff]  ;;  %3623 = vmatpush.bf16.msrb.mxu2 %v10583_v0  ;;  %v2198_v0 = vadd.f32 %v12482_v4, %v12550_v56 }
 0x259   : > { %14674 = vst [vmem:[#allocation46_spill] sm:$0xff] %v12658_v29  ;;  %v2285_v31 = vpop.f32.mrf.mxu2  ;;  %3715 = vmatpush.bf16.msrb.mxu0 %v10605_v8 }
 0x25a   : > { %v2334_v43 = vpop.f32.mrf.mxu3  ;;  %v2286_v20 = vadd.f32 %v2285_v31, %v12569_v30  ;;  %v12673_v15 = vpop.f32.mrf.mxu0 }
 0x25b   : > { %v2238_v39 = vpop.f32.mrf.mxu1 }
 0x25c   : > { %v2239_v7 = vadd.f32 %v2238_v39, %v2190_v21  ;;  %v2335_v5 = vadd.f32 %v2334_v43, %v2286_v20 }
 0x25e   : > { %vm2615_vm13 = vcmp.gt.f32.partialorder %v2239_v7, 0.0  ;;  %v2743_v44 = vmul.f32 0.2, %v2239_v7  ;;  %v2736_v39 = vmul.f32 0.2, %v2335_v5  ;;  %vm2608_vm14 = vcmp.gt.f32.partialorder %v2335_v5, 0.0 }
 0x260   : > { %v12669_v19 = vsel %vm2615_vm13, %v2239_v7, %v2743_v44  ;;  %v14676_v7 = vld [vmem:[#allocation50_spill] sm:$0xff] }
 0x261   : > { %v2287_v31 = vpop.f32.mrf.mxu2  ;;  %v14677_v44 = vpack.c.bf16 %v14675_v6, %v14676_v7  ;;  %v10604_v7 = vld [vmem:[#allocation7 + $0x130] sm:$0xff] }
 0x262   : > { %v2336_v40 = vpop.f32.mrf.mxu3  ;;  %v2288_v43 = vadd.f32 %v2287_v31, %v12569_v30  ;;  %v10591_v31 = vld [vmem:[#allocation7 + $0xc8] sm:$0xff]  ;;  %3716 = vmatpush.bf16.msrb.mxu0 %v10604_v7  ;;  %v10602_v7 = vld [vmem:[#allocation7 + $0x120] sm:$0xff] }
 0x263   : > { %v2241_v21 = vpop.f32.mrf.mxu1  ;;  %3672 = vmatpush.bf16.msrb.mxu3 %v10591_v31 }
 0x264   : > { %v2242_v20 = vadd.f32 %v2241_v21, %v2193_v11  ;;  %v2337_v9 = vadd.f32 %v2336_v40, %v2288_v43  ;;  %v12682_v11 = vsel %vm2608_vm14, %v2335_v5, %v2736_v39  ;;  %v2195_v43 = vadd.f32 %v12471_v27, %v12550_v56  ;;  %v12691_v5 = vpop.f32.mrf.mxu0  ;;  %v10575_v39 = vld [vmem:[#allocation7 + $0x48] sm:$0xff] }
 0x265   : > { %2436 = vmatmul.bf16.gmra.mxu1 %v12080_v32  ;;  %14678 = vst [vmem:[#allocation51_spill] sm:$0xff] %v12682_v11 }
 0x266   : > { %vm2616_vm15 = vcmp.gt.f32.partialorder %v2337_v9, 0.0  ;;  %v2744_v52 = vmul.f32 0.2, %v2337_v9  ;;  %2485 = vmatmul.bf16.gmra.mxu2 %v12018_v48  ;;  %vm2623_vm0 = vcmp.gt.f32.partialorder %v2242_v20, 0.0  ;;  %3574 = vmatpush.bf16.msrb.mxu1 %v10575_v39  ;;  %v10590_v39 = vld [vmem:[#allocation7 + $0xc0] sm:$0xff] }
 0x267   : > { %2534 = vmatmul.bf16.gmra.mxu3 %v12080_v32 }
 0x268   : > { %3547 = vmatmul.bf16.gmra.mxu0 %v14677_v44  ;;  %v12684_v40 = vsel %vm2616_vm15, %v2337_v9, %v2744_v52  ;;  %v2751_v44 = vmul.f32 0.2, %v2242_v20  ;;  %v10603_v52 = vld [vmem:[#allocation7 + $0x128] sm:$0xff]  ;;  %3673 = vmatpush.bf16.msrb.mxu3 %v10590_v39 }
 0x269   : > { %14679 = vst [vmem:[#allocation50_spill] sm:$0xff] %v12684_v40  ;;  %v2290_v21 = vpop.f32.mrf.mxu2  ;;  %3717 = vmatpush.bf16.msrb.mxu0 %v10603_v52 }
 0x26a   : > { %v2339_v23 = vpop.f32.mrf.mxu3  ;;  %v2291_v32 = vadd.f32 %v2290_v21, %v12569_v30  ;;  %v12695_v31 = vsel %vm2623_vm0, %v2242_v20, %v2751_v44  ;;  %v10601_v44 = vld [vmem:[#allocation7 + $0x118] sm:$0xff] }
 0x26b   : > { %v2243_v6 = vpop.f32.mrf.mxu1 }
 0x26c   : > { %v2244_v8 = vadd.f32 %v2243_v6, %v2195_v43  ;;  %v2340_v9 = vadd.f32 %v2339_v23, %v2291_v32  ;;  %v12703_v4 = vpop.f32.mrf.mxu0 }
 0x26d   : > { %3718 = vmatpush.bf16.msrb.mxu0 %v10602_v7 }
 0x26e   : > { %vm2631_vm1 = vcmp.gt.f32.partialorder %v2244_v8, 0.0  ;;  %v2759_v27 = vmul.f32 0.2, %v2244_v8  ;;  %v2752_v40 = vmul.f32 0.2, %v2340_v9  ;;  %vm2624_vm2 = vcmp.gt.f32.partialorder %v2340_v9, 0.0 }
 0x270   : > { %v12697_v48 = vsel %vm2631_vm1, %v2244_v8, %v2759_v27  ;;  %v14680_v8 = vpack.c.bf16 %v12291_v59, %v12289_v55  ;;  %v10582_v27 = vld [vmem:[#allocation7 + $0x80] sm:$0xff]  ;;  %v12710_v52 = vsel %vm2624_vm2, %v2340_v9, %v2752_v40  ;;  %v10600_v59 = vld [vmem:[#allocation7 + $0x110] sm:$0xff] }
 0x271   : > { %v2292_v21 = vpop.f32.mrf.mxu2  ;;  %3719 = vmatpush.bf16.msrb.mxu0 %v10601_v44  ;;  %14681 = vst [vmem:[#allocation87_spill] sm:$0xff] %v12710_v52  ;;  %3624 = vmatpush.bf16.msrb.mxu2 %v10582_v27  ;;  %v10574_v9 = vld [vmem:[#allocation7 + $0x40] sm:$0xff] }
 0x272   : > { %v2341_v6 = vpop.f32.mrf.mxu3  ;;  %v2293_v23 = vadd.f32 %v2292_v21, %v12569_v30  ;;  %v2200_v21 = vadd.f32 %v12497_v37, %v12550_v56  ;;  %v10599_v37 = vld [vmem:[#allocation7 + $0x108] sm:$0xff]  ;;  %3575 = vmatpush.bf16.msrb.mxu1 %v10574_v9  ;;  %v10629_v9 = vld [vmem:[#allocation7 + $0x1f8] sm:$0xff] }
 0x273   : > { %v2246_v32 = vpop.f32.mrf.mxu1  ;;  %3862 = vmatpush.bf16.msra.mxu3 %v10629_v9 }
 0x274   : > { %v2247_v11 = vadd.f32 %v2246_v32, %v2198_v0  ;;  %v2342_v29 = vadd.f32 %v2341_v6, %v2293_v23  ;;  %v12725_v27 = vpop.f32.mrf.mxu0 }
 0x275   : > { %2441 = vmatmul.bf16.gmra.mxu1 %v12088_v63  ;;  %3720 = vmatpush.bf16.msrb.mxu0 %v10600_v59 }
 0x276   : > { %vm2632_vm3 = vcmp.gt.f32.partialorder %v2342_v29, 0.0  ;;  %v2760_v20 = vmul.f32 0.2, %v2342_v29  ;;  %2490 = vmatmul.bf16.gmra.mxu2 %v12038_v46  ;;  %v2767_v32 = vmul.f32 0.2, %v2247_v11  ;;  %vm2639_vm4 = vcmp.gt.f32.partialorder %v2247_v11, 0.0 }
 0x277   : > { %2539 = vmatmul.bf16.gmra.mxu3 %v12088_v63 }
 0x278   : > { %3552 = vmatmul.bf16.gmra.mxu0 %v14680_v8  ;;  %v12712_v0 = vsel %vm2632_vm3, %v2342_v29, %v2760_v20  ;;  %v2203_v20 = vadd.f32 %v12512_v24, %v12550_v56  ;;  %v12721_v44 = vsel %vm2639_vm4, %v2247_v11, %v2767_v32  ;;  %v14683_v32 = vld [vmem:[#allocation56_spill] sm:$0xff] }
 0x279   : > { %14682 = vst [vmem:[#allocation88_spill] sm:$0xff] %v12712_v0  ;;  %v2295_v6 = vpop.f32.mrf.mxu2  ;;  %3721 = vmatpush.bf16.msrb.mxu0 %v10599_v37  ;;  %v14744_v0 = vld [vmem:[#allocation54_spill] sm:$0xff] }
 0x27a   : > { %v2344_v23 = vpop.f32.mrf.mxu3  ;;  %v2296_v63 = vadd.f32 %v2295_v6, %v12569_v30 }
 0x27b   : > { %v2248_v55 = vpop.f32.mrf.mxu1 }
 0x27c   : > { %v2249_v7 = vadd.f32 %v2248_v55, %v2200_v21  ;;  %v2345_v40 = vadd.f32 %v2344_v23, %v2296_v63  ;;  %v10598_v55 = vld [vmem:[#allocation7 + $0x100] sm:$0xff] }
 0x27d   : > { %3722 = vmatpush.bf16.msrb.mxu0 %v10598_v55 }
 0x27e   : > { %vm2647_vm5 = vcmp.gt.f32.partialorder %v2249_v7, 0.0  ;;  %v2775_v29 = vmul.f32 0.2, %v2249_v7  ;;  %v2768_v46 = vmul.f32 0.2, %v2345_v40  ;;  %vm2640_vm6 = vcmp.gt.f32.partialorder %v2345_v40, 0.0 }
 0x280   : > { %v12723_v8 = vsel %vm2647_vm5, %v2249_v7, %v2775_v29  ;;  %v14684_v7 = vpack.c.bf16 %v12315_v36, %v14683_v32  ;;  %v10621_v29 = vld [vmem:[#allocation7 + $0x1b8] sm:$0xff]  ;;  %v12736_v37 = vsel %vm2640_vm6, %v2345_v40, %v2768_v46 }
 0x281   : > { %v2297_v21 = vpop.f32.mrf.mxu2  ;;  %14685 = vst [vmem:[#allocation56_spill] sm:$0xff] %v12736_v37  ;;  %3813 = vmatpush.bf16.msra.mxu2 %v10621_v29 }
 0x282   : > { %v2346_v6 = vpop.f32.mrf.mxu3  ;;  %v2298_v23 = vadd.f32 %v2297_v21, %v12569_v30  ;;  %v2205_v21 = vadd.f32 %v12531_v34, %v12550_v56  ;;  %v2208_v34 = vadd.f32 %v12552_v45, %v12550_v56 }
 0x283   : > { %v2251_v63 = vpop.f32.mrf.mxu1 }
 0x284   : > { %v2252_v59 = vadd.f32 %v2251_v63, %v2203_v20  ;;  %v2347_v24 = vadd.f32 %v2346_v6, %v2298_v23 }
 0x285   : > { %2446 = vmatmul.bf16.gmra.mxu1 %v12096_v25 }
 0x286   : > { %vm2648_vm7 = vcmp.gt.f32.partialorder %v2347_v24, 0.0  ;;  %v2776_v11 = vmul.f32 0.2, %v2347_v24  ;;  %2495 = vmatmul.bf16.gmra.mxu2 %v12020_v49  ;;  %v2783_v55 = vmul.f32 0.2, %v2252_v59  ;;  %vm2655_vm8 = vcmp.gt.f32.partialorder %v2252_v59, 0.0 }
 0x287   : > { %2544 = vmatmul.bf16.gmra.mxu3 %v12096_v25  ;;  %v12744_v25 = vpop.f32.mrf.mxu0 }
 0x288   : > { %3557 = vmatmul.bf16.gmra.mxu0 %v14684_v7  ;;  %v12738_v20 = vsel %vm2648_vm7, %v2347_v24, %v2776_v11  ;;  %v12749_v11 = vsel %vm2655_vm8, %v2252_v59, %v2783_v55  ;;  %v10613_v7 = vld [vmem:[#allocation7 + $0x178] sm:$0xff]  ;;  %v14688_v55 = vld [vmem:[#allocation59_spill] sm:$0xff] }
 0x289   : > { %14686 = vst [vmem:[#allocation89_spill] sm:$0xff] %v12738_v20  ;;  %v2300_v6 = vpop.f32.mrf.mxu2  ;;  %3764 = vmatpush.bf16.msra.mxu1 %v10613_v7  ;;  %v14687_v59 = vld [vmem:[#allocation60_spill] sm:$0xff]  ;;  %v14731_v20 = vld [vmem:[#allocation77_spill] sm:$0xff] }
 0x28a   : > { %v2349_v23 = vpop.f32.mrf.mxu3  ;;  %v2301_v36 = vadd.f32 %v2300_v6, %v12569_v30 }
 0x28b   : > { %v2253_v63 = vpop.f32.mrf.mxu1 }
 0x28c   : > { %v2254_v46 = vadd.f32 %v2253_v63, %v2205_v21  ;;  %v2350_v40 = vadd.f32 %v2349_v23, %v2301_v36 }
 0x28e   : > { %vm2663_vm9 = vcmp.gt.f32.partialorder %v2254_v46, 0.0  ;;  %v2791_v24 = vmul.f32 0.2, %v2254_v46  ;;  %v2784_v63 = vmul.f32 0.2, %v2350_v40  ;;  %vm2656_vm10 = vcmp.gt.f32.partialorder %v2350_v40, 0.0 }
 0x28f   : > { %v12756_v36 = vpop.f32.mrf.mxu0 }
 0x290   : > { %v12751_v32 = vsel %vm2663_vm9, %v2254_v46, %v2791_v24  ;;  %v14689_v46 = vpack.c.bf16 %v14687_v59, %v14688_v55  ;;  %v12764_v24 = vsel %vm2656_vm10, %v2350_v40, %v2784_v63  ;;  %v12774_v59 = vperm.slane %v12547_v28, 6 }
 0x291   : > { %v2302_v9 = vpop.f32.mrf.mxu2  ;;  %14690 = vst [vmem:[#allocation60_spill] sm:$0xff] %v12764_v24  ;;  %v14692_v24 = vld [vmem:[#allocation41_spill] sm:$0xff] }
 0x292   : > { %v2351_v6 = vpop.f32.mrf.mxu3  ;;  %v2303_v49 = vadd.f32 %v2302_v9, %v12569_v30  ;;  %v2369_v55 = vadd.f32 %v12589_v51, %v12774_v59 }
 0x293   : > { %v2256_v21 = vpop.f32.mrf.mxu1 }
 0x294   : > { %v2257_v23 = vadd.f32 %v2256_v21, %v2208_v34  ;;  %v2352_v39 = vadd.f32 %v2351_v6, %v2303_v49  ;;  %v2210_v49 = vadd.f32 %v12564_v42, %v12550_v56  ;;  %v10620_v6 = vld [vmem:[#allocation7 + $0x1b0] sm:$0xff] }
 0x295   : > { %2451 = vmatmul.bf16.gmra.mxu1 %v12119_v62  ;;  %v10628_v21 = vld [vmem:[#allocation7 + $0x1f0] sm:$0xff]  ;;  %3814 = vmatpush.bf16.msra.mxu2 %v10620_v6 }
 0x296   : > { %vm2664_vm11 = vcmp.gt.f32.partialorder %v2352_v39, 0.0  ;;  %v2792_v45 = vmul.f32 0.2, %v2352_v39  ;;  %2500 = vmatmul.bf16.gmra.mxu2 %v12040_v47  ;;  %v2799_v40 = vmul.f32 0.2, %v2257_v23  ;;  %3863 = vmatpush.bf16.msra.mxu3 %v10628_v21  ;;  %vm2671_vm12 = vcmp.gt.f32.partialorder %v2257_v23, 0.0 }
 0x297   : > { %2549 = vmatmul.bf16.gmra.mxu3 %v12119_v62  ;;  %v12776_v42 = vpop.f32.mrf.mxu0 }
 0x298   : > { %3562 = vmatmul.bf16.gmra.mxu0 %v14689_v46  ;;  %v12766_v34 = vsel %vm2664_vm11, %v2352_v39, %v2792_v45  ;;  %v10612_v45 = vld [vmem:[#allocation7 + $0x170] sm:$0xff]  ;;  %v12780_v46 = vsel %vm2671_vm12, %v2257_v23, %v2799_v40 }
 0x299   : > { %14691 = vst [vmem:[#allocation59_spill] sm:$0xff] %v12766_v34  ;;  %v2305_v7 = vpop.f32.mrf.mxu2  ;;  %3765 = vmatpush.bf16.msra.mxu1 %v10612_v45  ;;  %v14693_v34 = vld [vmem:[#allocation40_spill] sm:$0xff]  ;;  %v14698_v45 = vld [vmem:[#allocation66_spill] sm:$0xff] }
 0x29a   : > { %v2354_v9 = vpop.f32.mrf.mxu3  ;;  %v2306_v62 = vadd.f32 %v2305_v7, %v12569_v30  ;;  %v14694_v51 = vpack.c.bf16 %v14692_v24, %v14693_v34  ;;  %v14695_v40 = vld [vmem:[#allocation64_spill] sm:$0xff]  ;;  %v10627_v24 = vld [vmem:[#allocation7 + $0x1e8] sm:$0xff] }
 0x29b   : > { %v2258_v29 = vpop.f32.mrf.mxu1  ;;  %3864 = vmatpush.bf16.msra.mxu3 %v10627_v24 }
 0x29c   : > { %v2259_v63 = vadd.f32 %v2258_v29, %v2210_v49  ;;  %v2355_v39 = vadd.f32 %v2354_v9, %v2306_v62  ;;  %v14699_v29 = vld [vmem:[#allocation65_spill] sm:$0xff] }
 0x29d   : > { %v14700_v37 = vpack.c.bf16 %v14698_v45, %v14699_v29 }
 0x29e   : > { %vm2679_vm13 = vcmp.gt.f32.partialorder %v2259_v63, 0.0  ;;  %v2807_v56 = vmul.f32 0.2, %v2259_v63  ;;  %v2800_v47 = vmul.f32 0.2, %v2355_v39  ;;  %vm2672_vm14 = vcmp.gt.f32.partialorder %v2355_v39, 0.0 }
 0x29f   : > { %v12802_v34 = vpop.f32.mrf.mxu0 }
 0x2a0   : > { %v12782_v7 = vsel %vm2679_vm13, %v2259_v63, %v2807_v56  ;;  %v14696_v63 = vld [vmem:[#allocation63_spill] sm:$0xff] }
 0x2a1   : > { %v2307_v49 = vpop.f32.mrf.mxu2  ;;  %v14697_v56 = vpack.c.bf16 %v14695_v40, %v14696_v63 }
 0x2a2   : > { %v2356_v6 = vpop.f32.mrf.mxu3  ;;  %v2308_v9 = vadd.f32 %v2307_v49, %v12569_v30  ;;  %v12797_v30 = vperm.slane %v12547_v28, 7  ;;  %v10619_v49 = vld [vmem:[#allocation7 + $0x1a8] sm:$0xff] }
 0x2a3   : > { %v2417_v21 = vpop.f32.mrf.mxu1  ;;  %3815 = vmatpush.bf16.msra.mxu2 %v10619_v49  ;;  %v14710_v28 = vld [vmem:[#allocation70_spill] sm:$0xff] }
 0x2a4   : > { %v2418_v62 = vadd.f32 %v2417_v21, %v2369_v55  ;;  %v2357_v43 = vadd.f32 %v2356_v6, %v2308_v9  ;;  %v14701_v55 = vpack.c.bf16 %v12587_v61, %v12585_v57  ;;  %v12804_v6 = vsel %vm2672_vm14, %v2355_v39, %v2800_v47  ;;  %v10611_v39 = vld [vmem:[#allocation7 + $0x168] sm:$0xff] }
 0x2a5   : > { %3576 = vmatmul.bf16.vlgmr.msrb.gmra.mxu1 %v14694_v51  ;;  %14702 = vst [vmem:[#allocation41_spill] sm:$0xff] %v12804_v6  ;;  %v2371_v21 = vadd.f32 %v12608_v60, %v12774_v59  ;;  %v2374_v60 = vadd.f32 %v12620_v22, %v12774_v59  ;;  %v14704_v22 = vld [vmem:[#allocation43_spill] sm:$0xff] }
 0x2a6   : > { %vm2680_vm15 = vcmp.gt.f32.partialorder %v2357_v43, 0.0  ;;  %v2808_v23 = vmul.f32 0.2, %v2357_v43  ;;  %3625 = vmatmul.bf16.vlgmr.msrb.gmra.mxu2 %v14697_v56  ;;  %v2689_v51 = vmul.f32 0.2, %v2418_v62  ;;  %vm2561_vm0 = vcmp.gt.f32.partialorder %v2418_v62, 0.0  ;;  %3766 = vmatpush.bf16.msra.mxu1 %v10611_v39 }
 0x2a7   : > { %3674 = vmatmul.bf16.vlgmr.msrb.gmra.mxu3 %v14700_v37  ;;  %v12821_v49 = vpop.f32.mrf.mxu0  ;;  %v14711_v56 = vld [vmem:[#allocation69_spill] sm:$0xff] }
 0x2a8   : > { %3723 = vmatmul.bf16.vlgmr.msrb.gmra.mxu0 %v14701_v55  ;;  %v12806_v9 = vsel %vm2680_vm15, %v2357_v43, %v2808_v23  ;;  %v12815_v23 = vsel %vm2561_vm0, %v2418_v62, %v2689_v51  ;;  %v14705_v62 = vld [vmem:[#allocation42_spill] sm:$0xff]  ;;  %v14712_v6 = vpack.c.bf16 %v14710_v28, %v14711_v56 }
 0x2a9   : > { %14703 = vst [vmem:[#allocation40_spill] sm:$0xff] %v12806_v9  ;;  %v2466_v29 = vpop.f32.mrf.mxu2  ;;  %v14721_v9 = vld [vmem:[#allocation73_spill] sm:$0xff] }
 0x2aa   : > { %v2515_v37 = vpop.f32.mrf.mxu3  ;;  %v2467_v57 = vadd.f32 %v2466_v29, %v12797_v30 }
 0x2ab   : > { %v2419_v61 = vpop.f32.mrf.mxu1 }
 0x2ac   : > { %v2420_v40 = vadd.f32 %v2419_v61, %v2371_v21  ;;  %v2516_v47 = vadd.f32 %v2515_v37, %v2467_v57  ;;  %v14706_v61 = vpack.c.bf16 %v14704_v22, %v14705_v62  ;;  %v2376_v22 = vadd.f32 %v12637_v50, %v12774_v59  ;;  %v14715_v62 = vld [vmem:[#allocation44_spill] sm:$0xff] }
 0x2ad   : > { %v2379_v50 = vadd.f32 %v12654_v35, %v12774_v59 }
 0x2ae   : > { %vm2569_vm1 = vcmp.gt.f32.partialorder %v2420_v40, 0.0  ;;  %v2697_v43 = vmul.f32 0.2, %v2420_v40  ;;  %v2690_v37 = vmul.f32 0.2, %v2516_v47  ;;  %vm2562_vm2 = vcmp.gt.f32.partialorder %v2516_v47, 0.0 }
 0x2af   : > { %v12845_v56 = vpop.f32.mrf.mxu0 }
 0x2b0   : > { %v12817_v63 = vsel %vm2569_vm1, %v2420_v40, %v2697_v43  ;;  %v14707_v40 = vld [vmem:[#allocation68_spill] sm:$0xff]  ;;  %v14708_v43 = vld [vmem:[#allocation67_spill] sm:$0xff] }
 0x2b1   : > { %v2468_v45 = vpop.f32.mrf.mxu2  ;;  %v14709_v39 = vpack.c.bf16 %v14707_v40, %v14708_v43 }
 0x2b2   : > { %v2517_v55 = vpop.f32.mrf.mxu3  ;;  %v2469_v24 = vadd.f32 %v2468_v45, %v12797_v30  ;;  %v10618_v45 = vld [vmem:[#allocation7 + $0x1a0] sm:$0xff] }
 0x2b3   : > { %v2422_v21 = vpop.f32.mrf.mxu1  ;;  %3816 = vmatpush.bf16.msra.mxu2 %v10618_v45 }
 0x2b4   : > { %v2423_v29 = vadd.f32 %v2422_v21, %v2374_v60  ;;  %v2518_v57 = vadd.f32 %v2517_v55, %v2469_v24  ;;  %v14713_v60 = vpack.c.bf16 %v12615_v38, %v12613_v12  ;;  %v10626_v55 = vld [vmem:[#allocation7 + $0x1e0] sm:$0xff]  ;;  %v12836_v24 = vsel %vm2562_vm2, %v2516_v47, %v2690_v37 }
 0x2b5   : > { %3581 = vmatmul.bf16.gmra.mxu1 %v14706_v61  ;;  %3865 = vmatpush.bf16.msra.mxu3 %v10626_v55 }
 0x2b6   : > { %vm2570_vm3 = vcmp.gt.f32.partialorder %v2518_v57, 0.0  ;;  %v2698_v51 = vmul.f32 0.2, %v2518_v57  ;;  %3630 = vmatmul.bf16.gmra.mxu2 %v14709_v39  ;;  %v2705_v38 = vmul.f32 0.2, %v2423_v29  ;;  %vm2577_vm4 = vcmp.gt.f32.partialorder %v2423_v29, 0.0 }
 0x2b7   : > { %3679 = vmatmul.bf16.gmra.mxu3 %v14712_v6  ;;  %v14720_v39 = vld [vmem:[#allocation74_spill] sm:$0xff] }
 0x2b8   : > { %3728 = vmatmul.bf16.gmra.mxu0 %v14713_v60  ;;  %v12838_v21 = vsel %vm2570_vm3, %v2518_v57, %v2698_v51  ;;  %v10610_v57 = vld [vmem:[#allocation7 + $0x160] sm:$0xff]  ;;  %v12849_v51 = vsel %vm2577_vm4, %v2423_v29, %v2705_v38  ;;  %v12859_v29 = vpop.f32.mrf.mxu0 }
 0x2b9   : > { %v2471_v61 = vpop.f32.mrf.mxu2  ;;  %3767 = vmatpush.bf16.msra.mxu1 %v10610_v57 }
 0x2ba   : > { %v2520_v40 = vpop.f32.mrf.mxu3  ;;  %v2472_v6 = vadd.f32 %v2471_v61, %v12797_v30 }
 0x2bb   : > { %v2424_v12 = vpop.f32.mrf.mxu1 }
 0x2bc   : > { %v2425_v28 = vadd.f32 %v2424_v12, %v2376_v22  ;;  %v2521_v47 = vadd.f32 %v2520_v40, %v2472_v6  ;;  %v14714_v12 = vld [vmem:[#allocation45_spill] sm:$0xff] }
 0x2bd   : > { %v14716_v35 = vpack.c.bf16 %v14714_v12, %v14715_v62  ;;  %v2381_v12 = vadd.f32 %v12673_v15, %v12774_v59  ;;  %v2384_v15 = vadd.f32 %v12691_v5, %v12774_v59  ;;  %v14724_v5 = vld [vmem:[#allocation49_spill] sm:$0xff] }
 0x2be   : > { %vm2585_vm5 = vcmp.gt.f32.partialorder %v2425_v28, 0.0  ;;  %v2713_v37 = vmul.f32 0.2, %v2425_v28  ;;  %v2706_v40 = vmul.f32 0.2, %v2521_v47  ;;  %vm2578_vm6 = vcmp.gt.f32.partialorder %v2521_v47, 0.0 }
 0x2c0   : > { %v12851_v43 = vsel %vm2585_vm5, %v2425_v28, %v2713_v37  ;;  %v14717_v28 = vld [vmem:[#allocation72_spill] sm:$0xff]  ;;  %v14718_v37 = vld [vmem:[#allocation71_spill] sm:$0xff]  ;;  %v12870_v62 = vsel %vm2578_vm6, %v2521_v47, %v2706_v40 }
 0x2c1   : > { %v2473_v60 = vpop.f32.mrf.mxu2  ;;  %v14719_v57 = vpack.c.bf16 %v14717_v28, %v14718_v37 }
 0x2c2   : > { %v2522_v45 = vpop.f32.mrf.mxu3  ;;  %v2474_v55 = vadd.f32 %v2473_v60, %v12797_v30  ;;  %v14722_v60 = vpack.c.bf16 %v14720_v39, %v14721_v9 }
 0x2c3   : > { %v2427_v22 = vpop.f32.mrf.mxu1 }
 0x2c4   : > { %v2428_v61 = vadd.f32 %v2427_v22, %v2379_v50  ;;  %v2523_v6 = vadd.f32 %v2522_v45, %v2474_v55  ;;  %v14723_v50 = vpack.c.bf16 %v12643_v10, %v12641_v53  ;;  %v10617_v45 = vld [vmem:[#allocation7 + $0x198] sm:$0xff] }
 0x2c5   : > { %3586 = vmatmul.bf16.gmra.mxu1 %v14716_v35  ;;  %v10625_v55 = vld [vmem:[#allocation7 + $0x1d8] sm:$0xff]  ;;  %3817 = vmatpush.bf16.msra.mxu2 %v10617_v45 }
 0x2c6   : > { %vm2586_vm7 = vcmp.gt.f32.partialorder %v2523_v6, 0.0  ;;  %v2714_v38 = vmul.f32 0.2, %v2523_v6  ;;  %3635 = vmatmul.bf16.gmra.mxu2 %v14719_v57  ;;  %3866 = vmatpush.bf16.msra.mxu3 %v10625_v55  ;;  %v2721_v10 = vmul.f32 0.2, %v2428_v61  ;;  %vm2593_vm8 = vcmp.gt.f32.partialorder %v2428_v61, 0.0 }
 0x2c7   : > { %3684 = vmatmul.bf16.gmra.mxu3 %v14722_v60  ;;  %v12885_v60 = vpop.f32.mrf.mxu0 }
 0x2c8   : > { %3733 = vmatmul.bf16.gmra.mxu0 %v14723_v50  ;;  %v12872_v22 = vsel %vm2586_vm7, %v2523_v6, %v2714_v38  ;;  %v10609_v6 = vld [vmem:[#allocation7 + $0x158] sm:$0xff]  ;;  %v12881_v38 = vsel %vm2593_vm8, %v2428_v61, %v2721_v10  ;;  %v14730_v50 = vld [vmem:[#allocation78_spill] sm:$0xff] }
 0x2c9   : > { %v2476_v35 = vpop.f32.mrf.mxu2  ;;  %3768 = vmatpush.bf16.msra.mxu1 %v10609_v6  ;;  %v14725_v61 = vld [vmem:[#allocation48_spill] sm:$0xff]  ;;  %v14728_v6 = vld [vmem:[#allocation75_spill] sm:$0xff]  ;;  %v14732_v52 = vpack.c.bf16 %v14730_v50, %v14731_v20 }
 0x2ca   : > { %v2525_v28 = vpop.f32.mrf.mxu3  ;;  %v2477_v39 = vadd.f32 %v2476_v35, %v12797_v30  ;;  %v14726_v10 = vpack.c.bf16 %v14724_v5, %v14725_v61  ;;  %v2386_v5 = vadd.f32 %v12703_v4, %v12774_v59  ;;  %v2389_v4 = vadd.f32 %v12725_v27, %v12774_v59  ;;  %v14734_v27 = vld [vmem:[#allocation53_spill] sm:$0xff] }
 0x2cb   : > { %v2429_v53 = vpop.f32.mrf.mxu1 }
 0x2cc   : > { %v2430_v37 = vadd.f32 %v2429_v53, %v2381_v12  ;;  %v2526_v47 = vadd.f32 %v2525_v28, %v2477_v39 }
 0x2ce   : > { %vm2601_vm9 = vcmp.gt.f32.partialorder %v2430_v37, 0.0  ;;  %v2729_v40 = vmul.f32 0.2, %v2430_v37  ;;  %v2722_v39 = vmul.f32 0.2, %v2526_v47  ;;  %vm2594_vm10 = vcmp.gt.f32.partialorder %v2526_v47, 0.0 }
 0x2cf   : > { %v12910_v20 = vpop.f32.mrf.mxu0 }
 0x2d0   : > { %v12883_v57 = vsel %vm2601_vm9, %v2430_v37, %v2729_v40  ;;  %v14727_v40 = vld [vmem:[#allocation76_spill] sm:$0xff] }
 0x2d1   : > { %v2478_v45 = vpop.f32.mrf.mxu2  ;;  %v14729_v9 = vpack.c.bf16 %v14727_v40, %v14728_v6  ;;  %v14739_v6 = vld [vmem:[#allocation81_spill] sm:$0xff] }
 0x2d2   : > { %v2527_v55 = vpop.f32.mrf.mxu3  ;;  %v2479_v12 = vadd.f32 %v2478_v45, %v12797_v30  ;;  %v10616_v45 = vld [vmem:[#allocation7 + $0x190] sm:$0xff] }
 0x2d3   : > { %v2432_v35 = vpop.f32.mrf.mxu1  ;;  %3818 = vmatpush.bf16.msra.mxu2 %v10616_v45 }
 0x2d4   : > { %v2433_v28 = vadd.f32 %v2432_v35, %v2384_v15  ;;  %v2528_v53 = vadd.f32 %v2527_v55, %v2479_v12  ;;  %v14733_v15 = vpack.c.bf16 %v12669_v19, %v12667_v2  ;;  %v10624_v55 = vld [vmem:[#allocation7 + $0x1d0] sm:$0xff]  ;;  %v12902_v12 = vsel %vm2594_vm10, %v2526_v47, %v2722_v39 }
 0x2d5   : > { %3591 = vmatmul.bf16.gmra.mxu1 %v14726_v10  ;;  %3867 = vmatpush.bf16.msra.mxu3 %v10624_v55 }
 0x2d6   : > { %vm2602_vm11 = vcmp.gt.f32.partialorder %v2528_v53, 0.0  ;;  %v2730_v37 = vmul.f32 0.2, %v2528_v53  ;;  %3640 = vmatmul.bf16.gmra.mxu2 %v14729_v9  ;;  %v2737_v9 = vmul.f32 0.2, %v2433_v28  ;;  %vm2609_vm12 = vcmp.gt.f32.partialorder %v2433_v28, 0.0 }
 0x2d7   : > { %3689 = vmatmul.bf16.gmra.mxu3 %v14732_v52  ;;  %v14740_v52 = vld [vmem:[#allocation80_spill] sm:$0xff] }
 0x2d8   : > { %3738 = vmatmul.bf16.gmra.mxu0 %v14733_v15  ;;  %v12904_v35 = vsel %vm2602_vm11, %v2528_v53, %v2730_v37  ;;  %v10608_v53 = vld [vmem:[#allocation7 + $0x150] sm:$0xff]  ;;  %v12915_v37 = vsel %vm2609_vm12, %v2433_v28, %v2737_v9 }
 0x2d9   : > { %v2481_v61 = vpop.f32.mrf.mxu2  ;;  %3769 = vmatpush.bf16.msra.mxu1 %v10608_v53  ;;  %v14735_v28 = vld [vmem:[#allocation52_spill] sm:$0xff] }
 0x2da   : > { %v2530_v10 = vpop.f32.mrf.mxu3  ;;  %v2482_v2 = vadd.f32 %v2481_v61, %v12797_v30  ;;  %v14736_v9 = vpack.c.bf16 %v14734_v27, %v14735_v28  ;;  %v2391_v28 = vadd.f32 %v12744_v25, %v12774_v59  ;;  %v2394_v25 = vadd.f32 %v12756_v36, %v12774_v59 }
 0x2db   : > { %v2434_v19 = vpop.f32.mrf.mxu1 }
 0x2dc   : > { %v2435_v47 = vadd.f32 %v2434_v19, %v2386_v5  ;;  %v2531_v50 = vadd.f32 %v2530_v10, %v2482_v2  ;;  %v12922_v10 = vpop.f32.mrf.mxu0 }
 0x2de   : > { %vm2617_vm13 = vcmp.gt.f32.partialorder %v2435_v47, 0.0  ;;  %v2745_v39 = vmul.f32 0.2, %v2435_v47  ;;  %v2738_v2 = vmul.f32 0.2, %v2531_v50  ;;  %vm2610_vm14 = vcmp.gt.f32.partialorder %v2531_v50, 0.0 }
 0x2e0   : > { %v12917_v40 = vsel %vm2617_vm13, %v2435_v47, %v2745_v39  ;;  %v14737_v39 = vld [vmem:[#allocation79_spill] sm:$0xff] }
 0x2e1   : > { %v2483_v15 = vpop.f32.mrf.mxu2  ;;  %v14738_v53 = vpack.c.bf16 %v12477_v58, %v14737_v39 }
 0x2e2   : > { %v2532_v45 = vpop.f32.mrf.mxu3  ;;  %v2484_v55 = vadd.f32 %v2483_v15, %v12797_v30  ;;  %v14741_v15 = vpack.c.bf16 %v14739_v6, %v14740_v52  ;;  %v14743_v52 = vld [vmem:[#allocation55_spill] sm:$0xff] }
 0x2e3   : > { %v2437_v5 = vpop.f32.mrf.mxu1  ;;  %v14745_v36 = vpack.c.bf16 %v14743_v52, %v14744_v0 }
 0x2e4   : > { %v2438_v61 = vadd.f32 %v2437_v5, %v2389_v4  ;;  %v2533_v19 = vadd.f32 %v2532_v45, %v2484_v55  ;;  %v14742_v4 = vpack.c.bf16 %v12697_v48, %v12695_v31  ;;  %v10615_v45 = vld [vmem:[#allocation7 + $0x188] sm:$0xff]  ;;  %v12936_v5 = vsel %vm2610_vm14, %v2531_v50, %v2738_v2 }
 0x2e5   : > { %3596 = vmatmul.bf16.gmra.mxu1 %v14736_v9  ;;  %v10623_v55 = vld [vmem:[#allocation7 + $0x1c8] sm:$0xff]  ;;  %3819 = vmatpush.bf16.msra.mxu2 %v10615_v45 }
 0x2e6   : > { %vm2618_vm15 = vcmp.gt.f32.partialorder %v2533_v19, 0.0  ;;  %v2746_v47 = vmul.f32 0.2, %v2533_v19  ;;  %3645 = vmatmul.bf16.gmra.mxu2 %v14738_v53  ;;  %3868 = vmatpush.bf16.msra.mxu3 %v10623_v55  ;;  %v2753_v31 = vmul.f32 0.2, %v2438_v61  ;;  %vm2625_vm0 = vcmp.gt.f32.partialorder %v2438_v61, 0.0 }
 0x2e7   : > { %3694 = vmatmul.bf16.gmra.mxu3 %v14741_v15 }
 0x2e8   : > { %3743 = vmatmul.bf16.gmra.mxu0 %v14742_v4  ;;  %v12938_v27 = vsel %vm2618_vm15, %v2533_v19, %v2746_v47  ;;  %v12945_v19 = vpop.f32.mrf.mxu0  ;;  %v10607_v47 = vld [vmem:[#allocation7 + $0x148] sm:$0xff]  ;;  %v12949_v53 = vsel %vm2625_vm0, %v2438_v61, %v2753_v31  ;;  %v14746_v31 = vpack.c.bf16 %v12503_v13, %v12501_v18  ;;  %v2396_v18 = vadd.f32 %v12776_v42, %v12774_v59 }
 0x2e9   : > { %v2486_v9 = vpop.f32.mrf.mxu2  ;;  %3770 = vmatpush.bf16.msra.mxu1 %v10607_v47  ;;  %v14749_v47 = vpack.c.bf16 %v12723_v8, %v12721_v44  ;;  %v2399_v42 = vadd.f32 %v12802_v34, %v12774_v59  ;;  %v14750_v34 = vld [vmem:[#allocation58_spill] sm:$0xff] }
 0x2ea   : > { %v2535_v58 = vpop.f32.mrf.mxu3  ;;  %v2487_v6 = vadd.f32 %v2486_v9, %v12797_v30 }
 0x2eb   : > { %v2439_v48 = vpop.f32.mrf.mxu1 }
 0x2ec   : > { %v2440_v39 = vadd.f32 %v2439_v48, %v2391_v28  ;;  %v2536_v50 = vadd.f32 %v2535_v58, %v2487_v6 }
 0x2ee   : > { %vm2633_vm1 = vcmp.gt.f32.partialorder %v2440_v39, 0.0  ;;  %v2761_v2 = vmul.f32 0.2, %v2440_v39  ;;  %v2754_v6 = vmul.f32 0.2, %v2536_v50  ;;  %vm2626_vm2 = vcmp.gt.f32.partialorder %v2536_v50, 0.0 }
 0x2f0   : > { %v12951_v15 = vsel %vm2633_vm1, %v2440_v39, %v2761_v2  ;;  %v14747_v39 = vld [vmem:[#allocation82_spill] sm:$0xff]  ;;  %v12970_v0 = vsel %vm2626_vm2, %v2536_v50, %v2754_v6 }
 0x2f1   : > { %v2488_v45 = vpop.f32.mrf.mxu2  ;;  %v14748_v2 = vpack.c.bf16 %v12516_v33, %v14747_v39  ;;  %v14756_v39 = vld [vmem:[#allocation86_spill] sm:$0xff]  ;;  %v14757_v33 = vld [vmem:[#allocation85_spill] sm:$0xff] }
 0x2f2   : > { %v2537_v55 = vpop.f32.mrf.mxu3  ;;  %v2489_v28 = vadd.f32 %v2488_v45, %v12797_v30  ;;  %v10622_v45 = vld [vmem:[#allocation7 + $0x1c0] sm:$0xff] }
 0x2f3   : > { %v2442_v9 = vpop.f32.mrf.mxu1  ;;  %3869 = vmatpush.bf16.msra.mxu3 %v10622_v45 }
 0x2f4   : > { %v2443_v58 = vadd.f32 %v2442_v9, %v2394_v25  ;;  %v2538_v48 = vadd.f32 %v2537_v55, %v2489_v28  ;;  %v10614_v25 = vld [vmem:[#allocation7 + $0x180] sm:$0xff]  ;;  %v12968_v55 = vpop.f32.mrf.mxu0 }
 0x2f5   : > { %3601 = vmatmul.bf16.gmra.mxu1 %v14745_v36  ;;  %3820 = vmatpush.bf16.msra.mxu2 %v10614_v25 }
 0x2f6   : > { %vm2634_vm3 = vcmp.gt.f32.partialorder %v2538_v48, 0.0  ;;  %v2762_v61 = vmul.f32 0.2, %v2538_v48  ;;  %3650 = vmatmul.bf16.gmra.mxu2 %v14746_v31  ;;  %v2769_v9 = vmul.f32 0.2, %v2443_v58  ;;  %vm2641_vm4 = vcmp.gt.f32.partialorder %v2443_v58, 0.0 }
 0x2f7   : > { %3699 = vmatmul.bf16.gmra.mxu3 %v14748_v2 }
 0x2f8   : > { %3748 = vmatmul.bf16.gmra.mxu0 %v14749_v47  ;;  %v12972_v52 = vsel %vm2634_vm3, %v2538_v48, %v2762_v61  ;;  %v10606_v48 = vld [vmem:[#allocation7 + $0x140] sm:$0xff]  ;;  %v12981_v61 = vsel %vm2641_vm4, %v2443_v58, %v2769_v9 }
 0x2f9   : > { %v2491_v13 = vpop.f32.mrf.mxu2  ;;  %3771 = vmatpush.bf16.msra.mxu1 %v10606_v48  ;;  %v14751_v58 = vld [vmem:[#allocation57_spill] sm:$0xff] }
 0x2fa   : > { %v2540_v28 = vpop.f32.mrf.mxu3  ;;  %v2492_v44 = vadd.f32 %v2491_v13, %v12797_v30 }
 0x2fb   : > { %v2444_v8 = vpop.f32.mrf.mxu1 }
 0x2fc   : > { %v2445_v36 = vadd.f32 %v2444_v8, %v2396_v18  ;;  %v2541_v50 = vadd.f32 %v2540_v28, %v2492_v44  ;;  %v12988_v18 = vpop.f32.mrf.mxu0  ;;  %v14752_v8 = vpack.c.bf16 %v14750_v34, %v14751_v58 }
 0x2fe   : > { %vm2649_vm5 = vcmp.gt.f32.partialorder %v2445_v36, 0.0  ;;  %v2777_v6 = vmul.f32 0.2, %v2445_v36  ;;  %v2770_v28 = vmul.f32 0.2, %v2541_v50  ;;  %vm2642_vm6 = vcmp.gt.f32.partialorder %v2541_v50, 0.0 }
 0x300   : > { %v12983_v31 = vsel %vm2649_vm5, %v2445_v36, %v2777_v6  ;;  %v14753_v36 = vld [vmem:[#allocation84_spill] sm:$0xff]  ;;  %v14754_v6 = vld [vmem:[#allocation83_spill] sm:$0xff] }
 0x301   : > { %v2493_v2 = vpop.f32.mrf.mxu2  ;;  %v14755_v48 = vpack.c.bf16 %v14753_v36, %v14754_v6 }
 0x302   : > { %v2542_v47 = vpop.f32.mrf.mxu3  ;;  %v2494_v25 = vadd.f32 %v2493_v2, %v12797_v30  ;;  %v14758_v2 = vpack.c.bf16 %v14756_v39, %v14757_v33 }
 0x303   : > { %v2447_v45 = vpop.f32.mrf.mxu1 }
 0x304   : > { %v2448_v13 = vadd.f32 %v2447_v45, %v2399_v42  ;;  %v2543_v44 = vadd.f32 %v2542_v47, %v2494_v25  ;;  %v14759_v42 = vpack.c.bf16 %v12751_v32, %v12749_v11  ;;  %v13002_v47 = vsel %vm2642_vm6, %v2541_v50, %v2770_v28  ;;  %v13011_v32 = vpop.f32.mrf.mxu0 }
 0x305   : > { %3606 = vmatmul.bf16.gmra.mxu1 %v14752_v8  ;;  %v2401_v45 = vadd.f32 %v12821_v49, %v12774_v59  ;;  %v2404_v28 = vadd.f32 %v12845_v56, %v12774_v59  ;;  %v14761_v8 = vld [vmem:[#allocation61_spill] sm:$0xff] }
 0x306   : > { %vm2650_vm7 = vcmp.gt.f32.partialorder %v2543_v44, 0.0  ;;  %v2778_v9 = vmul.f32 0.2, %v2543_v44  ;;  %3655 = vmatmul.bf16.gmra.mxu2 %v14755_v48  ;;  %v2785_v39 = vmul.f32 0.2, %v2448_v13  ;;  %vm2657_vm8 = vcmp.gt.f32.partialorder %v2448_v13, 0.0 }
 0x307   : > { %3704 = vmatmul.bf16.gmra.mxu3 %v14758_v2 }
 0x308   : > { %3753 = vmatmul.bf16.gmra.mxu0 %v14759_v42  ;;  %v13004_v25 = vsel %vm2650_vm7, %v2543_v44, %v2778_v9  ;;  %v13015_v49 = vsel %vm2657_vm8, %v2448_v13, %v2785_v39  ;;  %v14763_v13 = vpack.c.bf16 %v12558_v17, %v12556_v41  ;;  %v14764_v39 = vpack.c.bf16 %v12576_v54, %v12574_v14 }
 0x309   : > { %v2496_v34 = vpop.f32.mrf.mxu2 }
 0x30a   : > { %v2545_v58 = vpop.f32.mrf.mxu3  ;;  %v2497_v36 = vadd.f32 %v2496_v34, %v12797_v30 }
 0x30b   : > { %v2449_v33 = vpop.f32.mrf.mxu1 }
 0x30c   : > { %v2450_v6 = vadd.f32 %v2449_v33, %v2401_v45  ;;  %v2546_v11 = vadd.f32 %v2545_v58, %v2497_v36  ;;  %v14760_v33 = vld [vmem:[#allocation62_spill] sm:$0xff] }
 0x30d   : > { %v14762_v4 = vpack.c.bf16 %v14760_v33, %v14761_v8 }
 0x30e   : > { %vm2665_vm9 = vcmp.gt.f32.partialorder %v2450_v6, 0.0  ;;  %v2793_v50 = vmul.f32 0.2, %v2450_v6  ;;  %v2786_v58 = vmul.f32 0.2, %v2546_v11  ;;  %vm2658_vm10 = vcmp.gt.f32.partialorder %v2546_v11, 0.0 }
 0x310   : > { %v13017_v44 = vsel %vm2665_vm9, %v2450_v6, %v2793_v50  ;;  %v13031_v6 = vpop.f32.mrf.mxu0  ;;  %v14765_v50 = vpack.c.bf16 %v12782_v7, %v12780_v46  ;;  %v10637_v7 = vld [vmem:[%s14766_s29 + $0x38] sm:$0xff]  ;;  %s13334_s29 = sshll.u32 %s14886_s3, 3 }
 0x311   : > { %v2993_v9 = vpack.c.bf16 %v13017_v44, %v13015_v49  ;;  %v2498_v48 = vpop.f32.mrf.mxu2  ;;  %4035 = vmatpush.bf16.msra.mxu0 %v10637_v7  ;;  %s13352_s27 = scalar_lea.vmem %s14801_s23, %s13334_s29  ;;  %s13369_s16 = scalar_lea.vmem %s14802_s25, %s13334_s29 }
 0x312   : > { %v2547_v2 = vpop.f32.mrf.mxu3  ;;  %v2499_v42 = vadd.f32 %v2498_v48, %v12797_v30 }
 0x313   : > { %v2452_v45 = vpop.f32.mrf.mxu1 }
 0x314   : > { %v2453_v34 = vadd.f32 %v2452_v45, %v2404_v28  ;;  %v2548_v36 = vadd.f32 %v2547_v2, %v2499_v42  ;;  %v13036_v28 = vsel %vm2658_vm10, %v2546_v11, %v2786_v58 }
 0x315   : > { %3611 = vmatmul.bf16.gmra.mxu1 %v14762_v4  ;;  %v2406_v4 = vadd.f32 %v12859_v29, %v12774_v59  ;;  %v13051_v59 = vld [vmem:[%s14768_s0] ss:$0 sm:$0xff]  ;;  %s13341_s0 = scalar_lea.vmem %s14474_s21, %s13334_s29  ;;  %s8441_s29 = scalar_lea.hbm %s14876_s5, %s10845_s22 }
 0x316   : > { %vm2666_vm11 = vcmp.gt.f32.partialorder %v2548_v36, 0.0  ;;  %v2794_v56 = vmul.f32 0.2, %v2548_v36  ;;  %3660 = vmatmul.bf16.gmra.mxu2 %v14763_v13  ;;  %v2801_v2 = vmul.f32 0.2, %v2453_v34  ;;  %vm2673_vm12 = vcmp.gt.f32.partialorder %v2453_v34, 0.0 }
 0x317   : > { %3709 = vmatmul.bf16.gmra.mxu3 %v14764_v39  ;;  %s8444_s7 = sshll.u32 %s8441_s29, 4  ;;  %s8445_s7 = int_to_ptr.hbm [resolvable:$true] %s8444_s7 }
 0x318   : > { %3758 = vmatmul.bf16.gmra.mxu0 %v14765_v50  ;;  %v13038_v8 = vsel %vm2666_vm11, %v2548_v36, %v2794_v56  ;;  %v13053_v11 = vsel %vm2673_vm12, %v2453_v34, %v2801_v2  ;;  %v3529_v36 = vadd.f32 %v13051_v59, %v12885_v60  ;;  %v14769_v34 = vpack.c.bf16 %v12602_v1, %v12600_v3  ;;  %s11621_s3 = sshra.s32 %s8445_s7, 4  ;;  %s11622_s3 = int_to_ptr.hbm [resolvable:$true] %s11621_s3 }
 0x319   : > { %v2501_v48 = vpop.f32.mrf.mxu2  ;;  %v2994_v41 = vpack.c.bf16 %v13038_v8, %v13036_v28  ;;  %v14771_v60 = vpack.c.bf16 %v12838_v21, %v12836_v24  ;;  %v3531_v2 = vadd.f32 %v13051_v59, %v12910_v20  ;;  %v10636_v24 = vld [vmem:[%s14767_s18 + $0x30] sm:$0xff]  ;;  %v3534_v21 = vadd.f32 %v13051_v59, %v12922_v10  ;;  %v14798_v8 = vld [vmem:[#allocation40_spill] sm:$0xff]  ;;  %s11623_s20 = scalar_lea.hbm %s11622_s3, 256  ;;  %p11628_p3 = scmp.lt.s32.totalorder %s11622_s3, %s14876_s5 }
 0x31a   : > { %v2550_v17 = vpop.f32.mrf.mxu3  ;;  %v2502_v14 = vadd.f32 %v2501_v48, %v12797_v30  ;;  %4036 = vmatpush.bf16.msra.mxu0 %v10636_v24  ;;  %v3536_v10 = vadd.f32 %v13051_v59, %v12945_v19  ;;  %p11624_p0 = scmp.ne.s32.totalorder %s11622_s3, %s11623_s20  ;;  %p11629_p4 = scmp.lt.s32.totalorder %s11627_s24, %s11623_s20 }
 0x31b   : > { %v2454_v54 = vpop.f32.mrf.mxu1 }
 0x31c   : > { %v2455_v42 = vadd.f32 %v2454_v54, %v2406_v4  ;;  %v2551_v46 = vadd.f32 %v2550_v17, %v2502_v14  ;;  %v14770_v14 = vpack.c.bf16 %v12817_v63, %v12815_v23  ;;  %p11625_p1 = pnand %p11624_p0, %p11873_p5  ;;  %p11630_p7 = por %p11629_p4, %p11628_p3 }
 0x31e   : > { %vm2681_vm13 = vcmp.gt.f32.partialorder %v2455_v42, 0.0  ;;  %v2809_v29 = vmul.f32 0.2, %v2455_v42  ;;  %v2802_v4 = vmul.f32 0.2, %v2551_v46  ;;  %vm2674_vm14 = vcmp.gt.f32.partialorder %v2551_v46, 0.0  ;;  %p11626_p2 = pneg %p11625_p1 }
 0x320   : > { %v13055_v45 = vsel %vm2681_vm13, %v2455_v42, %v2809_v29  ;;  %p11631_p8 = pnand %p11630_p7, %p11626_p2 }
 0x321   : > { %v3001_v58 = vpack.c.bf16 %v13055_v45, %v13053_v11  ;;  %v2503_v33 = vpop.f32.mrf.mxu2  ;;  %v10645_v11 = vld [vmem:[%s14463_s10 + $0x18] sm:$0xff] }
 0x322   : > { %v2552_v56 = vpop.f32.mrf.mxu3  ;;  %v2504_v13 = vadd.f32 %v2503_v33, %v12797_v30  ;;  %v13071_v30 = vsel %vm2674_vm14, %v2551_v46, %v2802_v4  ;;  %v14773_v4 = vpack.c.bf16 %v12851_v43, %v12849_v51  ;;  %v3539_v51 = vadd.f32 %v13051_v59, %v12968_v55  ;;  %4338 = vmatpush.bf16.msrb.mxu2 %v10645_v11 }
 0x323   : > { %v3577_v39 = vpop.f32.mrf.mxu1  ;;  %v3541_v55 = vadd.f32 %v13051_v59, %v12988_v18 }
 0x324   : > { %v3578_v50 = vadd.f32 %v3577_v39, %v3529_v36  ;;  %v2553_v48 = vadd.f32 %v2552_v56, %v2504_v13  ;;  %v14772_v39 = vpack.c.bf16 %v12630_v16, %v12628_v26  ;;  %v10635_v26 = vld [vmem:[%s14767_s18 + $0x28] sm:$0xff] }
 0x325   : > { %3772 = vmatmul.bf16.vlgmr.msra.gmra.mxu1 %v14769_v34  ;;  %4037 = vmatpush.bf16.msra.mxu0 %v10635_v26 }
 0x326   : > { %vm2682_vm15 = vcmp.gt.f32.partialorder %v2553_v48, 0.0  ;;  %v2810_v17 = vmul.f32 0.2, %v2553_v48  ;;  %3821 = vmatmul.bf16.vlgmr.msra.gmra.mxu2 %v14770_v14 }
 0x327   : > { %3870 = vmatmul.bf16.vlgmr.msra.gmra.mxu3 %v14771_v60 }
 0x328   : > { %v13073_v54 = vsel %vm2682_vm15, %v2553_v48, %v2810_v17  ;;  %v14774_v48 = vpack.c.bf16 %v12872_v22, %v12870_v62 }
 0x329   : > { %v3626_v42 = vpop.f32.mrf.mxu2  ;;  %v3002_v1 = vpack.c.bf16 %v13073_v54, %v13071_v30 }
 0x32a   : > { %v3675_v3 = vpop.f32.mrf.mxu3  ;;  %v3627_v7 = vadd.f32 %v3626_v42, %v3578_v50  ;;  %v3548_v50 = vpop.f32.mrf.mxu0 }
 0x32b   : > { %v3579_v29 = vpop.f32.mrf.mxu1 }
 0x32c   : > { %v3580_v23 = vadd.f32 %v3579_v29, %v3531_v2  ;;  %v13079_v63 = vadd.f32 %v3675_v3, %v3627_v7  ;;  %v14775_v29 = vld [vmem:[#allocation46_spill] sm:$0xff] }
 0x331   : > { %v3628_v46 = vpop.f32.mrf.mxu2 }
 0x332   : > { %v3677_v20 = vpop.f32.mrf.mxu3  ;;  %v3629_v36 = vadd.f32 %v3628_v46, %v3580_v23  ;;  %v13104_v16 = vpop.f32.mrf.mxu0  ;;  %v14776_v23 = vld [vmem:[#allocation47_spill] sm:$0xff]  ;;  %v14779_v46 = vpack.c.bf16 %v12904_v35, %v12902_v12 }
 0x333   : > { %v3582_v33 = vpop.f32.mrf.mxu1  ;;  %v14777_v24 = vpack.c.bf16 %v14775_v29, %v14776_v23 }
 0x334   : > { %v3583_v56 = vadd.f32 %v3582_v33, %v3534_v21  ;;  %v13086_v13 = vadd.f32 %v3677_v20, %v3629_v36  ;;  %v14778_v21 = vpack.c.bf16 %v12883_v57, %v12881_v38  ;;  %v10634_v38 = vld [vmem:[%s14767_s18 + $0x20] sm:$0xff]  ;;  %v3544_v57 = vadd.f32 %v13051_v59, %v13011_v32 }
 0x335   : > { %3777 = vmatmul.bf16.gmra.mxu1 %v14772_v39  ;;  %4038 = vmatpush.bf16.msra.mxu0 %v10634_v38  ;;  %v14784_v32 = vpack.c.bf16 %v12938_v27, %v12936_v5 }
 0x336   : > { %3826 = vmatmul.bf16.gmra.mxu2 %v14773_v4 }
 0x337   : > { %3875 = vmatmul.bf16.gmra.mxu3 %v14774_v48 }
 0x339   : > { %v3631_v34 = vpop.f32.mrf.mxu2 }
 0x33a   : > { %v3680_v17 = vpop.f32.mrf.mxu3  ;;  %v3632_v14 = vadd.f32 %v3631_v34, %v3583_v56  ;;  %v3553_v33 = vpop.f32.mrf.mxu0 }
 0x33b   : > { %v3584_v60 = vpop.f32.mrf.mxu1 }
 0x33c   : > { %v3585_v2 = vadd.f32 %v3584_v60, %v3536_v10  ;;  %v13099_v42 = vadd.f32 %v3680_v17, %v3632_v14  ;;  %v14780_v60 = vld [vmem:[#allocation50_spill] sm:$0xff] }
 0x341   : > { %v3633_v43 = vpop.f32.mrf.mxu2 }
 0x342   : > { %v3682_v62 = vpop.f32.mrf.mxu3  ;;  %v3634_v22 = vadd.f32 %v3633_v43, %v3585_v2  ;;  %v13128_v17 = vpop.f32.mrf.mxu0  ;;  %v14781_v2 = vld [vmem:[#allocation51_spill] sm:$0xff]  ;;  %v3546_v43 = vadd.f32 %v13051_v59, %v13031_v6 }
 0x343   : > { %v3587_v19 = vpop.f32.mrf.mxu1  ;;  %v14782_v26 = vpack.c.bf16 %v14780_v60, %v14781_v2  ;;  %v14790_v2 = vld [vmem:[#allocation89_spill] sm:$0xff] }
 0x344   : > { %v3588_v3 = vadd.f32 %v3587_v19, %v3539_v51  ;;  %v13108_v7 = vadd.f32 %v3682_v62, %v3634_v22  ;;  %v14783_v51 = vpack.c.bf16 %v12917_v40, %v12915_v37  ;;  %v3549_v40 = vadd.f32 %v13051_v59, %v3548_v50 }
 0x345   : > { %3782 = vmatmul.bf16.gmra.mxu1 %v14777_v24  ;;  %v10633_v24 = vld [vmem:[%s14767_s18 + $0x18] sm:$0xff] }
 0x346   : > { %3831 = vmatmul.bf16.gmra.mxu2 %v14778_v21  ;;  %4039 = vmatpush.bf16.msra.mxu0 %v10633_v24  ;;  %v10631_v24 = vld [vmem:[%s14767_s18 + $0x8] sm:$0xff] }
 0x347   : > { %3880 = vmatmul.bf16.gmra.mxu3 %v14779_v46 }
 0x349   : > { %v3636_v20 = vpop.f32.mrf.mxu2 }
 0x34a   : > { %v3685_v36 = vpop.f32.mrf.mxu3  ;;  %v3637_v56 = vadd.f32 %v3636_v20, %v3588_v3  ;;  %v3558_v37 = vpop.f32.mrf.mxu0  ;;  %v14785_v20 = vld [vmem:[#allocation88_spill] sm:$0xff] }
 0x34b   : > { %v3589_v39 = vpop.f32.mrf.mxu1 }
 0x34c   : > { %v3590_v4 = vadd.f32 %v3589_v39, %v3541_v55  ;;  %v13121_v48 = vadd.f32 %v3685_v36, %v3637_v56  ;;  %v14786_v36 = vld [vmem:[#allocation87_spill] sm:$0xff]  ;;  %v14788_v39 = vpack.c.bf16 %v12951_v15, %v12949_v53  ;;  %v3554_v53 = vadd.f32 %v13051_v59, %v3553_v33 }
 0x34d   : > { %v14787_v56 = vpack.c.bf16 %v14785_v20, %v14786_v36 }
 0x351   : > { %v3638_v12 = vpop.f32.mrf.mxu2 }
 0x352   : > { %v3687_v35 = vpop.f32.mrf.mxu3  ;;  %v3639_v10 = vadd.f32 %v3638_v12, %v3590_v4  ;;  %v14789_v4 = vpack.c.bf16 %v12972_v52, %v12970_v0  ;;  %v13160_v50 = vpop.f32.mrf.mxu0 }
 0x353   : > { %v3592_v18 = vpop.f32.mrf.mxu1 }
 0x354   : > { %v3593_v34 = vadd.f32 %v3592_v18, %v3544_v57  ;;  %v13130_v14 = vadd.f32 %v3687_v35, %v3639_v10  ;;  %v10632_v18 = vld [vmem:[%s14767_s18 + $0x10] sm:$0xff] }
 0x355   : > { %3787 = vmatmul.bf16.gmra.mxu1 %v14782_v26  ;;  %4040 = vmatpush.bf16.msra.mxu0 %v10632_v18  ;;  %v14791_v26 = vld [vmem:[#allocation56_spill] sm:$0xff] }
 0x356   : > { %3836 = vmatmul.bf16.gmra.mxu2 %v14783_v51  ;;  %v14792_v51 = vpack.c.bf16 %v14790_v2, %v14791_v26 }
 0x357   : > { %3885 = vmatmul.bf16.gmra.mxu3 %v14784_v32  ;;  %v14793_v32 = vpack.c.bf16 %v12983_v31, %v12981_v61  ;;  %v3559_v61 = vadd.f32 %v13051_v59, %v3558_v37 }
 0x359   : > { %v3641_v62 = vpop.f32.mrf.mxu2  ;;  %4041 = vmatpush.bf16.msra.mxu0 %v10631_v24 }
 0x35a   : > { %v3690_v22 = vpop.f32.mrf.mxu3  ;;  %v3642_v19 = vadd.f32 %v3641_v62, %v3593_v34  ;;  %v3563_v52 = vpop.f32.mrf.mxu0 }
 0x35b   : > { %v3594_v3 = vpop.f32.mrf.mxu1 }
 0x35c   : > { %v3595_v29 = vadd.f32 %v3594_v3, %v3546_v43  ;;  %v13143_v23 = vadd.f32 %v3690_v22, %v3642_v19  ;;  %v14794_v43 = vpack.c.bf16 %v13004_v25, %v13002_v47 }
 0x361   : > { %v3643_v5 = vpop.f32.mrf.mxu2 }
 0x362   : > { %v3692_v27 = vpop.f32.mrf.mxu3  ;;  %v3644_v21 = vadd.f32 %v3643_v5, %v3595_v29  ;;  %v13185_v3 = vpop.f32.mrf.mxu0  ;;  %v14795_v5 = vld [vmem:[#allocation59_spill] sm:$0xff] }
 0x363   : > { %v3597_v46 = vpop.f32.mrf.mxu1 }
 0x364   : > { %v3598_v6 = vadd.f32 %v3597_v46, %v3549_v40  ;;  %v13149_v55 = vadd.f32 %v3692_v27, %v3644_v21  ;;  %v14796_v27 = vld [vmem:[#allocation60_spill] sm:$0xff] }
 0x365   : > { %3792 = vmatmul.bf16.gmra.mxu1 %v14787_v56  ;;  %v14797_v21 = vpack.c.bf16 %v14795_v5, %v14796_v27 }
 0x366   : > { %3841 = vmatmul.bf16.gmra.mxu2 %v14788_v39 }
 0x367   : > { %3890 = vmatmul.bf16.gmra.mxu3 %v14789_v4  ;;  %v10630_v4 = vld [vmem:[%s14767_s18] sm:$0xff] }
 0x368   : > { %4042 = vmatpush.bf16.msra.mxu0 %v10630_v4 }
 0x369   : > { %v3646_v38 = vpop.f32.mrf.mxu2 }
 0x36a   : > { %v3695_v57 = vpop.f32.mrf.mxu3  ;;  %v3647_v12 = vadd.f32 %v3646_v38, %v3598_v6  ;;  %v3724_v46 = vpop.f32.mrf.mxu0  ;;  %v3564_v38 = vadd.f32 %v13051_v59, %v3563_v52 }
 0x36b   : > { %v13162_v35 = vpop.f32.mrf.mxu1  ;;  %v3725_v45 = vadd.f32 %v3724_v46, %v13079_v63 }
 0x36c   : > { %v13164_v10 = vadd.f32 %v3695_v57, %v3647_v12 }
 0x371   : > { %v13170_v15 = vpop.f32.mrf.mxu2 }
 0x372   : > { %v13172_v0 = vpop.f32.mrf.mxu3  ;;  %v3726_v39 = vpop.f32.mrf.mxu0 }
 0x373   : > { %v3602_v34 = vpop.f32.mrf.mxu1 }
 0x374   : > { %v3603_v60 = vadd.f32 %v3602_v34, %v3554_v53 }
 0x375   : > { %3797 = vmatmul.bf16.gmra.mxu1 %v14792_v51 }
 0x376   : > { %3846 = vmatmul.bf16.gmra.mxu2 %v14793_v32 }
 0x377   : > { %3895 = vmatmul.bf16.gmra.mxu3 %v14794_v43 }
 0x379   : > { %v3651_v33 = vpop.f32.mrf.mxu2 }
 0x37a   : > { %v3700_v62 = vpop.f32.mrf.mxu3  ;;  %v3652_v22 = vadd.f32 %v3651_v33, %v3603_v60  ;;  %v3729_v53 = vpop.f32.mrf.mxu0 }
 0x37b   : > { %v13183_v19 = vpop.f32.mrf.mxu1 }
 0x37c   : > { %v13187_v29 = vadd.f32 %v3700_v62, %v3652_v22  ;;  %v3727_v62 = vadd.f32 %v3726_v39, %v13086_v13 }
 0x381   : > { %v13193_v31 = vpop.f32.mrf.mxu2 }
 0x382   : > { %v13195_v47 = vpop.f32.mrf.mxu3  ;;  %v3731_v32 = vpop.f32.mrf.mxu0 }
 0x383   : > { %v3607_v25 = vpop.f32.mrf.mxu1 }
 0x384   : > { %v3608_v40 = vadd.f32 %v3607_v25, %v3559_v61 }
 0x385   : > { %3802 = vmatmul.bf16.gmra.mxu1 %v14797_v21 }
 0x386   : > { %3851 = vmatmul.bf16.gmra.mxu2 %v2993_v9 }
 0x387   : > { %3900 = vmatmul.bf16.gmra.mxu3 %v2994_v41  ;;  %v14799_v41 = vld [vmem:[#allocation41_spill] sm:$0xff] }
 0x388   : > { %v14800_v57 = vpack.c.bf16 %v14798_v8, %v14799_v41  ;;  %v3732_v8 = vadd.f32 %v3731_v32, %v13108_v7  ;;  %v10641_v41 = vld [vmem:[%s14461_s8 + $0x18] sm:$0xff]  ;;  %v10644_v7 = vld [vmem:[%s14463_s10 + $0x10] sm:$0xff] }
 0x389   : > { %v3656_v37 = vpop.f32.mrf.mxu2  ;;  %4205 = vmatpush.bf16.msrb.mxu1 %v10641_v41  ;;  %4339 = vmatpush.bf16.msrb.mxu2 %v10644_v7 }
 0x38a   : > { %v3705_v6 = vpop.f32.mrf.mxu3  ;;  %v3657_v20 = vadd.f32 %v3656_v37, %v3608_v40  ;;  %v3734_v33 = vpop.f32.mrf.mxu0 }
 0x38b   : > { %v13206_v36 = vpop.f32.mrf.mxu1  ;;  %v3735_v32 = vadd.f32 %v3734_v33, %v13121_v48 }
 0x38c   : > { %v13208_v56 = vadd.f32 %v3705_v6, %v3657_v20  ;;  %v3730_v20 = vadd.f32 %v3729_v53, %v13099_v42 }
 0x391   : > { %v13214_v49 = vpop.f32.mrf.mxu2 }
 0x392   : > { %v13216_v44 = vpop.f32.mrf.mxu3  ;;  %v3736_v46 = vpop.f32.mrf.mxu0 }
 0x393   : > { %v3612_v9 = vpop.f32.mrf.mxu1 }
 0x394   : > { %v3613_v28 = vadd.f32 %v3612_v9, %v3564_v38 }
 0x395   : > { %3807 = vmatmul.bf16.gmra.mxu1 %v14800_v57 }
 0x396   : > { %3856 = vmatmul.bf16.gmra.mxu2 %v3001_v58 }
 0x397   : > { %3905 = vmatmul.bf16.gmra.mxu3 %v3002_v1 }
 0x399   : > { %v3661_v12 = vpop.f32.mrf.mxu2 }
 0x39a   : > { %v3710_v18 = vpop.f32.mrf.mxu3  ;;  %v3662_v52 = vadd.f32 %v3661_v12, %v3613_v28 }
 0x39b   : > { %v13227_v34 = vpop.f32.mrf.mxu1 }
 0x39c   : > { %v13229_v60 = vadd.f32 %v3710_v18, %v3662_v52 }
 0x3a1   : > { %v13231_v2 = vpop.f32.mrf.mxu2 }
 0x3a2   : > { %v13233_v26 = vpop.f32.mrf.mxu3 }
 0x3a3   : > { %v3773_v51 = vpop.f32.mrf.mxu1 }
 0x3a4   : > { %v3774_v54 = vadd.f32 %v3773_v51, %v3725_v45  ;;  %v3739_v51 = vpop.f32.mrf.mxu0 }
 0x3a9   : > { %v3822_v58 = vpop.f32.mrf.mxu2 }
 0x3aa   : > { %v3871_v30 = vpop.f32.mrf.mxu3  ;;  %v3823_v43 = vadd.f32 %v3822_v58, %v3774_v54 }
 0x3ab   : > { %v3775_v1 = vpop.f32.mrf.mxu1 }
 0x3ac   : > { %v3872_v22 = vadd.f32 %v3871_v30, %v3823_v43  ;;  %v3776_v24 = vadd.f32 %v3775_v1, %v3727_v62 }
 0x3ae   : > { %v3927_v27 = vmul.f32 0.2, %v3872_v22  ;;  %vm3911_vm0 = vcmp.gt.f32.partialorder %v3872_v22, 0.0 }
 0x3b0   : > { %v3943_v37 = vsel %vm3911_vm0, %v3872_v22, %v3927_v27 }
 0x3b1   : > { %v3824_v61 = vpop.f32.mrf.mxu2 }
 0x3b2   : > { %v3873_v25 = vpop.f32.mrf.mxu3  ;;  %v3825_v40 = vadd.f32 %v3824_v61, %v3776_v24  ;;  %v3741_v61 = vpop.f32.mrf.mxu0 }
 0x3b3   : > { %v3778_v5 = vpop.f32.mrf.mxu1 }
 0x3b4   : > { %v3874_v21 = vadd.f32 %v3873_v25, %v3825_v40  ;;  %v3779_v13 = vadd.f32 %v3778_v5, %v3730_v20  ;;  %v3737_v40 = vadd.f32 %v3736_v46, %v13130_v14 }
 0x3b6   : > { %vm3912_vm1 = vcmp.gt.f32.partialorder %v3874_v21, 0.0  ;;  %v3928_v63 = vmul.f32 0.2, %v3874_v21 }
 0x3b8   : > { %v3944_v6 = vsel %vm3912_vm1, %v3874_v21, %v3928_v63 }
 0x3b9   : > { %v3959_v4 = vpack.c.bf16 %v3944_v6, %v3943_v37  ;;  %v3827_v38 = vpop.f32.mrf.mxu2 }
 0x3ba   : > { %v3876_v9 = vpop.f32.mrf.mxu3  ;;  %v3828_v28 = vadd.f32 %v3827_v38, %v3779_v13  ;;  %v3744_v20 = vpop.f32.mrf.mxu0  ;;  %v3740_v38 = vadd.f32 %v3739_v51, %v13143_v23 }
 0x3bb   : > { %v3780_v39 = vpop.f32.mrf.mxu1  ;;  %4043 = vmatmul.bf16.vlgmr.msra.gmra.mxu0 %v3959_v4 }
 0x3bc   : > { %v3877_v57 = vadd.f32 %v3876_v9, %v3828_v28  ;;  %v3781_v12 = vadd.f32 %v3780_v39, %v3732_v8 }
 0x3be   : > { %v3929_v11 = vmul.f32 0.2, %v3877_v57  ;;  %vm3913_vm2 = vcmp.gt.f32.partialorder %v3877_v57, 0.0 }
 0x3c0   : > { %v3945_v30 = vsel %vm3913_vm2, %v3877_v57, %v3929_v11  ;;  %v3742_v57 = vadd.f32 %v3741_v61, %v13149_v55  ;;  %vm4176_vm2 = vcmask 523264  }
 0x3c1   : > { %v3829_v18 = vpop.f32.mrf.mxu2 }
 0x3c2   : > { %v3878_v52 = vpop.f32.mrf.mxu3  ;;  %v3830_v42 = vadd.f32 %v3829_v18, %v3781_v12  ;;  %v10640_v12 = vld [vmem:[%s14461_s8 + $0x10] sm:$0xff]  ;;  %v3746_v18 = vpop.f32.mrf.mxu0 }
 0x3c3   : > { %v3783_v53 = vpop.f32.mrf.mxu1  ;;  %4206 = vmatpush.bf16.msrb.mxu1 %v10640_v12 }
 0x3c4   : > { %v3879_v45 = vadd.f32 %v3878_v52, %v3830_v42  ;;  %v3784_v22 = vadd.f32 %v3783_v53, %v3735_v32  ;;  %v3551_v53 = vadd.f32 %v13051_v59, %v13104_v16 }
 0x3c6   : > { %vm3914_vm3 = vcmp.gt.f32.partialorder %v3879_v45, 0.0  ;;  %v3930_v58 = vmul.f32 0.2, %v3879_v45 }
 0x3c8   : > { %v3946_v54 = vsel %vm3914_vm3, %v3879_v45, %v3930_v58  ;;  %v3600_v58 = vadd.f32 %v13162_v35, %v3551_v53 }
 0x3c9   : > { %v3832_v1 = vpop.f32.mrf.mxu2  ;;  %v3960_v62 = vpack.c.bf16 %v3946_v54, %v3945_v30  ;;  %v10643_v54 = vld [vmem:[%s14463_s10 + $0x8] sm:$0xff] }
 0x3ca   : > { %v3881_v43 = vpop.f32.mrf.mxu3  ;;  %v3833_v25 = vadd.f32 %v3832_v1, %v3784_v22  ;;  %v3649_v55 = vadd.f32 %v13170_v15, %v3600_v58  ;;  %v3745_v1 = vadd.f32 %v3744_v20, %v13164_v10  ;;  %4340 = vmatpush.bf16.msrb.mxu2 %v10643_v54  ;;  %v3749_v61 = vpop.f32.mrf.mxu0  ;;  %v3556_v10 = vadd.f32 %v13051_v59, %v13128_v17 }
 0x3cb   : > { %v3785_v24 = vpop.f32.mrf.mxu1  ;;  %4048 = vmatmul.bf16.gmra.mxu0 %v3960_v62 }
 0x3cc   : > { %v3882_v5 = vadd.f32 %v3881_v43, %v3833_v25  ;;  %v3786_v27 = vadd.f32 %v3785_v24, %v3737_v40  ;;  %v3698_v35 = vadd.f32 %v13172_v0, %v3649_v55  ;;  %v10642_v55 = vld [vmem:[%s14463_s10] sm:$0xff] }
 0x3ce   : > { %v3931_v48 = vmul.f32 0.2, %v3882_v5  ;;  %vm3915_vm4 = vcmp.gt.f32.partialorder %v3882_v5, 0.0  ;;  %4341 = vmatpush.bf16.msrb.mxu2 %v10642_v55 }
 0x3d0   : > { %v3947_v9 = vsel %vm3915_vm4, %v3882_v5, %v3931_v48  ;;  %v3747_v5 = vadd.f32 %v3746_v18, %v3698_v35 }
 0x3d1   : > { %v3834_v21 = vpop.f32.mrf.mxu2 }
 0x3d2   : > { %v3883_v63 = vpop.f32.mrf.mxu3  ;;  %v3835_v37 = vadd.f32 %v3834_v21, %v3786_v27  ;;  %v3751_v20 = vpop.f32.mrf.mxu0 }
 0x3d3   : > { %v3788_v6 = vpop.f32.mrf.mxu1 }
 0x3d4   : > { %v3884_v33 = vadd.f32 %v3883_v63, %v3835_v37  ;;  %v3789_v14 = vadd.f32 %v3788_v6, %v3740_v38 }
 0x3d6   : > { %vm3916_vm5 = vcmp.gt.f32.partialorder %v3884_v33, 0.0  ;;  %v3932_v4 = vmul.f32 0.2, %v3884_v33 }
 0x3d8   : > { %v3948_v13 = vsel %vm3916_vm5, %v3884_v33, %v3932_v4  ;;  %v3605_v33 = vadd.f32 %v13183_v19, %v3556_v10 }
 0x3d9   : > { %v3837_v39 = vpop.f32.mrf.mxu2  ;;  %v3961_v8 = vpack.c.bf16 %v3948_v13, %v3947_v9  ;;  %v3750_v13 = vadd.f32 %v3749_v61, %v13187_v29 }
 0x3da   : > { %v3886_v28 = vpop.f32.mrf.mxu3  ;;  %v3838_v41 = vadd.f32 %v3837_v39, %v3789_v14  ;;  %v3654_v38 = vadd.f32 %v13193_v31, %v3605_v33  ;;  %v3754_v12 = vpop.f32.mrf.mxu0  ;;  %v10639_v31 = vld [vmem:[%s14461_s8 + $0x8] sm:$0xff] }
 0x3db   : > { %v3790_v46 = vpop.f32.mrf.mxu1  ;;  %4053 = vmatmul.bf16.gmra.mxu0 %v3961_v8  ;;  %4207 = vmatpush.bf16.msrb.mxu1 %v10639_v31  ;;  %v3755_v54 = vadd.f32 %v3754_v12, %v13208_v56  ;;  %v3566_v56 = vadd.f32 %v13051_v59, %v13185_v3  ;;  %v13291_v31 = vld [vmem:[#allocation8] ss:$0 sm:$0xff] }
 0x3dc   : > { %v3887_v52 = vadd.f32 %v3886_v28, %v3838_v41  ;;  %v3791_v42 = vadd.f32 %v3790_v46, %v3742_v57  ;;  %v3703_v17 = vadd.f32 %v13195_v47, %v3654_v38 }
 0x3de   : > { %v3933_v7 = vmul.f32 0.2, %v3887_v52  ;;  %vm3917_vm6 = vcmp.gt.f32.partialorder %v3887_v52, 0.0  ;;  %v3752_v18 = vadd.f32 %v3751_v20, %v3703_v17 }
 0x3e0   : > { %v3949_v43 = vsel %vm3917_vm6, %v3887_v52, %v3933_v7 }
 0x3e1   : > { %v3839_v23 = vpop.f32.mrf.mxu2 }
 0x3e2   : > { %v3888_v51 = vpop.f32.mrf.mxu3  ;;  %v3840_v11 = vadd.f32 %v3839_v23, %v3791_v42 }
 0x3e3   : > { %v3793_v45 = vpop.f32.mrf.mxu1 }
 0x3e4   : > { %v3889_v32 = vadd.f32 %v3888_v51, %v3840_v11  ;;  %v3794_v25 = vadd.f32 %v3793_v45, %v3745_v1  ;;  %v3561_v51 = vadd.f32 %v13051_v59, %v13160_v50 }
 0x3e6   : > { %vm3918_vm7 = vcmp.gt.f32.partialorder %v3889_v32, 0.0  ;;  %v3934_v30 = vmul.f32 0.2, %v3889_v32  ;;  %v3610_v11 = vadd.f32 %v13206_v36, %v3561_v51 }
 0x3e8   : > { %v3950_v62 = vsel %vm3918_vm7, %v3889_v32, %v3934_v30  ;;  %v3659_v7 = vadd.f32 %v13214_v49, %v3610_v11  ;;  %v3756_v30 = vpop.f32.mrf.mxu0 }
 0x3e9   : > { %v3842_v16 = vpop.f32.mrf.mxu2  ;;  %v3962_v24 = vpack.c.bf16 %v3950_v62, %v3949_v43 }
 0x3ea   : > { %v3891_v22 = vpop.f32.mrf.mxu3  ;;  %v3843_v15 = vadd.f32 %v3842_v16, %v3794_v25  ;;  %v3708_v16 = vadd.f32 %v13216_v44, %v3659_v7  ;;  %v10647_v7 = vld [vmem:[%s14465_s12 + $0x8] sm:$0xff] }
 0x3eb   : > { %v3795_v40 = vpop.f32.mrf.mxu1  ;;  %4058 = vmatmul.bf16.gmra.mxu0 %v3962_v24  ;;  %4586 = vmatpush.bf16.msrb.mxu3 %v10647_v7  ;;  %v13331_v7 = vld [vmem:[#allocation10] ss:$0 sm:$0xff] }
 0x3ec   : > { %v3892_v27 = vadd.f32 %v3891_v22, %v3843_v15  ;;  %v3796_v21 = vadd.f32 %v3795_v40, %v3747_v5  ;;  %v3757_v35 = vadd.f32 %v3756_v30, %v3708_v16 }
 0x3ee   : > { %v3935_v4 = vmul.f32 0.2, %v3892_v27  ;;  %vm3919_vm8 = vcmp.gt.f32.partialorder %v3892_v27, 0.0 }
 0x3f0   : > { %v3951_v39 = vsel %vm3919_vm8, %v3892_v27, %v3935_v4  ;;  %v3759_v27 = vpop.f32.mrf.mxu0 }
 0x3f1   : > { %v3844_v63 = vpop.f32.mrf.mxu2 }
 0x3f2   : > { %v3893_v37 = vpop.f32.mrf.mxu3  ;;  %v3845_v6 = vadd.f32 %v3844_v63, %v3796_v21  ;;  %v3615_v63 = vadd.f32 %v13227_v34, %v3566_v56 }
 0x3f3   : > { %v3798_v48 = vpop.f32.mrf.mxu1 }
 0x3f4   : > { %v3894_v0 = vadd.f32 %v3893_v37, %v3845_v6  ;;  %v3799_v41 = vadd.f32 %v3798_v48, %v3750_v13  ;;  %v3664_v44 = vadd.f32 %v13231_v2, %v3615_v63  ;;  %v3760_v48 = vadd.f32 %v3759_v27, %v13229_v60  ;;  %v10638_v2 = vld [vmem:[%s14461_s8] sm:$0xff] }
 0x3f5   : > { %4208 = vmatpush.bf16.msrb.mxu1 %v10638_v2 }
 0x3f6   : > { %vm3920_vm9 = vcmp.gt.f32.partialorder %v3894_v0, 0.0  ;;  %v3936_v9 = vmul.f32 0.2, %v3894_v0  ;;  %v3713_v59 = vadd.f32 %v13233_v26, %v3664_v44 }
 0x3f8   : > { %v3952_v28 = vsel %vm3920_vm9, %v3894_v0, %v3936_v9  ;;  %v3761_v34 = vpop.f32.mrf.mxu0 }
 0x3f9   : > { %v3847_v8 = vpop.f32.mrf.mxu2  ;;  %v3963_v46 = vpack.c.bf16 %v3952_v28, %v3951_v39  ;;  %v3762_v39 = vadd.f32 %v3761_v34, %v3713_v59  ;;  %v10646_v34 = vld [vmem:[%s14465_s12] sm:$0xff] }
 0x3fa   : > { %v3896_v14 = vpop.f32.mrf.mxu3  ;;  %v3848_v19 = vadd.f32 %v3847_v8, %v3799_v41  ;;  %4587 = vmatpush.bf16.msrb.mxu3 %v10646_v34 }
 0x3fb   : > { %v3800_v57 = vpop.f32.mrf.mxu1  ;;  %4063 = vmatmul.bf16.gmra.mxu0 %v3963_v46 }
 0x3fc   : > { %v3897_v52 = vadd.f32 %v3896_v14, %v3848_v19  ;;  %v3801_v42 = vadd.f32 %v3800_v57, %v3752_v18 }
 0x3fe   : > { %v3937_v45 = vmul.f32 0.2, %v3897_v52  ;;  %vm3921_vm10 = vcmp.gt.f32.partialorder %v3897_v52, 0.0 }
 0x400   : > { %v3953_v1 = vsel %vm3921_vm10, %v3897_v52, %v3937_v45 }
 0x401   : > { %v3849_v29 = vpop.f32.mrf.mxu2 }
 0x402   : > { %v3898_v23 = vpop.f32.mrf.mxu3  ;;  %v3850_v53 = vadd.f32 %v3849_v29, %v3801_v42 }
 0x403   : > { %v3803_v47 = vpop.f32.mrf.mxu1 }
 0x404   : > { %v3899_v58 = vadd.f32 %v3898_v23, %v3850_v53  ;;  %v3804_v22 = vadd.f32 %v3803_v47, %v3755_v54 }
 0x406   : > { %vm3922_vm11 = vcmp.gt.f32.partialorder %v3899_v58, 0.0  ;;  %v3938_v32 = vmul.f32 0.2, %v3899_v58 }
 0x408   : > { %v3954_v50 = vsel %vm3922_vm11, %v3899_v58, %v3938_v32 }
 0x409   : > { %v3852_v43 = vpop.f32.mrf.mxu2  ;;  %v3964_v36 = vpack.c.bf16 %v3954_v50, %v3953_v1 }
 0x40a   : > { %v3901_v62 = vpop.f32.mrf.mxu3  ;;  %v3853_v49 = vadd.f32 %v3852_v43, %v3804_v22 }
 0x40b   : > { %v3805_v24 = vpop.f32.mrf.mxu1  ;;  %4068 = vmatmul.bf16.gmra.mxu0 %v3964_v36 }
 0x40c   : > { %v3902_v61 = vadd.f32 %v3901_v62, %v3853_v49  ;;  %v3806_v25 = vadd.f32 %v3805_v24, %v3757_v35 }
 0x40e   : > { %v3939_v37 = vmul.f32 0.2, %v3902_v61  ;;  %vm3923_vm12 = vcmp.gt.f32.partialorder %v3902_v61, 0.0 }
 0x410   : > { %v3955_v33 = vsel %vm3923_vm12, %v3902_v61, %v3939_v37 }
 0x411   : > { %v3854_v40 = vpop.f32.mrf.mxu2 }
 0x412   : > { %v3903_v15 = vpop.f32.mrf.mxu3  ;;  %v3855_v5 = vadd.f32 %v3854_v40, %v3806_v25 }
 0x413   : > { %v3808_v21 = vpop.f32.mrf.mxu1 }
 0x414   : > { %v3904_v10 = vadd.f32 %v3903_v15, %v3855_v5  ;;  %v3809_v3 = vadd.f32 %v3808_v21, %v3760_v48 }
 0x416   : > { %vm3924_vm13 = vcmp.gt.f32.partialorder %v3904_v10, 0.0  ;;  %v3940_v6 = vmul.f32 0.2, %v3904_v10 }
 0x418   : > { %v3956_v20 = vsel %vm3924_vm13, %v3904_v10, %v3940_v6 }
 0x419   : > { %v3857_v4 = vpop.f32.mrf.mxu2  ;;  %v3965_v38 = vpack.c.bf16 %v3956_v20, %v3955_v33 }
 0x41a   : > { %v3906_v0 = vpop.f32.mrf.mxu3  ;;  %v3858_v9 = vadd.f32 %v3857_v4, %v3809_v3 }
 0x41b   : > { %4073 = vmatmul.bf16.gmra.mxu0 %v3965_v38  ;;  %v3810_v13 = vpop.f32.mrf.mxu1 }
 0x41c   : > { %v3907_v28 = vadd.f32 %v3906_v0, %v3858_v9  ;;  %v3811_v60 = vadd.f32 %v3810_v13, %v3762_v39 }
 0x41e   : > { %v3941_v17 = vmul.f32 0.2, %v3907_v28  ;;  %vm3925_vm14 = vcmp.gt.f32.partialorder %v3907_v28, 0.0 }
 0x420   : > { %v3957_v57 = vsel %vm3925_vm14, %v3907_v28, %v3941_v17 }
 0x421   : > { %v3859_v8 = vpop.f32.mrf.mxu2 }
 0x422   : > { %v3860_v14 = vadd.f32 %v3859_v8, %v3811_v60  ;;  %v3908_v46 = vpop.f32.mrf.mxu3 }
 0x424   : > { %v3909_v41 = vadd.f32 %v3908_v46, %v3860_v14 }
 0x426   : > { %vm3926_vm15 = vcmp.gt.f32.partialorder %v3909_v41, 0.0  ;;  %v3942_v26 = vmul.f32 0.2, %v3909_v41 }
 0x428   : > { %v3958_v19 = vsel %vm3926_vm15, %v3909_v41, %v3942_v26 }
 0x429   : > { %v3966_v12 = vpack.c.bf16 %v3958_v19, %v3957_v57 }
 0x42b   : > { %4078 = vmatmul.bf16.gmra.mxu0 %v3966_v12 }
 0x438   : > { %v4044_v18 = vpop.f32.mrf.mxu0 }
 0x439   : > { %v4045_v52 = vadd.f32 %v13291_v31, %v4044_v18 }
 0x43b   : > { %v4100_v29 = vmul.f32 0.2, %v4045_v52  ;;  %vm4084_vm0 = vcmp.gt.f32.partialorder %v4045_v52, 0.0 }
 0x43d   : > { %v4116_v53 = vsel %vm4084_vm0, %v4045_v52, %v4100_v29 }
 0x440   : > { %v4046_v42 = vpop.f32.mrf.mxu0 }
 0x441   : > { %v4047_v23 = vadd.f32 %v13291_v31, %v4046_v42 }
 0x443   : > { %vm4085_vm1 = vcmp.gt.f32.partialorder %v4047_v23, 0.0  ;;  %v4101_v51 = vmul.f32 0.2, %v4047_v23 }
 0x445   : > { %v4117_v47 = vsel %vm4085_vm1, %v4047_v23, %v4101_v51 }
 0x446   : > { %v4132_v11 = vpack.c.bf16 %v4117_v47, %v4116_v53 }
 0x448   : > { %v4049_v45 = vpop.f32.mrf.mxu0  ;;  %9559 = vmatmul.msk.bf16.vlgmr.msrb.gmra.mxu1 %vm4176_vm2, %v4132_v11  ;;  %9583 = vmatmul.msk.bf16.vlgmr.msrb.gmra.mxu2 %vm4176_vm2, %v4132_v11 }
 0x449   : > { %v4050_v58 = vadd.f32 %v13291_v31, %v4049_v45 }
 0x44b   : > { %v4102_v55 = vmul.f32 0.2, %v4050_v58  ;;  %vm4086_vm3 = vcmp.gt.f32.partialorder %v4050_v58, 0.0 }
 0x44d   : > { %v4118_v1 = vsel %vm4086_vm3, %v4050_v58, %v4102_v55  ;;  %vm4555_vm3 = vcmask 261120  }
 0x450   : > { %v4051_v32 = vpop.f32.mrf.mxu0 }
 0x451   : > { %v4052_v30 = vadd.f32 %v13291_v31, %v4051_v32 }
 0x453   : > { %vm4087_vm4 = vcmp.gt.f32.partialorder %v4052_v30, 0.0  ;;  %v4103_v54 = vmul.f32 0.2, %v4052_v30 }
 0x455   : > { %v4119_v50 = vsel %vm4087_vm4, %v4052_v30, %v4103_v54  ;;  %v13343_v30 = vld [vmem:[#allocation11] ss:$0 sm:$0xff] }
 0x456   : > { %v4133_v43 = vpack.c.bf16 %v4119_v50, %v4118_v1 }
 0x458   : > { %v4054_v62 = vpop.f32.mrf.mxu0  ;;  %9560 = vmatmul.msk.bf16.gmra.mxu1 %vm4176_vm2, %v4133_v43  ;;  %9584 = vmatmul.msk.bf16.gmra.mxu2 %vm4176_vm2, %v4133_v43 }
 0x459   : > { %v4055_v36 = vadd.f32 %v13291_v31, %v4054_v62 }
 0x45b   : > { %v4104_v22 = vmul.f32 0.2, %v4055_v36  ;;  %vm4088_vm5 = vcmp.gt.f32.partialorder %v4055_v36, 0.0 }
 0x45d   : > { %v4120_v35 = vsel %vm4088_vm5, %v4055_v36, %v4104_v22 }
 0x460   : > { %v4056_v16 = vpop.f32.mrf.mxu0 }
 0x461   : > { %v4057_v24 = vadd.f32 %v13291_v31, %v4056_v16 }
 0x463   : > { %vm4089_vm6 = vcmp.gt.f32.partialorder %v4057_v24, 0.0  ;;  %v4105_v49 = vmul.f32 0.2, %v4057_v24 }
 0x465   : > { %v4121_v61 = vsel %vm4089_vm6, %v4057_v24, %v4105_v49 }
 0x466   : > { %v4134_v25 = vpack.c.bf16 %v4121_v61, %v4120_v35 }
 0x468   : > { %v4059_v40 = vpop.f32.mrf.mxu0  ;;  %9561 = vmatmul.msk.bf16.gmra.mxu1 %vm4176_vm2, %v4134_v25  ;;  %9585 = vmatmul.msk.bf16.gmra.mxu2 %vm4176_vm2, %v4134_v25 }
 0x469   : > { %v4060_v15 = vadd.f32 %v13291_v31, %v4059_v40 }
 0x46b   : > { %v4106_v5 = vmul.f32 0.2, %v4060_v15  ;;  %vm4090_vm7 = vcmp.gt.f32.partialorder %v4060_v15, 0.0 }
 0x46d   : > { %v4122_v63 = vsel %vm4090_vm7, %v4060_v15, %v4106_v5 }
 0x470   : > { %v4061_v56 = vpop.f32.mrf.mxu0 }
 0x471   : > { %v4062_v27 = vadd.f32 %v13291_v31, %v4061_v56 }
 0x473   : > { %vm4091_vm8 = vcmp.gt.f32.partialorder %v4062_v27, 0.0  ;;  %v4107_v21 = vmul.f32 0.2, %v4062_v27 }
 0x475   : > { %v4123_v37 = vsel %vm4091_vm8, %v4062_v27, %v4107_v21 }
 0x476   : > { %v4135_v10 = vpack.c.bf16 %v4123_v37, %v4122_v63 }
 0x478   : > { %v4064_v44 = vpop.f32.mrf.mxu0  ;;  %9562 = vmatmul.msk.bf16.gmra.mxu1 %vm4176_vm2, %v4135_v10  ;;  %9586 = vmatmul.msk.bf16.gmra.mxu2 %vm4176_vm2, %v4135_v10 }
 0x479   : > { %v4065_v6 = vadd.f32 %v13291_v31, %v4064_v44 }
 0x47b   : > { %v4108_v33 = vmul.f32 0.2, %v4065_v6  ;;  %vm4092_vm9 = vcmp.gt.f32.partialorder %v4065_v6, 0.0 }
 0x47d   : > { %v4124_v0 = vsel %vm4092_vm9, %v4065_v6, %v4108_v33  ;;  %v4431_v33 = vld [vmem:[%s13369_s16] sm:$0xff] }
 0x480   : > { %v4066_v48 = vpop.f32.mrf.mxu0 }
 0x481   : > { %v4067_v20 = vadd.f32 %v13291_v31, %v4066_v48 }
 0x483   : > { %vm4093_vm10 = vcmp.gt.f32.partialorder %v4067_v20, 0.0  ;;  %v4109_v4 = vmul.f32 0.2, %v4067_v20 }
 0x485   : > { %v4125_v38 = vsel %vm4093_vm10, %v4067_v20, %v4109_v4 }
 0x486   : > { %v4136_v59 = vpack.c.bf16 %v4125_v38, %v4124_v0 }
 0x488   : > { %v4069_v3 = vpop.f32.mrf.mxu0  ;;  %9563 = vmatmul.msk.bf16.gmra.mxu1 %vm4176_vm2, %v4136_v59  ;;  %9587 = vmatmul.msk.bf16.gmra.mxu2 %vm4176_vm2, %v4136_v59 }
 0x489   : > { %v4070_v9 = vadd.f32 %v13291_v31, %v4069_v3  ;;  %v4432_v3 = vld [vmem:[%s13369_s16 + $0x8] sm:$0xff] }
 0x48b   : > { %v4110_v2 = vmul.f32 0.2, %v4070_v9  ;;  %vm4094_vm11 = vcmp.gt.f32.partialorder %v4070_v9, 0.0 }
 0x48d   : > { %v4126_v60 = vsel %vm4094_vm11, %v4070_v9, %v4110_v2 }
 0x490   : > { %v4071_v13 = vpop.f32.mrf.mxu0 }
 0x491   : > { %v4072_v39 = vadd.f32 %v13291_v31, %v4071_v13 }
 0x493   : > { %vm4095_vm12 = vcmp.gt.f32.partialorder %v4072_v39, 0.0  ;;  %v4111_v28 = vmul.f32 0.2, %v4072_v39 }
 0x495   : > { %v4127_v8 = vsel %vm4095_vm12, %v4072_v39, %v4111_v28 }
 0x496   : > { %v4137_v14 = vpack.c.bf16 %v4127_v8, %v4126_v60 }
 0x498   : > { %v4074_v46 = vpop.f32.mrf.mxu0  ;;  %9564 = vmatmul.msk.bf16.gmra.mxu1 %vm4176_vm2, %v4137_v14  ;;  %9588 = vmatmul.msk.bf16.gmra.mxu2 %vm4176_vm2, %v4137_v14 }
 0x499   : > { %v4075_v17 = vadd.f32 %v13291_v31, %v4074_v46  ;;  %v10651_v46 = vld [vmem:[#allocation14 + $0x18] sm:$0xff] }
 0x49a   : > { %4749 = vmatpush.bf16.msrb.mxu0 %v10651_v46 }
 0x49b   : > { %v4112_v26 = vmul.f32 0.2, %v4075_v17  ;;  %vm4096_vm13 = vcmp.gt.f32.partialorder %v4075_v17, 0.0 }
 0x49d   : > { %v4128_v12 = vsel %vm4096_vm13, %v4075_v17, %v4112_v26 }
 0x4a0   : > { %v4076_v41 = vpop.f32.mrf.mxu0 }
 0x4a1   : > { %v4077_v57 = vadd.f32 %v13291_v31, %v4076_v41 }
 0x4a3   : > { %vm4097_vm14 = vcmp.gt.f32.partialorder %v4077_v57, 0.0  ;;  %v4113_v19 = vmul.f32 0.2, %v4077_v57 }
 0x4a5   : > { %v4129_v18 = vsel %vm4097_vm14, %v4077_v57, %v4113_v19 }
 0x4a6   : > { %v4138_v52 = vpack.c.bf16 %v4129_v18, %v4128_v12 }
 0x4a8   : > { %v4079_v42 = vpop.f32.mrf.mxu0  ;;  %9565 = vmatmul.msk.bf16.gmra.mxu1 %vm4176_vm2, %v4138_v52  ;;  %9589 = vmatmul.msk.bf16.gmra.mxu2 %vm4176_vm2, %v4138_v52 }
 0x4a9   : > { %v4080_v29 = vadd.f32 %v13291_v31, %v4079_v42 }
 0x4ab   : > { %v4114_v51 = vmul.f32 0.2, %v4080_v29  ;;  %vm4098_vm15 = vcmp.gt.f32.partialorder %v4080_v29, 0.0 }
 0x4ad   : > { %v4130_v11 = vsel %vm4098_vm15, %v4080_v29, %v4114_v51 }
 0x4b0   : > { %v4081_v23 = vpop.f32.mrf.mxu0 }
 0x4b1   : > { %v4082_v53 = vadd.f32 %v13291_v31, %v4081_v23 }
 0x4b3   : > { %vm4099_vm0 = vcmp.gt.f32.partialorder %v4082_v53, 0.0  ;;  %v4115_v47 = vmul.f32 0.2, %v4082_v53 }
 0x4b5   : > { %v4131_v45 = vsel %vm4099_vm0, %v4082_v53, %v4115_v47 }
 0x4b6   : > { %v4139_v58 = vpack.c.bf16 %v4131_v45, %v4130_v11  ;;  %v4433_v45 = vld [vmem:[%s13369_s16 + $0x10] sm:$0xff] }
 0x4b8   : > { %9566 = vmatmul.msk.bf16.gmra.mxu1 %vm4176_vm2, %v4139_v58  ;;  %9590 = vmatmul.msk.bf16.gmra.mxu2 %vm4176_vm2, %v4139_v58 }
 0x4c5   : > { %v4210_v32 = vpop.f32.mrf.mxu1 }
 0x4c6   : > { %v4211_v55 = vadd.f32 %v13331_v7, %v4210_v32 }
 0x4c8   : > { %vm4250_vm1 = vcmp.gt.f32.partialorder %v4211_v55, 0.0  ;;  %v4266_v31 = vmul.f32 0.2, %v4211_v55 }
 0x4ca   : > { %v4282_v54 = vsel %vm4250_vm1, %v4211_v55, %v4266_v31  ;;  %v4434_v31 = vld [vmem:[%s13369_s16 + $0x18] sm:$0xff] }
 0x4cb   : > { %8386 = vst.msk [vmem:[%s13341_s0] sm:$0xff] %vm4555_vm3, %v4282_v54  ;;  %v4343_v1 = vpop.f32.mrf.mxu2 }
 0x4cc   : > { %v4344_v50 = vadd.f32 %v13343_v30, %v4343_v1 }
 0x4cd   : > { %v4212_v43 = vpop.f32.mrf.mxu1 }
 0x4ce   : > { %vm4383_vm4 = vcmp.gt.f32.partialorder %v4344_v50, 0.0  ;;  %v4399_v62 = vmul.f32 0.2, %v4344_v50  ;;  %v4213_v36 = vadd.f32 %v13331_v7, %v4212_v43 }
 0x4d0   : > { %v4415_v16 = vsel %vm4383_vm4, %v4344_v50, %v4399_v62  ;;  %vm4251_vm5 = vcmp.gt.f32.partialorder %v4213_v36, 0.0  ;;  %v4267_v22 = vmul.f32 0.2, %v4213_v36 }
 0x4d1   : > { %v4447_v24 = vmul.f32 0.5, %v4415_v16  ;;  %8402 = vst.msk [vmem:[%s13352_s27] sm:$0xff] %vm4555_vm3, %v4415_v16 }
 0x4d2   : > { %v4283_v49 = vsel %vm4251_vm5, %v4213_v36, %v4267_v22 }
 0x4d3   : > { %8387 = vst.msk [vmem:[%s13341_s0 + $0x8] sm:$0xff] %vm4555_vm3, %v4283_v49  ;;  %v4345_v35 = vpop.f32.mrf.mxu2  ;;  %v4463_v61 = vmul.f32 1.442695, %v4447_v24 }
 0x4d4   : > { %v4346_v25 = vadd.f32 %v13343_v30, %v4345_v35 }
 0x4d5   : > { %v4215_v40 = vpop.f32.mrf.mxu1  ;;  %11054 = vpow2.f32 %v4463_v61 }
 0x4d6   : > { %vm4384_vm6 = vcmp.gt.f32.partialorder %v4346_v25, 0.0  ;;  %v4400_v15 = vmul.f32 0.2, %v4346_v25  ;;  %v4216_v56 = vadd.f32 %v13331_v7, %v4215_v40 }
 0x4d8   : > { %v4416_v5 = vsel %vm4384_vm6, %v4346_v25, %v4400_v15  ;;  %vm4252_vm7 = vcmp.gt.f32.partialorder %v4216_v56, 0.0  ;;  %v4268_v27 = vmul.f32 0.2, %v4216_v56 }
 0x4d9   : > { %v4448_v21 = vmul.f32 0.5, %v4416_v5  ;;  %8403 = vst.msk [vmem:[%s13352_s27 + $0x8] sm:$0xff] %vm4555_vm3, %v4416_v5 }
 0x4da   : > { %v13363_v63 = vsel %vm4252_vm7, %v4216_v56, %v4268_v27 }
 0x4db   : > { %v4465_v37 = vmul.f32 1.442695, %v4448_v21  ;;  %8388 = vst.msk [vmem:[%s13341_s0 + $0x10] sm:$0xff] %vm4555_vm3, %v13363_v63  ;;  %v4348_v10 = vpop.f32.mrf.mxu2  ;;  %v11055_v48 = vpop.eup %11054 }
 0x4dc   : > { %v4349_v44 = vadd.f32 %v13343_v30, %v4348_v10  ;;  %v4495_v59 = vmul.f32 %v11055_v48, %v4431_v33  ;;  %v4435_v48 = vld [vmem:[%s13369_s16 + $0x20] sm:$0xff] }
 0x4dd   : > { %11056 = vpow2.f32 %v4465_v37  ;;  %v4217_v6 = vpop.f32.mrf.mxu1 }
 0x4de   : > { %vm4385_vm8 = vcmp.gt.f32.partialorder %v4349_v44, 0.0  ;;  %v4401_v20 = vmul.f32 0.2, %v4349_v44  ;;  %v4218_v4 = vadd.f32 %v13331_v7, %v4217_v6  ;;  %v4511_v8 = vadd.f32 %v4495_v59, %v4282_v54 }
 0x4e0   : > { %v4417_v0 = vsel %vm4385_vm8, %v4349_v44, %v4401_v20  ;;  %vm4253_vm9 = vcmp.gt.f32.partialorder %v4218_v4, 0.0  ;;  %v4269_v38 = vmul.f32 0.2, %v4218_v4 }
 0x4e1   : > { %v4449_v9 = vmul.f32 0.5, %v4417_v0  ;;  %8404 = vst.msk [vmem:[%s13352_s27 + $0x10] sm:$0xff] %vm4555_vm3, %v4417_v0  ;;  %v4436_v0 = vld [vmem:[%s13369_s16 + $0x28] sm:$0xff] }
 0x4e2   : > { %v4285_v34 = vsel %vm4253_vm9, %v4218_v4, %v4269_v38 }
 0x4e3   : > { %v11057_v13 = vpop.eup %11056  ;;  %v4467_v2 = vmul.f32 1.442695, %v4449_v9  ;;  %8389 = vst.msk [vmem:[%s13341_s0 + $0x18] sm:$0xff] %vm4555_vm3, %v4285_v34  ;;  %v4350_v39 = vpop.f32.mrf.mxu2 }
 0x4e4   : > { %v4496_v28 = vmul.f32 %v11057_v13, %v4432_v3  ;;  %v4351_v60 = vadd.f32 %v13343_v30, %v4350_v39 }
 0x4e5   : > { %v4220_v14 = vpop.f32.mrf.mxu1  ;;  %11058 = vpow2.f32 %v4467_v2 }
 0x4e6   : > { %v4512_v17 = vadd.f32 %v4496_v28, %v4283_v49  ;;  %vm4386_vm10 = vcmp.gt.f32.partialorder %v4351_v60, 0.0  ;;  %v4402_v41 = vmul.f32 0.2, %v4351_v60  ;;  %v4221_v26 = vadd.f32 %v13331_v7, %v4220_v14 }
 0x4e8   : > { %v4418_v57 = vsel %vm4386_vm10, %v4351_v60, %v4402_v41  ;;  %vm4254_vm11 = vcmp.gt.f32.partialorder %v4221_v26, 0.0  ;;  %v4270_v19 = vmul.f32 0.2, %v4221_v26  ;;  %v4527_v12 = vpack.c.bf16 %v4512_v17, %v4511_v8  ;;  %v10650_v60 = vld [vmem:[#allocation14 + $0x10] sm:$0xff] }
 0x4e9   : > { %v4450_v18 = vmul.f32 0.5, %v4418_v57  ;;  %8405 = vst.msk [vmem:[%s13352_s27 + $0x18] sm:$0xff] %vm4555_vm3, %v4418_v57  ;;  %4750 = vmatpush.bf16.msrb.mxu0 %v10650_v60 }
 0x4ea   : > { %v13386_v52 = vsel %vm4254_vm11, %v4221_v26, %v4270_v19  ;;  %9599 = vmatmul.msk.bf16.vlgmr.msrb.gmra.mxu3 %vm4555_vm3, %v4527_v12 }
 0x4eb   : > { %v4469_v42 = vmul.f32 1.442695, %v4450_v18  ;;  %8390 = vst.msk [vmem:[%s13341_s0 + $0x20] sm:$0xff] %vm4555_vm3, %v13386_v52  ;;  %v4353_v29 = vpop.f32.mrf.mxu2  ;;  %v11059_v51 = vpop.eup %11058 }
 0x4ec   : > { %v4354_v23 = vadd.f32 %v13343_v30, %v4353_v29  ;;  %v4497_v54 = vmul.f32 %v11059_v51, %v4433_v45 }
 0x4ed   : > { %11060 = vpow2.f32 %v4469_v42  ;;  %v4222_v53 = vpop.f32.mrf.mxu1 }
 0x4ee   : > { %vm4387_vm12 = vcmp.gt.f32.partialorder %v4354_v23, 0.0  ;;  %v4403_v47 = vmul.f32 0.2, %v4354_v23  ;;  %v4223_v11 = vadd.f32 %v13331_v7, %v4222_v53  ;;  %v4513_v24 = vadd.f32 %v4497_v54, %v13363_v63  ;;  %v4437_v53 = vld [vmem:[%s13369_s16 + $0x30] sm:$0xff] }
 0x4f0   : > { %v4419_v58 = vsel %vm4387_vm12, %v4354_v23, %v4403_v47  ;;  %vm4255_vm13 = vcmp.gt.f32.partialorder %v4223_v11, 0.0  ;;  %v4271_v32 = vmul.f32 0.2, %v4223_v11 }
 0x4f1   : > { %v4451_v55 = vmul.f32 0.5, %v4419_v58  ;;  %8406 = vst.msk [vmem:[%s13352_s27 + $0x20] sm:$0xff] %vm4555_vm3, %v4419_v58  ;;  %v4438_v58 = vld [vmem:[%s13369_s16 + $0x38] sm:$0xff] }
 0x4f2   : > { %v4287_v1 = vsel %vm4255_vm13, %v4223_v11, %v4271_v32 }
 0x4f3   : > { %v11061_v50 = vpop.eup %11060  ;;  %v4471_v43 = vmul.f32 1.442695, %v4451_v55  ;;  %8391 = vst.msk [vmem:[%s13341_s0 + $0x28] sm:$0xff] %vm4555_vm3, %v4287_v1  ;;  %v4355_v62 = vpop.f32.mrf.mxu2 }
 0x4f4   : > { %v4356_v36 = vadd.f32 %v13343_v30, %v4355_v62  ;;  %v4498_v16 = vmul.f32 %v11061_v50, %v4434_v31 }
 0x4f5   : > { %v4225_v22 = vpop.f32.mrf.mxu1  ;;  %11062 = vpow2.f32 %v4471_v43 }
 0x4f6   : > { %vm4388_vm14 = vcmp.gt.f32.partialorder %v4356_v36, 0.0  ;;  %v4404_v49 = vmul.f32 0.2, %v4356_v36  ;;  %v4226_v35 = vadd.f32 %v13331_v7, %v4225_v22  ;;  %v4514_v61 = vadd.f32 %v4498_v16, %v4285_v34 }
 0x4f8   : > { %v4420_v25 = vsel %vm4388_vm14, %v4356_v36, %v4404_v49  ;;  %vm4256_vm15 = vcmp.gt.f32.partialorder %v4226_v35, 0.0  ;;  %v4272_v40 = vmul.f32 0.2, %v4226_v35  ;;  %v4528_v15 = vpack.c.bf16 %v4514_v61, %v4513_v24 }
 0x4f9   : > { %v4452_v56 = vmul.f32 0.5, %v4420_v25  ;;  %8407 = vst.msk [vmem:[%s13352_s27 + $0x28] sm:$0xff] %vm4555_vm3, %v4420_v25 }
 0x4fa   : > { %v13405_v5 = vsel %vm4256_vm15, %v4226_v35, %v4272_v40  ;;  %9600 = vmatmul.msk.bf16.gmra.mxu3 %vm4555_vm3, %v4528_v15 }
 0x4fb   : > { %v4473_v27 = vmul.f32 1.442695, %v4452_v56  ;;  %8392 = vst.msk [vmem:[%s13341_s0 + $0x30] sm:$0xff] %vm4555_vm3, %v13405_v5  ;;  %v4358_v21 = vpop.f32.mrf.mxu2  ;;  %v11063_v37 = vpop.eup %11062 }
 0x4fc   : > { %v4359_v63 = vadd.f32 %v13343_v30, %v4358_v21  ;;  %v4499_v38 = vmul.f32 %v11063_v37, %v4435_v48 }
 0x4fd   : > { %11064 = vpow2.f32 %v4473_v27  ;;  %v4227_v10 = vpop.f32.mrf.mxu1 }
 0x4fe   : > { %vm4389_vm0 = vcmp.gt.f32.partialorder %v4359_v63, 0.0  ;;  %v4405_v44 = vmul.f32 0.2, %v4359_v63  ;;  %v4228_v6 = vadd.f32 %v13331_v7, %v4227_v10  ;;  %v4515_v28 = vadd.f32 %v4499_v38, %v13386_v52  ;;  %v4439_v10 = vld [vmem:[%s13369_s16 + $0x40] sm:$0xff] }
 0x500   : > { %v4421_v33 = vsel %vm4389_vm0, %v4359_v63, %v4405_v44  ;;  %vm4257_vm1 = vcmp.gt.f32.partialorder %v4228_v6, 0.0  ;;  %v4273_v20 = vmul.f32 0.2, %v4228_v6 }
 0x501   : > { %v4453_v4 = vmul.f32 0.5, %v4421_v33  ;;  %8408 = vst.msk [vmem:[%s13352_s27 + $0x30] sm:$0xff] %vm4555_vm3, %v4421_v33  ;;  %v4440_v33 = vld [vmem:[%s13369_s16 + $0x48] sm:$0xff] }
 0x502   : > { %v4289_v59 = vsel %vm4257_vm1, %v4228_v6, %v4273_v20 }
 0x503   : > { %v11065_v3 = vpop.eup %11064  ;;  %v4475_v9 = vmul.f32 1.442695, %v4453_v4  ;;  %8393 = vst.msk [vmem:[%s13341_s0 + $0x38] sm:$0xff] %vm4555_vm3, %v4289_v59  ;;  %v4360_v34 = vpop.f32.mrf.mxu2 }
 0x504   : > { %v4361_v13 = vadd.f32 %v13343_v30, %v4360_v34  ;;  %v4500_v2 = vmul.f32 %v11065_v3, %v4436_v0 }
 0x505   : > { %v4230_v39 = vpop.f32.mrf.mxu1  ;;  %11066 = vpow2.f32 %v4475_v9 }
 0x506   : > { %vm4390_vm4 = vcmp.gt.f32.partialorder %v4361_v13, 0.0  ;;  %v4406_v8 = vmul.f32 0.2, %v4361_v13  ;;  %v4231_v14 = vadd.f32 %v13331_v7, %v4230_v39  ;;  %v4516_v46 = vadd.f32 %v4500_v2, %v4287_v1  ;;  %v10649_v2 = vld [vmem:[#allocation14 + $0x8] sm:$0xff] }
 0x507   : > { %4751 = vmatpush.bf16.msrb.mxu0 %v10649_v2 }
 0x508   : > { %v4422_v17 = vsel %vm4390_vm4, %v4361_v13, %v4406_v8  ;;  %vm4258_vm5 = vcmp.gt.f32.partialorder %v4231_v14, 0.0  ;;  %v4274_v41 = vmul.f32 0.2, %v4231_v14  ;;  %v4529_v26 = vpack.c.bf16 %v4516_v46, %v4515_v28 }
 0x509   : > { %v4454_v57 = vmul.f32 0.5, %v4422_v17  ;;  %8409 = vst.msk [vmem:[%s13352_s27 + $0x38] sm:$0xff] %vm4555_vm3, %v4422_v17 }
 0x50a   : > { %v13424_v19 = vsel %vm4258_vm5, %v4231_v14, %v4274_v41  ;;  %9601 = vmatmul.msk.bf16.gmra.mxu3 %vm4555_vm3, %v4529_v26 }
 0x50b   : > { %v4477_v12 = vmul.f32 1.442695, %v4454_v57  ;;  %8394 = vst.msk [vmem:[%s13341_s0 + $0x40] sm:$0xff] %vm4555_vm3, %v13424_v19  ;;  %v4363_v18 = vpop.f32.mrf.mxu2  ;;  %v11067_v42 = vpop.eup %11066 }
 0x50c   : > { %v4364_v52 = vadd.f32 %v13343_v30, %v4363_v18  ;;  %v4501_v32 = vmul.f32 %v11067_v42, %v4437_v53 }
 0x50d   : > { %11068 = vpow2.f32 %v4477_v12  ;;  %v4232_v29 = vpop.f32.mrf.mxu1 }
 0x50e   : > { %vm4391_vm6 = vcmp.gt.f32.partialorder %v4364_v52, 0.0  ;;  %v4407_v23 = vmul.f32 0.2, %v4364_v52  ;;  %v4233_v51 = vadd.f32 %v13331_v7, %v4232_v29  ;;  %v4517_v36 = vadd.f32 %v4501_v32, %v13405_v5  ;;  %v4441_v29 = vld [vmem:[%s13369_s16 + $0x50] sm:$0xff] }
 0x510   : > { %v4423_v47 = vsel %vm4391_vm6, %v4364_v52, %v4407_v23  ;;  %vm4259_vm7 = vcmp.gt.f32.partialorder %v4233_v51, 0.0  ;;  %v4275_v11 = vmul.f32 0.2, %v4233_v51 }
 0x511   : > { %v4455_v45 = vmul.f32 0.5, %v4423_v47  ;;  %8410 = vst.msk [vmem:[%s13352_s27 + $0x40] sm:$0xff] %vm4555_vm3, %v4423_v47  ;;  %v4442_v47 = vld [vmem:[%s13369_s16 + $0x58] sm:$0xff] }
 0x512   : > { %v4291_v55 = vsel %vm4259_vm7, %v4233_v51, %v4275_v11 }
 0x513   : > { %v11069_v31 = vpop.eup %11068  ;;  %v4479_v54 = vmul.f32 1.442695, %v4455_v45  ;;  %8395 = vst.msk [vmem:[%s13341_s0 + $0x48] sm:$0xff] %vm4555_vm3, %v4291_v55  ;;  %v4365_v1 = vpop.f32.mrf.mxu2 }
 0x514   : > { %v4366_v50 = vadd.f32 %v13343_v30, %v4365_v1  ;;  %v4502_v43 = vmul.f32 %v11069_v31, %v4438_v58 }
 0x515   : > { %v4235_v62 = vpop.f32.mrf.mxu1  ;;  %11070 = vpow2.f32 %v4479_v54 }
 0x516   : > { %vm4392_vm8 = vcmp.gt.f32.partialorder %v4366_v50, 0.0  ;;  %v4408_v16 = vmul.f32 0.2, %v4366_v50  ;;  %v4236_v22 = vadd.f32 %v13331_v7, %v4235_v62  ;;  %v4518_v24 = vadd.f32 %v4502_v43, %v4289_v59 }
 0x518   : > { %v4424_v49 = vsel %vm4392_vm8, %v4366_v50, %v4408_v16  ;;  %vm4260_vm9 = vcmp.gt.f32.partialorder %v4236_v22, 0.0  ;;  %v4276_v35 = vmul.f32 0.2, %v4236_v22  ;;  %v4530_v61 = vpack.c.bf16 %v4518_v24, %v4517_v36 }
 0x519   : > { %v4456_v25 = vmul.f32 0.5, %v4424_v49  ;;  %8411 = vst.msk [vmem:[%s13352_s27 + $0x48] sm:$0xff] %vm4555_vm3, %v4424_v49 }
 0x51a   : > { %v13443_v40 = vsel %vm4260_vm9, %v4236_v22, %v4276_v35  ;;  %9602 = vmatmul.msk.bf16.gmra.mxu3 %vm4555_vm3, %v4530_v61  ;;  %v10648_v61 = vld [vmem:[#allocation14] sm:$0xff] }
 0x51b   : > { %v4481_v15 = vmul.f32 1.442695, %v4456_v25  ;;  %8396 = vst.msk [vmem:[%s13341_s0 + $0x50] sm:$0xff] %vm4555_vm3, %v13443_v40  ;;  %v4368_v56 = vpop.f32.mrf.mxu2  ;;  %v11071_v27 = vpop.eup %11070  ;;  %4752 = vmatpush.bf16.msrb.mxu0 %v10648_v61 }
 0x51c   : > { %v4369_v5 = vadd.f32 %v13343_v30, %v4368_v56  ;;  %v4503_v20 = vmul.f32 %v11071_v27, %v4439_v10 }
 0x51d   : > { %11072 = vpow2.f32 %v4481_v15  ;;  %v4237_v21 = vpop.f32.mrf.mxu1 }
 0x51e   : > { %vm4393_vm10 = vcmp.gt.f32.partialorder %v4369_v5, 0.0  ;;  %v4409_v63 = vmul.f32 0.2, %v4369_v5  ;;  %v4238_v37 = vadd.f32 %v13331_v7, %v4237_v21  ;;  %v4519_v13 = vadd.f32 %v4503_v20, %v13424_v19 }
 0x520   : > { %v4425_v44 = vsel %vm4393_vm10, %v4369_v5, %v4409_v63  ;;  %vm4261_vm11 = vcmp.gt.f32.partialorder %v4238_v37, 0.0  ;;  %v4277_v6 = vmul.f32 0.2, %v4238_v37  ;;  %v4443_v63 = vld [vmem:[%s13369_s16 + $0x60] sm:$0xff] }
 0x521   : > { %v4457_v48 = vmul.f32 0.5, %v4425_v44  ;;  %8412 = vst.msk [vmem:[%s13352_s27 + $0x50] sm:$0xff] %vm4555_vm3, %v4425_v44 }
 0x522   : > { %v4293_v4 = vsel %vm4261_vm11, %v4238_v37, %v4277_v6  ;;  %v4444_v6 = vld [vmem:[%s13369_s16 + $0x68] sm:$0xff] }
 0x523   : > { %v11073_v0 = vpop.eup %11072  ;;  %v4483_v38 = vmul.f32 1.442695, %v4457_v48  ;;  %8397 = vst.msk [vmem:[%s13341_s0 + $0x58] sm:$0xff] %vm4555_vm3, %v4293_v4  ;;  %v4370_v59 = vpop.f32.mrf.mxu2 }
 0x524   : > { %v4371_v3 = vadd.f32 %v13343_v30, %v4370_v59  ;;  %v4504_v9 = vmul.f32 %v11073_v0, %v4440_v33 }
 0x525   : > { %v4240_v34 = vpop.f32.mrf.mxu1  ;;  %11074 = vpow2.f32 %v4483_v38 }
 0x526   : > { %vm4394_vm12 = vcmp.gt.f32.partialorder %v4371_v3, 0.0  ;;  %v4410_v39 = vmul.f32 0.2, %v4371_v3  ;;  %v4241_v28 = vadd.f32 %v13331_v7, %v4240_v34  ;;  %v4520_v60 = vadd.f32 %v4504_v9, %v4291_v55 }
 0x528   : > { %v4426_v8 = vsel %vm4394_vm12, %v4371_v3, %v4410_v39  ;;  %vm4262_vm13 = vcmp.gt.f32.partialorder %v4241_v28, 0.0  ;;  %v4278_v14 = vmul.f32 0.2, %v4241_v28  ;;  %v4531_v46 = vpack.c.bf16 %v4520_v60, %v4519_v13  ;;  %v4446_v60 = vld [vmem:[%s13369_s16 + $0x78] sm:$0xff] }
 0x529   : > { %v4458_v17 = vmul.f32 0.5, %v4426_v8  ;;  %8413 = vst.msk [vmem:[%s13352_s27 + $0x58] sm:$0xff] %vm4555_vm3, %v4426_v8 }
 0x52a   : > { %v13462_v41 = vsel %vm4262_vm13, %v4241_v28, %v4278_v14  ;;  %9603 = vmatmul.msk.bf16.gmra.mxu3 %vm4555_vm3, %v4531_v46  ;;  %v4445_v28 = vld [vmem:[%s13369_s16 + $0x70] sm:$0xff] }
 0x52b   : > { %v4485_v26 = vmul.f32 1.442695, %v4458_v17  ;;  %8398 = vst.msk [vmem:[%s13341_s0 + $0x60] sm:$0xff] %vm4555_vm3, %v13462_v41  ;;  %v4373_v57 = vpop.f32.mrf.mxu2  ;;  %v11075_v12 = vpop.eup %11074 }
 0x52c   : > { %v4374_v19 = vadd.f32 %v13343_v30, %v4373_v57  ;;  %v4505_v11 = vmul.f32 %v11075_v12, %v4441_v29  ;;  %v10708_v57 = vld [vmem:[#allocation17 + $0x1c4] sm:$0xf]  ;;  %v9865_v12 = vld [vmem:[#allocation17 + $0x1c8] sm:$0xf] }
 0x52d   : > { %11076 = vpow2.f32 %v4485_v26  ;;  %v4242_v18 = vpop.f32.mrf.mxu1 }
 0x52e   : > { %vm4395_vm14 = vcmp.gt.f32.partialorder %v4374_v19, 0.0  ;;  %v4411_v52 = vmul.f32 0.2, %v4374_v19  ;;  %v4243_v42 = vadd.f32 %v13331_v7, %v4242_v18  ;;  %v4521_v50 = vadd.f32 %v4505_v11, %v13443_v40  ;;  %v10709_v11 = vld [vmem:[#allocation17 + $0x1cc] sm:$0xf] }
 0x530   : > { %v4427_v23 = vsel %vm4395_vm14, %v4374_v19, %v4411_v52  ;;  %vm4263_vm15 = vcmp.gt.f32.partialorder %v4243_v42, 0.0  ;;  %v4279_v51 = vmul.f32 0.2, %v4243_v42  ;;  %v9859_v19 = vld [vmem:[#allocation17 + $0x1e0] sm:$0xf0] }
 0x531   : > { %v4459_v53 = vmul.f32 0.5, %v4427_v23  ;;  %8414 = vst.msk [vmem:[%s13352_s27 + $0x60] sm:$0xff] %vm4555_vm3, %v4427_v23  ;;  %v9862_v18 = vor.u32 %v10708_v57, %v9859_v19  ;;  %v10713_v52 = vld [vmem:[#allocation17 + $0x1e4] sm:$0xf0]  ;;  %v13500_v23 = vld [vmem:[#allocation13] ss:$0 sm:$0xff] }
 0x532   : > { %v4295_v45 = vsel %vm4263_vm15, %v4243_v42, %v4279_v51  ;;  %v9866_v29 = vor.u32 %v10713_v52, %v9865_v12  ;;  %v10684_v57 = vld [vmem:[#allocation17 + $0x104] sm:$0xf]  ;;  %v9769_v12 = vld [vmem:[#allocation17 + $0x108] sm:$0xf] }
 0x533   : > { %v11077_v58 = vpop.eup %11076  ;;  %8399 = vst.msk [vmem:[%s13341_s0 + $0x68] sm:$0xff] %vm4555_vm3, %v4295_v45  ;;  %v4375_v32 = vpop.f32.mrf.mxu2  ;;  %v4487_v54 = vmul.f32 1.442695, %v4459_v53  ;;  %5301 = vmatpush.bf16.msra.mxu2 %v9862_v18  ;;  %v9857_v53 = vld [vmem:[#allocation17 + $0x1c0] sm:$0xf] }
 0x534   : > { %v4376_v55 = vadd.f32 %v13343_v30, %v4375_v32  ;;  %v4506_v31 = vmul.f32 %v11077_v58, %v4442_v47  ;;  %5350 = vmatpush.bf16.msra.mxu3 %v9866_v29  ;;  %v10712_v47 = vld [vmem:[#allocation17 + $0x1dc] sm:$0xf0]  ;;  %v9867_v58 = vld [vmem:[#allocation17 + $0x1e8] sm:$0xf0]  ;;  %v9763_v19 = vld [vmem:[#allocation17 + $0x120] sm:$0xf0] }
 0x535   : > { %v4245_v1 = vpop.f32.mrf.mxu1  ;;  %11078 = vpow2.f32 %v4487_v54  ;;  %v9870_v32 = vor.u32 %v10709_v11, %v9867_v58  ;;  %v9766_v18 = vor.u32 %v10684_v57, %v9763_v19  ;;  %v10689_v52 = vld [vmem:[#allocation17 + $0x124] sm:$0xf0]  ;;  %v10685_v11 = vld [vmem:[#allocation17 + $0x10c] sm:$0xf]  ;;  %v10660_v57 = vld [vmem:[#allocation17 + $0x44] sm:$0xf] }
 0x536   : > { %vm4396_vm0 = vcmp.gt.f32.partialorder %v4376_v55, 0.0  ;;  %v4412_v43 = vmul.f32 0.2, %v4376_v55  ;;  %v4246_v62 = vadd.f32 %v13331_v7, %v4245_v1  ;;  %v4522_v36 = vadd.f32 %v4506_v31, %v4293_v4  ;;  %v9771_v58 = vld [vmem:[#allocation17 + $0x128] sm:$0xf0] }
 0x537   : > { %5399 = vmatpush.bf16.msra.mxu0 %v9870_v32  ;;  %v9770_v29 = vor.u32 %v10689_v52, %v9769_v12  ;;  %v9774_v32 = vor.u32 %v10685_v11, %v9771_v58  ;;  %v9667_v19 = vld [vmem:[#allocation17 + $0x60] sm:$0xf0]  ;;  %v9673_v12 = vld [vmem:[#allocation17 + $0x48] sm:$0xf] }
 0x538   : > { %v4428_v16 = vsel %vm4396_vm0, %v4376_v55, %v4412_v43  ;;  %vm4264_vm1 = vcmp.gt.f32.partialorder %v4246_v62, 0.0  ;;  %v4280_v22 = vmul.f32 0.2, %v4246_v62  ;;  %v4532_v24 = vpack.c.bf16 %v4522_v36, %v4521_v50  ;;  %v10700_v36 = vld [vmem:[#allocation17 + $0x184] sm:$0xf] }
 0x539   : > { %v4460_v49 = vmul.f32 0.5, %v4428_v16  ;;  %8415 = vst.msk [vmem:[%s13352_s27 + $0x68] sm:$0xff] %vm4555_vm3, %v4428_v16  ;;  %v9827_v16 = vld [vmem:[#allocation17 + $0x1a0] sm:$0xf0]  ;;  %v10665_v52 = vld [vmem:[#allocation17 + $0x64] sm:$0xf0] }
 0x53a   : > { %v4296_v35 = vsel %vm4264_vm1, %v4246_v62, %v4280_v22  ;;  %9604 = vmatmul.msk.bf16.gmra.mxu3 %vm4555_vm3, %v4532_v24  ;;  %v9833_v22 = vld [vmem:[#allocation17 + $0x188] sm:$0xf]  ;;  %v9830_v24 = vor.u32 %v10700_v36, %v9827_v16  ;;  %v10676_v36 = vld [vmem:[#allocation17 + $0xc4] sm:$0xf] }
 0x53b   : > { %v4489_v25 = vmul.f32 1.442695, %v4460_v49  ;;  %8400 = vst.msk [vmem:[%s13341_s0 + $0x70] sm:$0xff] %vm4555_vm3, %v4296_v35  ;;  %v4378_v40 = vpop.f32.mrf.mxu2  ;;  %v11079_v21 = vpop.eup %11078  ;;  %v10705_v49 = vld [vmem:[#allocation17 + $0x1a4] sm:$0xf0] }
 0x53c   : > { %v4379_v15 = vadd.f32 %v13343_v30, %v4378_v40  ;;  %v4507_v33 = vmul.f32 %v11079_v21, %v4443_v63  ;;  %v9834_v61 = vor.u32 %v10705_v49, %v9833_v22  ;;  %5302 = vmatpush.bf16.msra.mxu2 %v9830_v24  ;;  %v9825_v40 = vld [vmem:[#allocation17 + $0x180] sm:$0xf]  ;;  %v9731_v16 = vld [vmem:[#allocation17 + $0xe0] sm:$0xf0]  ;;  %v9737_v22 = vld [vmem:[#allocation17 + $0xc8] sm:$0xf] }
 0x53d   : > { %11080 = vpow2.f32 %v4489_v25  ;;  %v4247_v56 = vpop.f32.mrf.mxu1  ;;  %v9734_v24 = vor.u32 %v10676_v36, %v9731_v16  ;;  %v10681_v49 = vld [vmem:[#allocation17 + $0xe4] sm:$0xf0]  ;;  %v10652_v16 = vld [vmem:[#allocation17 + $0x4] sm:$0xf] }
 0x53e   : > { %vm4397_vm4 = vcmp.gt.f32.partialorder %v4379_v15, 0.0  ;;  %v4413_v5 = vmul.f32 0.2, %v4379_v15  ;;  %v4248_v27 = vadd.f32 %v13331_v7, %v4247_v56  ;;  %v4523_v3 = vadd.f32 %v4507_v33, %v13462_v41  ;;  %5351 = vmatpush.bf16.msra.mxu3 %v9834_v61  ;;  %v10701_v56 = vld [vmem:[#allocation17 + $0x18c] sm:$0xf] }
 0x53f   : > { %v9738_v61 = vor.u32 %v10681_v49, %v9737_v22  ;;  %v9635_v22 = vld [vmem:[#allocation17 + $0x20] sm:$0xf0] }
 0x540   : > { %v4429_v37 = vsel %vm4397_vm4, %v4379_v15, %v4413_v5  ;;  %vm4265_vm5 = vcmp.gt.f32.partialorder %v4248_v27, 0.0  ;;  %v4281_v10 = vmul.f32 0.2, %v4248_v27  ;;  %v10704_v15 = vld [vmem:[#allocation17 + $0x19c] sm:$0xf0]  ;;  %v9638_v49 = vor.u32 %v10652_v16, %v9635_v22 }
 0x541   : > { %v4461_v44 = vmul.f32 0.5, %v4429_v37  ;;  %8416 = vst.msk [vmem:[%s13352_s27 + $0x70] sm:$0xff] %vm4555_vm3, %v4429_v37  ;;  %v9826_v5 = vor.u32 %v10704_v15, %v9825_v40  ;;  %v9729_v40 = vld [vmem:[#allocation17 + $0xc0] sm:$0xf] }
 0x542   : > { %v4297_v48 = vsel %vm4265_vm5, %v4248_v27, %v4281_v10  ;;  %v9835_v27 = vld [vmem:[#allocation17 + $0x1a8] sm:$0xf0]  ;;  %v10680_v15 = vld [vmem:[#allocation17 + $0xdc] sm:$0xf0] }
 0x543   : > { %v11081_v20 = vpop.eup %11080  ;;  %8401 = vst.msk [vmem:[%s13341_s0 + $0x78] sm:$0xff] %vm4555_vm3, %v4297_v48  ;;  %v4380_v4 = vpop.f32.mrf.mxu2  ;;  %v4491_v38 = vmul.f32 1.442695, %v4461_v44  ;;  %v9838_v21 = vor.u32 %v10701_v56, %v9835_v27  ;;  %v10677_v56 = vld [vmem:[#allocation17 + $0xcc] sm:$0xf] }
 0x544   : > { %v4381_v0 = vadd.f32 %v13343_v30, %v4380_v4  ;;  %v4508_v7 = vmul.f32 %v11081_v20, %v4444_v6  ;;  %v10692_v20 = vld [vmem:[#allocation17 + $0x144] sm:$0xf]  ;;  %v9739_v27 = vld [vmem:[#allocation17 + $0xe8] sm:$0xf0] }
 0x545   : > { %11082 = vpow2.f32 %v4491_v38  ;;  %5400 = vmatpush.bf16.msra.mxu0 %v9838_v21  ;;  %v9795_v4 = vld [vmem:[#allocation17 + $0x160] sm:$0xf0]  ;;  %v10697_v38 = vld [vmem:[#allocation17 + $0x164] sm:$0xf0]  ;;  %v9742_v21 = vor.u32 %v10677_v56, %v9739_v27  ;;  %v10653_v27 = vld [vmem:[#allocation17 + $0xc] sm:$0xf] }
 0x546   : > { %vm4398_vm6 = vcmp.gt.f32.partialorder %v4381_v0, 0.0  ;;  %v4414_v59 = vmul.f32 0.2, %v4381_v0  ;;  %v4524_v9 = vadd.f32 %v4508_v7, %v4295_v45  ;;  %v9858_v45 = vor.u32 %v10712_v47, %v9857_v53  ;;  %v9761_v53 = vld [vmem:[#allocation17 + $0x100] sm:$0xf] }
 0x547   : > { %v9798_v7 = vor.u32 %v10692_v20, %v9795_v4  ;;  %v10688_v47 = vld [vmem:[#allocation17 + $0x11c] sm:$0xf0]  ;;  %v10668_v20 = vld [vmem:[#allocation17 + $0x84] sm:$0xf] }
 0x548   : > { %v4430_v34 = vsel %vm4398_vm6, %v4381_v0, %v4414_v59  ;;  %v4533_v13 = vpack.c.bf16 %v4524_v9, %v4523_v3  ;;  %5252 = vmatpush.bf16.msra.mxu1 %v9858_v45  ;;  %v9801_v0 = vld [vmem:[#allocation17 + $0x148] sm:$0xf]  ;;  %v9762_v45 = vor.u32 %v10688_v47, %v9761_v53  ;;  %v9699_v4 = vld [vmem:[#allocation17 + $0xa0] sm:$0xf0]  ;;  %v10664_v53 = vld [vmem:[#allocation17 + $0x5c] sm:$0xf0] }
 0x549   : > { %v4462_v2 = vmul.f32 0.5, %v4430_v34  ;;  %8417 = vst.msk [vmem:[%s13352_s27 + $0x78] sm:$0xff] %vm4555_vm3, %v4430_v34  ;;  %v9802_v3 = vor.u32 %v10697_v38, %v9801_v0  ;;  %5303 = vmatpush.bf16.msra.mxu2 %v9798_v7  ;;  %v9793_v34 = vld [vmem:[#allocation17 + $0x140] sm:$0xf]  ;;  %v9705_v0 = vld [vmem:[#allocation17 + $0x88] sm:$0xf]  ;;  %v9702_v7 = vor.u32 %v10668_v20, %v9699_v4 }
 0x54a   : > { %9605 = vmatmul.msk.bf16.gmra.mxu3 %vm4555_vm3, %v4533_v13  ;;  %v10696_v13 = vld [vmem:[#allocation17 + $0x15c] sm:$0xf0]  ;;  %v10673_v38 = vld [vmem:[#allocation17 + $0xa4] sm:$0xf0]  ;;  %v10661_v47 = vld [vmem:[#allocation17 + $0x4c] sm:$0xf] }
 0x54b   : > { %v4493_v39 = vmul.f32 1.442695, %v4462_v2  ;;  %v11083_v30 = vpop.eup %11082  ;;  %5352 = vmatpush.bf16.msra.mxu3 %v9802_v3  ;;  %v10693_v2 = vld [vmem:[#allocation17 + $0x14c] sm:$0xf]  ;;  %v9706_v3 = vor.u32 %v10673_v38, %v9705_v0  ;;  %v10710_v20 = vld [vmem:[#allocation17 + $0x1d4] sm:$0xf] }
 0x54c   : > { %v4509_v8 = vmul.f32 %v11083_v30, %v4445_v28  ;;  %5253 = vmatpush.bf16.msra.mxu1 %v9826_v5  ;;  %v9803_v30 = vld [vmem:[#allocation17 + $0x168] sm:$0xf0]  ;;  %v9730_v5 = vor.u32 %v10680_v15, %v9729_v40  ;;  %v10656_v40 = vld [vmem:[#allocation17 + $0x1c] sm:$0xf0]  ;;  %v9875_v4 = vld [vmem:[#allocation17 + $0x1f0] sm:$0xf0] }
 0x54d   : > { %11084 = vpow2.f32 %v4493_v39  ;;  %v9794_v39 = vor.u32 %v10696_v13, %v9793_v34  ;;  %v9806_v28 = vor.u32 %v10693_v2, %v9803_v30  ;;  %5304 = vmatpush.bf16.msra.mxu2 %v9766_v18  ;;  %v9697_v34 = vld [vmem:[#allocation17 + $0x80] sm:$0xf]  ;;  %v10669_v2 = vld [vmem:[#allocation17 + $0x8c] sm:$0xf]  ;;  %v9670_v18 = vor.u32 %v10660_v57, %v9667_v19  ;;  %v9881_v0 = vld [vmem:[#allocation17 + $0x1d8] sm:$0xf] }
 0x54e   : > { %v4525_v17 = vadd.f32 %v4509_v8, %v4296_v35  ;;  %v10672_v13 = vld [vmem:[#allocation17 + $0x9c] sm:$0xf0]  ;;  %v9707_v30 = vld [vmem:[#allocation17 + $0xa8] sm:$0xf0]  ;;  %v10715_v38 = vld [vmem:[#allocation17 + $0x1f4] sm:$0xf0] }
 0x54f   : > { %5401 = vmatpush.bf16.msra.mxu0 %v9806_v28  ;;  %5353 = vmatpush.bf16.msra.mxu3 %v9770_v29  ;;  %v9710_v28 = vor.u32 %v10669_v2, %v9707_v30  ;;  %v9674_v29 = vor.u32 %v10665_v52, %v9673_v12  ;;  %v13526_v30 = vld [vmem:[#allocation16] ss:$0 sm:$0xff] }
 0x550   : > { %5254 = vmatpush.bf16.msra.mxu1 %v9794_v39  ;;  %v9698_v39 = vor.u32 %v10672_v13, %v9697_v34  ;;  %v9883_v13 = vld [vmem:[#allocation17 + $0x1f8] sm:$0xf0] }
 0x551   : > { %5305 = vmatpush.bf16.msra.mxu2 %v9734_v24  ;;  %v9641_v24 = vld [vmem:[#allocation17 + $0x8] sm:$0xf] }
 0x553   : > { %v11085_v14 = vpop.eup %11084  ;;  %5402 = vmatpush.bf16.msra.mxu0 %v9774_v32  ;;  %5354 = vmatpush.bf16.msra.mxu3 %v9738_v61 }
 0x554   : > { %v4510_v46 = vmul.f32 %v11085_v14, %v4446_v60  ;;  %5255 = vmatpush.bf16.msra.mxu1 %v9762_v45  ;;  %v9675_v45 = vld [vmem:[#allocation17 + $0x68] sm:$0xf0] }
 0x555   : > { %5306 = vmatpush.bf16.msra.mxu2 %v9702_v7  ;;  %v9678_v58 = vor.u32 %v10661_v47, %v9675_v45  ;;  %v9878_v7 = vor.u32 %v10710_v20, %v9875_v4  ;;  %v10703_v47 = vld [vmem:[#allocation17 + $0x19c] sm:$0xf] }
 0x556   : > { %v4526_v26 = vadd.f32 %v4510_v46, %v4297_v48 }
 0x557   : > { %5403 = vmatpush.bf16.msra.mxu0 %v9742_v21  ;;  %5355 = vmatpush.bf16.msra.mxu3 %v9706_v3  ;;  %v9643_v21 = vld [vmem:[#allocation17 + $0x28] sm:$0xf0]  ;;  %v10714_v3 = vld [vmem:[#allocation17 + $0x1ec] sm:$0xf0] }
 0x558   : > { %v4534_v41 = vpack.c.bf16 %v4526_v26, %v4525_v17  ;;  %5256 = vmatpush.bf16.msra.mxu1 %v9730_v5 }
 0x559   : > { %5307 = vmatpush.bf16.msra.mxu2 %v9670_v18 }
 0x55a   : > { %9606 = vmatmul.msk.bf16.gmra.mxu3 %vm4555_vm3, %v4534_v41 }
 0x55b   : > { %5404 = vmatpush.bf16.msra.mxu0 %v9710_v28  ;;  %5356 = vmatpush.bf16.msra.mxu3 %v9674_v29 }
 0x55c   : > { %5257 = vmatpush.bf16.msra.mxu1 %v9698_v39 }
 0x55d   : > { %5308 = vmatpush.bf16.msra.mxu2 %v9638_v49 }
 0x55f   : > { %5405 = vmatpush.bf16.msra.mxu0 %v9678_v58 }
 0x561   : > { %5497 = vmatpush.bf16.msrb.mxu2 %v9878_v7 }
 0x56d   : > { %v4589_v42 = vpop.f32.mrf.mxu3 }
 0x56e   : > { %v4590_v51 = vadd.f32 %v13500_v23, %v4589_v42 }
 0x570   : > { %v4645_v31 = vmul.f32 0.2, %v4590_v51  ;;  %vm4629_vm3 = vcmp.gt.f32.partialorder %v4590_v51, 0.0 }
 0x572   : > { %v4661_v50 = vsel %vm4629_vm3, %v4590_v51, %v4645_v31 }
 0x575   : > { %v4591_v55 = vpop.f32.mrf.mxu3 }
 0x576   : > { %v4592_v54 = vadd.f32 %v13500_v23, %v4591_v55 }
 0x578   : > { %vm4630_vm7 = vcmp.gt.f32.partialorder %v4592_v54, 0.0  ;;  %v4646_v1 = vmul.f32 0.2, %v4592_v54 }
 0x57a   : > { %v4662_v43 = vsel %vm4630_vm7, %v4592_v54, %v4646_v1 }
 0x57b   : > { %v4677_v62 = vpack.c.bf16 %v4662_v43, %v4661_v50 }
 0x57d   : > { %v4594_v35 = vpop.f32.mrf.mxu3  ;;  %9623 = vmatmul.msk.bf16.vlgmr.msrb.gmra.mxu0 %vm4176_vm2, %v4677_v62 }
 0x57e   : > { %v4595_v25 = vadd.f32 %v13500_v23, %v4594_v35 }
 0x580   : > { %v4647_v37 = vmul.f32 0.2, %v4595_v25  ;;  %vm4631_vm8 = vcmp.gt.f32.partialorder %v4595_v25, 0.0 }
 0x582   : > { %v4663_v6 = vsel %vm4631_vm8, %v4595_v25, %v4647_v37 }
 0x585   : > { %v4596_v63 = vpop.f32.mrf.mxu3 }
 0x586   : > { %v4597_v10 = vadd.f32 %v13500_v23, %v4596_v63 }
 0x588   : > { %vm4632_vm9 = vcmp.gt.f32.partialorder %v4597_v10, 0.0  ;;  %v4648_v44 = vmul.f32 0.2, %v4597_v10 }
 0x58a   : > { %v4664_v48 = vsel %vm4632_vm9, %v4597_v10, %v4648_v44 }
 0x58b   : > { %v4678_v33 = vpack.c.bf16 %v4664_v48, %v4663_v6 }
 0x58d   : > { %v4599_v59 = vpop.f32.mrf.mxu3  ;;  %9624 = vmatmul.msk.bf16.gmra.mxu0 %vm4176_vm2, %v4678_v33 }
 0x58e   : > { %v4600_v9 = vadd.f32 %v13500_v23, %v4599_v59 }
 0x590   : > { %v4649_v8 = vmul.f32 0.2, %v4600_v9  ;;  %vm4633_vm10 = vcmp.gt.f32.partialorder %v4600_v9, 0.0 }
 0x592   : > { %v4665_v17 = vsel %vm4633_vm10, %v4600_v9, %v4649_v8 }
 0x595   : > { %v4601_v60 = vpop.f32.mrf.mxu3 }
 0x596   : > { %v4602_v14 = vadd.f32 %v13500_v23, %v4601_v60 }
 0x598   : > { %vm4634_vm11 = vcmp.gt.f32.partialorder %v4602_v14, 0.0  ;;  %v4650_v46 = vmul.f32 0.2, %v4602_v14 }
 0x59a   : > { %v4666_v26 = vsel %vm4634_vm11, %v4602_v14, %v4650_v46 }
 0x59b   : > { %v4679_v41 = vpack.c.bf16 %v4666_v26, %v4665_v17 }
 0x59d   : > { %v4604_v42 = vpop.f32.mrf.mxu3  ;;  %9625 = vmatmul.msk.bf16.gmra.mxu0 %vm4176_vm2, %v4679_v41 }
 0x59e   : > { %v4605_v51 = vadd.f32 %v13500_v23, %v4604_v42 }
 0x5a0   : > { %v4651_v31 = vmul.f32 0.2, %v4605_v51  ;;  %vm4635_vm12 = vcmp.gt.f32.partialorder %v4605_v51, 0.0 }
 0x5a2   : > { %v4667_v50 = vsel %vm4635_vm12, %v4605_v51, %v4651_v31  ;;  %v9665_v51 = vld [vmem:[#allocation17 + $0x40] sm:$0xf] }
 0x5a3   : > { %v9666_v11 = vor.u32 %v10664_v53, %v9665_v51 }
 0x5a5   : > { %v4606_v55 = vpop.f32.mrf.mxu3  ;;  %5258 = vmatpush.bf16.msra.mxu1 %v9666_v11  ;;  %v9851_v11 = vld [vmem:[#allocation17 + $0x1b8] sm:$0xf0] }
 0x5a6   : > { %v4607_v54 = vadd.f32 %v13500_v23, %v4606_v55  ;;  %v9854_v45 = vor.u32 %v10703_v47, %v9851_v11  ;;  %v10679_v11 = vld [vmem:[#allocation17 + $0xdc] sm:$0xf] }
 0x5a8   : > { %vm4636_vm13 = vcmp.gt.f32.partialorder %v4607_v54, 0.0  ;;  %v4652_v1 = vmul.f32 0.2, %v4607_v54 }
 0x5aa   : > { %v4668_v43 = vsel %vm4636_vm13, %v4607_v54, %v4652_v1 }
 0x5ab   : > { %v4680_v62 = vpack.c.bf16 %v4668_v43, %v4667_v50 }
 0x5ad   : > { %v4609_v35 = vpop.f32.mrf.mxu3  ;;  %9626 = vmatmul.msk.bf16.gmra.mxu0 %vm4176_vm2, %v4680_v62 }
 0x5ae   : > { %v4610_v25 = vadd.f32 %v13500_v23, %v4609_v35  ;;  %v10657_v35 = vld [vmem:[#allocation17 + $0x24] sm:$0xf0] }
 0x5af   : > { %v9642_v61 = vor.u32 %v10657_v35, %v9641_v24 }
 0x5b0   : > { %v4653_v37 = vmul.f32 0.2, %v4610_v25  ;;  %vm4637_vm14 = vcmp.gt.f32.partialorder %v4610_v25, 0.0 }
 0x5b1   : > { %5357 = vmatpush.bf16.msra.mxu3 %v9642_v61 }
 0x5b2   : > { %v4669_v6 = vsel %vm4637_vm14, %v4610_v25, %v4653_v37  ;;  %v9633_v25 = vld [vmem:[#allocation17] sm:$0xf] }
 0x5b3   : > { %v9634_v56 = vor.u32 %v10656_v40, %v9633_v25 }
 0x5b5   : > { %v4611_v63 = vpop.f32.mrf.mxu3  ;;  %5259 = vmatpush.bf16.msra.mxu1 %v9634_v56  ;;  %v9819_v56 = vld [vmem:[#allocation17 + $0x178] sm:$0xf0] }
 0x5b6   : > { %v4612_v10 = vadd.f32 %v13500_v23, %v4611_v63 }
 0x5b8   : > { %vm4638_vm15 = vcmp.gt.f32.partialorder %v4612_v10, 0.0  ;;  %v4654_v44 = vmul.f32 0.2, %v4612_v10 }
 0x5ba   : > { %v4670_v48 = vsel %vm4638_vm15, %v4612_v10, %v4654_v44  ;;  %v9646_v10 = vor.u32 %v10653_v27, %v9643_v21 }
 0x5bb   : > { %v4681_v33 = vpack.c.bf16 %v4670_v48, %v4669_v6 }
 0x5bc   : > { %5406 = vmatpush.bf16.msra.mxu0 %v9646_v10  ;;  %v9785_v10 = vld [vmem:[#allocation17 + $0x118] sm:$0xf] }
 0x5bd   : > { %v4614_v59 = vpop.f32.mrf.mxu3  ;;  %9627 = vmatmul.msk.bf16.gmra.mxu0 %vm4176_vm2, %v4681_v33 }
 0x5be   : > { %v4615_v9 = vadd.f32 %v13500_v23, %v4614_v59  ;;  %v9873_v59 = vld [vmem:[#allocation17 + $0x1d0] sm:$0xf] }
 0x5bf   : > { %v9874_v34 = vor.u32 %v10714_v3, %v9873_v59 }
 0x5c0   : > { %v4655_v8 = vmul.f32 0.2, %v4615_v9  ;;  %vm4639_vm0 = vcmp.gt.f32.partialorder %v4615_v9, 0.0 }
 0x5c1   : > { %5448 = vmatpush.bf16.msrb.mxu1 %v9874_v34 }
 0x5c2   : > { %v4671_v17 = vsel %vm4639_vm0, %v4615_v9, %v4655_v8  ;;  %v9882_v9 = vor.u32 %v10715_v38, %v9881_v0  ;;  %v9843_v8 = vld [vmem:[#allocation17 + $0x1b0] sm:$0xf0] }
 0x5c4   : > { %5546 = vmatpush.bf16.msrb.mxu3 %v9882_v9 }
 0x5c5   : > { %v4616_v60 = vpop.f32.mrf.mxu3 }
 0x5c6   : > { %v4617_v14 = vadd.f32 %v13500_v23, %v4616_v60  ;;  %v10702_v60 = vld [vmem:[#allocation17 + $0x194] sm:$0xf] }
 0x5c8   : > { %vm4640_vm1 = vcmp.gt.f32.partialorder %v4617_v14, 0.0  ;;  %v4656_v46 = vmul.f32 0.2, %v4617_v14 }
 0x5ca   : > { %v4672_v26 = vsel %vm4640_vm1, %v4617_v14, %v4656_v46  ;;  %v9849_v14 = vld [vmem:[#allocation17 + $0x198] sm:$0xf]  ;;  %v9846_v46 = vor.u32 %v10702_v60, %v9843_v8  ;;  %v10678_v60 = vld [vmem:[#allocation17 + $0xd4] sm:$0xf] }
 0x5cb   : > { %v4682_v41 = vpack.c.bf16 %v4672_v26, %v4671_v17  ;;  %v10707_v17 = vld [vmem:[#allocation17 + $0x1b4] sm:$0xf0]  ;;  %v9841_v26 = vld [vmem:[#allocation17 + $0x190] sm:$0xf]  ;;  %v9747_v8 = vld [vmem:[#allocation17 + $0xf0] sm:$0xf0] }
 0x5cc   : > { %v9850_v57 = vor.u32 %v10707_v17, %v9849_v14  ;;  %5498 = vmatpush.bf16.msrb.mxu2 %v9846_v46  ;;  %v9753_v14 = vld [vmem:[#allocation17 + $0xd8] sm:$0xf]  ;;  %v9750_v46 = vor.u32 %v10678_v60, %v9747_v8 }
 0x5cd   : > { %v4619_v42 = vpop.f32.mrf.mxu3  ;;  %9628 = vmatmul.msk.bf16.gmra.mxu0 %vm4176_vm2, %v4682_v41  ;;  %v10706_v41 = vld [vmem:[#allocation17 + $0x1ac] sm:$0xf0]  ;;  %v10683_v17 = vld [vmem:[#allocation17 + $0xf4] sm:$0xf0] }
 0x5ce   : > { %v4620_v32 = vadd.f32 %v13500_v23, %v4619_v42  ;;  %v9842_v19 = vor.u32 %v10706_v41, %v9841_v26  ;;  %5547 = vmatpush.bf16.msrb.mxu3 %v9850_v57  ;;  %v9745_v26 = vld [vmem:[#allocation17 + $0xd0] sm:$0xf]  ;;  %v9754_v57 = vor.u32 %v10683_v17, %v9753_v14  ;;  %v10654_v14 = vld [vmem:[#allocation17 + $0x14] sm:$0xf]  ;;  %v9657_v17 = vld [vmem:[#allocation17 + $0x18] sm:$0xf] }
 0x5cf   : > { %v10682_v41 = vld [vmem:[#allocation17 + $0xec] sm:$0xf0] }
 0x5d0   : > { %v4657_v31 = vmul.f32 0.2, %v4620_v32  ;;  %vm4641_vm4 = vcmp.gt.f32.partialorder %v4620_v32, 0.0  ;;  %5449 = vmatpush.bf16.msrb.mxu1 %v9842_v19  ;;  %v9746_v19 = vor.u32 %v10682_v41, %v9745_v26  ;;  %v10659_v41 = vld [vmem:[#allocation17 + $0x34] sm:$0xf0] }
 0x5d2   : > { %v4673_v50 = vsel %vm4641_vm4, %v4620_v32, %v4657_v31  ;;  %v9811_v31 = vld [vmem:[#allocation17 + $0x170] sm:$0xf0] }
 0x5d5   : > { %v4621_v55 = vpop.f32.mrf.mxu3 }
 0x5d6   : > { %v4622_v54 = vadd.f32 %v13500_v23, %v4621_v55  ;;  %v10694_v55 = vld [vmem:[#allocation17 + $0x154] sm:$0xf] }
 0x5d8   : > { %vm4642_vm5 = vcmp.gt.f32.partialorder %v4622_v54, 0.0  ;;  %v4658_v1 = vmul.f32 0.2, %v4622_v54 }
 0x5da   : > { %v4674_v43 = vsel %vm4642_vm5, %v4622_v54, %v4658_v1  ;;  %v9817_v54 = vld [vmem:[#allocation17 + $0x158] sm:$0xf]  ;;  %v9814_v1 = vor.u32 %v10694_v55, %v9811_v31  ;;  %v10670_v31 = vld [vmem:[#allocation17 + $0x94] sm:$0xf] }
 0x5db   : > { %v4683_v62 = vpack.c.bf16 %v4674_v43, %v4673_v50  ;;  %v10699_v50 = vld [vmem:[#allocation17 + $0x174] sm:$0xf0]  ;;  %v9809_v43 = vld [vmem:[#allocation17 + $0x150] sm:$0xf] }
 0x5dc   : > { %5499 = vmatpush.bf16.msrb.mxu2 %v9814_v1  ;;  %v9721_v1 = vld [vmem:[#allocation17 + $0x98] sm:$0xf] }
 0x5dd   : > { %v4624_v36 = vpop.f32.mrf.mxu3  ;;  %9629 = vmatmul.msk.bf16.gmra.mxu0 %vm4176_vm2, %v4683_v62  ;;  %v10698_v62 = vld [vmem:[#allocation17 + $0x16c] sm:$0xf0] }
 0x5de   : > { %v4625_v15 = vadd.f32 %v13500_v23, %v4624_v36  ;;  %v9818_v36 = vor.u32 %v10699_v50, %v9817_v54  ;;  %v9810_v16 = vor.u32 %v10698_v62, %v9809_v43  ;;  %v9715_v54 = vld [vmem:[#allocation17 + $0xb0] sm:$0xf0]  ;;  %v10675_v43 = vld [vmem:[#allocation17 + $0xb4] sm:$0xf0]  ;;  %v9713_v62 = vld [vmem:[#allocation17 + $0x90] sm:$0xf] }
 0x5df   : > { %v9718_v50 = vor.u32 %v10670_v31, %v9715_v54 }
 0x5e0   : > { %v4659_v63 = vmul.f32 0.2, %v4625_v15  ;;  %vm4643_vm6 = vcmp.gt.f32.partialorder %v4625_v15, 0.0  ;;  %5548 = vmatpush.bf16.msrb.mxu3 %v9818_v36  ;;  %5450 = vmatpush.bf16.msrb.mxu1 %v9810_v16  ;;  %v10674_v36 = vld [vmem:[#allocation17 + $0xac] sm:$0xf0]  ;;  %v9722_v16 = vor.u32 %v10675_v43, %v9721_v1 }
 0x5e1   : > { %v10747_v43 = vld [vmem:[#allocation20 + $0xf4] sm:$0xf0] }
 0x5e2   : > { %v4675_v6 = vsel %vm4643_vm6, %v4625_v15, %v4659_v63  ;;  %v10695_v15 = vld [vmem:[#allocation17 + $0x15c] sm:$0xf]  ;;  %v10686_v63 = vld [vmem:[#allocation17 + $0x114] sm:$0xf] }
 0x5e5   : > { %v4626_v5 = vpop.f32.mrf.mxu3 }
 0x5e6   : > { %v4627_v37 = vadd.f32 %v13500_v23, %v4626_v5  ;;  %v10711_v23 = vld [vmem:[#allocation17 + $0x1dc] sm:$0xf]  ;;  %v9822_v5 = vor.u32 %v10695_v15, %v9819_v56 }
 0x5e7   : > { %v9886_v2 = vor.u32 %v10711_v23, %v9883_v13  ;;  %v10687_v23 = vld [vmem:[#allocation17 + $0x11c] sm:$0xf] }
 0x5e8   : > { %vm4644_vm3 = vcmp.gt.f32.partialorder %v4627_v37, 0.0  ;;  %v4660_v44 = vmul.f32 0.2, %v4627_v37  ;;  %v9787_v13 = vld [vmem:[#allocation17 + $0x138] sm:$0xf0] }
 0x5e9   : > { %5595 = vmatpush.bf16.msrb.mxu0 %v9886_v2  ;;  %v9790_v2 = vor.u32 %v10687_v23, %v9787_v13 }
 0x5ea   : > { %v4676_v48 = vsel %vm4644_vm3, %v4627_v37, %v4660_v44  ;;  %v9779_v37 = vld [vmem:[#allocation17 + $0x130] sm:$0xf0] }
 0x5eb   : > { %v4684_v33 = vpack.c.bf16 %v4676_v48, %v4675_v6  ;;  %v9782_v44 = vor.u32 %v10686_v63, %v9779_v37  ;;  %v10691_v6 = vld [vmem:[#allocation17 + $0x134] sm:$0xf0]  ;;  %v9777_v48 = vld [vmem:[#allocation17 + $0x110] sm:$0xf] }
 0x5ec   : > { %v9786_v20 = vor.u32 %v10691_v6, %v9785_v10  ;;  %v10662_v10 = vld [vmem:[#allocation17 + $0x54] sm:$0xf]  ;;  %v9689_v6 = vld [vmem:[#allocation17 + $0x58] sm:$0xf] }
 0x5ed   : > { %9630 = vmatmul.msk.bf16.gmra.mxu0 %vm4176_vm2, %v4684_v33  ;;  %v10690_v33 = vld [vmem:[#allocation17 + $0x12c] sm:$0xf0]  ;;  %5500 = vmatpush.bf16.msrb.mxu2 %v9782_v44  ;;  %v9683_v44 = vld [vmem:[#allocation17 + $0x70] sm:$0xf0] }
 0x5ee   : > { %5596 = vmatpush.bf16.msrb.mxu0 %v9854_v45  ;;  %v9778_v4 = vor.u32 %v10690_v33, %v9777_v48  ;;  %5549 = vmatpush.bf16.msrb.mxu3 %v9786_v20  ;;  %v9755_v45 = vld [vmem:[#allocation17 + $0xf8] sm:$0xf0]  ;;  %v9686_v48 = vor.u32 %v10662_v10, %v9683_v44  ;;  %v10667_v33 = vld [vmem:[#allocation17 + $0x74] sm:$0xf0]  ;;  %v9681_v20 = vld [vmem:[#allocation17 + $0x50] sm:$0xf] }
 0x5f0   : > { %5451 = vmatpush.bf16.msrb.mxu1 %v9778_v4  ;;  %v10666_v4 = vld [vmem:[#allocation17 + $0x6c] sm:$0xf0] }
 0x5f1   : > { %5501 = vmatpush.bf16.msrb.mxu2 %v9750_v46  ;;  %v9651_v46 = vld [vmem:[#allocation17 + $0x30] sm:$0xf0] }
 0x5f2   : > { %5597 = vmatpush.bf16.msrb.mxu0 %v9822_v5  ;;  %5550 = vmatpush.bf16.msrb.mxu3 %v9754_v57  ;;  %v10671_v5 = vld [vmem:[#allocation17 + $0x9c] sm:$0xf]  ;;  %v9654_v26 = vor.u32 %v10654_v14, %v9651_v46  ;;  %v9649_v57 = vld [vmem:[#allocation17 + $0x10] sm:$0xf]  ;;  %v9993_v14 = vld [vmem:[#allocation20 + $0xd0] sm:$0xf] }
 0x5f4   : > { %5452 = vmatpush.bf16.msrb.mxu1 %v9746_v19  ;;  %v10658_v19 = vld [vmem:[#allocation17 + $0x2c] sm:$0xf0] }
 0x5f5   : > { %5502 = vmatpush.bf16.msrb.mxu2 %v9718_v50  ;;  %v10009_v50 = vld [vmem:[#allocation20 + $0xf0] sm:$0xf] }
 0x5f6   : > { %5598 = vmatpush.bf16.msrb.mxu0 %v9790_v2  ;;  %5551 = vmatpush.bf16.msrb.mxu3 %v9722_v16 }
 0x5f9   : > { %5503 = vmatpush.bf16.msrb.mxu2 %v9686_v48  ;;  %v10745_v48 = vld [vmem:[#allocation20 + $0xe4] sm:$0xf0] }
 0x5fa   : > { %v4754_v39 = vpop.f32.mrf.mxu0 }
 0x5fb   : > { %v4755_v28 = vadd.f32 %v13526_v30, %v4754_v39 }
 0x5fd   : > { %v4810_v18 = vmul.f32 0.2, %v4755_v28  ;;  %vm4794_vm2 = vcmp.gt.f32.partialorder %v4755_v28, 0.0  ;;  %5504 = vmatpush.bf16.msrb.mxu2 %v9654_v26  ;;  %v10057_v26 = vld [vmem:[#allocation20 + $0x150] sm:$0xf] }
 0x5ff   : > { %v4826_v29 = vsel %vm4794_vm2, %v4755_v28, %v4810_v18 }
 0x602   : > { %v4756_v12 = vpop.f32.mrf.mxu0 }
 0x603   : > { %v4757_v52 = vadd.f32 %v13526_v30, %v4756_v12 }
 0x605   : > { %vm4795_vm7 = vcmp.gt.f32.partialorder %v4757_v52, 0.0  ;;  %v4811_v42 = vmul.f32 0.2, %v4757_v52 }
 0x607   : > { %v4827_v51 = vsel %vm4795_vm7, %v4757_v52, %v4811_v42 }
 0x608   : > { %v13530_v53 = vpack.c.bf16 %v4827_v51, %v4826_v29 }
 0x60a   : > { %v4759_v58 = vpop.f32.mrf.mxu0  ;;  %5260 = vmatmul.bf16.vlgmr.msra.gmra.mxu1 %v13530_v53  ;;  %5309 = vmatmul.bf16.vlgmr.msra.gmra.mxu2 %v13530_v53 }
 0x60b   : > { %5358 = vmatmul.bf16.vlgmr.msra.gmra.mxu3 %v13530_v53  ;;  %5407 = vmatmul.bf16.vlgmr.msra.gmra.mxu0 %v13530_v53  ;;  %v4760_v32 = vadd.f32 %v13526_v30, %v4759_v58  ;;  %v9758_v58 = vor.u32 %v10679_v11, %v9755_v45 }
 0x60d   : > { %v4812_v24 = vmul.f32 0.2, %v4760_v32  ;;  %vm4796_vm8 = vcmp.gt.f32.partialorder %v4760_v32, 0.0  ;;  %5599 = vmatpush.bf16.msrb.mxu0 %v9758_v58 }
 0x60f   : > { %v4828_v61 = vsel %vm4796_vm8, %v4760_v32, %v4812_v24 }
 0x612   : > { %v4761_v22 = vpop.f32.mrf.mxu0 }
 0x613   : > { %v4762_v49 = vadd.f32 %v13526_v30, %v4761_v22  ;;  %v9714_v22 = vor.u32 %v10674_v36, %v9713_v62  ;;  %v10073_v62 = vld [vmem:[#allocation20 + $0x170] sm:$0xf]  ;;  %v10763_v36 = vld [vmem:[#allocation20 + $0x174] sm:$0xf0] }
 0x615   : > { %vm4797_vm9 = vcmp.gt.f32.partialorder %v4762_v49, 0.0  ;;  %v4813_v35 = vmul.f32 0.2, %v4762_v49  ;;  %5453 = vmatpush.bf16.msrb.mxu1 %v9714_v22  ;;  %v10010_v22 = vor.u32 %v10747_v43, %v10009_v50  ;;  %v10727_v50 = vld [vmem:[#allocation20 + $0x54] sm:$0xf0] }
 0x617   : > { %v4829_v25 = vsel %vm4797_vm9, %v4762_v49, %v4813_v35  ;;  %6915 = vmatpush.bf16.msra.mxu2 %v10010_v22 }
 0x618   : > { %v13538_v40 = vpack.c.bf16 %v4829_v25, %v4828_v61 }
 0x61a   : > { %v4764_v27 = vpop.f32.mrf.mxu0  ;;  %5265 = vmatmul.bf16.gmra.mxu1 %v13538_v40  ;;  %5314 = vmatmul.bf16.gmra.mxu2 %v13538_v40 }
 0x61b   : > { %5363 = vmatmul.bf16.gmra.mxu3 %v13538_v40  ;;  %5412 = vmatmul.bf16.gmra.mxu0 %v13538_v40  ;;  %v4765_v21 = vadd.f32 %v13526_v30, %v4764_v27  ;;  %v9723_v27 = vld [vmem:[#allocation17 + $0xb8] sm:$0xf0] }
 0x61d   : > { %v4814_v7 = vmul.f32 0.2, %v4765_v21  ;;  %vm4798_vm10 = vcmp.gt.f32.partialorder %v4765_v21, 0.0 }
 0x61f   : > { %v4830_v3 = vsel %vm4798_vm10, %v4765_v21, %v4814_v7  ;;  %v9726_v21 = vor.u32 %v10671_v5, %v9723_v27  ;;  %v9682_v7 = vor.u32 %v10666_v4, %v9681_v20  ;;  %v10761_v4 = vld [vmem:[#allocation20 + $0x164] sm:$0xf0] }
 0x621   : > { %5600 = vmatpush.bf16.msrb.mxu0 %v9726_v21  ;;  %5454 = vmatpush.bf16.msrb.mxu1 %v9682_v7  ;;  %v10137_v21 = vld [vmem:[#allocation20 + $0x1f0] sm:$0xf]  ;;  %v9937_v7 = vld [vmem:[#allocation20 + $0x60] sm:$0xf] }
 0x622   : > { %v4766_v0 = vpop.f32.mrf.mxu0 }
 0x623   : > { %v4767_v38 = vadd.f32 %v13526_v30, %v4766_v0  ;;  %v9690_v0 = vor.u32 %v10667_v33, %v9689_v6  ;;  %v10065_v33 = vld [vmem:[#allocation20 + $0x160] sm:$0xf] }
 0x625   : > { %vm4799_vm11 = vcmp.gt.f32.partialorder %v4767_v38, 0.0  ;;  %v4815_v59 = vmul.f32 0.2, %v4767_v38  ;;  %5552 = vmatpush.bf16.msrb.mxu3 %v9690_v0  ;;  %v10066_v0 = vor.u32 %v10761_v4, %v10065_v33 }
 0x627   : > { %v4831_v9 = vsel %vm4799_vm11, %v4767_v38, %v4815_v59 }
 0x628   : > { %v13546_v34 = vpack.c.bf16 %v4831_v9, %v4830_v3 }
 0x62a   : > { %v4769_v39 = vpop.f32.mrf.mxu0  ;;  %5270 = vmatmul.bf16.gmra.mxu1 %v13546_v34  ;;  %5319 = vmatmul.bf16.gmra.mxu2 %v13546_v34 }
 0x62b   : > { %5368 = vmatmul.bf16.gmra.mxu3 %v13546_v34  ;;  %5417 = vmatmul.bf16.gmra.mxu0 %v13546_v34  ;;  %v4770_v28 = vadd.f32 %v13526_v30, %v4769_v39  ;;  %v10663_v39 = vld [vmem:[#allocation17 + $0x5c] sm:$0xf] }
 0x62d   : > { %v4816_v18 = vmul.f32 0.2, %v4770_v28  ;;  %vm4800_vm12 = vcmp.gt.f32.partialorder %v4770_v28, 0.0 }
 0x62f   : > { %v4832_v29 = vsel %vm4800_vm12, %v4770_v28, %v4816_v18  ;;  %v9691_v28 = vld [vmem:[#allocation17 + $0x78] sm:$0xf0]  ;;  %v9650_v18 = vor.u32 %v10658_v19, %v9649_v57 }
 0x630   : > { %v9694_v60 = vor.u32 %v10663_v39, %v9691_v28 }
 0x631   : > { %5455 = vmatpush.bf16.msrb.mxu1 %v9650_v18 }
 0x632   : > { %v4771_v12 = vpop.f32.mrf.mxu0  ;;  %5601 = vmatpush.bf16.msrb.mxu0 %v9694_v60 }
 0x633   : > { %v4772_v52 = vadd.f32 %v13526_v30, %v4771_v12  ;;  %v9658_v12 = vor.u32 %v10659_v41, %v9657_v17  ;;  %v10743_v17 = vld [vmem:[#allocation20 + $0xd4] sm:$0xf0] }
 0x634   : > { %v10759_v41 = vld [vmem:[#allocation20 + $0x154] sm:$0xf0] }
 0x635   : > { %vm4801_vm13 = vcmp.gt.f32.partialorder %v4772_v52, 0.0  ;;  %v4817_v42 = vmul.f32 0.2, %v4772_v52  ;;  %5553 = vmatpush.bf16.msrb.mxu3 %v9658_v12  ;;  %v9994_v12 = vor.u32 %v10743_v17, %v9993_v14  ;;  %v10058_v18 = vor.u32 %v10759_v41, %v10057_v26  ;;  %v10757_v14 = vld [vmem:[#allocation20 + $0x144] sm:$0xf0] }
 0x637   : > { %v4833_v51 = vsel %vm4801_vm13, %v4772_v52, %v4817_v42  ;;  %v10655_v52 = vld [vmem:[#allocation17 + $0x1c] sm:$0xf] }
 0x638   : > { %v13554_v47 = vpack.c.bf16 %v4833_v51, %v4832_v29  ;;  %v9659_v42 = vld [vmem:[#allocation17 + $0x38] sm:$0xf0] }
 0x639   : > { %v9662_v51 = vor.u32 %v10655_v52, %v9659_v42 }
 0x63a   : > { %v4774_v32 = vpop.f32.mrf.mxu0  ;;  %5275 = vmatmul.bf16.gmra.mxu1 %v13554_v47  ;;  %5324 = vmatmul.bf16.gmra.mxu2 %v13554_v47 }
 0x63b   : > { %5373 = vmatmul.bf16.gmra.mxu3 %v13554_v47  ;;  %5422 = vmatmul.bf16.gmra.mxu0 %v13554_v47  ;;  %v4775_v55 = vadd.f32 %v13526_v30, %v4774_v32 }
 0x63c   : > { %5602 = vmatpush.bf16.msrb.mxu0 %v9662_v51 }
 0x63d   : > { %v4818_v49 = vmul.f32 0.2, %v4775_v55  ;;  %vm4802_vm14 = vcmp.gt.f32.partialorder %v4775_v55, 0.0 }
 0x63f   : > { %v4834_v25 = vsel %vm4802_vm14, %v4775_v55, %v4818_v49 }
 0x642   : > { %v4776_v24 = vpop.f32.mrf.mxu0 }
 0x643   : > { %v4777_v35 = vadd.f32 %v13526_v30, %v4776_v24  ;;  %v10074_v24 = vor.u32 %v10763_v36, %v10073_v62 }
 0x645   : > { %vm4803_vm15 = vcmp.gt.f32.partialorder %v4777_v35, 0.0  ;;  %v4819_v61 = vmul.f32 0.2, %v4777_v35  ;;  %6964 = vmatpush.bf16.msra.mxu3 %v10074_v24 }
 0x647   : > { %v4835_v15 = vsel %vm4803_vm15, %v4777_v35, %v4819_v61 }
 0x648   : > { %v13562_v56 = vpack.c.bf16 %v4835_v15, %v4834_v25  ;;  %v9945_v25 = vld [vmem:[#allocation20 + $0x70] sm:$0xf]  ;;  %v10731_v15 = vld [vmem:[#allocation20 + $0x74] sm:$0xf0] }
 0x649   : > { %v9946_v5 = vor.u32 %v10731_v15, %v9945_v25  ;;  %6965 = vmatpush.bf16.msra.mxu3 %v10066_v0 }
 0x64a   : > { %v4779_v63 = vpop.f32.mrf.mxu0  ;;  %5280 = vmatmul.bf16.gmra.mxu1 %v13562_v56  ;;  %5329 = vmatmul.bf16.gmra.mxu2 %v13562_v56 }
 0x64b   : > { %5378 = vmatmul.bf16.gmra.mxu3 %v13562_v56  ;;  %5427 = vmatmul.bf16.gmra.mxu0 %v13562_v56  ;;  %v4780_v37 = vadd.f32 %v13526_v30, %v4779_v63  ;;  %v10779_v63 = vld [vmem:[#allocation20 + $0x1f4] sm:$0xf0] }
 0x64c   : > { %6866 = vmatpush.bf16.msra.mxu1 %v9946_v5  ;;  %v10138_v44 = vor.u32 %v10779_v63, %v10137_v21 }
 0x64d   : > { %v4820_v59 = vmul.f32 0.2, %v4780_v37  ;;  %vm4804_vm0 = vcmp.gt.f32.partialorder %v4780_v37, 0.0  ;;  %6966 = vmatpush.bf16.msra.mxu3 %v10058_v18 }
 0x64e   : > { %7013 = vmatpush.bf16.msra.mxu0 %v10138_v44 }
 0x64f   : > { %v4836_v23 = vsel %vm4804_vm0, %v4780_v37, %v4820_v59 }
 0x652   : > { %v4781_v38 = vpop.f32.mrf.mxu0 }
 0x653   : > { %v4782_v3 = vadd.f32 %v13526_v30, %v4781_v38  ;;  %v10729_v38 = vld [vmem:[#allocation20 + $0x64] sm:$0xf0] }
 0x654   : > { %v9938_v59 = vor.u32 %v10729_v38, %v9937_v7 }
 0x655   : > { %vm4805_vm1 = vcmp.gt.f32.partialorder %v4782_v3, 0.0  ;;  %v4821_v9 = vmul.f32 0.2, %v4782_v3 }
 0x656   : > { %6867 = vmatpush.bf16.msra.mxu1 %v9938_v59 }
 0x657   : > { %v4837_v13 = vsel %vm4805_vm1, %v4782_v3, %v4821_v9  ;;  %v10129_v3 = vld [vmem:[#allocation20 + $0x1e0] sm:$0xf]  ;;  %v10777_v9 = vld [vmem:[#allocation20 + $0x1e4] sm:$0xf0] }
 0x658   : > { %v13570_v2 = vpack.c.bf16 %v4837_v13, %v4836_v23  ;;  %v10130_v23 = vor.u32 %v10777_v9, %v10129_v3  ;;  %v13592_v13 = vld [vmem:[#allocation19] sm:$0xff]  ;;  %v9985_v3 = vld [vmem:[#allocation20 + $0xc0] sm:$0xf] }
 0x659   : > { %v13595_v28 = vperm.slane %v13592_v13, 0  ;;  %v13607_v52 = vperm.slane %v13592_v13, 1 }
 0x65a   : > { %v4784_v8 = vpop.f32.mrf.mxu0  ;;  %5285 = vmatmul.bf16.gmra.mxu1 %v13570_v2  ;;  %5334 = vmatmul.bf16.gmra.mxu2 %v13570_v2 }
 0x65b   : > { %5383 = vmatmul.bf16.gmra.mxu3 %v13570_v2  ;;  %5432 = vmatmul.bf16.gmra.mxu0 %v13570_v2  ;;  %v4785_v29 = vadd.f32 %v13526_v30, %v4784_v8  ;;  %v13598_v8 = vperm.slane %v13592_v13, 3 }
 0x65c   : > { %7014 = vmatpush.bf16.msra.mxu0 %v10130_v23 }
 0x65d   : > { %v4822_v45 = vmul.f32 0.2, %v4785_v29  ;;  %vm4806_vm4 = vcmp.gt.f32.partialorder %v4785_v29, 0.0 }
 0x65f   : > { %v4838_v55 = vsel %vm4806_vm4, %v4785_v29, %v4822_v45  ;;  %v13610_v29 = vperm.slane %v13592_v13, 2 }
 0x662   : > { %v4786_v11 = vpop.f32.mrf.mxu0 }
 0x663   : > { %v4787_v58 = vadd.f32 %v13526_v30, %v4786_v11 }
 0x665   : > { %vm4807_vm5 = vcmp.gt.f32.partialorder %v4787_v58, 0.0  ;;  %v4823_v32 = vmul.f32 0.2, %v4787_v58 }
 0x667   : > { %v4839_v31 = vsel %vm4807_vm5, %v4787_v58, %v4823_v32 }
 0x668   : > { %v13578_v54 = vpack.c.bf16 %v4839_v31, %v4838_v55  ;;  %v9929_v55 = vld [vmem:[#allocation20 + $0x50] sm:$0xf] }
 0x669   : > { %v9930_v36 = vor.u32 %v10727_v50, %v9929_v55  ;;  %v10773_v50 = vld [vmem:[#allocation20 + $0x1c4] sm:$0xf0] }
 0x66a   : > { %v4789_v1 = vpop.f32.mrf.mxu0  ;;  %5290 = vmatmul.bf16.gmra.mxu1 %v13578_v54  ;;  %5339 = vmatmul.bf16.gmra.mxu2 %v13578_v54 }
 0x66b   : > { %5388 = vmatmul.bf16.gmra.mxu3 %v13578_v54  ;;  %5437 = vmatmul.bf16.gmra.mxu0 %v13578_v54  ;;  %v4790_v16 = vadd.f32 %v13526_v30, %v4789_v1 }
 0x66c   : > { %6868 = vmatpush.bf16.msra.mxu1 %v9930_v36 }
 0x66d   : > { %v4824_v35 = vmul.f32 0.2, %v4790_v16  ;;  %vm4808_vm6 = vcmp.gt.f32.partialorder %v4790_v16, 0.0 }
 0x66f   : > { %v4840_v37 = vsel %vm4808_vm6, %v4790_v16, %v4824_v35  ;;  %v10121_v16 = vld [vmem:[#allocation20 + $0x1d0] sm:$0xf] }
 0x672   : > { %v4791_v49 = vpop.f32.mrf.mxu0 }
 0x673   : > { %v4792_v61 = vadd.f32 %v13526_v30, %v4791_v49  ;;  %v10001_v30 = vld [vmem:[#allocation20 + $0xe0] sm:$0xf]  ;;  %v10775_v49 = vld [vmem:[#allocation20 + $0x1d4] sm:$0xf0] }
 0x674   : > { %v10002_v20 = vor.u32 %v10745_v48, %v10001_v30  ;;  %v10122_v5 = vor.u32 %v10775_v49, %v10121_v16 }
 0x675   : > { %vm4809_vm3 = vcmp.gt.f32.partialorder %v4792_v61, 0.0  ;;  %v4825_v27 = vmul.f32 0.2, %v4792_v61 }
 0x676   : > { %6916 = vmatpush.bf16.msra.mxu2 %v10002_v20  ;;  %7015 = vmatpush.bf16.msra.mxu0 %v10122_v5 }
 0x677   : > { %v4841_v10 = vsel %vm4809_vm3, %v4792_v61, %v4825_v27 }
 0x678   : > { %v13586_v6 = vpack.c.bf16 %v4841_v10, %v4840_v37 }
 0x67a   : > { %5295 = vmatmul.bf16.gmra.mxu1 %v13586_v6  ;;  %5344 = vmatmul.bf16.gmra.mxu2 %v13586_v6 }
 0x67b   : > { %5393 = vmatmul.bf16.gmra.mxu3 %v13586_v6  ;;  %5442 = vmatmul.bf16.gmra.mxu0 %v13586_v6 }
 0x67c   : > { %6917 = vmatpush.bf16.msra.mxu2 %v9994_v12 }
 0x687   : > { %v5261_v39 = vpop.f32.mrf.mxu1 }
 0x688   : > { %v5408_v60 = vpop.f32.mrf.mxu0  ;;  %v5262_v46 = vadd.f32 %v5261_v39, %v13595_v28  ;;  %v10741_v39 = vld [vmem:[#allocation20 + $0xc4] sm:$0xf0] }
 0x689   : > { %v5409_v57 = vadd.f32 %v5408_v60, %v13598_v8  ;;  %v10049_v60 = vld [vmem:[#allocation20 + $0x140] sm:$0xf]  ;;  %v9986_v26 = vor.u32 %v10741_v39, %v9985_v3  ;;  %v10739_v3 = vld [vmem:[#allocation20 + $0xb4] sm:$0xf0] }
 0x68a   : > { %5456 = vmatmul.bf16.vlgmr.msrb.gmra.mxu1 %v13530_v53  ;;  %5505 = vmatmul.bf16.vlgmr.msrb.gmra.mxu2 %v13530_v53  ;;  %vm5644_vm2 = vcmp.gt.f32.partialorder %v5262_v46, 0.0  ;;  %v10050_v41 = vor.u32 %v10757_v14, %v10049_v60  ;;  %v10755_v39 = vld [vmem:[#allocation20 + $0x134] sm:$0xf0] }
 0x68b   : > { %5554 = vmatmul.bf16.vlgmr.msrb.gmra.mxu3 %v13530_v53  ;;  %5603 = vmatmul.bf16.vlgmr.msrb.gmra.mxu0 %v13530_v53  ;;  %v5772_v53 = vmul.f32 0.2, %v5262_v46  ;;  %v5775_v58 = vmul.f32 0.2, %v5409_v57  ;;  %vm5647_vm7 = vcmp.gt.f32.partialorder %v5409_v57, 0.0 }
 0x68c   : > { %6918 = vmatpush.bf16.msra.mxu2 %v9986_v26  ;;  %6967 = vmatpush.bf16.msra.mxu3 %v10050_v41 }
 0x68d   : > { %v5310_v19 = vpop.f32.mrf.mxu2  ;;  %v5900_v22 = vsel %vm5644_vm2, %v5262_v46, %v5772_v53  ;;  %v5903_v35 = vsel %vm5647_vm7, %v5409_v57, %v5775_v58  ;;  %v9921_v53 = vld [vmem:[#allocation20 + $0x40] sm:$0xf]  ;;  %v10725_v58 = vld [vmem:[#allocation20 + $0x44] sm:$0xf0] }
 0x68e   : > { %v5359_v42 = vpop.f32.mrf.mxu3  ;;  %v5311_v31 = vadd.f32 %v5310_v19, %v13607_v52 }
 0x68f   : > { %v5263_v51 = vpop.f32.mrf.mxu1  ;;  %v5360_v43 = vadd.f32 %v5359_v42, %v13610_v29 }
 0x690   : > { %v5264_v11 = vadd.f32 %v5263_v51, %v13595_v28  ;;  %v5410_v45 = vpop.f32.mrf.mxu0  ;;  %v5773_v27 = vmul.f32 0.2, %v5311_v31  ;;  %vm5645_vm10 = vcmp.gt.f32.partialorder %v5311_v31, 0.0 }
 0x691   : > { %v5411_v32 = vadd.f32 %v5410_v45, %v13598_v8  ;;  %v5774_v10 = vmul.f32 0.2, %v5360_v43  ;;  %vm5646_vm11 = vcmp.gt.f32.partialorder %v5360_v43, 0.0 }
 0x692   : > { %vm5652_vm8 = vcmp.gt.f32.partialorder %v5264_v11, 0.0  ;;  %v5780_v1 = vmul.f32 0.2, %v5264_v11  ;;  %v5901_v4 = vsel %vm5645_vm10, %v5311_v31, %v5773_v27  ;;  %v9922_v31 = vor.u32 %v10725_v58, %v9921_v53 }
 0x693   : > { %vm5655_vm9 = vcmp.gt.f32.partialorder %v5411_v32, 0.0  ;;  %v5783_v62 = vmul.f32 0.2, %v5411_v32  ;;  %v5902_v7 = vsel %vm5646_vm11, %v5360_v43, %v5774_v10 }
 0x694   : > { %v5908_v24 = vsel %vm5652_vm8, %v5264_v11, %v5780_v1  ;;  %v10113_v1 = vld [vmem:[#allocation20 + $0x1c0] sm:$0xf]  ;;  %6869 = vmatpush.bf16.msra.mxu1 %v9922_v31  ;;  %v10771_v31 = vld [vmem:[#allocation20 + $0x1b4] sm:$0xf0] }
 0x695   : > { %v13616_v61 = vpack.c.bf16 %v5908_v24, %v5900_v22  ;;  %v5911_v25 = vsel %vm5655_vm9, %v5411_v32, %v5783_v62  ;;  %v5312_v15 = vpop.f32.mrf.mxu2  ;;  %v10114_v16 = vor.u32 %v10773_v50, %v10113_v1 }
 0x696   : > { %v13618_v21 = vpack.c.bf16 %v5911_v25, %v5903_v35  ;;  %v5313_v63 = vadd.f32 %v5312_v15, %v13607_v52  ;;  %v5361_v37 = vpop.f32.mrf.mxu3 }
 0x697   : > { %v5362_v44 = vadd.f32 %v5361_v37, %v13610_v29  ;;  %v5266_v30 = vpop.f32.mrf.mxu1  ;;  %7016 = vmatpush.bf16.msra.mxu0 %v10114_v16 }
 0x698   : > { %vm5653_vm12 = vcmp.gt.f32.partialorder %v5313_v63, 0.0  ;;  %v5781_v48 = vmul.f32 0.2, %v5313_v63  ;;  %v5413_v33 = vpop.f32.mrf.mxu0  ;;  %v5267_v23 = vadd.f32 %v5266_v30, %v13595_v28 }
 0x699   : > { %vm5654_vm13 = vcmp.gt.f32.partialorder %v5362_v44, 0.0  ;;  %v5782_v20 = vmul.f32 0.2, %v5362_v44  ;;  %v5414_v46 = vadd.f32 %v5413_v33, %v13598_v8 }
 0x69a   : > { %v5909_v0 = vsel %vm5653_vm12, %v5313_v63, %v5781_v48  ;;  %5461 = vmatmul.bf16.gmra.mxu1 %v13538_v40  ;;  %5510 = vmatmul.bf16.gmra.mxu2 %v13538_v40  ;;  %v5788_v12 = vmul.f32 0.2, %v5267_v23  ;;  %vm5660_vm14 = vcmp.gt.f32.partialorder %v5267_v23, 0.0 }
 0x69b   : > { %v13624_v38 = vpack.c.bf16 %v5909_v0, %v5901_v4  ;;  %v5910_v59 = vsel %vm5654_vm13, %v5362_v44, %v5782_v20  ;;  %5559 = vmatmul.bf16.gmra.mxu3 %v13538_v40  ;;  %5608 = vmatmul.bf16.gmra.mxu0 %v13538_v40  ;;  %v5791_v42 = vmul.f32 0.2, %v5414_v46  ;;  %vm5663_vm15 = vcmp.gt.f32.partialorder %v5414_v46, 0.0  ;;  %v9977_v20 = vld [vmem:[#allocation20 + $0xb0] sm:$0xf] }
 0x69c   : > { %v13628_v9 = vpack.c.bf16 %v5910_v59, %v5902_v7  ;;  %v5916_v43 = vsel %vm5660_vm14, %v5267_v23, %v5788_v12  ;;  %v10041_v23 = vld [vmem:[#allocation20 + $0x130] sm:$0xf] }
 0x69d   : > { %v5315_v17 = vpop.f32.mrf.mxu2  ;;  %v5919_v24 = vsel %vm5663_vm15, %v5414_v46, %v5791_v42  ;;  %v10042_v26 = vor.u32 %v10755_v39, %v10041_v23  ;;  %v9913_v42 = vld [vmem:[#allocation20 + $0x30] sm:$0xf]  ;;  %v10737_v23 = vld [vmem:[#allocation20 + $0xa4] sm:$0xf0]  ;;  %v10033_v39 = vld [vmem:[#allocation20 + $0x120] sm:$0xf] }
 0x69e   : > { %v5364_v57 = vpop.f32.mrf.mxu3  ;;  %v5316_v11 = vadd.f32 %v5315_v17, %v13607_v52  ;;  %v9978_v17 = vor.u32 %v10739_v3, %v9977_v20  ;;  %v9969_v20 = vld [vmem:[#allocation20 + $0xa0] sm:$0xf] }
 0x69f   : > { %v5268_v19 = vpop.f32.mrf.mxu1  ;;  %v5365_v32 = vadd.f32 %v5364_v57, %v13610_v29  ;;  %6968 = vmatpush.bf16.msra.mxu3 %v10042_v26 }
 0x6a0   : > { %v5269_v40 = vadd.f32 %v5268_v19, %v13595_v28  ;;  %v5415_v18 = vpop.f32.mrf.mxu0  ;;  %v5789_v35 = vmul.f32 0.2, %v5316_v11  ;;  %vm5661_vm4 = vcmp.gt.f32.partialorder %v5316_v11, 0.0  ;;  %6919 = vmatpush.bf16.msra.mxu2 %v9978_v17 }
 0x6a1   : > { %v5416_v51 = vadd.f32 %v5415_v18, %v13598_v8  ;;  %v5790_v27 = vmul.f32 0.2, %v5365_v32  ;;  %vm5662_vm5 = vcmp.gt.f32.partialorder %v5365_v32, 0.0 }
 0x6a2   : > { %vm5668_vm0 = vcmp.gt.f32.partialorder %v5269_v40, 0.0  ;;  %v5796_v45 = vmul.f32 0.2, %v5269_v40  ;;  %v5917_v48 = vsel %vm5661_vm4, %v5316_v11, %v5789_v35  ;;  %v10723_v11 = vld [vmem:[#allocation20 + $0x34] sm:$0xf0] }
 0x6a3   : > { %vm5671_vm1 = vcmp.gt.f32.partialorder %v5416_v51, 0.0  ;;  %v5799_v55 = vmul.f32 0.2, %v5416_v51  ;;  %v5918_v0 = vsel %vm5662_vm5, %v5365_v32, %v5790_v27  ;;  %v9914_v32 = vor.u32 %v10723_v11, %v9913_v42 }
 0x6a4   : > { %v5924_v62 = vsel %vm5668_vm0, %v5269_v40, %v5796_v45 }
 0x6a5   : > { %v5317_v36 = vpop.f32.mrf.mxu2  ;;  %v13636_v22 = vpack.c.bf16 %v5924_v62, %v5916_v43  ;;  %v5927_v49 = vsel %vm5671_vm1, %v5416_v51, %v5799_v55  ;;  %v10105_v55 = vld [vmem:[#allocation20 + $0x1b0] sm:$0xf]  ;;  %6870 = vmatpush.bf16.msra.mxu1 %v9914_v32 }
 0x6a6   : > { %v5318_v25 = vadd.f32 %v5317_v36, %v13607_v52  ;;  %v5366_v15 = vpop.f32.mrf.mxu3  ;;  %v13640_v5 = vpack.c.bf16 %v5927_v49, %v5919_v24  ;;  %v10106_v62 = vor.u32 %v10771_v31, %v10105_v55  ;;  %v10097_v31 = vld [vmem:[#allocation20 + $0x1a0] sm:$0xf] }
 0x6a7   : > { %v5367_v63 = vadd.f32 %v5366_v15, %v13610_v29  ;;  %v5271_v37 = vpop.f32.mrf.mxu1 }
 0x6a8   : > { %14803 = vst [vmem:[#allocation64_spill] sm:$0xff] %v13640_v5  ;;  %vm5669_vm6 = vcmp.gt.f32.partialorder %v5318_v25, 0.0  ;;  %v5797_v10 = vmul.f32 0.2, %v5318_v25  ;;  %v5418_v44 = vpop.f32.mrf.mxu0  ;;  %v5272_v59 = vadd.f32 %v5271_v37, %v13595_v28  ;;  %7017 = vmatpush.bf16.msra.mxu0 %v10106_v62 }
 0x6a9   : > { %vm5670_vm3 = vcmp.gt.f32.partialorder %v5367_v63, 0.0  ;;  %v5798_v30 = vmul.f32 0.2, %v5367_v63  ;;  %v5419_v14 = vadd.f32 %v5418_v44, %v13598_v8 }
 0x6aa   : > { %5466 = vmatmul.bf16.gmra.mxu1 %v13546_v34  ;;  %5515 = vmatmul.bf16.gmra.mxu2 %v13546_v34  ;;  %v5925_v33 = vsel %vm5669_vm6, %v5318_v25, %v5797_v10  ;;  %vm5676_vm2 = vcmp.gt.f32.partialorder %v5272_v59, 0.0 }
 0x6ab   : > { %5564 = vmatmul.bf16.gmra.mxu3 %v13546_v34  ;;  %5613 = vmatmul.bf16.gmra.mxu0 %v13546_v34  ;;  %v13647_v4 = vpack.c.bf16 %v5925_v33, %v5917_v48  ;;  %v5926_v7 = vsel %vm5670_vm3, %v5367_v63, %v5798_v30  ;;  %v5804_v34 = vmul.f32 0.2, %v5272_v59  ;;  %v5807_v40 = vmul.f32 0.2, %v5419_v14 }
 0x6ac   : > { %v13650_v60 = vpack.c.bf16 %v5926_v7, %v5918_v0  ;;  %vm5679_vm7 = vcmp.gt.f32.partialorder %v5419_v14, 0.0 }
 0x6ad   : > { %v5320_v46 = vpop.f32.mrf.mxu2  ;;  %v5932_v1 = vsel %vm5676_vm2, %v5272_v59, %v5804_v34  ;;  %v5935_v16 = vsel %vm5679_vm7, %v5419_v14, %v5807_v40  ;;  %v10753_v14 = vld [vmem:[#allocation20 + $0x124] sm:$0xf0] }
 0x6ae   : > { %14804 = vst [vmem:[#allocation63_spill] sm:$0xff] %v13650_v60  ;;  %v5369_v41 = vpop.f32.mrf.mxu3  ;;  %v5321_v51 = vadd.f32 %v5320_v46, %v13607_v52 }
 0x6af   : > { %v5273_v57 = vpop.f32.mrf.mxu1  ;;  %v5370_v45 = vadd.f32 %v5369_v41, %v13610_v29  ;;  %v9970_v41 = vor.u32 %v10737_v23, %v9969_v20 }
 0x6b0   : > { %v5274_v19 = vadd.f32 %v5273_v57, %v13595_v28  ;;  %v5420_v12 = vpop.f32.mrf.mxu0  ;;  %v5805_v49 = vmul.f32 0.2, %v5321_v51  ;;  %vm5677_vm10 = vcmp.gt.f32.partialorder %v5321_v51, 0.0  ;;  %v10034_v57 = vor.u32 %v10753_v14, %v10033_v39 }
 0x6b1   : > { %v5421_v18 = vadd.f32 %v5420_v12, %v13598_v8  ;;  %v5806_v27 = vmul.f32 0.2, %v5370_v45  ;;  %vm5678_vm11 = vcmp.gt.f32.partialorder %v5370_v45, 0.0  ;;  %6920 = vmatpush.bf16.msra.mxu2 %v9970_v41  ;;  %v10025_v41 = vld [vmem:[#allocation20 + $0x110] sm:$0xf] }
 0x6b2   : > { %vm5684_vm8 = vcmp.gt.f32.partialorder %v5274_v19, 0.0  ;;  %v5812_v53 = vmul.f32 0.2, %v5274_v19  ;;  %v5933_v48 = vsel %vm5677_vm10, %v5321_v51, %v5805_v49  ;;  %6969 = vmatpush.bf16.msra.mxu3 %v10034_v57  ;;  %v9905_v51 = vld [vmem:[#allocation20 + $0x20] sm:$0xf] }
 0x6b3   : > { %vm5687_vm9 = vcmp.gt.f32.partialorder %v5421_v18, 0.0  ;;  %v5815_v58 = vmul.f32 0.2, %v5421_v18  ;;  %v5934_v7 = vsel %vm5678_vm11, %v5370_v45, %v5806_v27  ;;  %v10721_v45 = vld [vmem:[#allocation20 + $0x24] sm:$0xf0] }
 0x6b4   : > { %v5940_v50 = vsel %vm5684_vm8, %v5274_v19, %v5812_v53  ;;  %v9906_v55 = vor.u32 %v10721_v45, %v9905_v51  ;;  %v10751_v57 = vld [vmem:[#allocation20 + $0x114] sm:$0xf0] }
 0x6b5   : > { %v5322_v43 = vpop.f32.mrf.mxu2  ;;  %v13657_v36 = vpack.c.bf16 %v5940_v50, %v5932_v1  ;;  %v5943_v24 = vsel %vm5687_vm9, %v5421_v18, %v5815_v58  ;;  %v10769_v1 = vld [vmem:[#allocation20 + $0x1a4] sm:$0xf0] }
 0x6b6   : > { %v5323_v35 = vadd.f32 %v5322_v43, %v13607_v52  ;;  %v5371_v25 = vpop.f32.mrf.mxu3  ;;  %v13661_v15 = vpack.c.bf16 %v5943_v24, %v5935_v16  ;;  %6871 = vmatpush.bf16.msra.mxu1 %v9906_v55  ;;  %v10098_v16 = vor.u32 %v10769_v1, %v10097_v31  ;;  %v10719_v31 = vld [vmem:[#allocation20 + $0x14] sm:$0xf0] }
 0x6b7   : > { %14805 = vst [vmem:[#allocation66_spill] sm:$0xff] %v13657_v36  ;;  %v5372_v63 = vadd.f32 %v5371_v25, %v13610_v29  ;;  %v5276_v37 = vpop.f32.mrf.mxu1 }
 0x6b8   : > { %14806 = vst [vmem:[#allocation65_spill] sm:$0xff] %v13661_v15  ;;  %vm5685_vm12 = vcmp.gt.f32.partialorder %v5323_v35, 0.0  ;;  %v5813_v10 = vmul.f32 0.2, %v5323_v35  ;;  %v5423_v44 = vpop.f32.mrf.mxu0  ;;  %v5277_v3 = vadd.f32 %v5276_v37, %v13595_v28  ;;  %7018 = vmatpush.bf16.msra.mxu0 %v10098_v16  ;;  %v10767_v16 = vld [vmem:[#allocation20 + $0x194] sm:$0xf0] }
 0x6b9   : > { %vm5686_vm13 = vcmp.gt.f32.partialorder %v5372_v63, 0.0  ;;  %v5814_v30 = vmul.f32 0.2, %v5372_v63  ;;  %v5424_v17 = vadd.f32 %v5423_v44, %v13598_v8 }
 0x6ba   : > { %5471 = vmatmul.bf16.gmra.mxu1 %v13554_v47  ;;  %5520 = vmatmul.bf16.gmra.mxu2 %v13554_v47  ;;  %v5941_v33 = vsel %vm5685_vm12, %v5323_v35, %v5813_v10  ;;  %vm5692_vm14 = vcmp.gt.f32.partialorder %v5277_v3, 0.0 }
 0x6bb   : > { %5569 = vmatmul.bf16.gmra.mxu3 %v13554_v47  ;;  %5618 = vmatmul.bf16.gmra.mxu0 %v13554_v47  ;;  %v13668_v0 = vpack.c.bf16 %v5941_v33, %v5933_v48  ;;  %v5942_v59 = vsel %vm5686_vm13, %v5372_v63, %v5814_v30  ;;  %v5820_v47 = vmul.f32 0.2, %v5277_v3  ;;  %v5823_v18 = vmul.f32 0.2, %v5424_v17 }
 0x6bc   : > { %v13671_v46 = vpack.c.bf16 %v5942_v59, %v5934_v7  ;;  %vm5695_vm15 = vcmp.gt.f32.partialorder %v5424_v17, 0.0 }
 0x6bd   : > { %14807 = vst [vmem:[#allocation43_spill] sm:$0xff] %v13668_v0  ;;  %v5325_v26 = vpop.f32.mrf.mxu2  ;;  %v5948_v50 = vsel %vm5692_vm14, %v5277_v3, %v5820_v47  ;;  %v5951_v49 = vsel %vm5695_vm15, %v5424_v17, %v5823_v18  ;;  %v9961_v3 = vld [vmem:[#allocation20 + $0x90] sm:$0xf] }
 0x6be   : > { %14808 = vst [vmem:[#allocation42_spill] sm:$0xff] %v13671_v46  ;;  %v5374_v34 = vpop.f32.mrf.mxu3  ;;  %v5326_v53 = vadd.f32 %v5325_v26, %v13607_v52  ;;  %v10735_v26 = vld [vmem:[#allocation20 + $0x94] sm:$0xf0] }
 0x6bf   : > { %v5278_v19 = vpop.f32.mrf.mxu1  ;;  %v5375_v58 = vadd.f32 %v5374_v34, %v13610_v29 }
 0x6c0   : > { %v5279_v12 = vadd.f32 %v5278_v19, %v13595_v28  ;;  %v5425_v40 = vpop.f32.mrf.mxu0  ;;  %v5821_v25 = vmul.f32 0.2, %v5326_v53  ;;  %vm5693_vm4 = vcmp.gt.f32.partialorder %v5326_v53, 0.0 }
 0x6c1   : > { %v5426_v42 = vadd.f32 %v5425_v40, %v13598_v8  ;;  %v5822_v10 = vmul.f32 0.2, %v5375_v58  ;;  %vm5694_vm5 = vcmp.gt.f32.partialorder %v5375_v58, 0.0  ;;  %v10026_v40 = vor.u32 %v10751_v57, %v10025_v41  ;;  %v9953_v57 = vld [vmem:[#allocation20 + $0x80] sm:$0xf] }
 0x6c2   : > { %vm5700_vm0 = vcmp.gt.f32.partialorder %v5279_v12, 0.0  ;;  %v5828_v11 = vmul.f32 0.2, %v5279_v12  ;;  %v5949_v7 = vsel %vm5693_vm4, %v5326_v53, %v5821_v25 }
 0x6c3   : > { %vm5703_vm1 = vcmp.gt.f32.partialorder %v5426_v42, 0.0  ;;  %v5831_v32 = vmul.f32 0.2, %v5426_v42  ;;  %v5950_v39 = vsel %vm5694_vm5, %v5375_v58, %v5822_v10  ;;  %6970 = vmatpush.bf16.msra.mxu3 %v10026_v40  ;;  %v9897_v58 = vld [vmem:[#allocation20 + $0x10] sm:$0xf] }
 0x6c4   : > { %v5956_v43 = vsel %vm5700_vm0, %v5279_v12, %v5828_v11  ;;  %v9962_v12 = vor.u32 %v10735_v26, %v9961_v3 }
 0x6c5   : > { %v5327_v62 = vpop.f32.mrf.mxu2  ;;  %v13678_v24 = vpack.c.bf16 %v5956_v43, %v5948_v50  ;;  %v5959_v35 = vsel %vm5703_vm1, %v5426_v42, %v5831_v32  ;;  %v9898_v43 = vor.u32 %v10719_v31, %v9897_v58 }
 0x6c6   : > { %v5328_v27 = vadd.f32 %v5327_v62, %v13607_v52  ;;  %v5376_v63 = vpop.f32.mrf.mxu3  ;;  %v13682_v37 = vpack.c.bf16 %v5959_v35, %v5951_v49  ;;  %6921 = vmatpush.bf16.msra.mxu2 %v9962_v12  ;;  %v10089_v62 = vld [vmem:[#allocation20 + $0x190] sm:$0xf] }
 0x6c7   : > { %14809 = vst [vmem:[#allocation68_spill] sm:$0xff] %v13678_v24  ;;  %v5377_v44 = vadd.f32 %v5376_v63, %v13610_v29  ;;  %v5281_v30 = vpop.f32.mrf.mxu1  ;;  %6872 = vmatpush.bf16.msra.mxu1 %v9898_v43 }
 0x6c8   : > { %14810 = vst [vmem:[#allocation67_spill] sm:$0xff] %v13682_v37  ;;  %vm5701_vm6 = vcmp.gt.f32.partialorder %v5328_v27, 0.0  ;;  %v5829_v48 = vmul.f32 0.2, %v5328_v27  ;;  %v5428_v33 = vpop.f32.mrf.mxu0  ;;  %v5282_v17 = vadd.f32 %v5281_v30, %v13595_v28 }
 0x6c9   : > { %vm5702_vm3 = vcmp.gt.f32.partialorder %v5377_v44, 0.0  ;;  %v5830_v20 = vmul.f32 0.2, %v5377_v44  ;;  %v5429_v19 = vadd.f32 %v5428_v33, %v13598_v8 }
 0x6ca   : > { %5476 = vmatmul.bf16.gmra.mxu1 %v13562_v56  ;;  %5525 = vmatmul.bf16.gmra.mxu2 %v13562_v56  ;;  %v5957_v59 = vsel %vm5701_vm6, %v5328_v27, %v5829_v48  ;;  %vm5708_vm2 = vcmp.gt.f32.partialorder %v5282_v17, 0.0  ;;  %v10090_v27 = vor.u32 %v10767_v16, %v10089_v62  ;;  %v9889_v62 = vld [vmem:[#allocation20] sm:$0xf] }
 0x6cb   : > { %5574 = vmatmul.bf16.gmra.mxu3 %v13562_v56  ;;  %5623 = vmatmul.bf16.gmra.mxu0 %v13562_v56  ;;  %v13689_v23 = vpack.c.bf16 %v5957_v59, %v5949_v7  ;;  %v5958_v14 = vsel %vm5702_vm3, %v5377_v44, %v5830_v20  ;;  %v5836_v56 = vmul.f32 0.2, %v5282_v17  ;;  %v5839_v11 = vmul.f32 0.2, %v5429_v19 }
 0x6cc   : > { %v13692_v34 = vpack.c.bf16 %v5958_v14, %v5950_v39  ;;  %vm5711_vm7 = vcmp.gt.f32.partialorder %v5429_v19, 0.0  ;;  %7019 = vmatpush.bf16.msra.mxu0 %v10090_v27 }
 0x6cd   : > { %14811 = vst [vmem:[#allocation70_spill] sm:$0xff] %v13689_v23  ;;  %v5330_v47 = vpop.f32.mrf.mxu2  ;;  %v5964_v49 = vsel %vm5708_vm2, %v5282_v17, %v5836_v56  ;;  %v5967_v10 = vsel %vm5711_vm7, %v5429_v19, %v5839_v11  ;;  %v10749_v56 = vld [vmem:[#allocation20 + $0x104] sm:$0xf0] }
 0x6ce   : > { %14812 = vst [vmem:[#allocation69_spill] sm:$0xff] %v13692_v34  ;;  %v5379_v18 = vpop.f32.mrf.mxu3  ;;  %v5331_v32 = vadd.f32 %v5330_v47, %v13607_v52 }
 0x6cf   : > { %v5283_v42 = vpop.f32.mrf.mxu1  ;;  %v5380_v1 = vadd.f32 %v5379_v18, %v13610_v29  ;;  %v10733_v18 = vld [vmem:[#allocation20 + $0x84] sm:$0xf0] }
 0x6d0   : > { %v5284_v51 = vadd.f32 %v5283_v42, %v13595_v28  ;;  %v5430_v53 = vpop.f32.mrf.mxu0  ;;  %v5837_v30 = vmul.f32 0.2, %v5331_v32  ;;  %vm5709_vm10 = vcmp.gt.f32.partialorder %v5331_v32, 0.0  ;;  %v10017_v42 = vld [vmem:[#allocation20 + $0x100] sm:$0xf] }
 0x6d1   : > { %v5431_v45 = vadd.f32 %v5430_v53, %v13598_v8  ;;  %v5838_v7 = vmul.f32 0.2, %v5380_v1  ;;  %vm5710_vm11 = vcmp.gt.f32.partialorder %v5380_v1, 0.0  ;;  %v10018_v58 = vor.u32 %v10749_v56, %v10017_v42 }
 0x6d2   : > { %vm5716_vm8 = vcmp.gt.f32.partialorder %v5284_v51, 0.0  ;;  %v5844_v55 = vmul.f32 0.2, %v5284_v51  ;;  %v5965_v26 = vsel %vm5709_vm10, %v5331_v32, %v5837_v30  ;;  %v10765_v30 = vld [vmem:[#allocation20 + $0x184] sm:$0xf0] }
 0x6d3   : > { %vm5719_vm9 = vcmp.gt.f32.partialorder %v5431_v45, 0.0  ;;  %v5847_v50 = vmul.f32 0.2, %v5431_v45  ;;  %v5966_v47 = vsel %vm5710_vm11, %v5380_v1, %v5838_v7  ;;  %6971 = vmatpush.bf16.msra.mxu3 %v10018_v58 }
 0x6d4   : > { %v5972_v35 = vsel %vm5716_vm8, %v5284_v51, %v5844_v55 }
 0x6d5   : > { %v5332_v25 = vpop.f32.mrf.mxu2  ;;  %v13699_v63 = vpack.c.bf16 %v5972_v35, %v5964_v49  ;;  %v5975_v44 = vsel %vm5719_vm9, %v5431_v45, %v5847_v50  ;;  %v9954_v45 = vor.u32 %v10733_v18, %v9953_v57  ;;  %v10717_v35 = vld [vmem:[#allocation20 + $0x4] sm:$0xf0] }
 0x6d6   : > { %v5333_v48 = vadd.f32 %v5332_v25, %v13607_v52  ;;  %v5381_v33 = vpop.f32.mrf.mxu3  ;;  %v13703_v20 = vpack.c.bf16 %v5975_v44, %v5967_v10  ;;  %v9890_v10 = vor.u32 %v10717_v35, %v9889_v62  ;;  %v10081_v44 = vld [vmem:[#allocation20 + $0x180] sm:$0xf]  ;;  %v10329_v62 = vld [vmem:[#allocation20 + $0x370] sm:$0xf]  ;;  %v10827_v35 = vld [vmem:[#allocation20 + $0x374] sm:$0xf0] }
 0x6d7   : > { %14813 = vst [vmem:[#allocation45_spill] sm:$0xff] %v13699_v63  ;;  %v5382_v59 = vadd.f32 %v5381_v33, %v13610_v29  ;;  %v5286_v3 = vpop.f32.mrf.mxu1  ;;  %6922 = vmatpush.bf16.msra.mxu2 %v9954_v45 }
 0x6d8   : > { %14814 = vst [vmem:[#allocation44_spill] sm:$0xff] %v13703_v20  ;;  %vm5717_vm12 = vcmp.gt.f32.partialorder %v5333_v48, 0.0  ;;  %v5845_v39 = vmul.f32 0.2, %v5333_v48  ;;  %v5433_v14 = vpop.f32.mrf.mxu0  ;;  %v5287_v40 = vadd.f32 %v5286_v3, %v13595_v28  ;;  %6873 = vmatpush.bf16.msra.mxu1 %v9890_v10  ;;  %v10330_v10 = vor.u32 %v10827_v35, %v10329_v62 }
 0x6d9   : > { %vm5718_vm13 = vcmp.gt.f32.partialorder %v5382_v59, 0.0  ;;  %v5846_v17 = vmul.f32 0.2, %v5382_v59  ;;  %v5434_v53 = vadd.f32 %v5433_v14, %v13598_v8 }
 0x6da   : > { %5481 = vmatmul.bf16.gmra.mxu1 %v13570_v2  ;;  %5530 = vmatmul.bf16.gmra.mxu2 %v13570_v2  ;;  %v5973_v41 = vsel %vm5717_vm12, %v5333_v48, %v5845_v39  ;;  %vm5724_vm14 = vcmp.gt.f32.partialorder %v5287_v40, 0.0 }
 0x6db   : > { %5579 = vmatmul.bf16.gmra.mxu3 %v13570_v2  ;;  %5628 = vmatmul.bf16.gmra.mxu0 %v13570_v2  ;;  %v13710_v19 = vpack.c.bf16 %v5973_v41, %v5965_v26  ;;  %v5974_v12 = vsel %vm5718_vm13, %v5382_v59, %v5846_v17  ;;  %v5852_v2 = vmul.f32 0.2, %v5287_v40  ;;  %v5855_v50 = vmul.f32 0.2, %v5434_v53 }
 0x6dc   : > { %v13713_v51 = vpack.c.bf16 %v5974_v12, %v5966_v47  ;;  %vm5727_vm15 = vcmp.gt.f32.partialorder %v5434_v53, 0.0  ;;  %v10082_v59 = vor.u32 %v10765_v30, %v10081_v44  ;;  %7160 = vmatpush.bf16.msrb.mxu3 %v10330_v10 }
 0x6dd   : > { %14815 = vst [vmem:[#allocation72_spill] sm:$0xff] %v13710_v19  ;;  %v5335_v11 = vpop.f32.mrf.mxu2  ;;  %v5980_v48 = vsel %vm5724_vm14, %v5287_v40, %v5852_v2  ;;  %v5983_v39 = vsel %vm5727_vm15, %v5434_v53, %v5855_v50  ;;  %v10265_v50 = vld [vmem:[#allocation20 + $0x2f0] sm:$0xf] }
 0x6de   : > { %14816 = vst [vmem:[#allocation71_spill] sm:$0xff] %v13713_v51  ;;  %v5384_v32 = vpop.f32.mrf.mxu3  ;;  %v5336_v16 = vadd.f32 %v5335_v11, %v13607_v52  ;;  %7020 = vmatpush.bf16.msra.mxu0 %v10082_v59 }
 0x6df   : > { %v5288_v55 = vpop.f32.mrf.mxu1  ;;  %v5385_v25 = vadd.f32 %v5384_v32, %v13610_v29 }
 0x6e0   : > { %v5289_v31 = vadd.f32 %v5288_v55, %v13595_v28  ;;  %v5435_v1 = vpop.f32.mrf.mxu0  ;;  %v5853_v17 = vmul.f32 0.2, %v5336_v16  ;;  %vm5725_vm4 = vcmp.gt.f32.partialorder %v5336_v16, 0.0 }
 0x6e1   : > { %v5436_v43 = vadd.f32 %v5435_v1, %v13598_v8  ;;  %v5854_v47 = vmul.f32 0.2, %v5385_v25  ;;  %vm5726_vm5 = vcmp.gt.f32.partialorder %v5385_v25, 0.0 }
 0x6e2   : > { %vm5732_vm0 = vcmp.gt.f32.partialorder %v5289_v31, 0.0  ;;  %v5860_v49 = vmul.f32 0.2, %v5289_v31  ;;  %v5981_v53 = vsel %vm5725_vm4, %v5336_v16, %v5853_v17  ;;  %v10795_v17 = vld [vmem:[#allocation20 + $0x274] sm:$0xf0] }
 0x6e3   : > { %vm5735_vm1 = vcmp.gt.f32.partialorder %v5436_v43, 0.0  ;;  %v5863_v27 = vmul.f32 0.2, %v5436_v43  ;;  %v5982_v58 = vsel %vm5726_vm5, %v5385_v25, %v5854_v47 }
 0x6e4   : > { %v5988_v33 = vsel %vm5732_vm0, %v5289_v31, %v5860_v49 }
 0x6e5   : > { %v5337_v7 = vpop.f32.mrf.mxu2  ;;  %v13720_v3 = vpack.c.bf16 %v5988_v33, %v5980_v48  ;;  %v5991_v14 = vsel %vm5735_vm1, %v5436_v43, %v5863_v27  ;;  %v10811_v43 = vld [vmem:[#allocation20 + $0x2f4] sm:$0xf0] }
 0x6e6   : > { %v5338_v26 = vadd.f32 %v5337_v7, %v13607_v52  ;;  %v5386_v41 = vpop.f32.mrf.mxu3  ;;  %v13724_v57 = vpack.c.bf16 %v5991_v14, %v5983_v39  ;;  %v10266_v49 = vor.u32 %v10811_v43, %v10265_v50  ;;  %v10201_v14 = vld [vmem:[#allocation20 + $0x270] sm:$0xf] }
 0x6e7   : > { %14817 = vst [vmem:[#allocation74_spill] sm:$0xff] %v13720_v3  ;;  %v5387_v12 = vadd.f32 %v5386_v41, %v13610_v29  ;;  %v5291_v40 = vpop.f32.mrf.mxu1 }
 0x6e8   : > { %14818 = vst [vmem:[#allocation73_spill] sm:$0xff] %v13724_v57  ;;  %vm5733_vm6 = vcmp.gt.f32.partialorder %v5338_v26, 0.0  ;;  %v5861_v18 = vmul.f32 0.2, %v5338_v26  ;;  %v5438_v42 = vpop.f32.mrf.mxu0  ;;  %v5292_v55 = vadd.f32 %v5291_v40, %v13595_v28  ;;  %7111 = vmatpush.bf16.msrb.mxu2 %v10266_v49 }
 0x6e9   : > { %vm5734_vm3 = vcmp.gt.f32.partialorder %v5387_v12, 0.0  ;;  %v5862_v56 = vmul.f32 0.2, %v5387_v12  ;;  %v5439_v31 = vadd.f32 %v5438_v42, %v13598_v8 }
 0x6ea   : > { %5486 = vmatmul.bf16.gmra.mxu1 %v13578_v54  ;;  %5535 = vmatmul.bf16.gmra.mxu2 %v13578_v54  ;;  %v5989_v11 = vsel %vm5733_vm6, %v5338_v26, %v5861_v18  ;;  %vm5740_vm2 = vcmp.gt.f32.partialorder %v5292_v55, 0.0 }
 0x6eb   : > { %5584 = vmatmul.bf16.gmra.mxu3 %v13578_v54  ;;  %5633 = vmatmul.bf16.gmra.mxu0 %v13578_v54  ;;  %v13731_v45 = vpack.c.bf16 %v5989_v11, %v5981_v53  ;;  %v5990_v32 = vsel %vm5734_vm3, %v5387_v12, %v5862_v56  ;;  %v5868_v54 = vmul.f32 0.2, %v5292_v55  ;;  %v5871_v30 = vmul.f32 0.2, %v5439_v31 }
 0x6ec   : > { %v13734_v2 = vpack.c.bf16 %v5990_v32, %v5982_v58  ;;  %vm5743_vm7 = vcmp.gt.f32.partialorder %v5439_v31, 0.0  ;;  %v10202_v12 = vor.u32 %v10795_v17, %v10201_v14  ;;  %v10393_v58 = vld [vmem:[#allocation20 + $0x3f0] sm:$0xf]  ;;  %v10843_v32 = vld [vmem:[#allocation20 + $0x3f4] sm:$0xf0] }
 0x6ed   : > { %14819 = vst [vmem:[#allocation49_spill] sm:$0xff] %v13731_v45  ;;  %v5340_v1 = vpop.f32.mrf.mxu2  ;;  %v5996_v26 = vsel %vm5740_vm2, %v5292_v55, %v5868_v54  ;;  %v5999_v18 = vsel %vm5743_vm7, %v5439_v31, %v5871_v30  ;;  %v10394_v62 = vor.u32 %v10843_v32, %v10393_v58  ;;  %v10257_v30 = vld [vmem:[#allocation20 + $0x2e0] sm:$0xf]  ;;  %v10793_v32 = vld [vmem:[#allocation20 + $0x264] sm:$0xf0] }
 0x6ee   : > { %14820 = vst [vmem:[#allocation48_spill] sm:$0xff] %v13734_v2  ;;  %v5389_v16 = vpop.f32.mrf.mxu3  ;;  %v5341_v33 = vadd.f32 %v5340_v1, %v13607_v52  ;;  %7062 = vmatpush.bf16.msrb.mxu1 %v10202_v12 }
 0x6ef   : > { %v5293_v27 = vpop.f32.mrf.mxu1  ;;  %v5390_v59 = vadd.f32 %v5389_v16, %v13610_v29  ;;  %7209 = vmatpush.bf16.msrb.mxu0 %v10394_v62  ;;  %v10385_v62 = vld [vmem:[#allocation20 + $0x3e0] sm:$0xf] }
 0x6f0   : > { %v5294_v44 = vadd.f32 %v5293_v27, %v13595_v28  ;;  %v5440_v25 = vpop.f32.mrf.mxu0  ;;  %v5869_v56 = vmul.f32 0.2, %v5341_v33  ;;  %vm5741_vm10 = vcmp.gt.f32.partialorder %v5341_v33, 0.0 }
 0x6f1   : > { %v5441_v48 = vadd.f32 %v5440_v25, %v13598_v8  ;;  %v5870_v50 = vmul.f32 0.2, %v5390_v59  ;;  %vm5742_vm11 = vcmp.gt.f32.partialorder %v5390_v59, 0.0 }
 0x6f2   : > { %vm5748_vm8 = vcmp.gt.f32.partialorder %v5294_v44, 0.0  ;;  %v5876_v7 = vmul.f32 0.2, %v5294_v44  ;;  %v5997_v35 = vsel %vm5741_vm10, %v5341_v33, %v5869_v56 }
 0x6f3   : > { %vm5751_vm9 = vcmp.gt.f32.partialorder %v5441_v48, 0.0  ;;  %v5879_v39 = vmul.f32 0.2, %v5441_v48  ;;  %v5998_v54 = vsel %vm5742_vm11, %v5390_v59, %v5870_v50 }
 0x6f4   : > { %v6004_v41 = vsel %vm5748_vm8, %v5294_v44, %v5876_v7  ;;  %v10321_v7 = vld [vmem:[#allocation20 + $0x360] sm:$0xf] }
 0x6f5   : > { %v5342_v47 = vpop.f32.mrf.mxu2  ;;  %v13741_v40 = vpack.c.bf16 %v6004_v41, %v5996_v26  ;;  %v6007_v42 = vsel %vm5751_vm9, %v5441_v48, %v5879_v39  ;;  %v10809_v48 = vld [vmem:[#allocation20 + $0x2e4] sm:$0xf0] }
 0x6f6   : > { %v5343_v53 = vadd.f32 %v5342_v47, %v13607_v52  ;;  %v5391_v11 = vpop.f32.mrf.mxu3  ;;  %v13744_v1 = vpack.c.bf16 %v6007_v42, %v5999_v18  ;;  %v10258_v33 = vor.u32 %v10809_v48, %v10257_v30  ;;  %v10825_v26 = vld [vmem:[#allocation20 + $0x364] sm:$0xf0] }
 0x6f7   : > { %14821 = vst [vmem:[#allocation76_spill] sm:$0xff] %v13741_v40  ;;  %v5392_v43 = vadd.f32 %v5391_v11, %v13610_v29  ;;  %v5296_v55 = vpop.f32.mrf.mxu1  ;;  %v10322_v47 = vor.u32 %v10825_v26, %v10321_v7 }
 0x6f8   : > { %14822 = vst [vmem:[#allocation75_spill] sm:$0xff] %v13744_v1  ;;  %vm5749_vm12 = vcmp.gt.f32.partialorder %v5343_v53, 0.0  ;;  %v5877_v16 = vmul.f32 0.2, %v5343_v53  ;;  %v5443_v31 = vpop.f32.mrf.mxu0  ;;  %v5297_v25 = vadd.f32 %v5296_v55, %v13595_v28  ;;  %7112 = vmatpush.bf16.msrb.mxu2 %v10258_v33 }
 0x6f9   : > { %vm5750_vm13 = vcmp.gt.f32.partialorder %v5392_v43, 0.0  ;;  %v5878_v49 = vmul.f32 0.2, %v5392_v43  ;;  %v5444_v14 = vadd.f32 %v5443_v31, %v13598_v8  ;;  %7161 = vmatpush.bf16.msrb.mxu3 %v10322_v47 }
 0x6fa   : > { %5491 = vmatmul.bf16.gmra.mxu1 %v13586_v6  ;;  %5540 = vmatmul.bf16.gmra.mxu2 %v13586_v6  ;;  %v6005_v27 = vsel %vm5749_vm12, %v5343_v53, %v5877_v16  ;;  %vm5756_vm14 = vcmp.gt.f32.partialorder %v5297_v25, 0.0  ;;  %v10193_v53 = vld [vmem:[#allocation20 + $0x260] sm:$0xf] }
 0x6fb   : > { %5589 = vmatmul.bf16.gmra.mxu3 %v13586_v6  ;;  %5638 = vmatmul.bf16.gmra.mxu0 %v13586_v6  ;;  %v13751_v10 = vpack.c.bf16 %v6005_v27, %v5997_v35  ;;  %v6006_v44 = vsel %vm5750_vm13, %v5392_v43, %v5878_v49  ;;  %v5884_v6 = vmul.f32 0.2, %v5297_v25  ;;  %v5887_v42 = vmul.f32 0.2, %v5444_v14 }
 0x6fc   : > { %v13754_v39 = vpack.c.bf16 %v6006_v44, %v5998_v54  ;;  %vm5759_vm15 = vcmp.gt.f32.partialorder %v5444_v14, 0.0  ;;  %v10194_v55 = vor.u32 %v10793_v32, %v10193_v53  ;;  %v10807_v53 = vld [vmem:[#allocation20 + $0x2d4] sm:$0xf0] }
 0x6fd   : > { %v5345_v17 = vpop.f32.mrf.mxu2  ;;  %v6012_v16 = vsel %vm5756_vm14, %v5297_v25, %v5884_v6  ;;  %v6015_v27 = vsel %vm5759_vm15, %v5444_v14, %v5887_v42  ;;  %v10823_v32 = vld [vmem:[#allocation20 + $0x354] sm:$0xf0] }
 0x6fe   : > { %14823 = vst [vmem:[#allocation78_spill] sm:$0xff] %v13754_v39  ;;  %v5394_v41 = vpop.f32.mrf.mxu3  ;;  %v5346_v11 = vadd.f32 %v5345_v17, %v13607_v52  ;;  %7063 = vmatpush.bf16.msrb.mxu1 %v10194_v55 }
 0x6ff   : > { %v5298_v12 = vpop.f32.mrf.mxu1  ;;  %v5395_v50 = vadd.f32 %v5394_v41, %v13610_v29  ;;  %v13769_v41 = vperm.slane %v13592_v13, 4 }
 0x700   : > { %v5299_v59 = vadd.f32 %v5298_v12, %v13595_v28  ;;  %v5445_v18 = vpop.f32.mrf.mxu0  ;;  %v10841_v28 = vld [vmem:[#allocation20 + $0x3e4] sm:$0xf0]  ;;  %v5885_v44 = vmul.f32 0.2, %v5346_v11  ;;  %vm5757_vm4 = vcmp.gt.f32.partialorder %v5346_v11, 0.0  ;;  %v11215_v12 = vld [vmem:[#allocation19] sm:$0xff] }
 0x701   : > { %v5446_v56 = vadd.f32 %v5445_v18, %v13598_v8  ;;  %v10386_v35 = vor.u32 %v10841_v28, %v10385_v62  ;;  %v5886_v17 = vmul.f32 0.2, %v5395_v50  ;;  %vm5758_vm5 = vcmp.gt.f32.partialorder %v5395_v50, 0.0 }
 0x702   : > { %vm5764_vm0 = vcmp.gt.f32.partialorder %v5299_v59, 0.0  ;;  %v5892_v58 = vmul.f32 0.2, %v5299_v59 }
 0x703   : > { %vm5767_vm1 = vcmp.gt.f32.partialorder %v5446_v56, 0.0  ;;  %v5895_v43 = vmul.f32 0.2, %v5446_v56  ;;  %7210 = vmatpush.bf16.msrb.mxu0 %v10386_v35  ;;  %v6014_v18 = vsel %vm5758_vm5, %v5395_v50, %v5886_v17 }
 0x704   : > { %v6020_v31 = vsel %vm5764_vm0, %v5299_v59, %v5892_v58  ;;  %v10249_v59 = vld [vmem:[#allocation20 + $0x2d0] sm:$0xf] }
 0x705   : > { %v5347_v49 = vpop.f32.mrf.mxu2  ;;  %v13761_v8 = vpack.c.bf16 %v6020_v31, %v6012_v16  ;;  %v6023_v54 = vsel %vm5767_vm1, %v5446_v56, %v5895_v43  ;;  %v10313_v58 = vld [vmem:[#allocation20 + $0x350] sm:$0xf]  ;;  %v10250_v62 = vor.u32 %v10807_v53, %v10249_v59  ;;  %v13785_v16 = vperm.slane %v11215_v12, 5  ;;  %v10839_v59 = vld [vmem:[#allocation20 + $0x3d4] sm:$0xf0] }
 0x706   : > { %v5348_v30 = vadd.f32 %v5347_v49, %v13607_v52  ;;  %v5396_v48 = vpop.f32.mrf.mxu3  ;;  %v13765_v7 = vpack.c.bf16 %v6023_v54, %v6015_v27  ;;  %v13771_v52 = vperm.slane %v11215_v12, 7  ;;  %v10314_v28 = vor.u32 %v10823_v32, %v10313_v58 }
 0x707   : > { %v5397_v33 = vadd.f32 %v5396_v48, %v13610_v29  ;;  %v5457_v25 = vpop.f32.mrf.mxu1  ;;  %v6013_v29 = vsel %vm5757_vm4, %v5346_v11, %v5885_v44  ;;  %v13787_v49 = vperm.slane %v11215_v12, 6  ;;  %7113 = vmatpush.bf16.msrb.mxu2 %v10250_v62  ;;  %v10185_v48 = vld [vmem:[#allocation20 + $0x250] sm:$0xf] }
 0x708   : > { %14824 = vst [vmem:[#allocation77_spill] sm:$0xff] %v13765_v7  ;;  %vm5765_vm6 = vcmp.gt.f32.partialorder %v5348_v30, 0.0  ;;  %v5893_v26 = vmul.f32 0.2, %v5348_v30  ;;  %v5604_v14 = vpop.f32.mrf.mxu0  ;;  %v5458_v56 = vadd.f32 %v5457_v25, %v13769_v41  ;;  %7162 = vmatpush.bf16.msrb.mxu3 %v10314_v28  ;;  %v10791_v25 = vld [vmem:[#allocation20 + $0x254] sm:$0xf0] }
 0x709   : > { %vm5766_vm3 = vcmp.gt.f32.partialorder %v5397_v33, 0.0  ;;  %v5894_v47 = vmul.f32 0.2, %v5397_v33  ;;  %v5605_v11 = vadd.f32 %v5604_v14, %v13771_v52  ;;  %v10377_v12 = vld [vmem:[#allocation20 + $0x3d0] sm:$0xf] }
 0x70a   : > { %6874 = vmatmul.bf16.vlgmr.msra.gmra.mxu1 %v13616_v61  ;;  %6923 = vmatmul.bf16.vlgmr.msra.gmra.mxu2 %v13624_v38  ;;  %v6021_v6 = vsel %vm5765_vm6, %v5348_v30, %v5893_v26  ;;  %v5776_v50 = vmul.f32 0.2, %v5458_v56  ;;  %vm5648_vm2 = vcmp.gt.f32.partialorder %v5458_v56, 0.0  ;;  %v10378_v32 = vor.u32 %v10839_v59, %v10377_v12 }
 0x70b   : > { %6972 = vmatmul.bf16.vlgmr.msra.gmra.mxu3 %v13628_v9  ;;  %7021 = vmatmul.bf16.vlgmr.msra.gmra.mxu0 %v13618_v21  ;;  %v13778_v13 = vpack.c.bf16 %v6021_v6, %v6013_v29  ;;  %v6022_v42 = vsel %vm5766_vm3, %v5397_v33, %v5894_v47  ;;  %v5779_v44 = vmul.f32 0.2, %v5605_v11  ;;  %vm5651_vm7 = vcmp.gt.f32.partialorder %v5605_v11, 0.0 }
 0x70c   : > { %v13782_v43 = vpack.c.bf16 %v6022_v42, %v6014_v18  ;;  %v10186_v47 = vor.u32 %v10791_v25, %v10185_v48  ;;  %v5904_v29 = vsel %vm5648_vm2, %v5458_v56, %v5776_v50  ;;  %7211 = vmatpush.bf16.msrb.mxu0 %v10378_v32 }
 0x70d   : > { %v5506_v55 = vpop.f32.mrf.mxu2  ;;  %v5907_v18 = vsel %vm5651_vm7, %v5605_v11, %v5779_v44 }
 0x70e   : > { %14825 = vst [vmem:[#allocation53_spill] sm:$0xff] %v13782_v43  ;;  %v5555_v31 = vpop.f32.mrf.mxu3  ;;  %v5507_v17 = vadd.f32 %v5506_v55, %v13785_v16  ;;  %7064 = vmatpush.bf16.msrb.mxu1 %v10186_v47 }
 0x70f   : > { %v5459_v35 = vpop.f32.mrf.mxu1  ;;  %v5556_v26 = vadd.f32 %v5555_v31, %v13787_v49 }
 0x710   : > { %v5460_v27 = vadd.f32 %v5459_v35, %v13769_v41  ;;  %v5606_v54 = vpop.f32.mrf.mxu0  ;;  %v5777_v55 = vmul.f32 0.2, %v5507_v17  ;;  %vm5649_vm10 = vcmp.gt.f32.partialorder %v5507_v17, 0.0 }
 0x711   : > { %v5607_v30 = vadd.f32 %v5606_v54, %v13771_v52  ;;  %v5778_v35 = vmul.f32 0.2, %v5556_v26  ;;  %vm5650_vm11 = vcmp.gt.f32.partialorder %v5556_v26, 0.0 }
 0x712   : > { %vm5656_vm8 = vcmp.gt.f32.partialorder %v5460_v27, 0.0  ;;  %v5784_v33 = vmul.f32 0.2, %v5460_v27  ;;  %v5905_v44 = vsel %vm5649_vm10, %v5507_v17, %v5777_v55  ;;  %v10305_v17 = vld [vmem:[#allocation20 + $0x340] sm:$0xf] }
 0x713   : > { %vm5659_vm9 = vcmp.gt.f32.partialorder %v5607_v30, 0.0  ;;  %v5787_v14 = vmul.f32 0.2, %v5607_v30  ;;  %v5906_v48 = vsel %vm5650_vm11, %v5556_v26, %v5778_v35 }
 0x714   : > { %v5912_v6 = vsel %vm5656_vm8, %v5460_v27, %v5784_v33 }
 0x715   : > { %v13793_v42 = vpack.c.bf16 %v5912_v6, %v5904_v29  ;;  %v5915_v53 = vsel %vm5659_vm9, %v5607_v30, %v5787_v14  ;;  %v5508_v58 = vpop.f32.mrf.mxu2  ;;  %v10241_v14 = vld [vmem:[#allocation20 + $0x2c0] sm:$0xf]  ;;  %v10805_v29 = vld [vmem:[#allocation20 + $0x2c4] sm:$0xf0] }
 0x716   : > { %v13795_v62 = vpack.c.bf16 %v5915_v53, %v5907_v18  ;;  %v5509_v28 = vadd.f32 %v5508_v58, %v13785_v16  ;;  %v5557_v31 = vpop.f32.mrf.mxu3  ;;  %v10821_v6 = vld [vmem:[#allocation20 + $0x344] sm:$0xf0]  ;;  %v10242_v53 = vor.u32 %v10805_v29, %v10241_v14 }
 0x717   : > { %v5558_v54 = vadd.f32 %v5557_v31, %v13787_v49  ;;  %v5462_v56 = vpop.f32.mrf.mxu1  ;;  %v10306_v26 = vor.u32 %v10821_v6, %v10305_v17  ;;  %v10837_v14 = vld [vmem:[#allocation20 + $0x3c4] sm:$0xf0] }
 0x718   : > { %14826 = vst [vmem:[#allocation52_spill] sm:$0xff] %v13795_v62  ;;  %vm5657_vm12 = vcmp.gt.f32.partialorder %v5509_v28, 0.0  ;;  %v5785_v11 = vmul.f32 0.2, %v5509_v28  ;;  %v5609_v50 = vpop.f32.mrf.mxu0  ;;  %v5463_v12 = vadd.f32 %v5462_v56, %v13769_v41  ;;  %7114 = vmatpush.bf16.msrb.mxu2 %v10242_v53  ;;  %v10177_v56 = vld [vmem:[#allocation20 + $0x240] sm:$0xf] }
 0x719   : > { %vm5658_vm13 = vcmp.gt.f32.partialorder %v5558_v54, 0.0  ;;  %v5786_v27 = vmul.f32 0.2, %v5558_v54  ;;  %v5610_v59 = vadd.f32 %v5609_v50, %v13771_v52  ;;  %7163 = vmatpush.bf16.msrb.mxu3 %v10306_v26 }
 0x71a   : > { %v5913_v30 = vsel %vm5657_vm12, %v5509_v28, %v5785_v11  ;;  %6879 = vmatmul.bf16.gmra.mxu1 %v13636_v22  ;;  %6928 = vmatmul.bf16.gmra.mxu2 %v13647_v4  ;;  %v5792_v55 = vmul.f32 0.2, %v5463_v12  ;;  %vm5664_vm14 = vcmp.gt.f32.partialorder %v5463_v12, 0.0 }
 0x71b   : > { %v13801_v33 = vpack.c.bf16 %v5913_v30, %v5905_v44  ;;  %v5914_v25 = vsel %vm5658_vm13, %v5558_v54, %v5786_v27  ;;  %6977 = vmatmul.bf16.gmra.mxu3 %v13650_v60  ;;  %7026 = vmatmul.bf16.gmra.mxu0 %v13640_v5  ;;  %v5795_v35 = vmul.f32 0.2, %v5610_v59  ;;  %vm5667_vm15 = vcmp.gt.f32.partialorder %v5610_v59, 0.0  ;;  %v10789_v27 = vld [vmem:[#allocation20 + $0x244] sm:$0xf0] }
 0x71c   : > { %v13805_v47 = vpack.c.bf16 %v5914_v25, %v5906_v48  ;;  %v10178_v48 = vor.u32 %v10789_v27, %v10177_v56  ;;  %v10369_v25 = vld [vmem:[#allocation20 + $0x3c0] sm:$0xf]  ;;  %v5920_v29 = vsel %vm5664_vm14, %v5463_v12, %v5792_v55 }
 0x71d   : > { %v5511_v18 = vpop.f32.mrf.mxu2  ;;  %v10370_v53 = vor.u32 %v10837_v14, %v10369_v25  ;;  %v10803_v14 = vld [vmem:[#allocation20 + $0x2b4] sm:$0xf0] }
 0x71e   : > { %14827 = vst [vmem:[#allocation79_spill] sm:$0xff] %v13805_v47  ;;  %v5560_v58 = vpop.f32.mrf.mxu3  ;;  %v5512_v11 = vadd.f32 %v5511_v18, %v13785_v16  ;;  %7065 = vmatpush.bf16.msrb.mxu1 %v10178_v48 }
 0x71f   : > { %v5464_v32 = vpop.f32.mrf.mxu1  ;;  %v5561_v44 = vadd.f32 %v5560_v58, %v13787_v49  ;;  %7212 = vmatpush.bf16.msrb.mxu0 %v10370_v53 }
 0x720   : > { %v5465_v28 = vadd.f32 %v5464_v32, %v13769_v41  ;;  %v5611_v31 = vpop.f32.mrf.mxu0  ;;  %v5923_v32 = vsel %vm5667_vm15, %v5610_v59, %v5795_v35  ;;  %vm5665_vm4 = vcmp.gt.f32.partialorder %v5512_v11, 0.0 }
 0x721   : > { %v5612_v54 = vadd.f32 %v5611_v31, %v13771_v52  ;;  %v5793_v31 = vmul.f32 0.2, %v5512_v11  ;;  %v5794_v56 = vmul.f32 0.2, %v5561_v44  ;;  %vm5666_vm5 = vcmp.gt.f32.partialorder %v5561_v44, 0.0 }
 0x722   : > { %vm5672_vm0 = vcmp.gt.f32.partialorder %v5465_v28, 0.0  ;;  %v5800_v50 = vmul.f32 0.2, %v5465_v28 }
 0x723   : > { %vm5675_vm1 = vcmp.gt.f32.partialorder %v5612_v54, 0.0  ;;  %v5803_v30 = vmul.f32 0.2, %v5612_v54  ;;  %v5921_v59 = vsel %vm5665_vm4, %v5512_v11, %v5793_v31 }
 0x724   : > { %v5928_v17 = vsel %vm5672_vm0, %v5465_v28, %v5800_v50 }
 0x725   : > { %v5513_v6 = vpop.f32.mrf.mxu2  ;;  %v13813_v26 = vpack.c.bf16 %v5928_v17, %v5920_v29  ;;  %v5931_v18 = vsel %vm5675_vm1, %v5612_v54, %v5803_v30  ;;  %v10233_v54 = vld [vmem:[#allocation20 + $0x2b0] sm:$0xf]  ;;  %v5922_v30 = vsel %vm5666_vm5, %v5561_v44, %v5794_v56  ;;  %v10819_v17 = vld [vmem:[#allocation20 + $0x334] sm:$0xf0] }
 0x726   : > { %v5514_v5 = vadd.f32 %v5513_v6, %v13785_v16  ;;  %v5562_v60 = vpop.f32.mrf.mxu3  ;;  %v13817_v58 = vpack.c.bf16 %v5931_v18, %v5923_v32  ;;  %v10297_v29 = vld [vmem:[#allocation20 + $0x330] sm:$0xf] }
 0x727   : > { %v5563_v27 = vadd.f32 %v5562_v60, %v13787_v49  ;;  %v5467_v12 = vpop.f32.mrf.mxu1  ;;  %v10298_v32 = vor.u32 %v10819_v17, %v10297_v29  ;;  %v10835_v29 = vld [vmem:[#allocation20 + $0x3b4] sm:$0xf0] }
 0x728   : > { %vm5673_vm6 = vcmp.gt.f32.partialorder %v5514_v5, 0.0  ;;  %v5801_v55 = vmul.f32 0.2, %v5514_v5  ;;  %v5614_v28 = vpop.f32.mrf.mxu0  ;;  %v5468_v25 = vadd.f32 %v5467_v12, %v13769_v41 }
 0x729   : > { %vm5674_vm3 = vcmp.gt.f32.partialorder %v5563_v27, 0.0  ;;  %v5802_v50 = vmul.f32 0.2, %v5563_v27  ;;  %v5615_v53 = vadd.f32 %v5614_v28, %v13771_v52  ;;  %7164 = vmatpush.bf16.msrb.mxu3 %v10298_v32 }
 0x72a   : > { %6884 = vmatmul.bf16.gmra.mxu1 %v13657_v36  ;;  %6933 = vmatmul.bf16.gmra.mxu2 %v13668_v0  ;;  %v5929_v35 = vsel %vm5673_vm6, %v5514_v5, %v5801_v55  ;;  %v10234_v5 = vor.u32 %v10803_v14, %v10233_v54  ;;  %v5808_v55 = vmul.f32 0.2, %v5468_v25  ;;  %vm5680_vm2 = vcmp.gt.f32.partialorder %v5468_v25, 0.0  ;;  %v10361_v14 = vld [vmem:[#allocation20 + $0x3b0] sm:$0xf] }
 0x72b   : > { %6982 = vmatmul.bf16.gmra.mxu3 %v13671_v46  ;;  %7031 = vmatmul.bf16.gmra.mxu0 %v13661_v15  ;;  %v13824_v60 = vpack.c.bf16 %v5929_v35, %v5921_v59  ;;  %v5930_v48 = vsel %vm5674_vm3, %v5563_v27, %v5802_v50  ;;  %v5811_v27 = vmul.f32 0.2, %v5615_v53  ;;  %v10169_v50 = vld [vmem:[#allocation20 + $0x230] sm:$0xf]  ;;  %vm5683_vm7 = vcmp.gt.f32.partialorder %v5615_v53, 0.0 }
 0x72c   : > { %v13827_v6 = vpack.c.bf16 %v5930_v48, %v5922_v30  ;;  %7115 = vmatpush.bf16.msrb.mxu2 %v10234_v5  ;;  %v10787_v35 = vld [vmem:[#allocation20 + $0x234] sm:$0xf0]  ;;  %v5936_v17 = vsel %vm5680_vm2, %v5468_v25, %v5808_v55 }
 0x72d   : > { %v5516_v11 = vpop.f32.mrf.mxu2  ;;  %v10170_v48 = vor.u32 %v10787_v35, %v10169_v50  ;;  %v5939_v15 = vsel %vm5683_vm7, %v5615_v53, %v5811_v27 }
 0x72e   : > { %v5565_v18 = vpop.f32.mrf.mxu3  ;;  %v5517_v59 = vadd.f32 %v5516_v11, %v13785_v16 }
 0x72f   : > { %v5469_v31 = vpop.f32.mrf.mxu1  ;;  %v5566_v54 = vadd.f32 %v5565_v18, %v13787_v49  ;;  %7066 = vmatpush.bf16.msrb.mxu1 %v10170_v48 }
 0x730   : > { %v5470_v44 = vadd.f32 %v5469_v31, %v13769_v41  ;;  %v5616_v56 = vpop.f32.mrf.mxu0  ;;  %v10362_v31 = vor.u32 %v10835_v29, %v10361_v14  ;;  %v5809_v46 = vmul.f32 0.2, %v5517_v59  ;;  %vm5681_vm10 = vcmp.gt.f32.partialorder %v5517_v59, 0.0  ;;  %v10801_v14 = vld [vmem:[#allocation20 + $0x2a4] sm:$0xf0] }
 0x731   : > { %v5617_v12 = vadd.f32 %v5616_v56, %v13771_v52  ;;  %v5810_v50 = vmul.f32 0.2, %v5566_v54  ;;  %vm5682_vm11 = vcmp.gt.f32.partialorder %v5566_v54, 0.0  ;;  %v10289_v29 = vld [vmem:[#allocation20 + $0x320] sm:$0xf] }
 0x732   : > { %vm5688_vm8 = vcmp.gt.f32.partialorder %v5470_v44, 0.0  ;;  %v5816_v28 = vmul.f32 0.2, %v5470_v44  ;;  %7213 = vmatpush.bf16.msrb.mxu0 %v10362_v31  ;;  %v5937_v53 = vsel %vm5681_vm10, %v5517_v59, %v5809_v46 }
 0x733   : > { %vm5691_vm9 = vcmp.gt.f32.partialorder %v5617_v12, 0.0  ;;  %v5819_v30 = vmul.f32 0.2, %v5617_v12 }
 0x734   : > { %v5944_v5 = vsel %vm5688_vm8, %v5470_v44, %v5816_v28 }
 0x735   : > { %v5518_v32 = vpop.f32.mrf.mxu2  ;;  %v13834_v56 = vpack.c.bf16 %v5944_v5, %v5936_v17  ;;  %v5947_v11 = vsel %vm5691_vm9, %v5617_v12, %v5819_v30  ;;  %v5938_v12 = vsel %vm5682_vm11, %v5566_v54, %v5810_v50  ;;  %v10817_v17 = vld [vmem:[#allocation20 + $0x324] sm:$0xf0] }
 0x736   : > { %v5519_v0 = vadd.f32 %v5518_v32, %v13785_v16  ;;  %v5567_v36 = vpop.f32.mrf.mxu3  ;;  %v13838_v18 = vpack.c.bf16 %v5947_v11, %v5939_v15  ;;  %v10225_v15 = vld [vmem:[#allocation20 + $0x2a0] sm:$0xf]  ;;  %v10290_v59 = vor.u32 %v10817_v17, %v10289_v29  ;;  %v10833_v29 = vld [vmem:[#allocation20 + $0x3a4] sm:$0xf0] }
 0x737   : > { %v5568_v35 = vadd.f32 %v5567_v36, %v13787_v49  ;;  %v5472_v25 = vpop.f32.mrf.mxu1 }
 0x738   : > { %14828 = vst [vmem:[#allocation81_spill] sm:$0xff] %v13838_v18  ;;  %vm5689_vm12 = vcmp.gt.f32.partialorder %v5519_v0, 0.0  ;;  %v5817_v55 = vmul.f32 0.2, %v5519_v0  ;;  %v5619_v44 = vpop.f32.mrf.mxu0  ;;  %v5473_v48 = vadd.f32 %v5472_v25, %v13769_v41  ;;  %7165 = vmatpush.bf16.msrb.mxu3 %v10290_v59 }
 0x739   : > { %vm5690_vm13 = vcmp.gt.f32.partialorder %v5568_v35, 0.0  ;;  %v5818_v28 = vmul.f32 0.2, %v5568_v35  ;;  %v5620_v32 = vadd.f32 %v5619_v44, %v13771_v52 }
 0x73a   : > { %6889 = vmatmul.bf16.gmra.mxu1 %v13678_v24  ;;  %6938 = vmatmul.bf16.gmra.mxu2 %v13689_v23  ;;  %v5945_v27 = vsel %vm5689_vm12, %v5519_v0, %v5817_v55  ;;  %v10226_v0 = vor.u32 %v10801_v14, %v10225_v15  ;;  %v5824_v55 = vmul.f32 0.2, %v5473_v48  ;;  %vm5696_vm14 = vcmp.gt.f32.partialorder %v5473_v48, 0.0  ;;  %v10353_v14 = vld [vmem:[#allocation20 + $0x3a0] sm:$0xf] }
 0x73b   : > { %6987 = vmatmul.bf16.gmra.mxu3 %v13692_v34  ;;  %7036 = vmatmul.bf16.gmra.mxu0 %v13682_v37  ;;  %v13845_v36 = vpack.c.bf16 %v5945_v27, %v5937_v53  ;;  %v5946_v30 = vsel %vm5690_vm13, %v5568_v35, %v5818_v28  ;;  %v5827_v35 = vmul.f32 0.2, %v5620_v32  ;;  %v10161_v28 = vld [vmem:[#allocation20 + $0x220] sm:$0xf]  ;;  %vm5699_vm15 = vcmp.gt.f32.partialorder %v5620_v32, 0.0 }
 0x73c   : > { %v13848_v5 = vpack.c.bf16 %v5946_v30, %v5938_v12  ;;  %7116 = vmatpush.bf16.msrb.mxu2 %v10226_v0  ;;  %v10785_v27 = vld [vmem:[#allocation20 + $0x224] sm:$0xf0]  ;;  %v5952_v17 = vsel %vm5696_vm14, %v5473_v48, %v5824_v55 }
 0x73d   : > { %v5521_v46 = vpop.f32.mrf.mxu2  ;;  %v10162_v30 = vor.u32 %v10785_v27, %v10161_v28  ;;  %v5955_v37 = vsel %vm5699_vm15, %v5620_v32, %v5827_v35 }
 0x73e   : > { %14829 = vst [vmem:[#allocation80_spill] sm:$0xff] %v13848_v5  ;;  %v5570_v31 = vpop.f32.mrf.mxu3  ;;  %v5522_v53 = vadd.f32 %v5521_v46, %v13785_v16 }
 0x73f   : > { %v5474_v11 = vpop.f32.mrf.mxu1  ;;  %v5571_v15 = vadd.f32 %v5570_v31, %v13787_v49  ;;  %7067 = vmatpush.bf16.msrb.mxu1 %v10162_v30 }
 0x740   : > { %v5475_v54 = vadd.f32 %v5474_v11, %v13769_v41  ;;  %v5621_v50 = vpop.f32.mrf.mxu0  ;;  %v10354_v11 = vor.u32 %v10833_v29, %v10353_v14  ;;  %v5825_v34 = vmul.f32 0.2, %v5522_v53  ;;  %vm5697_vm4 = vcmp.gt.f32.partialorder %v5522_v53, 0.0  ;;  %v10799_v14 = vld [vmem:[#allocation20 + $0x294] sm:$0xf0] }
 0x741   : > { %v5622_v25 = vadd.f32 %v5621_v50, %v13771_v52  ;;  %v5826_v28 = vmul.f32 0.2, %v5571_v15  ;;  %vm5698_vm5 = vcmp.gt.f32.partialorder %v5571_v15, 0.0  ;;  %v10281_v29 = vld [vmem:[#allocation20 + $0x310] sm:$0xf] }
 0x742   : > { %vm5704_vm0 = vcmp.gt.f32.partialorder %v5475_v54, 0.0  ;;  %v5832_v44 = vmul.f32 0.2, %v5475_v54  ;;  %7214 = vmatpush.bf16.msrb.mxu0 %v10354_v11  ;;  %v5953_v32 = vsel %vm5697_vm4, %v5522_v53, %v5825_v34 }
 0x743   : > { %vm5707_vm1 = vcmp.gt.f32.partialorder %v5622_v25, 0.0  ;;  %v5835_v12 = vmul.f32 0.2, %v5622_v25 }
 0x744   : > { %v5960_v0 = vsel %vm5704_vm0, %v5475_v54, %v5832_v44 }
 0x745   : > { %v5523_v59 = vpop.f32.mrf.mxu2  ;;  %v13855_v50 = vpack.c.bf16 %v5960_v0, %v5952_v17  ;;  %v5963_v46 = vsel %vm5707_vm1, %v5622_v25, %v5835_v12  ;;  %v5954_v25 = vsel %vm5698_vm5, %v5571_v15, %v5826_v28  ;;  %v10815_v17 = vld [vmem:[#allocation20 + $0x314] sm:$0xf0] }
 0x746   : > { %v5524_v23 = vadd.f32 %v5523_v59, %v13785_v16  ;;  %v5572_v24 = vpop.f32.mrf.mxu3  ;;  %v13859_v31 = vpack.c.bf16 %v5963_v46, %v5955_v37  ;;  %v10217_v37 = vld [vmem:[#allocation20 + $0x290] sm:$0xf]  ;;  %v10282_v53 = vor.u32 %v10815_v17, %v10281_v29  ;;  %v10831_v29 = vld [vmem:[#allocation20 + $0x394] sm:$0xf0] }
 0x747   : > { %v5573_v27 = vadd.f32 %v5572_v24, %v13787_v49  ;;  %v5477_v48 = vpop.f32.mrf.mxu1 }
 0x748   : > { %14830 = vst [vmem:[#allocation55_spill] sm:$0xff] %v13859_v31  ;;  %vm5705_vm6 = vcmp.gt.f32.partialorder %v5524_v23, 0.0  ;;  %v5833_v55 = vmul.f32 0.2, %v5524_v23  ;;  %v5624_v54 = vpop.f32.mrf.mxu0  ;;  %v5478_v30 = vadd.f32 %v5477_v48, %v13769_v41  ;;  %7166 = vmatpush.bf16.msrb.mxu3 %v10282_v53 }
 0x749   : > { %vm5706_vm3 = vcmp.gt.f32.partialorder %v5573_v27, 0.0  ;;  %v5834_v44 = vmul.f32 0.2, %v5573_v27  ;;  %v5625_v59 = vadd.f32 %v5624_v54, %v13771_v52 }
 0x74a   : > { %6894 = vmatmul.bf16.gmra.mxu1 %v13699_v63  ;;  %6943 = vmatmul.bf16.gmra.mxu2 %v13710_v19  ;;  %v5961_v35 = vsel %vm5705_vm6, %v5524_v23, %v5833_v55  ;;  %v10218_v23 = vor.u32 %v10799_v14, %v10217_v37  ;;  %v5840_v55 = vmul.f32 0.2, %v5478_v30  ;;  %vm5712_vm2 = vcmp.gt.f32.partialorder %v5478_v30, 0.0  ;;  %v10345_v14 = vld [vmem:[#allocation20 + $0x390] sm:$0xf] }
 0x74b   : > { %6992 = vmatmul.bf16.gmra.mxu3 %v13713_v51  ;;  %7041 = vmatmul.bf16.gmra.mxu0 %v13703_v20  ;;  %v13866_v24 = vpack.c.bf16 %v5961_v35, %v5953_v32  ;;  %v5962_v12 = vsel %vm5706_vm3, %v5573_v27, %v5834_v44  ;;  %v5843_v27 = vmul.f32 0.2, %v5625_v59  ;;  %v10153_v44 = vld [vmem:[#allocation20 + $0x210] sm:$0xf]  ;;  %vm5715_vm7 = vcmp.gt.f32.partialorder %v5625_v59, 0.0 }
 0x74c   : > { %v13869_v0 = vpack.c.bf16 %v5962_v12, %v5954_v25  ;;  %7117 = vmatpush.bf16.msrb.mxu2 %v10218_v23  ;;  %v10783_v35 = vld [vmem:[#allocation20 + $0x214] sm:$0xf0]  ;;  %v5968_v17 = vsel %vm5712_vm2, %v5478_v30, %v5840_v55 }
 0x74d   : > { %v5526_v34 = vpop.f32.mrf.mxu2  ;;  %v10154_v12 = vor.u32 %v10783_v35, %v10153_v44  ;;  %v5971_v20 = vsel %vm5715_vm7, %v5625_v59, %v5843_v27 }
 0x74e   : > { %14831 = vst [vmem:[#allocation54_spill] sm:$0xff] %v13869_v0  ;;  %v5575_v11 = vpop.f32.mrf.mxu3  ;;  %v5527_v32 = vadd.f32 %v5526_v34, %v13785_v16 }
 0x74f   : > { %v5479_v46 = vpop.f32.mrf.mxu1  ;;  %v5576_v37 = vadd.f32 %v5575_v11, %v13787_v49  ;;  %7068 = vmatpush.bf16.msrb.mxu1 %v10154_v12 }
 0x750   : > { %v5480_v15 = vadd.f32 %v5479_v46, %v13769_v41  ;;  %v5626_v28 = vpop.f32.mrf.mxu0  ;;  %v10346_v46 = vor.u32 %v10831_v29, %v10345_v14  ;;  %v5841_v51 = vmul.f32 0.2, %v5527_v32  ;;  %vm5713_vm10 = vcmp.gt.f32.partialorder %v5527_v32, 0.0  ;;  %v10797_v14 = vld [vmem:[#allocation20 + $0x284] sm:$0xf0] }
 0x751   : > { %v5627_v48 = vadd.f32 %v5626_v28, %v13771_v52  ;;  %v5842_v44 = vmul.f32 0.2, %v5576_v37  ;;  %vm5714_vm11 = vcmp.gt.f32.partialorder %v5576_v37, 0.0  ;;  %v10273_v29 = vld [vmem:[#allocation20 + $0x300] sm:$0xf] }
 0x752   : > { %vm5720_vm8 = vcmp.gt.f32.partialorder %v5480_v15, 0.0  ;;  %v5848_v54 = vmul.f32 0.2, %v5480_v15  ;;  %7215 = vmatpush.bf16.msrb.mxu0 %v10346_v46  ;;  %v5969_v59 = vsel %vm5713_vm10, %v5527_v32, %v5841_v51 }
 0x753   : > { %vm5723_vm9 = vcmp.gt.f32.partialorder %v5627_v48, 0.0  ;;  %v5851_v25 = vmul.f32 0.2, %v5627_v48 }
 0x754   : > { %v5976_v23 = vsel %vm5720_vm8, %v5480_v15, %v5848_v54 }
 0x755   : > { %v5528_v53 = vpop.f32.mrf.mxu2  ;;  %v13876_v28 = vpack.c.bf16 %v5976_v23, %v5968_v17  ;;  %v5979_v34 = vsel %vm5723_vm9, %v5627_v48, %v5851_v25  ;;  %v5970_v48 = vsel %vm5714_vm11, %v5576_v37, %v5842_v44  ;;  %v10813_v17 = vld [vmem:[#allocation20 + $0x304] sm:$0xf0] }
 0x756   : > { %v5529_v63 = vadd.f32 %v5528_v53, %v13785_v16  ;;  %v5577_v19 = vpop.f32.mrf.mxu3  ;;  %v13880_v11 = vpack.c.bf16 %v5979_v34, %v5971_v20  ;;  %v10209_v20 = vld [vmem:[#allocation20 + $0x280] sm:$0xf]  ;;  %v10274_v32 = vor.u32 %v10813_v17, %v10273_v29  ;;  %v10829_v29 = vld [vmem:[#allocation20 + $0x384] sm:$0xf0] }
 0x757   : > { %v5578_v35 = vadd.f32 %v5577_v19, %v13787_v49  ;;  %v5482_v30 = vpop.f32.mrf.mxu1 }
 0x758   : > { %14832 = vst [vmem:[#allocation82_spill] sm:$0xff] %v13880_v11  ;;  %vm5721_vm12 = vcmp.gt.f32.partialorder %v5529_v63, 0.0  ;;  %v5849_v55 = vmul.f32 0.2, %v5529_v63  ;;  %v5629_v15 = vpop.f32.mrf.mxu0  ;;  %v5483_v12 = vadd.f32 %v5482_v30, %v13769_v41  ;;  %7167 = vmatpush.bf16.msrb.mxu3 %v10274_v32 }
 0x759   : > { %vm5722_vm13 = vcmp.gt.f32.partialorder %v5578_v35, 0.0  ;;  %v5850_v54 = vmul.f32 0.2, %v5578_v35  ;;  %v5630_v53 = vadd.f32 %v5629_v15, %v13771_v52 }
 0x75a   : > { %6899 = vmatmul.bf16.gmra.mxu1 %v13720_v3  ;;  %6948 = vmatmul.bf16.gmra.mxu2 %v13731_v45  ;;  %v5977_v27 = vsel %vm5721_vm12, %v5529_v63, %v5849_v55  ;;  %v10210_v63 = vor.u32 %v10797_v14, %v10209_v20  ;;  %v5856_v55 = vmul.f32 0.2, %v5483_v12  ;;  %vm5728_vm14 = vcmp.gt.f32.partialorder %v5483_v12, 0.0  ;;  %v10337_v14 = vld [vmem:[#allocation20 + $0x380] sm:$0xf] }
 0x75b   : > { %6997 = vmatmul.bf16.gmra.mxu3 %v13734_v2  ;;  %7046 = vmatmul.bf16.gmra.mxu0 %v13724_v57  ;;  %v13887_v19 = vpack.c.bf16 %v5977_v27, %v5969_v59  ;;  %v5978_v25 = vsel %vm5722_vm13, %v5578_v35, %v5850_v54  ;;  %v5859_v35 = vmul.f32 0.2, %v5630_v53  ;;  %v10145_v54 = vld [vmem:[#allocation20 + $0x200] sm:$0xf]  ;;  %vm5731_vm15 = vcmp.gt.f32.partialorder %v5630_v53, 0.0 }
 0x75c   : > { %v13890_v23 = vpack.c.bf16 %v5978_v25, %v5970_v48  ;;  %7118 = vmatpush.bf16.msrb.mxu2 %v10210_v63  ;;  %v10781_v27 = vld [vmem:[#allocation20 + $0x204] sm:$0xf0]  ;;  %v5984_v17 = vsel %vm5728_vm14, %v5483_v12, %v5856_v55 }
 0x75d   : > { %v5531_v51 = vpop.f32.mrf.mxu2  ;;  %v10146_v25 = vor.u32 %v10781_v27, %v10145_v54  ;;  %v5987_v57 = vsel %vm5731_vm15, %v5630_v53, %v5859_v35 }
 0x75e   : > { %14833 = vst [vmem:[#allocation58_spill] sm:$0xff] %v13890_v23  ;;  %v5580_v46 = vpop.f32.mrf.mxu3  ;;  %v5532_v59 = vadd.f32 %v5531_v51, %v13785_v16 }
 0x75f   : > { %v5484_v34 = vpop.f32.mrf.mxu1  ;;  %v5581_v20 = vadd.f32 %v5580_v46, %v13787_v49  ;;  %7069 = vmatpush.bf16.msrb.mxu1 %v10146_v25 }
 0x760   : > { %v5485_v37 = vadd.f32 %v5484_v34, %v13769_v41  ;;  %v5631_v44 = vpop.f32.mrf.mxu0  ;;  %v10338_v34 = vor.u32 %v10829_v29, %v10337_v14  ;;  %v5857_v2 = vmul.f32 0.2, %v5532_v59  ;;  %vm5729_vm4 = vcmp.gt.f32.partialorder %v5532_v59, 0.0  ;;  %v10011_v14 = vld [vmem:[#allocation20 + $0xf8] sm:$0xf0] }
 0x761   : > { %v5632_v30 = vadd.f32 %v5631_v44, %v13771_v52  ;;  %v5858_v54 = vmul.f32 0.2, %v5581_v20  ;;  %vm5730_vm5 = vcmp.gt.f32.partialorder %v5581_v20, 0.0  ;;  %v10762_v29 = vld [vmem:[#allocation20 + $0x174] sm:$0xf] }
 0x762   : > { %vm5736_vm0 = vcmp.gt.f32.partialorder %v5485_v37, 0.0  ;;  %v5864_v15 = vmul.f32 0.2, %v5485_v37  ;;  %7216 = vmatpush.bf16.msrb.mxu0 %v10338_v34  ;;  %v5985_v53 = vsel %vm5729_vm4, %v5532_v59, %v5857_v2 }
 0x763   : > { %vm5739_vm1 = vcmp.gt.f32.partialorder %v5632_v30, 0.0  ;;  %v5867_v48 = vmul.f32 0.2, %v5632_v30 }
 0x764   : > { %v5992_v63 = vsel %vm5736_vm0, %v5485_v37, %v5864_v15 }
 0x765   : > { %v5533_v32 = vpop.f32.mrf.mxu2  ;;  %v13897_v44 = vpack.c.bf16 %v5992_v63, %v5984_v17  ;;  %v5995_v51 = vsel %vm5739_vm1, %v5632_v30, %v5867_v48  ;;  %v5986_v30 = vsel %vm5730_vm5, %v5581_v20, %v5858_v54  ;;  %v10075_v17 = vld [vmem:[#allocation20 + $0x178] sm:$0xf0] }
 0x766   : > { %v5534_v3 = vadd.f32 %v5533_v32, %v13785_v16  ;;  %v5582_v45 = vpop.f32.mrf.mxu3  ;;  %v13901_v46 = vpack.c.bf16 %v5995_v51, %v5987_v57  ;;  %v10746_v57 = vld [vmem:[#allocation20 + $0xf4] sm:$0xf]  ;;  %v10078_v59 = vor.u32 %v10762_v29, %v10075_v17  ;;  %v10139_v29 = vld [vmem:[#allocation20 + $0x1f8] sm:$0xf0] }
 0x767   : > { %v5583_v27 = vadd.f32 %v5582_v45, %v13787_v49  ;;  %v5487_v12 = vpop.f32.mrf.mxu1 }
 0x768   : > { %14834 = vst [vmem:[#allocation57_spill] sm:$0xff] %v13901_v46  ;;  %vm5737_vm6 = vcmp.gt.f32.partialorder %v5534_v3, 0.0  ;;  %v5865_v55 = vmul.f32 0.2, %v5534_v3  ;;  %v5634_v37 = vpop.f32.mrf.mxu0  ;;  %v5488_v25 = vadd.f32 %v5487_v12, %v13769_v41  ;;  %7356 = vmatpush.bf16.msra.mxu3 %v10078_v59 }
 0x769   : > { %vm5738_vm3 = vcmp.gt.f32.partialorder %v5583_v27, 0.0  ;;  %v5866_v15 = vmul.f32 0.2, %v5583_v27  ;;  %v5635_v32 = vadd.f32 %v5634_v37, %v13771_v52 }
 0x76a   : > { %6904 = vmatmul.bf16.gmra.mxu1 %v13741_v40  ;;  %6953 = vmatmul.bf16.gmra.mxu2 %v13751_v10  ;;  %v5993_v35 = vsel %vm5737_vm6, %v5534_v3, %v5865_v55  ;;  %v10014_v3 = vor.u32 %v10746_v57, %v10011_v14  ;;  %v5872_v55 = vmul.f32 0.2, %v5488_v25  ;;  %vm5744_vm2 = vcmp.gt.f32.partialorder %v5488_v25, 0.0 }
 0x76b   : > { %7002 = vmatmul.bf16.gmra.mxu3 %v13754_v39  ;;  %7051 = vmatmul.bf16.gmra.mxu0 %v13744_v1  ;;  %v13908_v45 = vpack.c.bf16 %v5993_v35, %v5985_v53  ;;  %v5994_v48 = vsel %vm5738_vm3, %v5583_v27, %v5866_v15  ;;  %v10730_v27 = vld [vmem:[#allocation20 + $0x74] sm:$0xf]  ;;  %vm5747_vm7 = vcmp.gt.f32.partialorder %v5635_v32, 0.0  ;;  %v5875_v12 = vmul.f32 0.2, %v5635_v32 }
 0x76c   : > { %v13911_v63 = vpack.c.bf16 %v5994_v48, %v5986_v30  ;;  %7307 = vmatpush.bf16.msra.mxu2 %v10014_v3  ;;  %v9947_v53 = vld [vmem:[#allocation20 + $0x78] sm:$0xf0]  ;;  %v10778_v30 = vld [vmem:[#allocation20 + $0x1f4] sm:$0xf]  ;;  %v6000_v3 = vsel %vm5744_vm2, %v5488_v25, %v5872_v55 }
 0x76d   : > { %v5536_v2 = vpop.f32.mrf.mxu2  ;;  %v9950_v57 = vor.u32 %v10730_v27, %v9947_v53  ;;  %v10142_v17 = vor.u32 %v10778_v30, %v10139_v29 }
 0x76e   : > { %14835 = vst [vmem:[#allocation84_spill] sm:$0xff] %v13911_v63  ;;  %v5585_v34 = vpop.f32.mrf.mxu3  ;;  %v5537_v37 = vadd.f32 %v5536_v2, %v13785_v16 }
 0x76f   : > { %v5489_v51 = vpop.f32.mrf.mxu1  ;;  %v5586_v48 = vadd.f32 %v5585_v34, %v13787_v49  ;;  %7258 = vmatpush.bf16.msra.mxu1 %v9950_v57  ;;  %7405 = vmatpush.bf16.msra.mxu0 %v10142_v17 }
 0x770   : > { %v5490_v20 = vadd.f32 %v5489_v51, %v13769_v41  ;;  %v5636_v54 = vpop.f32.mrf.mxu0  ;;  %v5873_v39 = vmul.f32 0.2, %v5537_v37  ;;  %vm5745_vm10 = vcmp.gt.f32.partialorder %v5537_v37, 0.0 }
 0x771   : > { %v5637_v15 = vadd.f32 %v5636_v54, %v13771_v52  ;;  %v6003_v54 = vsel %vm5747_vm7, %v5635_v32, %v5875_v12  ;;  %v5874_v40 = vmul.f32 0.2, %v5586_v48  ;;  %vm5746_vm11 = vcmp.gt.f32.partialorder %v5586_v48, 0.0 }
 0x772   : > { %vm5752_vm8 = vcmp.gt.f32.partialorder %v5490_v20, 0.0  ;;  %v5880_v35 = vmul.f32 0.2, %v5490_v20  ;;  %v6001_v32 = vsel %vm5745_vm10, %v5537_v37, %v5873_v39 }
 0x773   : > { %vm5755_vm9 = vcmp.gt.f32.partialorder %v5637_v15, 0.0  ;;  %v5883_v14 = vmul.f32 0.2, %v5637_v15 }
 0x774   : > { %v6008_v59 = vsel %vm5752_vm8, %v5490_v20, %v5880_v35 }
 0x775   : > { %v5538_v51 = vpop.f32.mrf.mxu2  ;;  %v13919_v1 = vpack.c.bf16 %v6008_v59, %v6000_v3  ;;  %v6011_v2 = vsel %vm5755_vm9, %v5637_v15, %v5883_v14  ;;  %v10744_v15 = vld [vmem:[#allocation20 + $0xe4] sm:$0xf]  ;;  %v6002_v14 = vsel %vm5746_vm11, %v5586_v48, %v5874_v40  ;;  %v10003_v3 = vld [vmem:[#allocation20 + $0xe8] sm:$0xf0] }
 0x776   : > { %v5539_v27 = vadd.f32 %v5538_v51, %v13785_v16  ;;  %v5587_v53 = vpop.f32.mrf.mxu3  ;;  %v13923_v34 = vpack.c.bf16 %v6011_v2, %v6003_v54  ;;  %v10760_v59 = vld [vmem:[#allocation20 + $0x164] sm:$0xf]  ;;  %v10067_v51 = vld [vmem:[#allocation20 + $0x168] sm:$0xf0]  ;;  %v10006_v37 = vor.u32 %v10744_v15, %v10003_v3 }
 0x777   : > { %v5588_v57 = vadd.f32 %v5587_v53, %v13787_v49  ;;  %v5492_v30 = vpop.f32.mrf.mxu1 }
 0x778   : > { %14836 = vst [vmem:[#allocation83_spill] sm:$0xff] %v13923_v34  ;;  %vm5753_vm12 = vcmp.gt.f32.partialorder %v5539_v27, 0.0  ;;  %v5881_v25 = vmul.f32 0.2, %v5539_v27  ;;  %v5639_v55 = vpop.f32.mrf.mxu0  ;;  %v5493_v17 = vadd.f32 %v5492_v30, %v13769_v41  ;;  %7308 = vmatpush.bf16.msra.mxu2 %v10006_v37 }
 0x779   : > { %vm5754_vm13 = vcmp.gt.f32.partialorder %v5588_v57, 0.0  ;;  %v5882_v20 = vmul.f32 0.2, %v5588_v57  ;;  %v5640_v2 = vadd.f32 %v5639_v55, %v13771_v52 }
 0x77a   : > { %6909 = vmatmul.bf16.gmra.mxu1 %v13761_v8  ;;  %6958 = vmatmul.bf16.gmra.mxu2 %v13778_v13  ;;  %v6009_v12 = vsel %vm5753_vm12, %v5539_v27, %v5881_v25  ;;  %v10070_v27 = vor.u32 %v10760_v59, %v10067_v51  ;;  %vm5760_vm14 = vcmp.gt.f32.partialorder %v5493_v17, 0.0  ;;  %v10131_v51 = vld [vmem:[#allocation20 + $0x1e8] sm:$0xf0] }
 0x77b   : > { %7007 = vmatmul.bf16.gmra.mxu3 %v13782_v43  ;;  %7056 = vmatmul.bf16.gmra.mxu0 %v13765_v7  ;;  %v13930_v35 = vpack.c.bf16 %v6009_v12, %v6001_v32  ;;  %v6010_v29 = vsel %vm5754_vm13, %v5588_v57, %v5882_v20  ;;  %v5888_v32 = vmul.f32 0.2, %v5493_v17  ;;  %v10728_v57 = vld [vmem:[#allocation20 + $0x64] sm:$0xf]  ;;  %vm5763_vm15 = vcmp.gt.f32.partialorder %v5640_v2, 0.0 }
 0x77c   : > { %v13933_v54 = vpack.c.bf16 %v6010_v29, %v6002_v14  ;;  %7357 = vmatpush.bf16.msra.mxu3 %v10070_v27  ;;  %v5891_v30 = vmul.f32 0.2, %v5640_v2  ;;  %v9939_v12 = vld [vmem:[#allocation20 + $0x68] sm:$0xf0]  ;;  %v10776_v29 = vld [vmem:[#allocation20 + $0x1e4] sm:$0xf] }
 0x77d   : > { %v5541_v39 = vpop.f32.mrf.mxu2  ;;  %v9942_v14 = vor.u32 %v10728_v57, %v9939_v12  ;;  %v6016_v37 = vsel %vm5760_vm14, %v5493_v17, %v5888_v32  ;;  %v6220_v7 = vld [vmem:[#allocation22] sm:$0x3] }
 0x77e   : > { %v5590_v53 = vpop.f32.mrf.mxu3  ;;  %v5542_v55 = vadd.f32 %v5541_v39, %v13785_v16  ;;  %v6019_v39 = vsel %vm5763_vm15, %v5640_v2, %v5891_v30 }
 0x77f   : > { %v5494_v25 = vpop.f32.mrf.mxu1  ;;  %v5591_v3 = vadd.f32 %v5590_v53, %v13787_v49  ;;  %7259 = vmatpush.bf16.msra.mxu1 %v9942_v14 }
 0x780   : > { %v5495_v40 = vadd.f32 %v5494_v25, %v13769_v41  ;;  %v5641_v48 = vpop.f32.mrf.mxu0  ;;  %v10134_v41 = vor.u32 %v10776_v29, %v10131_v51  ;;  %v5889_v43 = vmul.f32 0.2, %v5542_v55  ;;  %vm5761_vm4 = vcmp.gt.f32.partialorder %v5542_v55, 0.0 }
 0x781   : > { %v5642_v20 = vadd.f32 %v5641_v48, %v13771_v52  ;;  %v5890_v14 = vmul.f32 0.2, %v5591_v3  ;;  %vm5762_vm5 = vcmp.gt.f32.partialorder %v5591_v3, 0.0 }
 0x782   : > { %vm5768_vm0 = vcmp.gt.f32.partialorder %v5495_v40, 0.0  ;;  %v5896_v15 = vmul.f32 0.2, %v5495_v40  ;;  %7406 = vmatpush.bf16.msra.mxu0 %v10134_v41 }
 0x783   : > { %vm5771_vm1 = vcmp.gt.f32.partialorder %v5642_v20, 0.0  ;;  %v5899_v59 = vmul.f32 0.2, %v5642_v20 }
 0x784   : > { %v6024_v27 = vsel %vm5768_vm0, %v5495_v40, %v5896_v15  ;;  %v13948_v40 = vperm.slane %v6220_v7, 0  ;;  %v6018_v7 = vsel %vm5762_vm5, %v5591_v3, %v5890_v14  ;;  %v10123_v14 = vld [vmem:[#allocation20 + $0x1d8] sm:$0xf0] }
 0x785   : > { %v5543_v25 = vpop.f32.mrf.mxu2  ;;  %v13941_v52 = vpack.c.bf16 %v6024_v27, %v6016_v37  ;;  %v6027_v48 = vsel %vm5771_vm1, %v5642_v20, %v5899_v59  ;;  %v9995_v20 = vld [vmem:[#allocation20 + $0xd8] sm:$0xf0]  ;;  %v10758_v59 = vld [vmem:[#allocation20 + $0x154] sm:$0xf] }
 0x786   : > { %v5544_v57 = vadd.f32 %v5543_v25, %v13785_v16  ;;  %v5592_v12 = vpop.f32.mrf.mxu3  ;;  %v13945_v53 = vpack.c.bf16 %v6027_v48, %v6019_v39  ;;  %v6017_v16 = vsel %vm5761_vm4, %v5542_v55, %v5889_v43  ;;  %v10059_v25 = vld [vmem:[#allocation20 + $0x158] sm:$0xf0] }
 0x787   : > { %v5593_v29 = vadd.f32 %v5592_v12, %v13787_v49  ;;  %v6875_v17 = vpop.f32.mrf.mxu1  ;;  %v10742_v49 = vld [vmem:[#allocation20 + $0xd4] sm:$0xf]  ;;  %v10062_v55 = vor.u32 %v10758_v59, %v10059_v25  ;;  %v10756_v25 = vld [vmem:[#allocation20 + $0x144] sm:$0xf] }
 0x788   : > { %vm5769_vm6 = vcmp.gt.f32.partialorder %v5544_v57, 0.0  ;;  %v5897_v32 = vmul.f32 0.2, %v5544_v57  ;;  %v7022_v15 = vpop.f32.mrf.mxu0  ;;  %v6876_v37 = vadd.f32 %v6875_v17, %v13948_v40  ;;  %v9998_v27 = vor.u32 %v10742_v49, %v9995_v20 }
 0x789   : > { %vm5770_vm3 = vcmp.gt.f32.partialorder %v5593_v29, 0.0  ;;  %v5898_v2 = vmul.f32 0.2, %v5593_v29  ;;  %7358 = vmatpush.bf16.msra.mxu3 %v10062_v55 }
 0x78a   : > { %7070 = vmatmul.bf16.vlgmr.msrb.gmra.mxu1 %v13793_v42  ;;  %7119 = vmatmul.bf16.vlgmr.msrb.gmra.mxu2 %v13801_v33  ;;  %v6025_v30 = vsel %vm5769_vm6, %v5544_v57, %v5897_v32 }
 0x78b   : > { %7168 = vmatmul.bf16.vlgmr.msrb.gmra.mxu3 %v13805_v47  ;;  %7217 = vmatmul.bf16.vlgmr.msrb.gmra.mxu0 %v13795_v62  ;;  %v13954_v51 = vpack.c.bf16 %v6025_v30, %v6017_v16  ;;  %v6026_v41 = vsel %vm5770_vm3, %v5593_v29, %v5898_v2  ;;  %v10726_v16 = vld [vmem:[#allocation20 + $0x54] sm:$0xf]  ;;  %v9931_v30 = vld [vmem:[#allocation20 + $0x58] sm:$0xf0] }
 0x78c   : > { %v13958_v39 = vpack.c.bf16 %v6026_v41, %v6018_v7  ;;  %7309 = vmatpush.bf16.msra.mxu2 %v9998_v27  ;;  %v10774_v47 = vld [vmem:[#allocation20 + $0x1d4] sm:$0xf]  ;;  %v9934_v3 = vor.u32 %v10726_v16, %v9931_v30 }
 0x78d   : > { %v6924_v43 = vpop.f32.mrf.mxu2  ;;  %v10126_v29 = vor.u32 %v10774_v47, %v10123_v14  ;;  %v10740_v47 = vld [vmem:[#allocation20 + $0xc4] sm:$0xf] }
 0x78e   : > { %v6925_v48 = vadd.f32 %v6924_v43, %v6876_v37  ;;  %v6973_v57 = vpop.f32.mrf.mxu3  ;;  %7260 = vmatpush.bf16.msra.mxu1 %v9934_v3  ;;  %v10724_v14 = vld [vmem:[#allocation20 + $0x44] sm:$0xf] }
 0x78f   : > { %v6877_v12 = vpop.f32.mrf.mxu1  ;;  %7407 = vmatpush.bf16.msra.mxu0 %v10126_v29  ;;  %v9923_v29 = vld [vmem:[#allocation20 + $0x48] sm:$0xf0] }
 0x790   : > { %v6974_v32 = vadd.f32 %v6973_v57, %v6925_v48  ;;  %v7024_v62 = vpop.f32.mrf.mxu0  ;;  %v6878_v2 = vadd.f32 %v6877_v12, %v13948_v40  ;;  %v10051_v48 = vld [vmem:[#allocation20 + $0x148] sm:$0xf0] }
 0x791   : > { %v10054_v12 = vor.u32 %v10756_v25, %v10051_v48 }
 0x792   : > { %v13960_v17 = vadd.f32 %v7022_v15, %v6974_v32  ;;  %v9987_v15 = vld [vmem:[#allocation20 + $0xc8] sm:$0xf0] }
 0x793   : > { %v9990_v55 = vor.u32 %v10740_v47, %v9987_v15  ;;  %7359 = vmatpush.bf16.msra.mxu3 %v10054_v12  ;;  %v9979_v12 = vld [vmem:[#allocation20 + $0xb8] sm:$0xf0] }
 0x795   : > { %v6926_v49 = vpop.f32.mrf.mxu2  ;;  %7310 = vmatpush.bf16.msra.mxu2 %v9990_v55 }
 0x796   : > { %v6927_v20 = vadd.f32 %v6926_v49, %v6878_v2  ;;  %v6975_v59 = vpop.f32.mrf.mxu3  ;;  %v10772_v2 = vld [vmem:[#allocation20 + $0x1c4] sm:$0xf]  ;;  %v9926_v49 = vor.u32 %v10724_v14, %v9923_v29 }
 0x797   : > { %v6880_v7 = vpop.f32.mrf.mxu1 }
 0x798   : > { %v6976_v41 = vadd.f32 %v6975_v59, %v6927_v20  ;;  %v7027_v37 = vpop.f32.mrf.mxu0  ;;  %v6881_v43 = vadd.f32 %v6880_v7, %v13948_v40  ;;  %v10115_v20 = vld [vmem:[#allocation20 + $0x1c8] sm:$0xf0]  ;;  %7261 = vmatpush.bf16.msra.mxu1 %v9926_v49 }
 0x799   : > { %v10118_v59 = vor.u32 %v10772_v2, %v10115_v20 }
 0x79a   : > { %7075 = vmatmul.bf16.gmra.mxu1 %v13813_v26  ;;  %7124 = vmatmul.bf16.gmra.mxu2 %v13824_v60  ;;  %v13965_v27 = vadd.f32 %v7024_v62, %v6976_v41 }
 0x79b   : > { %7173 = vmatmul.bf16.gmra.mxu3 %v13827_v6  ;;  %7222 = vmatmul.bf16.gmra.mxu0 %v13817_v58 }
 0x79c   : > { %7408 = vmatpush.bf16.msra.mxu0 %v10118_v59 }
 0x79d   : > { %v6929_v57 = vpop.f32.mrf.mxu2 }
 0x79e   : > { %v6930_v32 = vadd.f32 %v6929_v57, %v6881_v43  ;;  %v6978_v16 = vpop.f32.mrf.mxu3 }
 0x79f   : > { %v6882_v30 = vpop.f32.mrf.mxu1 }
 0x7a0   : > { %v6979_v62 = vadd.f32 %v6978_v16, %v6930_v32  ;;  %v7029_v3 = vpop.f32.mrf.mxu0  ;;  %v6883_v7 = vadd.f32 %v6882_v30, %v13948_v40  ;;  %v10754_v32 = vld [vmem:[#allocation20 + $0x134] sm:$0xf] }
 0x7a2   : > { %v13970_v41 = vadd.f32 %v7027_v37, %v6979_v62  ;;  %v10738_v37 = vld [vmem:[#allocation20 + $0xb4] sm:$0xf]  ;;  %v10043_v62 = vld [vmem:[#allocation20 + $0x138] sm:$0xf0] }
 0x7a3   : > { %v9982_v30 = vor.u32 %v10738_v37, %v9979_v12  ;;  %v10046_v29 = vor.u32 %v10754_v32, %v10043_v62 }
 0x7a5   : > { %v6931_v47 = vpop.f32.mrf.mxu2  ;;  %7311 = vmatpush.bf16.msra.mxu2 %v9982_v30  ;;  %7360 = vmatpush.bf16.msra.mxu3 %v10046_v29  ;;  %v9971_v29 = vld [vmem:[#allocation20 + $0xa8] sm:$0xf0] }
 0x7a6   : > { %v6932_v15 = vadd.f32 %v6931_v47, %v6883_v7  ;;  %v6980_v25 = vpop.f32.mrf.mxu3  ;;  %v10722_v7 = vld [vmem:[#allocation20 + $0x34] sm:$0xf]  ;;  %v9915_v47 = vld [vmem:[#allocation20 + $0x38] sm:$0xf0] }
 0x7a7   : > { %v6885_v43 = vpop.f32.mrf.mxu1 }
 0x7a8   : > { %v6981_v55 = vadd.f32 %v6980_v25, %v6932_v15  ;;  %v7032_v48 = vpop.f32.mrf.mxu0  ;;  %v6886_v16 = vadd.f32 %v6885_v43, %v13948_v40  ;;  %v10770_v15 = vld [vmem:[#allocation20 + $0x1b4] sm:$0xf]  ;;  %v9918_v25 = vor.u32 %v10722_v7, %v9915_v47 }
 0x7aa   : > { %7080 = vmatmul.bf16.gmra.mxu1 %v13834_v56  ;;  %7129 = vmatmul.bf16.gmra.mxu2 %v13845_v36  ;;  %v13975_v57 = vadd.f32 %v7029_v3, %v6981_v55  ;;  %v10107_v55 = vld [vmem:[#allocation20 + $0x1b8] sm:$0xf0] }
 0x7ab   : > { %7178 = vmatmul.bf16.gmra.mxu3 %v13848_v5  ;;  %7227 = vmatmul.bf16.gmra.mxu0 %v13838_v18  ;;  %v10110_v18 = vor.u32 %v10770_v15, %v10107_v55 }
 0x7ac   : > { %7262 = vmatpush.bf16.msra.mxu1 %v9918_v25 }
 0x7ad   : > { %v6934_v14 = vpop.f32.mrf.mxu2  ;;  %7409 = vmatpush.bf16.msra.mxu0 %v10110_v18 }
 0x7ae   : > { %v6935_v2 = vadd.f32 %v6934_v14, %v6886_v16  ;;  %v6983_v49 = vpop.f32.mrf.mxu3 }
 0x7af   : > { %v6887_v20 = vpop.f32.mrf.mxu1 }
 0x7b0   : > { %v6984_v3 = vadd.f32 %v6983_v49, %v6935_v2  ;;  %v7034_v59 = vpop.f32.mrf.mxu0  ;;  %v6888_v43 = vadd.f32 %v6887_v20, %v13948_v40  ;;  %v10752_v2 = vld [vmem:[#allocation20 + $0x124] sm:$0xf]  ;;  %v10035_v20 = vld [vmem:[#allocation20 + $0x128] sm:$0xf0] }
 0x7b1   : > { %v10038_v7 = vor.u32 %v10752_v2, %v10035_v20 }
 0x7b2   : > { %v13980_v5 = vadd.f32 %v7032_v48, %v6984_v3  ;;  %v10736_v48 = vld [vmem:[#allocation20 + $0xa4] sm:$0xf] }
 0x7b3   : > { %v9974_v49 = vor.u32 %v10736_v48, %v9971_v29  ;;  %7361 = vmatpush.bf16.msra.mxu3 %v10038_v7  ;;  %v9963_v7 = vld [vmem:[#allocation20 + $0x98] sm:$0xf0] }
 0x7b5   : > { %v6936_v37 = vpop.f32.mrf.mxu2  ;;  %7312 = vmatpush.bf16.msra.mxu2 %v9974_v49 }
 0x7b6   : > { %v6937_v12 = vadd.f32 %v6936_v37, %v6888_v43  ;;  %v6985_v32 = vpop.f32.mrf.mxu3  ;;  %v10720_v43 = vld [vmem:[#allocation20 + $0x24] sm:$0xf]  ;;  %v9907_v37 = vld [vmem:[#allocation20 + $0x28] sm:$0xf0] }
 0x7b7   : > { %v6890_v16 = vpop.f32.mrf.mxu1 }
 0x7b8   : > { %v6986_v30 = vadd.f32 %v6985_v32, %v6937_v12  ;;  %v7037_v62 = vpop.f32.mrf.mxu0  ;;  %v6891_v18 = vadd.f32 %v6890_v16, %v13948_v40  ;;  %v10768_v12 = vld [vmem:[#allocation20 + $0x1a4] sm:$0xf]  ;;  %v9910_v32 = vor.u32 %v10720_v43, %v9907_v37 }
 0x7ba   : > { %7085 = vmatmul.bf16.gmra.mxu1 %v13855_v50  ;;  %7134 = vmatmul.bf16.gmra.mxu2 %v13866_v24  ;;  %v13985_v14 = vadd.f32 %v7034_v59, %v6986_v30  ;;  %v10099_v30 = vld [vmem:[#allocation20 + $0x1a8] sm:$0xf0] }
 0x7bb   : > { %7183 = vmatmul.bf16.gmra.mxu3 %v13869_v0  ;;  %7232 = vmatmul.bf16.gmra.mxu0 %v13859_v31  ;;  %v10102_v31 = vor.u32 %v10768_v12, %v10099_v30 }
 0x7bc   : > { %7263 = vmatpush.bf16.msra.mxu1 %v9910_v32 }
 0x7bd   : > { %v6939_v3 = vpop.f32.mrf.mxu2  ;;  %7410 = vmatpush.bf16.msra.mxu0 %v10102_v31 }
 0x7be   : > { %v6940_v47 = vadd.f32 %v6939_v3, %v6891_v18  ;;  %v6988_v15 = vpop.f32.mrf.mxu3 }
 0x7bf   : > { %v6892_v25 = vpop.f32.mrf.mxu1 }
 0x7c0   : > { %v6989_v59 = vadd.f32 %v6988_v15, %v6940_v47  ;;  %v7039_v55 = vpop.f32.mrf.mxu0  ;;  %v6893_v16 = vadd.f32 %v6892_v25, %v13948_v40  ;;  %v10750_v47 = vld [vmem:[#allocation20 + $0x114] sm:$0xf]  ;;  %v10027_v25 = vld [vmem:[#allocation20 + $0x118] sm:$0xf0] }
 0x7c1   : > { %v10030_v43 = vor.u32 %v10750_v47, %v10027_v25 }
 0x7c2   : > { %v13990_v0 = vadd.f32 %v7037_v62, %v6989_v59  ;;  %v10734_v62 = vld [vmem:[#allocation20 + $0x94] sm:$0xf] }
 0x7c3   : > { %v9966_v15 = vor.u32 %v10734_v62, %v9963_v7  ;;  %7362 = vmatpush.bf16.msra.mxu3 %v10030_v43  ;;  %v9955_v43 = vld [vmem:[#allocation20 + $0x88] sm:$0xf0] }
 0x7c5   : > { %v6941_v48 = vpop.f32.mrf.mxu2  ;;  %7313 = vmatpush.bf16.msra.mxu2 %v9966_v15 }
 0x7c6   : > { %v6942_v29 = vadd.f32 %v6941_v48, %v6893_v16  ;;  %v6990_v2 = vpop.f32.mrf.mxu3  ;;  %v10718_v16 = vld [vmem:[#allocation20 + $0x14] sm:$0xf]  ;;  %v9899_v48 = vld [vmem:[#allocation20 + $0x18] sm:$0xf0] }
 0x7c7   : > { %v6895_v18 = vpop.f32.mrf.mxu1 }
 0x7c8   : > { %v6991_v49 = vadd.f32 %v6990_v2, %v6942_v29  ;;  %v7042_v20 = vpop.f32.mrf.mxu0  ;;  %v6896_v31 = vadd.f32 %v6895_v18, %v13948_v40  ;;  %v10766_v29 = vld [vmem:[#allocation20 + $0x194] sm:$0xf]  ;;  %v9902_v2 = vor.u32 %v10718_v16, %v9899_v48 }
 0x7ca   : > { %7090 = vmatmul.bf16.gmra.mxu1 %v13876_v28  ;;  %7139 = vmatmul.bf16.gmra.mxu2 %v13887_v19  ;;  %v13995_v3 = vadd.f32 %v7039_v55, %v6991_v49  ;;  %v10091_v49 = vld [vmem:[#allocation20 + $0x198] sm:$0xf0] }
 0x7cb   : > { %7188 = vmatmul.bf16.gmra.mxu3 %v13890_v23  ;;  %7237 = vmatmul.bf16.gmra.mxu0 %v13880_v11  ;;  %v10094_v11 = vor.u32 %v10766_v29, %v10091_v49 }
 0x7cc   : > { %7264 = vmatpush.bf16.msra.mxu1 %v9902_v2 }
 0x7cd   : > { %v6944_v59 = vpop.f32.mrf.mxu2  ;;  %7411 = vmatpush.bf16.msra.mxu0 %v10094_v11 }
 0x7ce   : > { %v6945_v37 = vadd.f32 %v6944_v59, %v6896_v31  ;;  %v6993_v12 = vpop.f32.mrf.mxu3 }
 0x7cf   : > { %v6897_v32 = vpop.f32.mrf.mxu1 }
 0x7d0   : > { %v6994_v55 = vadd.f32 %v6993_v12, %v6945_v37  ;;  %v7044_v30 = vpop.f32.mrf.mxu0  ;;  %v6898_v18 = vadd.f32 %v6897_v32, %v13948_v40  ;;  %v10748_v37 = vld [vmem:[#allocation20 + $0x104] sm:$0xf]  ;;  %v10019_v32 = vld [vmem:[#allocation20 + $0x108] sm:$0xf0] }
 0x7d1   : > { %v10022_v16 = vor.u32 %v10748_v37, %v10019_v32 }
 0x7d2   : > { %v14000_v23 = vadd.f32 %v7042_v20, %v6994_v55  ;;  %v10732_v20 = vld [vmem:[#allocation20 + $0x84] sm:$0xf] }
 0x7d3   : > { %v9958_v12 = vor.u32 %v10732_v20, %v9955_v43  ;;  %7363 = vmatpush.bf16.msra.mxu3 %v10022_v16  ;;  %v10267_v16 = vld [vmem:[#allocation20 + $0x2f8] sm:$0xf0] }
 0x7d5   : > { %v6946_v62 = vpop.f32.mrf.mxu2  ;;  %7314 = vmatpush.bf16.msra.mxu2 %v9958_v12 }
 0x7d6   : > { %v6947_v7 = vadd.f32 %v6946_v62, %v6898_v18  ;;  %v6995_v47 = vpop.f32.mrf.mxu3  ;;  %v10716_v18 = vld [vmem:[#allocation20 + $0x4] sm:$0xf]  ;;  %v9891_v62 = vld [vmem:[#allocation20 + $0x8] sm:$0xf0] }
 0x7d7   : > { %v6900_v31 = vpop.f32.mrf.mxu1 }
 0x7d8   : > { %v6996_v15 = vadd.f32 %v6995_v47, %v6947_v7  ;;  %v7047_v25 = vpop.f32.mrf.mxu0  ;;  %v6901_v11 = vadd.f32 %v6900_v31, %v13948_v40  ;;  %v10764_v7 = vld [vmem:[#allocation20 + $0x184] sm:$0xf]  ;;  %v9894_v47 = vor.u32 %v10716_v18, %v9891_v62 }
 0x7da   : > { %7095 = vmatmul.bf16.gmra.mxu1 %v13897_v44  ;;  %7144 = vmatmul.bf16.gmra.mxu2 %v13908_v45  ;;  %v14005_v59 = vadd.f32 %v7044_v30, %v6996_v15  ;;  %v10083_v15 = vld [vmem:[#allocation20 + $0x188] sm:$0xf0] }
 0x7db   : > { %7193 = vmatmul.bf16.gmra.mxu3 %v13911_v63  ;;  %7242 = vmatmul.bf16.gmra.mxu0 %v13901_v46  ;;  %v10086_v46 = vor.u32 %v10764_v7, %v10083_v15 }
 0x7dc   : > { %7265 = vmatpush.bf16.msra.mxu1 %v9894_v47 }
 0x7dd   : > { %v6949_v55 = vpop.f32.mrf.mxu2  ;;  %7412 = vmatpush.bf16.msra.mxu0 %v10086_v46 }
 0x7de   : > { %v6950_v48 = vadd.f32 %v6949_v55, %v6901_v11  ;;  %v6998_v29 = vpop.f32.mrf.mxu3 }
 0x7df   : > { %v6902_v2 = vpop.f32.mrf.mxu1 }
 0x7e0   : > { %v6999_v30 = vadd.f32 %v6998_v29, %v6950_v48  ;;  %v7049_v49 = vpop.f32.mrf.mxu0  ;;  %v6903_v31 = vadd.f32 %v6902_v2, %v13948_v40  ;;  %v10826_v48 = vld [vmem:[#allocation20 + $0x374] sm:$0xf]  ;;  %v10331_v2 = vld [vmem:[#allocation20 + $0x378] sm:$0xf0] }
 0x7e1   : > { %v10334_v18 = vor.u32 %v10826_v48, %v10331_v2 }
 0x7e2   : > { %v14010_v63 = vadd.f32 %v7047_v25, %v6999_v30  ;;  %v10810_v25 = vld [vmem:[#allocation20 + $0x2f4] sm:$0xf] }
 0x7e3   : > { %v10270_v29 = vor.u32 %v10810_v25, %v10267_v16  ;;  %7552 = vmatpush.bf16.msrb.mxu3 %v10334_v18 }
 0x7e5   : > { %v6951_v20 = vpop.f32.mrf.mxu2  ;;  %7503 = vmatpush.bf16.msrb.mxu2 %v10270_v29 }
 0x7e6   : > { %v6952_v43 = vadd.f32 %v6951_v20, %v6903_v31  ;;  %v7000_v37 = vpop.f32.mrf.mxu3 }
 0x7e7   : > { %v6905_v11 = vpop.f32.mrf.mxu1 }
 0x7e8   : > { %v7001_v12 = vadd.f32 %v7000_v37, %v6952_v43  ;;  %v7052_v32 = vpop.f32.mrf.mxu0  ;;  %v6906_v46 = vadd.f32 %v6905_v11, %v13948_v40 }
 0x7ea   : > { %7100 = vmatmul.bf16.gmra.mxu1 %v13919_v1  ;;  %7149 = vmatmul.bf16.gmra.mxu2 %v13930_v35  ;;  %v14015_v55 = vadd.f32 %v7049_v49, %v7001_v12 }
 0x7eb   : > { %7198 = vmatmul.bf16.gmra.mxu3 %v13933_v54  ;;  %7247 = vmatmul.bf16.gmra.mxu0 %v13923_v34 }
 0x7ed   : > { %v6954_v30 = vpop.f32.mrf.mxu2 }
 0x7ee   : > { %v6955_v62 = vadd.f32 %v6954_v30, %v6906_v46  ;;  %v7003_v7 = vpop.f32.mrf.mxu3 }
 0x7ef   : > { %v6907_v47 = vpop.f32.mrf.mxu1 }
 0x7f0   : > { %v7004_v49 = vadd.f32 %v7003_v7, %v6955_v62  ;;  %v7054_v15 = vpop.f32.mrf.mxu0  ;;  %v6908_v20 = vadd.f32 %v6907_v47, %v13948_v40 }
 0x7f2   : > { %v14020_v31 = vadd.f32 %v7052_v32, %v7004_v49 }
 0x7f5   : > { %v6956_v43 = vpop.f32.mrf.mxu2 }
 0x7f6   : > { %v6957_v37 = vadd.f32 %v6956_v43, %v6908_v20  ;;  %v7005_v12 = vpop.f32.mrf.mxu3 }
 0x7f7   : > { %v6910_v34 = vpop.f32.mrf.mxu1 }
 0x7f8   : > { %v7006_v11 = vadd.f32 %v7005_v12, %v6957_v37  ;;  %v7057_v25 = vpop.f32.mrf.mxu0  ;;  %v6911_v32 = vadd.f32 %v6910_v34, %v13948_v40 }
 0x7fa   : > { %7105 = vmatmul.bf16.gmra.mxu1 %v13941_v52  ;;  %7154 = vmatmul.bf16.gmra.mxu2 %v13954_v51  ;;  %v14025_v16 = vadd.f32 %v7054_v15, %v7006_v11 }
 0x7fb   : > { %7203 = vmatmul.bf16.gmra.mxu3 %v13958_v39  ;;  %7252 = vmatmul.bf16.gmra.mxu0 %v13945_v53 }
 0x7fd   : > { %v6959_v48 = vpop.f32.mrf.mxu2 }
 0x7fe   : > { %v6960_v46 = vadd.f32 %v6959_v48, %v6911_v32  ;;  %v7008_v29 = vpop.f32.mrf.mxu3 }
 0x7ff   : > { %v6912_v2 = vpop.f32.mrf.mxu1 }
 0x800   : > { %v7009_v30 = vadd.f32 %v7008_v29, %v6960_v46  ;;  %v7059_v18 = vpop.f32.mrf.mxu0  ;;  %v6913_v7 = vadd.f32 %v6912_v2, %v13948_v40  ;;  %v10794_v2 = vld [vmem:[#allocation20 + $0x274] sm:$0xf] }
 0x802   : > { %v14030_v62 = vadd.f32 %v7057_v25, %v7009_v30  ;;  %v10203_v30 = vld [vmem:[#allocation20 + $0x278] sm:$0xf0] }
 0x805   : > { %v6961_v47 = vpop.f32.mrf.mxu2 }
 0x806   : > { %v6962_v49 = vadd.f32 %v6961_v47, %v6913_v7  ;;  %v7010_v15 = vpop.f32.mrf.mxu3 }
 0x807   : > { %v7071_v20 = vpop.f32.mrf.mxu1 }
 0x808   : > { %v7011_v43 = vadd.f32 %v7010_v15, %v6962_v49  ;;  %v7218_v37 = vpop.f32.mrf.mxu0  ;;  %v7072_v12 = vadd.f32 %v7071_v20, %v13960_v17 }
 0x80a   : > { %7266 = vmatmul.bf16.vlgmr.msra.gmra.mxu1 %v13616_v61  ;;  %7315 = vmatmul.bf16.vlgmr.msra.gmra.mxu2 %v13624_v38  ;;  %v14035_v34 = vadd.f32 %v7059_v18, %v7011_v43  ;;  %v10842_v61 = vld [vmem:[#allocation20 + $0x3f4] sm:$0xf]  ;;  %v10206_v18 = vor.u32 %v10794_v2, %v10203_v30 }
 0x80b   : > { %7364 = vmatmul.bf16.vlgmr.msra.gmra.mxu3 %v13628_v9  ;;  %7413 = vmatmul.bf16.vlgmr.msra.gmra.mxu0 %v13618_v21  ;;  %v10395_v9 = vld [vmem:[#allocation20 + $0x3f8] sm:$0xf0] }
 0x80c   : > { %v10398_v47 = vor.u32 %v10842_v61, %v10395_v9  ;;  %7454 = vmatpush.bf16.msrb.mxu1 %v10206_v18  ;;  %v10323_v61 = vld [vmem:[#allocation20 + $0x368] sm:$0xf0] }
 0x80d   : > { %v7120_v11 = vpop.f32.mrf.mxu2 }
 0x80e   : > { %v7121_v40 = vadd.f32 %v7120_v11, %v7072_v12  ;;  %v7169_v25 = vpop.f32.mrf.mxu3  ;;  %7601 = vmatpush.bf16.msrb.mxu0 %v10398_v47 }
 0x80f   : > { %v7073_v32 = vpop.f32.mrf.mxu1 }
 0x810   : > { %v7170_v48 = vadd.f32 %v7169_v25, %v7121_v40  ;;  %v7220_v46 = vpop.f32.mrf.mxu0  ;;  %v7074_v7 = vadd.f32 %v7073_v32, %v13965_v27  ;;  %v14837_v40 = vld [vmem:[#allocation63_spill] sm:$0xff]  ;;  %v14838_v27 = vld [vmem:[#allocation64_spill] sm:$0xff]  ;;  %v10259_v32 = vld [vmem:[#allocation20 + $0x2e8] sm:$0xf0] }
 0x811   : > { %v10808_v25 = vld [vmem:[#allocation20 + $0x2e4] sm:$0xf] }
 0x812   : > { %v7219_v29 = vadd.f32 %v7218_v37, %v7170_v48  ;;  %v10824_v48 = vld [vmem:[#allocation20 + $0x364] sm:$0xf]  ;;  %v10262_v30 = vor.u32 %v10808_v25, %v10259_v32 }
 0x814   : > { %vm7650_vm2 = vcmp.gt.f32.partialorder %v7219_v29, 0.0  ;;  %v7682_v38 = vmul.f32 0.2, %v7219_v29  ;;  %7504 = vmatpush.bf16.msrb.mxu2 %v10262_v30 }
 0x815   : > { %v7122_v21 = vpop.f32.mrf.mxu2 }
 0x816   : > { %v7714_v49 = vsel %vm7650_vm2, %v7219_v29, %v7682_v38  ;;  %v7123_v17 = vadd.f32 %v7122_v21, %v7074_v7  ;;  %v7171_v15 = vpop.f32.mrf.mxu3  ;;  %v10326_v38 = vor.u32 %v10824_v48, %v10323_v61 }
 0x817   : > { %v10399_v20 = vmul.f32 -1.442695, %v7714_v49  ;;  %v7076_v43 = vpop.f32.mrf.mxu1 }
 0x818   : > { %v7172_v12 = vadd.f32 %v7171_v15, %v7123_v17  ;;  %v7223_v37 = vpop.f32.mrf.mxu0  ;;  %v7077_v2 = vadd.f32 %v7076_v43, %v13970_v41  ;;  %7553 = vmatpush.bf16.msrb.mxu3 %v10326_v38  ;;  %v10792_v43 = vld [vmem:[#allocation20 + $0x264] sm:$0xf] }
 0x819   : > { %11086 = vpow2.f32 %v10399_v20 }
 0x81a   : > { %v7221_v11 = vadd.f32 %v7220_v46, %v7172_v12  ;;  %7271 = vmatmul.bf16.gmra.mxu1 %v13636_v22  ;;  %7320 = vmatmul.bf16.gmra.mxu2 %v13647_v4 }
 0x81b   : > { %7369 = vmatmul.bf16.gmra.mxu3 %v14837_v40  ;;  %7418 = vmatmul.bf16.gmra.mxu0 %v14838_v27  ;;  %v10840_v40 = vld [vmem:[#allocation20 + $0x3e4] sm:$0xf]  ;;  %v10387_v27 = vld [vmem:[#allocation20 + $0x3e8] sm:$0xf0] }
 0x81c   : > { %vm7652_vm7 = vcmp.gt.f32.partialorder %v7221_v11, 0.0  ;;  %v7684_v29 = vmul.f32 0.2, %v7221_v11  ;;  %v10390_v30 = vor.u32 %v10840_v40, %v10387_v27 }
 0x81d   : > { %v7125_v18 = vpop.f32.mrf.mxu2 }
 0x81e   : > { %v7716_v46 = vsel %vm7652_vm7, %v7221_v11, %v7684_v29  ;;  %v7126_v22 = vadd.f32 %v7125_v18, %v7077_v2  ;;  %v7174_v7 = vpop.f32.mrf.mxu3  ;;  %v10195_v11 = vld [vmem:[#allocation20 + $0x268] sm:$0xf0]  ;;  %7602 = vmatpush.bf16.msrb.mxu0 %v10390_v30 }
 0x81f   : > { %v11087_v4 = vpop.eup %11086  ;;  %v10401_v9 = vmul.f32 -1.442695, %v7716_v46  ;;  %v7078_v47 = vpop.f32.mrf.mxu1  ;;  %v10198_v2 = vor.u32 %v10792_v43, %v10195_v11  ;;  %v10251_v11 = vld [vmem:[#allocation20 + $0x2d8] sm:$0xf0] }
 0x820   : > { %v14046_v21 = vadd.f32 1.0, %v11087_v4  ;;  %v7175_v49 = vadd.f32 %v7174_v7, %v7126_v22  ;;  %v7225_v17 = vpop.f32.mrf.mxu0  ;;  %v7079_v15 = vadd.f32 %v7078_v47, %v13975_v57  ;;  %v14840_v7 = vld [vmem:[#allocation66_spill] sm:$0xff]  ;;  %v14841_v4 = vld [vmem:[#allocation43_spill] sm:$0xff] }
 0x821   : > { %11088 = vpow2.f32 %v10401_v9  ;;  %7455 = vmatpush.bf16.msrb.mxu1 %v10198_v2 }
 0x822   : > { %11090 = vrcp.f32 %v14046_v21  ;;  %v7224_v41 = vadd.f32 %v7223_v37, %v7175_v49  ;;  %v7883_v47 = vand.u32 2147483647, %v14046_v21  ;;  %vm7879_vm11 = vweird.f32 %v14046_v21 }
 0x824   : > { %vm7654_vm8 = vcmp.gt.f32.partialorder %v7224_v41, 0.0  ;;  %v7686_v20 = vmul.f32 0.2, %v7224_v41  ;;  %vm7884_vm13 = vcmp.eq.f32.partialorder %v7883_v47, 8.507059e+37 }
 0x825   : > { %v7127_v12 = vpop.f32.mrf.mxu2 }
 0x826   : > { %v7128_v25 = vadd.f32 %v7127_v12, %v7079_v15  ;;  %v7176_v32 = vpop.f32.mrf.mxu3  ;;  %v7718_v29 = vsel %vm7654_vm8, %v7224_v41, %v7686_v20  ;;  %v14842_v41 = vld [vmem:[#allocation42_spill] sm:$0xff]  ;;  %v14843_v15 = vld [vmem:[#allocation65_spill] sm:$0xff]  ;;  %v7885_v20 = vand.u32 2147483648, %v14046_v21 }
 0x827   : > { %v11089_v48 = vpop.eup %11088  ;;  %v7081_v61 = vpop.f32.mrf.mxu1  ;;  %v10403_v37 = vmul.f32 -1.442695, %v7718_v29  ;;  %v10806_v12 = vld [vmem:[#allocation20 + $0x2d4] sm:$0xf] }
 0x828   : > { %v11091_v38 = vpop.eup %11090  ;;  %v14050_v18 = vadd.f32 1.0, %v11089_v48  ;;  %v7177_v57 = vadd.f32 %v7176_v32, %v7128_v25  ;;  %v7228_v46 = vpop.f32.mrf.mxu0  ;;  %v7082_v43 = vadd.f32 %v7081_v61, %v13980_v5  ;;  %v10254_v25 = vor.u32 %v10806_v12, %v10251_v11  ;;  %v10822_v32 = vld [vmem:[#allocation20 + $0x354] sm:$0xf]  ;;  %v10315_v48 = vld [vmem:[#allocation20 + $0x358] sm:$0xf0] }
 0x829   : > { %v7875_v22 = vmul.f32 %v11091_v38, %v14046_v21  ;;  %vm7880_vm9 = vweird.f32 %v11091_v38  ;;  %v10318_v5 = vor.u32 %v10822_v32, %v10315_v48  ;;  %v10187_v32 = vld [vmem:[#allocation20 + $0x258] sm:$0xf0]  ;;  %v10838_v48 = vld [vmem:[#allocation20 + $0x3d4] sm:$0xf] }
 0x82a   : > { %11092 = vrcp.f32 %v14050_v18  ;;  %7276 = vmatmul.bf16.gmra.mxu1 %v14840_v7  ;;  %7325 = vmatmul.bf16.gmra.mxu2 %v14841_v4  ;;  %v7226_v49 = vadd.f32 %v7225_v17, %v7177_v57  ;;  %vm7881_vm12 = vmor %vm7879_vm11, %vm7880_vm9  ;;  %vm7909_vm0 = vweird.f32 %v14050_v18 }
 0x82b   : > { %v7876_v9 = vsub.f32 1.0, %v7875_v22  ;;  %11094 = vpow2.f32 %v10403_v37  ;;  %7374 = vmatmul.bf16.gmra.mxu3 %v14842_v41  ;;  %7423 = vmatmul.bf16.gmra.mxu0 %v14843_v15  ;;  %v7886_v22 = vor.u32 1.1754944e-38, %v7885_v20  ;;  %v7913_v20 = vand.u32 2147483647, %v14050_v18 }
 0x82c   : > { %vm7656_vm10 = vcmp.gt.f32.partialorder %v7226_v49, 0.0  ;;  %v7688_v27 = vmul.f32 0.2, %v7226_v49  ;;  %7505 = vmatpush.bf16.msrb.mxu2 %v10254_v25  ;;  %7554 = vmatpush.bf16.msrb.mxu3 %v10318_v5 }
 0x82d   : > { %v7877_v40 = vmul.f32 %v11091_v38, %v7876_v9  ;;  %v7130_v17 = vpop.f32.mrf.mxu2  ;;  %vm7914_vm4 = vcmp.eq.f32.partialorder %v7913_v20, 8.507059e+37  ;;  %v10804_v20 = vld [vmem:[#allocation20 + $0x2c4] sm:$0xf] }
 0x82e   : > { %v7131_v29 = vadd.f32 %v7130_v17, %v7082_v43  ;;  %v7179_v2 = vpop.f32.mrf.mxu3  ;;  %v7720_v37 = vsel %vm7656_vm10, %v7226_v49, %v7688_v27 }
 0x82f   : > { %v7878_v30 = vadd.f32 %v11091_v38, %v7877_v40  ;;  %v7083_v61 = vpop.f32.mrf.mxu1  ;;  %v10405_v7 = vmul.f32 -1.442695, %v7720_v37  ;;  %v7915_v40 = vand.u32 2147483648, %v14050_v18 }
 0x830   : > { %v11093_v57 = vpop.eup %11092  ;;  %v7180_v4 = vadd.f32 %v7179_v2, %v7131_v29  ;;  %v7230_v9 = vpop.f32.mrf.mxu0  ;;  %v7084_v47 = vadd.f32 %v7083_v61, %v13985_v14  ;;  %v10379_v29 = vld [vmem:[#allocation20 + $0x3d8] sm:$0xf0] }
 0x831   : > { %v11095_v41 = vpop.eup %11094  ;;  %v7882_v15 = vsel %vm7881_vm12, %v11091_v38, %v7878_v30  ;;  %v7905_v43 = vmul.f32 %v11093_v57, %v14050_v18  ;;  %11096 = vpow2.f32 %v10405_v7  ;;  %v10790_v38 = vld [vmem:[#allocation20 + $0x254] sm:$0xf]  ;;  %vm7910_vm14 = vweird.f32 %v11093_v57 }
 0x832   : > { %v7887_v12 = vsel %vm7884_vm13, %v7886_v22, %v7882_v15  ;;  %v14069_v21 = vadd.f32 1.0, %v11095_v41  ;;  %v7229_v49 = vadd.f32 %v7228_v46, %v7180_v4  ;;  %v10190_v17 = vor.u32 %v10790_v38, %v10187_v32  ;;  %vm7911_vm1 = vmor %vm7909_vm0, %vm7910_vm14 }
 0x833   : > { %8354 = vst [vmem:[%s14072_s14] sm:$0xff] %v7887_v12  ;;  %v7906_v11 = vsub.f32 1.0, %v7905_v43  ;;  %v10382_v22 = vor.u32 %v10838_v48, %v10379_v29  ;;  %v7916_v14 = vor.u32 1.1754944e-38, %v7915_v40  ;;  %v10820_v48 = vld [vmem:[#allocation20 + $0x344] sm:$0xf]  ;;  %v10307_v29 = vld [vmem:[#allocation20 + $0x348] sm:$0xf0] }
 0x834   : > { %11098 = vrcp.f32 %v14069_v21  ;;  %vm7658_vm15 = vcmp.gt.f32.partialorder %v7229_v49, 0.0  ;;  %v7690_v25 = vmul.f32 0.2, %v7229_v49  ;;  %7456 = vmatpush.bf16.msrb.mxu1 %v10190_v17  ;;  %vm7939_vm3 = vweird.f32 %v14069_v21 }
 0x835   : > { %v7907_v27 = vmul.f32 %v11093_v57, %v7906_v11  ;;  %v7132_v46 = vpop.f32.mrf.mxu2  ;;  %7603 = vmatpush.bf16.msrb.mxu0 %v10382_v22  ;;  %v10310_v22 = vor.u32 %v10820_v48, %v10307_v29 }
 0x836   : > { %v7133_v2 = vadd.f32 %v7132_v46, %v7084_v47  ;;  %v7181_v30 = vpop.f32.mrf.mxu3  ;;  %v7722_v5 = vsel %vm7658_vm15, %v7229_v49, %v7690_v25  ;;  %v14844_v49 = vld [vmem:[#allocation68_spill] sm:$0xff]  ;;  %v14845_v47 = vld [vmem:[#allocation70_spill] sm:$0xff]  ;;  %v10243_v25 = vld [vmem:[#allocation20 + $0x2c8] sm:$0xf0] }
 0x837   : > { %v7908_v37 = vadd.f32 %v11093_v57, %v7907_v27  ;;  %v7086_v7 = vpop.f32.mrf.mxu1  ;;  %v11097_v4 = vpop.eup %11096  ;;  %v10407_v61 = vmul.f32 -1.442695, %v7722_v5  ;;  %v14846_v27 = vld [vmem:[#allocation69_spill] sm:$0xff]  ;;  %v10246_v17 = vor.u32 %v10804_v20, %v10243_v25  ;;  %7555 = vmatpush.bf16.msrb.mxu3 %v10310_v22 }
 0x838   : > { %v7182_v41 = vadd.f32 %v7181_v30, %v7133_v2  ;;  %v7233_v15 = vpop.f32.mrf.mxu0  ;;  %v14081_v12 = vadd.f32 1.0, %v11097_v4  ;;  %v7943_v30 = vand.u32 2147483647, %v14069_v21 }
 0x839   : > { %v7912_v43 = vsel %vm7911_vm1, %v11093_v57, %v7908_v37  ;;  %11100 = vpow2.f32 %v10407_v61  ;;  %v14847_v57 = vld [vmem:[#allocation67_spill] sm:$0xff]  ;;  %v7945_v37 = vand.u32 2147483648, %v14069_v21  ;;  %7506 = vmatpush.bf16.msrb.mxu2 %v10246_v17 }
 0x83a   : > { %v11099_v11 = vpop.eup %11098  ;;  %v7917_v38 = vsel %vm7914_vm4, %v7916_v14, %v7912_v43  ;;  %v7231_v18 = vadd.f32 %v7230_v9, %v7182_v41  ;;  %7281 = vmatmul.bf16.gmra.mxu1 %v14844_v49  ;;  %7330 = vmatmul.bf16.gmra.mxu2 %v14845_v47  ;;  %11102 = vrcp.f32 %v14081_v12  ;;  %v7087_v9 = vadd.f32 %v7086_v7, %v13990_v0 }
 0x83b   : > { %8356 = vst [vmem:[%s14072_s14 + $0x10] sm:$0xff] %v7917_v38  ;;  %v7935_v40 = vmul.f32 %v11099_v11, %v14069_v21  ;;  %7379 = vmatmul.bf16.gmra.mxu3 %v14846_v27  ;;  %7428 = vmatmul.bf16.gmra.mxu0 %v14847_v57  ;;  %vm7940_vm6 = vweird.f32 %v11099_v11  ;;  %vm7944_vm7 = vcmp.eq.f32.partialorder %v7943_v30, 8.507059e+37  ;;  %vm7969_vm10 = vweird.f32 %v14081_v12 }
 0x83c   : > { %vm7660_vm5 = vcmp.gt.f32.partialorder %v7231_v18, 0.0  ;;  %v7692_v32 = vmul.f32 0.2, %v7231_v18  ;;  %vm7941_vm2 = vmor %vm7939_vm3, %vm7940_vm6 }
 0x83d   : > { %v7936_v46 = vsub.f32 1.0, %v7935_v40  ;;  %v7135_v2 = vpop.f32.mrf.mxu2  ;;  %v7946_v40 = vor.u32 1.1754944e-38, %v7945_v37  ;;  %v10179_v37 = vld [vmem:[#allocation20 + $0x248] sm:$0xf0] }
 0x83e   : > { %v7724_v5 = vsel %vm7660_vm5, %v7231_v18, %v7692_v32  ;;  %v7184_v4 = vpop.f32.mrf.mxu3  ;;  %v7136_v41 = vadd.f32 %v7135_v2, %v7087_v9  ;;  %v7973_v32 = vand.u32 2147483647, %v14081_v12  ;;  %v10788_v2 = vld [vmem:[#allocation20 + $0x244] sm:$0xf] }
 0x83f   : > { %v7937_v14 = vmul.f32 %v11099_v11, %v7936_v46  ;;  %v10409_v61 = vmul.f32 -1.442695, %v7724_v5  ;;  %v7088_v43 = vpop.f32.mrf.mxu1  ;;  %v11101_v38 = vpop.eup %11100  ;;  %v7975_v46 = vand.u32 2147483648, %v14081_v12  ;;  %v10836_v5 = vld [vmem:[#allocation20 + $0x3c4] sm:$0xf] }
 0x840   : > { %v7235_v0 = vpop.f32.mrf.mxu0  ;;  %v11103_v7 = vpop.eup %11102  ;;  %v14094_v47 = vadd.f32 1.0, %v11101_v38  ;;  %v7185_v18 = vadd.f32 %v7184_v4, %v7136_v41  ;;  %v7089_v9 = vadd.f32 %v7088_v43, %v13995_v3  ;;  %v10182_v3 = vor.u32 %v10788_v2, %v10179_v37  ;;  %v10802_v2 = vld [vmem:[#allocation20 + $0x2b4] sm:$0xf] }
 0x841   : > { %v7938_v49 = vadd.f32 %v11099_v11, %v7937_v14  ;;  %11104 = vpow2.f32 %v10409_v61  ;;  %v7965_v27 = vmul.f32 %v11103_v7, %v14081_v12  ;;  %vm7970_vm8 = vweird.f32 %v11103_v7 }
 0x842   : > { %11106 = vrcp.f32 %v14094_v47  ;;  %v7234_v21 = vadd.f32 %v7233_v15, %v7185_v18  ;;  %v10371_v15 = vld [vmem:[#allocation20 + $0x3c8] sm:$0xf0]  ;;  %vm7971_vm11 = vmor %vm7969_vm10, %vm7970_vm8  ;;  %vm7974_vm12 = vcmp.eq.f32.partialorder %v7973_v32, 8.507059e+37  ;;  %7457 = vmatpush.bf16.msrb.mxu1 %v10182_v3  ;;  %v8005_v32 = vand.u32 2147483648, %v14094_v47 }
 0x843   : > { %v7942_v57 = vsel %vm7941_vm2, %v11099_v11, %v7938_v49  ;;  %v7966_v25 = vsub.f32 1.0, %v7965_v27  ;;  %v7976_v49 = vor.u32 1.1754944e-38, %v7975_v46  ;;  %v8003_v46 = vand.u32 2147483647, %v14094_v47 }
 0x844   : > { %v7947_v20 = vsel %vm7944_vm7, %v7946_v40, %v7942_v57  ;;  %vm7662_vm9 = vcmp.gt.f32.partialorder %v7234_v21, 0.0  ;;  %v7694_v29 = vmul.f32 0.2, %v7234_v21  ;;  %v10374_v40 = vor.u32 %v10836_v5, %v10371_v15 }
 0x845   : > { %8358 = vst [vmem:[%s14072_s14 + $0x20] sm:$0xff] %v7947_v20  ;;  %v7137_v17 = vpop.f32.mrf.mxu2  ;;  %v7967_v48 = vmul.f32 %v11103_v7, %v7966_v25  ;;  %v14848_v20 = vld [vmem:[#allocation72_spill] sm:$0xff]  ;;  %vm7999_vm15 = vweird.f32 %v14094_v47  ;;  %vm8004_vm1 = vcmp.eq.f32.partialorder %v8003_v46, 8.507059e+37 }
 0x846   : > { %v7186_v11 = vpop.f32.mrf.mxu3  ;;  %v7138_v22 = vadd.f32 %v7137_v17, %v7089_v9  ;;  %v7726_v41 = vsel %vm7662_vm9, %v7234_v21, %v7694_v29  ;;  %7604 = vmatpush.bf16.msrb.mxu0 %v10374_v40  ;;  %v14849_v21 = vld [vmem:[#allocation45_spill] sm:$0xff] }
 0x847   : > { %v11105_v30 = vpop.eup %11104  ;;  %v7091_v4 = vpop.f32.mrf.mxu1  ;;  %v7968_v14 = vadd.f32 %v11103_v7, %v7967_v48  ;;  %v10411_v18 = vmul.f32 -1.442695, %v7726_v41  ;;  %v14850_v48 = vld [vmem:[#allocation71_spill] sm:$0xff] }
 0x848   : > { %v14103_v61 = vadd.f32 1.0, %v11105_v30  ;;  %v7238_v43 = vpop.f32.mrf.mxu0  ;;  %v11107_v38 = vpop.eup %11106  ;;  %v7187_v27 = vadd.f32 %v7186_v11, %v7138_v22  ;;  %v7092_v29 = vadd.f32 %v7091_v4, %v14000_v23  ;;  %v10235_v11 = vld [vmem:[#allocation20 + $0x2b8] sm:$0xf0]  ;;  %v10818_v22 = vld [vmem:[#allocation20 + $0x334] sm:$0xf] }
 0x849   : > { %v7972_v12 = vsel %vm7971_vm11, %v11103_v7, %v7968_v14  ;;  %v7995_v57 = vmul.f32 %v11107_v38, %v14094_v47  ;;  %v14851_v7 = vld [vmem:[#allocation44_spill] sm:$0xff]  ;;  %vm8000_vm13 = vweird.f32 %v11107_v38  ;;  %v10238_v15 = vor.u32 %v10802_v2, %v10235_v11  ;;  %v10299_v41 = vld [vmem:[#allocation20 + $0x338] sm:$0xf0]  ;;  %v10786_v2 = vld [vmem:[#allocation20 + $0x234] sm:$0xf] }
 0x84a   : > { %11108 = vrcp.f32 %v14103_v61  ;;  %7335 = vmatmul.bf16.gmra.mxu2 %v14848_v20  ;;  %v7977_v25 = vsel %vm7974_vm12, %v7976_v49, %v7972_v12  ;;  %7286 = vmatmul.bf16.gmra.mxu1 %v14849_v21  ;;  %v7236_v17 = vadd.f32 %v7235_v0, %v7187_v27  ;;  %v10302_v23 = vor.u32 %v10818_v22, %v10299_v41  ;;  %vm8001_vm0 = vmor %vm7999_vm15, %vm8000_vm13  ;;  %v10171_v11 = vld [vmem:[#allocation20 + $0x238] sm:$0xf0] }
 0x84b   : > { %8360 = vst [vmem:[%s14072_s14 + $0x30] sm:$0xff] %v7977_v25  ;;  %v7996_v9 = vsub.f32 1.0, %v7995_v57  ;;  %11110 = vpow2.f32 %v10411_v18  ;;  %7384 = vmatmul.bf16.gmra.mxu3 %v14850_v48  ;;  %7433 = vmatmul.bf16.gmra.mxu0 %v14851_v7  ;;  %v8006_v27 = vor.u32 1.1754944e-38, %v8005_v32  ;;  %v8033_v47 = vand.u32 2147483647, %v14103_v61 }
 0x84c   : > { %vm7664_vm14 = vcmp.gt.f32.partialorder %v7236_v17, 0.0  ;;  %v7696_v5 = vmul.f32 0.2, %v7236_v17  ;;  %7507 = vmatpush.bf16.msrb.mxu2 %v10238_v15  ;;  %7556 = vmatpush.bf16.msrb.mxu3 %v10302_v23  ;;  %vm8029_vm6 = vweird.f32 %v14103_v61 }
 0x84d   : > { %v7140_v30 = vpop.f32.mrf.mxu2  ;;  %v7997_v37 = vmul.f32 %v11107_v38, %v7996_v9  ;;  %vm8034_vm2 = vcmp.eq.f32.partialorder %v8033_v47, 8.507059e+37  ;;  %v14854_v47 = vld [vmem:[#allocation48_spill] sm:$0xff] }
 0x84e   : > { %v7189_v14 = vpop.f32.mrf.mxu3  ;;  %v7141_v0 = vadd.f32 %v7140_v30, %v7092_v29  ;;  %v7728_v40 = vsel %vm7664_vm14, %v7236_v17, %v7696_v5  ;;  %v8035_v17 = vand.u32 2147483648, %v14103_v61  ;;  %v10834_v5 = vld [vmem:[#allocation20 + $0x3b4] sm:$0xf] }
 0x84f   : > { %v7093_v3 = vpop.f32.mrf.mxu1  ;;  %v7998_v18 = vadd.f32 %v11107_v38, %v7997_v37  ;;  %v10413_v57 = vmul.f32 -1.442695, %v7728_v40  ;;  %v10174_v37 = vor.u32 %v10786_v2, %v10171_v11  ;;  %v10227_v2 = vld [vmem:[#allocation20 + $0x2a8] sm:$0xf0]  ;;  %v10816_v11 = vld [vmem:[#allocation20 + $0x324] sm:$0xf] }
 0x850   : > { %v11109_v49 = vpop.eup %11108  ;;  %v7240_v4 = vpop.f32.mrf.mxu0  ;;  %v7190_v20 = vadd.f32 %v7189_v14, %v7141_v0  ;;  %v10363_v14 = vld [vmem:[#allocation20 + $0x3b8] sm:$0xf0]  ;;  %v8036_v0 = vor.u32 1.1754944e-38, %v8035_v17 }
 0x851   : > { %v8025_v12 = vmul.f32 %v11109_v49, %v14103_v61  ;;  %v11111_v25 = vpop.eup %11110  ;;  %v8002_v21 = vsel %vm8001_vm0, %v11107_v38, %v7998_v18  ;;  %11112 = vpow2.f32 %v10413_v57  ;;  %vm8030_vm4 = vweird.f32 %v11109_v49  ;;  %7458 = vmatpush.bf16.msrb.mxu1 %v10174_v37  ;;  %v14852_v61 = vld [vmem:[#allocation49_spill] sm:$0xff] }
 0x852   : > { %v8007_v9 = vsel %vm8004_vm1, %v8006_v27, %v8002_v21  ;;  %v14119_v7 = vadd.f32 1.0, %v11111_v25  ;;  %v7239_v29 = vadd.f32 %v7238_v43, %v7190_v20  ;;  %v7094_v38 = vadd.f32 %v7093_v3, %v14005_v59  ;;  %vm8031_vm3 = vmor %vm8029_vm6, %vm8030_vm4  ;;  %v10291_v37 = vld [vmem:[#allocation20 + $0x328] sm:$0xf0] }
 0x853   : > { %v8026_v48 = vsub.f32 1.0, %v8025_v12  ;;  %8362 = vst [vmem:[%s14072_s14 + $0x40] sm:$0xff] %v8007_v9  ;;  %v10366_v40 = vor.u32 %v10834_v5, %v10363_v14 }
 0x854   : > { %11114 = vrcp.f32 %v14119_v7  ;;  %vm7666_vm5 = vcmp.gt.f32.partialorder %v7239_v29, 0.0  ;;  %v7698_v30 = vmul.f32 0.2, %v7239_v29  ;;  %v8065_v21 = vand.u32 2147483648, %v14119_v7 }
 0x855   : > { %v8027_v32 = vmul.f32 %v11109_v49, %v8026_v48  ;;  %v7142_v46 = vpop.f32.mrf.mxu2  ;;  %7605 = vmatpush.bf16.msrb.mxu0 %v10366_v40  ;;  %v14853_v48 = vld [vmem:[#allocation74_spill] sm:$0xff]  ;;  %vm8059_vm9 = vweird.f32 %v14119_v7 }
 0x856   : > { %v7191_v15 = vpop.f32.mrf.mxu3  ;;  %v7143_v41 = vadd.f32 %v7142_v46, %v7094_v38  ;;  %v7730_v18 = vsel %vm7666_vm5, %v7239_v29, %v7698_v30  ;;  %v14855_v29 = vld [vmem:[#allocation73_spill] sm:$0xff]  ;;  %v8066_v14 = vor.u32 1.1754944e-38, %v8065_v21 }
 0x857   : > { %v8028_v22 = vadd.f32 %v11109_v49, %v8027_v32  ;;  %v7096_v43 = vpop.f32.mrf.mxu1  ;;  %v11113_v3 = vpop.eup %11112  ;;  %v10415_v27 = vmul.f32 -1.442695, %v7730_v18  ;;  %v10800_v32 = vld [vmem:[#allocation20 + $0x2a4] sm:$0xf] }
 0x858   : > { %v7243_v59 = vpop.f32.mrf.mxu0  ;;  %v7192_v12 = vadd.f32 %v7191_v15, %v7143_v41  ;;  %v14128_v20 = vadd.f32 1.0, %v11113_v3 }
 0x859   : > { %v8032_v23 = vsel %vm8031_vm3, %v11109_v49, %v8028_v22  ;;  %11116 = vpow2.f32 %v10415_v27  ;;  %v7097_v49 = vadd.f32 %v7096_v43, %v14010_v63  ;;  %v8063_v22 = vand.u32 2147483647, %v14119_v7  ;;  %v10784_v27 = vld [vmem:[#allocation20 + $0x224] sm:$0xf] }
 0x85a   : > { %v8037_v57 = vsel %vm8034_vm2, %v8036_v0, %v8032_v23  ;;  %7340 = vmatmul.bf16.gmra.mxu2 %v14852_v61  ;;  %v11115_v25 = vpop.eup %11114  ;;  %v7241_v9 = vadd.f32 %v7240_v4, %v7192_v12  ;;  %7291 = vmatmul.bf16.gmra.mxu1 %v14853_v48  ;;  %11118 = vrcp.f32 %v14128_v20  ;;  %v10230_v4 = vor.u32 %v10800_v32, %v10227_v2  ;;  %v10163_v12 = vld [vmem:[#allocation20 + $0x228] sm:$0xf0] }
 0x85b   : > { %8364 = vst [vmem:[%s14072_s14 + $0x50] sm:$0xff] %v8037_v57  ;;  %v8055_v17 = vmul.f32 %v11115_v25, %v14119_v7  ;;  %7389 = vmatmul.bf16.gmra.mxu3 %v14854_v47  ;;  %7438 = vmatmul.bf16.gmra.mxu0 %v14855_v29  ;;  %v10294_v63 = vor.u32 %v10816_v11, %v10291_v37  ;;  %vm8060_vm8 = vweird.f32 %v11115_v25  ;;  %v10832_v57 = vld [vmem:[#allocation20 + $0x3a4] sm:$0xf]  ;;  %v8093_v7 = vand.u32 2147483647, %v14128_v20 }
 0x85c   : > { %vm7668_vm7 = vcmp.gt.f32.partialorder %v7241_v9, 0.0  ;;  %v7700_v38 = vmul.f32 0.2, %v7241_v9  ;;  %7508 = vmatpush.bf16.msrb.mxu2 %v10230_v4  ;;  %vm8061_vm10 = vmor %vm8059_vm9, %vm8060_vm8  ;;  %v10166_v47 = vor.u32 %v10784_v27, %v10163_v12  ;;  %vm8064_vm11 = vcmp.eq.f32.partialorder %v8063_v22, 8.507059e+37  ;;  %v10782_v27 = vld [vmem:[#allocation20 + $0x214] sm:$0xf] }
 0x85d   : > { %v7145_v46 = vpop.f32.mrf.mxu2  ;;  %v8056_v30 = vsub.f32 1.0, %v8055_v17  ;;  %7557 = vmatpush.bf16.msrb.mxu3 %v10294_v63  ;;  %v10355_v17 = vld [vmem:[#allocation20 + $0x3a8] sm:$0xf0]  ;;  %vm14155_vm14 = vcmp.eq.f32.partialorder %v8093_v7, 8.507059e+37  ;;  %v10283_v63 = vld [vmem:[#allocation20 + $0x318] sm:$0xf0]  ;;  %vm8089_vm15 = vweird.f32 %v14128_v20 }
 0x85e   : > { %v7146_v5 = vadd.f32 %v7145_v46, %v7097_v49  ;;  %v7194_v15 = vpop.f32.mrf.mxu3  ;;  %v7732_v41 = vsel %vm7668_vm7, %v7241_v9, %v7700_v38  ;;  %v10358_v29 = vor.u32 %v10832_v57, %v10355_v17  ;;  %7459 = vmatpush.bf16.msrb.mxu1 %v10166_v47  ;;  %v10798_v46 = vld [vmem:[#allocation20 + $0x294] sm:$0xf]  ;;  %v10155_v12 = vld [vmem:[#allocation20 + $0x218] sm:$0xf0] }
 0x85f   : > { %v7098_v43 = vpop.f32.mrf.mxu1  ;;  %v8057_v0 = vmul.f32 %v11115_v25, %v8056_v30  ;;  %v10417_v18 = vmul.f32 -1.442695, %v7732_v41  ;;  %v11117_v23 = vpop.eup %11116  ;;  %v8095_v30 = vand.u32 2147483648, %v14128_v20  ;;  %v10814_v41 = vld [vmem:[#allocation20 + $0x314] sm:$0xf]  ;;  %v10158_v7 = vor.u32 %v10782_v27, %v10155_v12 }
 0x860   : > { %v7195_v40 = vadd.f32 %v7194_v15, %v7146_v5  ;;  %v7245_v3 = vpop.f32.mrf.mxu0  ;;  %v14141_v61 = vpop.eup %11118  ;;  %v14143_v21 = vadd.f32 1.0, %v11117_v23  ;;  %v7099_v2 = vadd.f32 %v7098_v43, %v14015_v55  ;;  %7606 = vmatpush.bf16.msrb.mxu0 %v10358_v29  ;;  %v10219_v15 = vld [vmem:[#allocation20 + $0x298] sm:$0xf0]  ;;  %v10286_v23 = vor.u32 %v10814_v41, %v10283_v63  ;;  %v10830_v57 = vld [vmem:[#allocation20 + $0x394] sm:$0xf] }
 0x861   : > { %v8058_v48 = vadd.f32 %v11115_v25, %v8057_v0  ;;  %11120 = vpow2.f32 %v10417_v18  ;;  %v8085_v49 = vmul.f32 %v14141_v61, %v14128_v20  ;;  %vm8090_vm13 = vweird.f32 %v14141_v61  ;;  %v10347_v47 = vld [vmem:[#allocation20 + $0x398] sm:$0xf0]  ;;  %v10828_v41 = vld [vmem:[#allocation20 + $0x384] sm:$0xf] }
 0x862   : > { %v7244_v9 = vadd.f32 %v7243_v59, %v7195_v40  ;;  %11122 = vrcp.f32 %v14143_v21  ;;  %vm14172_vm0 = vmor %vm8089_vm15, %vm8090_vm13  ;;  %7558 = vmatpush.bf16.msrb.mxu3 %v10286_v23  ;;  %7460 = vmatpush.bf16.msrb.mxu1 %v10158_v7  ;;  %v8125_v55 = vand.u32 2147483648, %v14143_v21  ;;  %v10339_v23 = vld [vmem:[#allocation20 + $0x388] sm:$0xf0]  ;;  %vm8119_vm5 = vweird.f32 %v14143_v21 }
 0x863   : > { %v8062_v32 = vsel %vm8061_vm10, %v11115_v25, %v8058_v48  ;;  %v8086_v38 = vsub.f32 1.0, %v8085_v49  ;;  %v10342_v7 = vor.u32 %v10828_v41, %v10339_v23 }
 0x864   : > { %v8067_v11 = vsel %vm8064_vm11, %v8066_v14, %v8062_v32  ;;  %vm7670_vm12 = vcmp.gt.f32.partialorder %v7244_v9, 0.0  ;;  %v7702_v4 = vmul.f32 0.2, %v7244_v9  ;;  %v10222_v14 = vor.u32 %v10798_v46, %v10219_v15  ;;  %v14861_v15 = vld [vmem:[#allocation78_spill] sm:$0xff] }
 0x865   : > { %v7147_v59 = vpop.f32.mrf.mxu2  ;;  %8366 = vst [vmem:[%s14072_s14 + $0x60] sm:$0xff] %v8067_v11  ;;  %v8087_v25 = vmul.f32 %v14141_v61, %v8086_v38  ;;  %v8096_v32 = vor.u32 1.1754944e-38, %v8095_v30  ;;  %v10350_v38 = vor.u32 %v10830_v57, %v10347_v47  ;;  %v10211_v30 = vld [vmem:[#allocation20 + $0x288] sm:$0xf0] }
 0x866   : > { %v7148_v37 = vadd.f32 %v7147_v59, %v7099_v2  ;;  %v7196_v5 = vpop.f32.mrf.mxu3  ;;  %v7734_v0 = vsel %vm7670_vm12, %v7244_v9, %v7702_v4  ;;  %7509 = vmatpush.bf16.msrb.mxu2 %v10222_v14  ;;  %v8123_v2 = vand.u32 2147483647, %v14143_v21  ;;  %v10796_v59 = vld [vmem:[#allocation20 + $0x284] sm:$0xf]  ;;  %v10147_v14 = vld [vmem:[#allocation20 + $0x208] sm:$0xf0] }
 0x867   : > { %v7101_v22 = vpop.f32.mrf.mxu1  ;;  %v11121_v43 = vpop.eup %11120  ;;  %v8088_v48 = vadd.f32 %v14141_v61, %v8087_v25  ;;  %v10419_v49 = vmul.f32 -1.442695, %v7734_v0  ;;  %v14860_v4 = vld [vmem:[#allocation76_spill] sm:$0xff]  ;;  %v14862_v25 = vld [vmem:[#allocation75_spill] sm:$0xff]  ;;  %7607 = vmatpush.bf16.msrb.mxu0 %v10350_v38 }
 0x868   : > { %v7197_v18 = vadd.f32 %v7196_v5, %v7148_v37  ;;  %v14161_v40 = vpop.f32.mrf.mxu0  ;;  %v14164_v17 = vadd.f32 1.0, %v11121_v43  ;;  %v14166_v29 = vpop.eup %11122  ;;  %v10812_v37 = vld [vmem:[#allocation20 + $0x304] sm:$0xf]  ;;  %v7102_v5 = vadd.f32 %v7101_v22, %v14020_v31  ;;  %vm8124_vm3 = vcmp.eq.f32.partialorder %v8123_v2, 8.507059e+37 }
 0x869   : > { %v8092_v46 = vsel %vm14172_vm0, %v14141_v61, %v8088_v48  ;;  %v8115_v20 = vmul.f32 %v14166_v29, %v14143_v21  ;;  %v10780_v61 = vld [vmem:[#allocation20 + $0x204] sm:$0xf]  ;;  %vm8120_vm4 = vweird.f32 %v14166_v29 }
 0x86a   : > { %v7246_v11 = vadd.f32 %v7245_v3, %v7197_v18  ;;  %7345 = vmatmul.bf16.gmra.mxu2 %v13751_v10  ;;  %11124 = vrcp.f32 %v14164_v17  ;;  %7296 = vmatmul.bf16.gmra.mxu1 %v14860_v4  ;;  %v10275_v3 = vld [vmem:[#allocation20 + $0x308] sm:$0xf0]  ;;  %v8097_v10 = vsel %vm14155_vm14, %v8096_v32, %v8092_v46  ;;  %v10214_v18 = vor.u32 %v10796_v59, %v10211_v30  ;;  %vm8121_vm6 = vmor %vm8119_vm5, %vm8120_vm4 }
 0x86b   : > { %7394 = vmatmul.bf16.gmra.mxu3 %v14861_v15  ;;  %7443 = vmatmul.bf16.gmra.mxu0 %v14862_v25  ;;  %8368 = vst [vmem:[%s14072_s14 + $0x70] sm:$0xff] %v8097_v10  ;;  %v8116_v63 = vsub.f32 1.0, %v8115_v20  ;;  %11126 = vpow2.f32 %v10419_v49  ;;  %v10278_v48 = vor.u32 %v10812_v37, %v10275_v3  ;;  %v10150_v47 = vor.u32 %v10780_v61, %v10147_v14 }
 0x86c   : > { %vm7672_vm1 = vcmp.gt.f32.partialorder %v7246_v11, 0.0  ;;  %v7704_v43 = vmul.f32 0.2, %v7246_v11  ;;  %7510 = vmatpush.bf16.msrb.mxu2 %v10214_v18  ;;  %7608 = vmatpush.bf16.msrb.mxu0 %v10342_v7  ;;  %v8155_v10 = vand.u32 2147483648, %v14164_v17  ;;  %vm8149_vm8 = vweird.f32 %v14164_v17 }
 0x86d   : > { %v7150_v0 = vpop.f32.mrf.mxu2  ;;  %v8117_v27 = vmul.f32 %v14166_v29, %v8116_v63  ;;  %7559 = vmatpush.bf16.msrb.mxu3 %v10278_v48  ;;  %7461 = vmatpush.bf16.msrb.mxu1 %v10150_v47  ;;  %v14864_v48 = vld [vmem:[#allocation77_spill] sm:$0xff] }
 0x86e   : > { %v7151_v31 = vadd.f32 %v7150_v0, %v7102_v5  ;;  %v7199_v22 = vpop.f32.mrf.mxu3  ;;  %v7736_v12 = vsel %vm7672_vm1, %v7246_v11, %v7704_v43  ;;  %v8126_v11 = vor.u32 1.1754944e-38, %v8125_v55 }
 0x86f   : > { %v7103_v57 = vpop.f32.mrf.mxu1  ;;  %v10421_v49 = vmul.f32 -1.442695, %v7736_v12  ;;  %v8118_v46 = vadd.f32 %v14166_v29, %v8117_v27 }
 0x870   : > { %v7200_v9 = vadd.f32 %v7199_v22, %v7151_v31  ;;  %v7250_v32 = vpop.f32.mrf.mxu0  ;;  %v11125_v38 = vpop.eup %11124  ;;  %v7104_v15 = vadd.f32 %v7103_v57, %v14025_v16  ;;  %v8156_v16 = vor.u32 1.1754944e-38, %v8155_v10  ;;  %v14863_v57 = vld [vmem:[#allocation53_spill] sm:$0xff] }
 0x871   : > { %v8145_v59 = vmul.f32 %v11125_v38, %v14164_v17  ;;  %11128 = vpow2.f32 %v10421_v49  ;;  %v11127_v4 = vpop.eup %11126  ;;  %v8122_v30 = vsel %vm8121_vm6, %v14166_v29, %v8118_v46  ;;  %vm8150_vm7 = vweird.f32 %v11125_v38 }
 0x872   : > { %v7249_v20 = vadd.f32 %v14161_v40, %v7200_v9  ;;  %v8127_v37 = vsel %vm8124_vm3, %v8126_v11, %v8122_v30  ;;  %v14201_v21 = vadd.f32 1.0, %v11127_v4  ;;  %v8153_v40 = vand.u32 2147483647, %v14164_v17  ;;  %vm8151_vm9 = vmor %vm8149_vm8, %vm8150_vm7 }
 0x873   : > { %v8146_v3 = vsub.f32 1.0, %v8145_v59  ;;  %8370 = vst [vmem:[%s14072_s14 + $0x80] sm:$0xff] %v8127_v37 }
 0x874   : > { %vm7674_vm2 = vcmp.gt.f32.partialorder %v7249_v20, 0.0  ;;  %v7706_v5 = vmul.f32 0.2, %v7249_v20  ;;  %11130 = vrcp.f32 %v14201_v21  ;;  %vm8154_vm10 = vcmp.eq.f32.partialorder %v8153_v40, 8.507059e+37 }
 0x875   : > { %v7152_v25 = vpop.f32.mrf.mxu2  ;;  %v8147_v61 = vmul.f32 %v11125_v38, %v8146_v3  ;;  %v8183_v46 = vand.u32 2147483647, %v14201_v21  ;;  %vm8179_vm13 = vweird.f32 %v14201_v21 }
 0x876   : > { %v7201_v29 = vpop.f32.mrf.mxu3  ;;  %v7738_v2 = vsel %vm7674_vm2, %v7249_v20, %v7706_v5  ;;  %v7153_v14 = vadd.f32 %v7152_v25, %v7104_v15 }
 0x877   : > { %v7106_v41 = vpop.f32.mrf.mxu1  ;;  %v11129_v63 = vpop.eup %11128  ;;  %v8148_v43 = vadd.f32 %v11125_v38, %v8147_v61  ;;  %v10423_v0 = vmul.f32 -1.442695, %v7738_v2  ;;  %vm8184_vm14 = vcmp.eq.f32.partialorder %v8183_v46, 8.507059e+37 }
 0x878   : > { %v7253_v55 = vpop.f32.mrf.mxu0  ;;  %v14209_v31 = vadd.f32 1.0, %v11129_v63  ;;  %v7202_v22 = vadd.f32 %v7201_v29, %v7153_v14  ;;  %v7107_v12 = vadd.f32 %v7106_v41, %v14030_v62 }
 0x879   : > { %v8152_v18 = vsel %vm8151_vm9, %v11125_v38, %v8148_v43  ;;  %11132 = vpow2.f32 %v10423_v0 }
 0x87a   : > { %7350 = vmatmul.bf16.gmra.mxu2 %v13778_v13  ;;  %v8157_v23 = vsel %vm8154_vm10, %v8156_v16, %v8152_v18  ;;  %11134 = vrcp.f32 %v14209_v31  ;;  %7301 = vmatmul.bf16.gmra.mxu1 %v13761_v8  ;;  %v11131_v27 = vpop.eup %11130  ;;  %v7251_v17 = vadd.f32 %v7250_v32, %v7202_v22  ;;  %v8185_v8 = vand.u32 2147483648, %v14201_v21  ;;  %v11216_v22 = vld [vmem:[#allocation22] sm:$0x3] }
 0x87b   : > { %8372 = vst [vmem:[%s14072_s14 + $0x90] sm:$0xff] %v8157_v23  ;;  %7399 = vmatmul.bf16.gmra.mxu3 %v14863_v57  ;;  %7448 = vmatmul.bf16.gmra.mxu0 %v14864_v48  ;;  %v8175_v47 = vmul.f32 %v11131_v27, %v14201_v21  ;;  %vm8180_vm12 = vweird.f32 %v11131_v27  ;;  %v8213_v2 = vand.u32 2147483647, %v14209_v31  ;;  %v8215_v21 = vand.u32 2147483648, %v14209_v31 }
 0x87c   : > { %vm7676_vm11 = vcmp.gt.f32.partialorder %v7251_v17, 0.0  ;;  %v7708_v9 = vmul.f32 0.2, %v7251_v17  ;;  %v8186_v25 = vor.u32 1.1754944e-38, %v8185_v8  ;;  %vm8181_vm15 = vmor %vm8179_vm13, %vm8180_vm12  ;;  %v14230_v18 = vperm.slane %v11216_v22, 1  ;;  %v14865_v8 = vld [vmem:[#allocation79_spill] sm:$0xff] }
 0x87d   : > { %v7155_v49 = vpop.f32.mrf.mxu2  ;;  %v8176_v38 = vsub.f32 1.0, %v8175_v47  ;;  %vm8209_vm4 = vweird.f32 %v14209_v31  ;;  %v8216_v48 = vor.u32 1.1754944e-38, %v8215_v21  ;;  %vm8214_vm6 = vcmp.eq.f32.partialorder %v8213_v2, 8.507059e+37 }
 0x87e   : > { %v7156_v13 = vadd.f32 %v7155_v49, %v7107_v12  ;;  %v7204_v7 = vpop.f32.mrf.mxu3  ;;  %v7740_v59 = vsel %vm7676_vm11, %v7251_v17, %v7708_v9 }
 0x87f   : > { %v7108_v11 = vpop.f32.mrf.mxu1  ;;  %v11133_v32 = vpop.eup %11132  ;;  %v8177_v30 = vmul.f32 %v11131_v27, %v8176_v38  ;;  %v10425_v3 = vmul.f32 -1.442695, %v7740_v59 }
 0x880   : > { %v7205_v62 = vadd.f32 %v7204_v7, %v7156_v13  ;;  %v7255_v20 = vpop.f32.mrf.mxu0  ;;  %v11135_v4 = vpop.eup %11134  ;;  %v14221_v37 = vadd.f32 1.0, %v11133_v32  ;;  %v7109_v40 = vadd.f32 %v7108_v11, %v14035_v34  ;;  %v14866_v11 = vld [vmem:[#allocation52_spill] sm:$0xff] }
 0x881   : > { %v8205_v10 = vmul.f32 %v11135_v4, %v14209_v31  ;;  %v8178_v15 = vadd.f32 %v11131_v27, %v8177_v30  ;;  %vm8210_vm1 = vweird.f32 %v11135_v4 }
 0x882   : > { %v7254_v5 = vadd.f32 %v7253_v55, %v7205_v62  ;;  %11136 = vrcp.f32 %v14221_v37  ;;  %vm8211_vm5 = vmor %vm8209_vm4, %vm8210_vm1  ;;  %v8243_v32 = vand.u32 2147483647, %v14221_v37  ;;  %v8245_v59 = vand.u32 2147483648, %v14221_v37 }
 0x883   : > { %v8206_v61 = vsub.f32 1.0, %v8205_v10  ;;  %11138 = vpow2.f32 %v10425_v3  ;;  %v8182_v29 = vsel %vm8181_vm15, %v11131_v27, %v8178_v15  ;;  %vm8239_vm7 = vweird.f32 %v14221_v37 }
 0x884   : > { %vm7678_vm0 = vcmp.gt.f32.partialorder %v7254_v5, 0.0  ;;  %v7710_v14 = vmul.f32 0.2, %v7254_v5  ;;  %v8187_v63 = vsel %vm8184_vm14, %v8186_v25, %v8182_v29  ;;  %vm8244_vm9 = vcmp.eq.f32.partialorder %v8243_v32, 8.507059e+37 }
 0x885   : > { %v7157_v41 = vpop.f32.mrf.mxu2  ;;  %v8207_v43 = vmul.f32 %v11135_v4, %v8206_v61  ;;  %8374 = vst [vmem:[%s14072_s14 + $0xa0] sm:$0xff] %v8187_v63  ;;  %v8246_v61 = vor.u32 1.1754944e-38, %v8245_v59 }
 0x886   : > { %v7158_v0 = vadd.f32 %v7157_v41, %v7109_v40  ;;  %v7206_v55 = vpop.f32.mrf.mxu3  ;;  %v7742_v16 = vsel %vm7678_vm0, %v7254_v5, %v7710_v14 }
 0x887   : > { %v7267_v23 = vpop.f32.mrf.mxu1  ;;  %v8208_v17 = vadd.f32 %v11135_v4, %v8207_v43  ;;  %v10427_v34 = vmul.f32 -1.442695, %v7742_v16 }
 0x888   : > { %v7207_v27 = vadd.f32 %v7206_v55, %v7158_v0  ;;  %v7414_v12 = vpop.f32.mrf.mxu0  ;;  %v11137_v57 = vpop.eup %11136  ;;  %v7268_v46 = vadd.f32 %v7267_v23, %v14230_v18 }
 0x889   : > { %v11139_v47 = vpop.eup %11138  ;;  %v8212_v49 = vsel %vm8211_vm5, %v11135_v4, %v8208_v17  ;;  %v8235_v9 = vmul.f32 %v11137_v57, %v14221_v37  ;;  %11140 = vpow2.f32 %v10427_v34  ;;  %vm8240_vm3 = vweird.f32 %v11137_v57 }
 0x88a   : > { %7511 = vmatmul.bf16.vlgmr.msrb.gmra.mxu2 %v13801_v33  ;;  %v8217_v13 = vsel %vm8214_vm6, %v8216_v48, %v8212_v49  ;;  %v14235_v7 = vadd.f32 1.0, %v11139_v47  ;;  %v7256_v38 = vadd.f32 %v7255_v20, %v7207_v27  ;;  %7462 = vmatmul.bf16.vlgmr.msrb.gmra.mxu1 %v13793_v42  ;;  %vm8241_vm8 = vmor %vm8239_vm7, %vm8240_vm3 }
 0x88b   : > { %8376 = vst [vmem:[%s14072_s14 + $0xb0] sm:$0xff] %v8217_v13  ;;  %v8236_v31 = vsub.f32 1.0, %v8235_v9  ;;  %7560 = vmatmul.bf16.vlgmr.msrb.gmra.mxu3 %v14865_v8  ;;  %7609 = vmatmul.bf16.vlgmr.msrb.gmra.mxu0 %v14866_v11 }
 0x88c   : > { %11142 = vrcp.f32 %v14235_v7  ;;  %vm7680_vm2 = vcmp.gt.f32.partialorder %v7256_v38, 0.0  ;;  %v7712_v20 = vmul.f32 0.2, %v7256_v38  ;;  %v8275_v22 = vand.u32 2147483648, %v14235_v7 }
 0x88d   : > { %v7316_v33 = vpop.f32.mrf.mxu2  ;;  %v8237_v62 = vmul.f32 %v11137_v57, %v8236_v31  ;;  %v8273_v34 = vand.u32 2147483647, %v14235_v7  ;;  %vm8269_vm11 = vweird.f32 %v14235_v7 }
 0x88e   : > { %v7317_v42 = vadd.f32 %v7316_v33, %v7268_v46  ;;  %v7365_v4 = vpop.f32.mrf.mxu3  ;;  %v7744_v5 = vsel %vm7680_vm2, %v7256_v38, %v7712_v20  ;;  %v8276_v13 = vor.u32 1.1754944e-38, %v8275_v22 }
 0x88f   : > { %v7269_v30 = vpop.f32.mrf.mxu1  ;;  %v11141_v3 = vpop.eup %11140  ;;  %v8238_v10 = vadd.f32 %v11137_v57, %v8237_v62  ;;  %v10429_v29 = vmul.f32 -1.442695, %v7744_v5  ;;  %vm8274_vm13 = vcmp.eq.f32.partialorder %v8273_v34, 8.507059e+37  ;;  %v14868_v34 = vld [vmem:[#allocation81_spill] sm:$0xff] }
 0x890   : > { %v7366_v15 = vadd.f32 %v7365_v4, %v7317_v42  ;;  %v7416_v25 = vpop.f32.mrf.mxu0  ;;  %v7870_v40 = vadd.f32 1.0, %v11141_v3  ;;  %v7270_v37 = vadd.f32 %v7269_v30, %v14230_v18 }
 0x891   : > { %v8242_v2 = vsel %vm8241_vm8, %v11137_v57, %v8238_v10 }
 0x892   : > { %v14247_v21 = vadd.f32 %v7414_v12, %v7366_v15  ;;  %v11143_v14 = vpop.eup %11142  ;;  %v8247_v41 = vsel %vm8244_vm9, %v8246_v61, %v8242_v2  ;;  %11144 = vrcp.f32 %v7870_v40  ;;  %v8305_v11 = vand.u32 2147483648, %v7870_v40 }
 0x893   : > { %8378 = vst [vmem:[%s14072_s14 + $0xc0] sm:$0xff] %v8247_v41  ;;  %v8265_v63 = vmul.f32 %v11143_v14, %v14235_v7  ;;  %11146 = vpow2.f32 %v10429_v29  ;;  %vm8270_vm10 = vweird.f32 %v11143_v14  ;;  %v8303_v59 = vand.u32 2147483647, %v7870_v40 }
 0x894   : > { %vm8271_vm12 = vmor %vm8269_vm11, %vm8270_vm10  ;;  %vm8299_vm15 = vweird.f32 %v7870_v40 }
 0x895   : > { %v7318_v43 = vpop.f32.mrf.mxu2  ;;  %v8266_v0 = vsub.f32 1.0, %v8265_v63  ;;  %vm8304_vm1 = vcmp.eq.f32.partialorder %v8303_v59, 8.507059e+37  ;;  %v14869_v59 = vld [vmem:[#allocation54_spill] sm:$0xff] }
 0x896   : > { %v7319_v55 = vadd.f32 %v7318_v43, %v7270_v37  ;;  %v7367_v16 = vpop.f32.mrf.mxu3 }
 0x897   : > { %v7272_v23 = vpop.f32.mrf.mxu1  ;;  %v8267_v17 = vmul.f32 %v11143_v14, %v8266_v0 }
 0x898   : > { %v7368_v27 = vadd.f32 %v7367_v16, %v7319_v55  ;;  %v7419_v12 = vpop.f32.mrf.mxu0  ;;  %v11145_v57 = vpop.eup %11144  ;;  %v7273_v8 = vadd.f32 %v7272_v23, %v14230_v18 }
 0x899   : > { %v11147_v48 = vpop.eup %11146  ;;  %v8268_v47 = vadd.f32 %v11143_v14, %v8267_v17  ;;  %v8295_v49 = vmul.f32 %v11145_v57, %v7870_v40  ;;  %vm8300_vm14 = vweird.f32 %v11145_v57  ;;  %v14867_v17 = vld [vmem:[#allocation80_spill] sm:$0xff] }
 0x89a   : > { %7516 = vmatmul.bf16.gmra.mxu2 %v13824_v60  ;;  %v14256_v9 = vadd.f32 %v7416_v25, %v7368_v27  ;;  %v7872_v38 = vadd.f32 1.0, %v11147_v48  ;;  %7467 = vmatmul.bf16.gmra.mxu1 %v13813_v26  ;;  %vm8301_vm0 = vmor %vm8299_vm15, %vm8300_vm14 }
 0x89b   : > { %v8272_v31 = vsel %vm8271_vm12, %v11143_v14, %v8268_v47  ;;  %v8296_v46 = vsub.f32 1.0, %v8295_v49  ;;  %7565 = vmatmul.bf16.gmra.mxu3 %v13827_v6  ;;  %7614 = vmatmul.bf16.gmra.mxu0 %v13817_v58  ;;  %v8306_v6 = vor.u32 1.1754944e-38, %v8305_v11 }
 0x89c   : > { %v8277_v7 = vsel %vm8274_vm13, %v8276_v13, %v8272_v31  ;;  %11148 = vrcp.f32 %v7872_v38  ;;  %v8335_v14 = vand.u32 2147483648, %v7872_v38  ;;  %v8333_v63 = vand.u32 2147483647, %v7872_v38 }
 0x89d   : > { %v7321_v60 = vpop.f32.mrf.mxu2  ;;  %8380 = vst [vmem:[%s14072_s14 + $0xd0] sm:$0xff] %v8277_v7  ;;  %v8297_v32 = vmul.f32 %v11145_v57, %v8296_v46  ;;  %vm8329_vm5 = vweird.f32 %v7872_v38 }
 0x89e   : > { %v7322_v33 = vadd.f32 %v7321_v60, %v7273_v8  ;;  %v7370_v26 = vpop.f32.mrf.mxu3  ;;  %v8336_v16 = vor.u32 1.1754944e-38, %v8335_v14  ;;  %vm8334_vm3 = vcmp.eq.f32.partialorder %v8333_v63, 8.507059e+37  ;;  %v14872_v14 = vld [vmem:[#allocation82_spill] sm:$0xff] }
 0x89f   : > { %v7274_v62 = vpop.f32.mrf.mxu1  ;;  %v8298_v20 = vadd.f32 %v11145_v57, %v8297_v32 }
 0x8a0   : > { %v7371_v42 = vadd.f32 %v7370_v26, %v7322_v33  ;;  %v7421_v4 = vpop.f32.mrf.mxu0  ;;  %v7275_v15 = vadd.f32 %v7274_v62, %v14230_v18  ;;  %v14870_v33 = vld [vmem:[#allocation55_spill] sm:$0xff] }
 0x8a1   : > { %v8302_v30 = vsel %vm8301_vm0, %v11145_v57, %v8298_v20 }
 0x8a2   : > { %v14263_v58 = vadd.f32 %v7419_v12, %v7371_v42  ;;  %v11149_v3 = vpop.eup %11148  ;;  %v8307_v10 = vsel %vm8304_vm1, %v8306_v6, %v8302_v30 }
 0x8a3   : > { %8382 = vst [vmem:[%s14072_s14 + $0xe0] sm:$0xff] %v8307_v10  ;;  %v8325_v5 = vmul.f32 %v11149_v3, %v7872_v38  ;;  %vm8330_vm4 = vweird.f32 %v11149_v3 }
 0x8a4   : > { %vm8331_vm6 = vmor %vm8329_vm5, %vm8330_vm4 }
 0x8a5   : > { %v7323_v25 = vpop.f32.mrf.mxu2  ;;  %v8326_v61 = vsub.f32 1.0, %v8325_v5 }
 0x8a6   : > { %v7324_v29 = vadd.f32 %v7323_v25, %v7275_v15  ;;  %v7372_v2 = vpop.f32.mrf.mxu3 }
 0x8a7   : > { %v7277_v40 = vpop.f32.mrf.mxu1  ;;  %v8327_v41 = vmul.f32 %v11149_v3, %v8326_v61 }
 0x8a8   : > { %v7373_v37 = vadd.f32 %v7372_v2, %v7324_v29  ;;  %v7424_v43 = vpop.f32.mrf.mxu0  ;;  %v7278_v23 = vadd.f32 %v7277_v40, %v14230_v18  ;;  %v14871_v2 = vld [vmem:[#allocation58_spill] sm:$0xff] }
 0x8a9   : > { %v8328_v0 = vadd.f32 %v11149_v3, %v8327_v41 }
 0x8aa   : > { %7521 = vmatmul.bf16.gmra.mxu2 %v13845_v36  ;;  %v14268_v55 = vadd.f32 %v7421_v4, %v7373_v37  ;;  %7472 = vmatmul.bf16.gmra.mxu1 %v13834_v56 }
 0x8ab   : > { %v8332_v22 = vsel %vm8331_vm6, %v11149_v3, %v8328_v0  ;;  %7570 = vmatmul.bf16.gmra.mxu3 %v14867_v17  ;;  %7619 = vmatmul.bf16.gmra.mxu0 %v14868_v34 }
 0x8ac   : > { %v8337_v27 = vsel %vm8334_vm3, %v8336_v16, %v8332_v22 }
 0x8ad   : > { %v7326_v12 = vpop.f32.mrf.mxu2  ;;  %8384 = vst [vmem:[%s14072_s14 + $0xf0] sm:$0xff] %v8337_v27 }
 0x8ae   : > { %v7327_v57 = vadd.f32 %v7326_v12, %v7278_v23  ;;  %v7375_v48 = vpop.f32.mrf.mxu3 }
 0x8af   : > { %v7279_v36 = vpop.f32.mrf.mxu1 }
 0x8b0   : > { %v7376_v47 = vadd.f32 %v7375_v48, %v7327_v57  ;;  %v7426_v49 = vpop.f32.mrf.mxu0  ;;  %v7280_v56 = vadd.f32 %v7279_v36, %v14230_v18  ;;  %v14873_v48 = vld [vmem:[#allocation84_spill] sm:$0xff]  ;;  %v14874_v36 = vld [vmem:[#allocation57_spill] sm:$0xff] }
 0x8b2   : > { %v14275_v13 = vadd.f32 %v7424_v43, %v7376_v47 }
 0x8b5   : > { %v7328_v38 = vpop.f32.mrf.mxu2 }
 0x8b6   : > { %v7329_v31 = vadd.f32 %v7328_v38, %v7280_v56  ;;  %v7377_v46 = vpop.f32.mrf.mxu3 }
 0x8b7   : > { %v7282_v8 = vpop.f32.mrf.mxu1 }
 0x8b8   : > { %v7378_v7 = vadd.f32 %v7377_v46, %v7329_v31  ;;  %v7429_v11 = vpop.f32.mrf.mxu0  ;;  %v7283_v32 = vadd.f32 %v7282_v8, %v14230_v18 }
 0x8ba   : > { %7526 = vmatmul.bf16.gmra.mxu2 %v13866_v24  ;;  %v14279_v60 = vadd.f32 %v7426_v49, %v7378_v7  ;;  %7477 = vmatmul.bf16.gmra.mxu1 %v13855_v50 }
 0x8bb   : > { %7575 = vmatmul.bf16.gmra.mxu3 %v14869_v59  ;;  %7624 = vmatmul.bf16.gmra.mxu0 %v14870_v33 }
 0x8bd   : > { %v7331_v26 = vpop.f32.mrf.mxu2 }
 0x8be   : > { %v7332_v62 = vadd.f32 %v7331_v26, %v7283_v32  ;;  %v7380_v20 = vpop.f32.mrf.mxu3 }
 0x8bf   : > { %v7284_v42 = vpop.f32.mrf.mxu1 }
 0x8c0   : > { %v7381_v4 = vadd.f32 %v7380_v20, %v7332_v62  ;;  %v7431_v6 = vpop.f32.mrf.mxu0  ;;  %v7285_v24 = vadd.f32 %v7284_v42, %v14230_v18  ;;  %v14875_v20 = vld [vmem:[#allocation83_spill] sm:$0xff] }
 0x8c2   : > { %v14285_v30 = vadd.f32 %v7429_v11, %v7381_v4 }
 0x8c5   : > { %v7333_v3 = vpop.f32.mrf.mxu2 }
 0x8c6   : > { %v7334_v10 = vadd.f32 %v7333_v3, %v7285_v24  ;;  %v7382_v5 = vpop.f32.mrf.mxu3 }
 0x8c7   : > { %v7287_v15 = vpop.f32.mrf.mxu1 }
 0x8c8   : > { %v7383_v50 = vadd.f32 %v7382_v5, %v7334_v10  ;;  %v7434_v25 = vpop.f32.mrf.mxu0  ;;  %v7288_v29 = vadd.f32 %v7287_v15, %v14230_v18 }
 0x8ca   : > { %7531 = vmatmul.bf16.gmra.mxu2 %v13887_v19  ;;  %v14289_v61 = vadd.f32 %v7431_v6, %v7383_v50  ;;  %7482 = vmatmul.bf16.gmra.mxu1 %v13876_v28 }
 0x8cb   : > { %7580 = vmatmul.bf16.gmra.mxu3 %v14871_v2  ;;  %7629 = vmatmul.bf16.gmra.mxu0 %v14872_v14 }
 0x8cd   : > { %v7336_v40 = vpop.f32.mrf.mxu2 }
 0x8ce   : > { %v7337_v41 = vadd.f32 %v7336_v40, %v7288_v29  ;;  %v7385_v63 = vpop.f32.mrf.mxu3 }
 0x8cf   : > { %v7289_v43 = vpop.f32.mrf.mxu1 }
 0x8d0   : > { %v7386_v37 = vadd.f32 %v7385_v63, %v7337_v41  ;;  %v7436_v0 = vpop.f32.mrf.mxu0  ;;  %v7290_v19 = vadd.f32 %v7289_v43, %v14230_v18 }
 0x8d2   : > { %v14295_v16 = vadd.f32 %v7434_v25, %v7386_v37 }
 0x8d5   : > { %v7338_v22 = vpop.f32.mrf.mxu2 }
 0x8d6   : > { %v7339_v23 = vadd.f32 %v7338_v22, %v7290_v19  ;;  %v7387_v17 = vpop.f32.mrf.mxu3 }
 0x8d7   : > { %v7292_v34 = vpop.f32.mrf.mxu1 }
 0x8d8   : > { %v7388_v28 = vadd.f32 %v7387_v17, %v7339_v23  ;;  %v7439_v27 = vpop.f32.mrf.mxu0  ;;  %v7293_v57 = vadd.f32 %v7292_v34, %v14230_v18 }
 0x8da   : > { %7536 = vmatmul.bf16.gmra.mxu2 %v13908_v45  ;;  %v14299_v12 = vadd.f32 %v7436_v0, %v7388_v28  ;;  %7487 = vmatmul.bf16.gmra.mxu1 %v13897_v44 }
 0x8db   : > { %7585 = vmatmul.bf16.gmra.mxu3 %v14873_v48  ;;  %7634 = vmatmul.bf16.gmra.mxu0 %v14874_v36 }
 0x8dd   : > { %v7341_v47 = vpop.f32.mrf.mxu2 }
 0x8de   : > { %v7342_v49 = vadd.f32 %v7341_v47, %v7293_v57  ;;  %v7390_v56 = vpop.f32.mrf.mxu3 }
 0x8df   : > { %v7294_v31 = vpop.f32.mrf.mxu1 }
 0x8e0   : > { %v7391_v38 = vadd.f32 %v7390_v56, %v7342_v49  ;;  %v7441_v46 = vpop.f32.mrf.mxu0  ;;  %v7295_v45 = vadd.f32 %v7294_v31, %v14230_v18 }
 0x8e2   : > { %v14305_v8 = vadd.f32 %v7439_v27, %v7391_v38 }
 0x8e5   : > { %v7343_v7 = vpop.f32.mrf.mxu2 }
 0x8e6   : > { %v7344_v11 = vadd.f32 %v7343_v7, %v7295_v45  ;;  %v7392_v32 = vpop.f32.mrf.mxu3 }
 0x8e7   : > { %v7297_v59 = vpop.f32.mrf.mxu1 }
 0x8e8   : > { %v7393_v44 = vadd.f32 %v7392_v32, %v7344_v11  ;;  %v7444_v33 = vpop.f32.mrf.mxu0  ;;  %v7298_v62 = vadd.f32 %v7297_v59, %v14230_v18 }
 0x8ea   : > { %7541 = vmatmul.bf16.gmra.mxu2 %v13930_v35  ;;  %v14309_v26 = vadd.f32 %v7441_v46, %v7393_v44  ;;  %7492 = vmatmul.bf16.gmra.mxu1 %v13919_v1 }
 0x8eb   : > { %7590 = vmatmul.bf16.gmra.mxu3 %v13933_v54  ;;  %7639 = vmatmul.bf16.gmra.mxu0 %v14875_v20 }
 0x8ed   : > { %v7346_v42 = vpop.f32.mrf.mxu2 }
 0x8ee   : > { %v7347_v4 = vadd.f32 %v7346_v42, %v7298_v62  ;;  %v7395_v6 = vpop.f32.mrf.mxu3 }
 0x8ef   : > { %v7299_v3 = vpop.f32.mrf.mxu1 }
 0x8f0   : > { %v7396_v24 = vadd.f32 %v7395_v6, %v7347_v4  ;;  %v7446_v10 = vpop.f32.mrf.mxu0  ;;  %v7300_v35 = vadd.f32 %v7299_v3, %v14230_v18 }
 0x8f2   : > { %v14315_v5 = vadd.f32 %v7444_v33, %v7396_v24 }
 0x8f5   : > { %v7348_v50 = vpop.f32.mrf.mxu2 }
 0x8f6   : > { %v7349_v15 = vadd.f32 %v7348_v50, %v7300_v35  ;;  %v7397_v25 = vpop.f32.mrf.mxu3 }
 0x8f7   : > { %v7302_v29 = vpop.f32.mrf.mxu1 }
 0x8f8   : > { %v7398_v1 = vadd.f32 %v7397_v25, %v7349_v15  ;;  %v7449_v2 = vpop.f32.mrf.mxu0  ;;  %v7303_v14 = vadd.f32 %v7302_v29, %v14230_v18 }
 0x8fa   : > { %7546 = vmatmul.bf16.gmra.mxu2 %v13954_v51  ;;  %v14319_v54 = vadd.f32 %v7446_v10, %v7398_v1  ;;  %7497 = vmatmul.bf16.gmra.mxu1 %v13941_v52 }
 0x8fb   : > { %7595 = vmatmul.bf16.gmra.mxu3 %v13958_v39  ;;  %7644 = vmatmul.bf16.gmra.mxu0 %v13945_v53 }
 0x8fd   : > { %v7351_v40 = vpop.f32.mrf.mxu2 }
 0x8fe   : > { %v7352_v41 = vadd.f32 %v7351_v40, %v7303_v14  ;;  %v7400_v63 = vpop.f32.mrf.mxu3 }
 0x8ff   : > { %v7304_v43 = vpop.f32.mrf.mxu1 }
 0x900   : > { %v7401_v37 = vadd.f32 %v7400_v63, %v7352_v41  ;;  %v7451_v0 = vpop.f32.mrf.mxu0  ;;  %v7305_v51 = vadd.f32 %v7304_v43, %v14230_v18 }
 0x902   : > { %v14325_v19 = vadd.f32 %v7449_v2, %v7401_v37 }
 0x905   : > { %v7353_v22 = vpop.f32.mrf.mxu2 }
 0x906   : > { %v7354_v23 = vadd.f32 %v7353_v22, %v7305_v51  ;;  %v7402_v17 = vpop.f32.mrf.mxu3 }
 0x907   : > { %v7463_v28 = vpop.f32.mrf.mxu1 }
 0x908   : > { %v7403_v52 = vadd.f32 %v7402_v17, %v7354_v23  ;;  %v7610_v34 = vpop.f32.mrf.mxu0  ;;  %v7464_v53 = vadd.f32 %v7463_v28, %v14247_v21 }
 0x90a   : > { %v14328_v27 = vadd.f32 %v7451_v0, %v7403_v52 }
 0x90d   : > { %v7512_v39 = vpop.f32.mrf.mxu2 }
 0x90e   : > { %v7513_v57 = vadd.f32 %v7512_v39, %v7464_v53  ;;  %v7561_v48 = vpop.f32.mrf.mxu3 }
 0x90f   : > { %v7465_v47 = vpop.f32.mrf.mxu1 }
 0x910   : > { %v7562_v36 = vadd.f32 %v7561_v48, %v7513_v57  ;;  %v7612_v49 = vpop.f32.mrf.mxu0  ;;  %v7466_v18 = vadd.f32 %v7465_v47, %v14256_v9 }
 0x912   : > { %v7611_v56 = vadd.f32 %v7610_v34, %v7562_v36 }
 0x914   : > { %vm7651_vm2 = vcmp.gt.f32.partialorder %v7611_v56, 0.0  ;;  %v7683_v38 = vmul.f32 0.2, %v7611_v56 }
 0x915   : > { %v7514_v31 = vpop.f32.mrf.mxu2 }
 0x916   : > { %v7715_v46 = vsel %vm7651_vm2, %v7611_v56, %v7683_v38  ;;  %v7515_v45 = vadd.f32 %v7514_v31, %v7466_v18  ;;  %v7563_v11 = vpop.f32.mrf.mxu3 }
 0x917   : > { %v10400_v7 = vmul.f32 -1.442695, %v7715_v46  ;;  %v7468_v44 = vpop.f32.mrf.mxu1 }
 0x918   : > { %v7564_v32 = vadd.f32 %v7563_v11, %v7515_v45  ;;  %v7615_v21 = vpop.f32.mrf.mxu0  ;;  %v7469_v62 = vadd.f32 %v7468_v44, %v14263_v58 }
 0x919   : > { %11150 = vpow2.f32 %v10400_v7 }
 0x91a   : > { %v7613_v59 = vadd.f32 %v7612_v49, %v7564_v32 }
 0x91c   : > { %vm7653_vm7 = vcmp.gt.f32.partialorder %v7613_v59, 0.0  ;;  %v7685_v33 = vmul.f32 0.2, %v7613_v59 }
 0x91d   : > { %v7517_v20 = vpop.f32.mrf.mxu2 }
 0x91e   : > { %v7717_v42 = vsel %vm7653_vm7, %v7613_v59, %v7685_v33  ;;  %v7518_v4 = vadd.f32 %v7517_v20, %v7469_v62  ;;  %v7566_v9 = vpop.f32.mrf.mxu3 }
 0x91f   : > { %v11151_v6 = vpop.eup %11150  ;;  %v10402_v24 = vmul.f32 -1.442695, %v7717_v42  ;;  %v7470_v35 = vpop.f32.mrf.mxu1 }
 0x920   : > { %v7843_v3 = vadd.f32 1.0, %v11151_v6  ;;  %v7567_v10 = vadd.f32 %v7566_v9, %v7518_v4  ;;  %v7617_v50 = vpop.f32.mrf.mxu0  ;;  %v7471_v25 = vadd.f32 %v7470_v35, %v14268_v55 }
 0x921   : > { %11152 = vpow2.f32 %v10402_v24 }
 0x922   : > { %11154 = vrcp.f32 %v7843_v3  ;;  %v7616_v15 = vadd.f32 %v7615_v21, %v7567_v10  ;;  %v7898_v52 = vand.u32 2147483647, %v7843_v3  ;;  %v7900_v55 = vand.u32 2147483648, %v7843_v3 }
 0x923   : > { %vm7894_vm11 = vweird.f32 %v7843_v3 }
 0x924   : > { %vm7655_vm8 = vcmp.gt.f32.partialorder %v7616_v15, 0.0  ;;  %v7687_v1 = vmul.f32 0.2, %v7616_v15  ;;  %v7901_v56 = vor.u32 1.1754944e-38, %v7900_v55  ;;  %vm7899_vm13 = vcmp.eq.f32.partialorder %v7898_v52, 8.507059e+37 }
 0x925   : > { %v7519_v29 = vpop.f32.mrf.mxu2 }
 0x926   : > { %v7520_v2 = vadd.f32 %v7519_v29, %v7471_v25  ;;  %v7719_v14 = vsel %vm7655_vm8, %v7616_v15, %v7687_v1  ;;  %v7568_v40 = vpop.f32.mrf.mxu3 }
 0x927   : > { %v11153_v58 = vpop.eup %11152  ;;  %v10404_v37 = vmul.f32 -1.442695, %v7719_v14  ;;  %v7473_v0 = vpop.f32.mrf.mxu1 }
 0x928   : > { %v11155_v41 = vpop.eup %11154  ;;  %v7845_v63 = vadd.f32 1.0, %v11153_v58  ;;  %v7569_v43 = vadd.f32 %v7568_v40, %v7520_v2  ;;  %v7620_v22 = vpop.f32.mrf.mxu0  ;;  %v7474_v28 = vadd.f32 %v7473_v0, %v14275_v13 }
 0x929   : > { %v7890_v51 = vmul.f32 %v11155_v41, %v7843_v3  ;;  %vm7895_vm9 = vweird.f32 %v11155_v41 }
 0x92a   : > { %11156 = vrcp.f32 %v7845_v63  ;;  %v7618_v17 = vadd.f32 %v7617_v50, %v7569_v43  ;;  %vm7896_vm12 = vmor %vm7894_vm11, %vm7895_vm9  ;;  %v7928_v59 = vand.u32 2147483647, %v7845_v63  ;;  %v7930_v33 = vand.u32 2147483648, %v7845_v63 }
 0x92b   : > { %v7891_v23 = vsub.f32 1.0, %v7890_v51  ;;  %11158 = vpow2.f32 %v10404_v37  ;;  %vm7924_vm0 = vweird.f32 %v7845_v63 }
 0x92c   : > { %vm7657_vm10 = vcmp.gt.f32.partialorder %v7618_v17, 0.0  ;;  %v7689_v53 = vmul.f32 0.2, %v7618_v17  ;;  %v7931_v35 = vor.u32 1.1754944e-38, %v7930_v33  ;;  %vm7929_vm4 = vcmp.eq.f32.partialorder %v7928_v59, 8.507059e+37 }
 0x92d   : > { %v7892_v34 = vmul.f32 %v11155_v41, %v7891_v23  ;;  %v7522_v39 = vpop.f32.mrf.mxu2 }
 0x92e   : > { %v7523_v57 = vadd.f32 %v7522_v39, %v7474_v28  ;;  %v7721_v36 = vsel %vm7657_vm10, %v7618_v17, %v7689_v53  ;;  %v7571_v47 = vpop.f32.mrf.mxu3 }
 0x92f   : > { %v7893_v48 = vadd.f32 %v11155_v41, %v7892_v34  ;;  %v10406_v38 = vmul.f32 -1.442695, %v7721_v36  ;;  %v7475_v31 = vpop.f32.mrf.mxu1 }
 0x930   : > { %v11157_v49 = vpop.eup %11156  ;;  %v7572_v18 = vadd.f32 %v7571_v47, %v7523_v57  ;;  %v7622_v7 = vpop.f32.mrf.mxu0  ;;  %v7476_v62 = vadd.f32 %v7475_v31, %v14279_v60 }
 0x931   : > { %v11159_v46 = vpop.eup %11158  ;;  %v7897_v45 = vsel %vm7896_vm12, %v11155_v41, %v7893_v48  ;;  %v7920_v13 = vmul.f32 %v11157_v49, %v7845_v63  ;;  %11160 = vpow2.f32 %v10406_v38  ;;  %vm7925_vm14 = vweird.f32 %v11157_v49 }
 0x932   : > { %v7902_v11 = vsel %vm7899_vm13, %v7901_v56, %v7897_v45  ;;  %v14335_v32 = vadd.f32 1.0, %v11159_v46  ;;  %v7621_v44 = vadd.f32 %v7620_v22, %v7572_v18  ;;  %vm7926_vm1 = vmor %vm7924_vm0, %vm7925_vm14 }
 0x933   : > { %8355 = vst [vmem:[%s14072_s14 + $0x8] sm:$0xff] %v7902_v11  ;;  %v7921_v21 = vsub.f32 1.0, %v7920_v13 }
 0x934   : > { %11162 = vrcp.f32 %v14335_v32  ;;  %vm7659_vm15 = vcmp.gt.f32.partialorder %v7621_v44, 0.0  ;;  %v7691_v42 = vmul.f32 0.2, %v7621_v44  ;;  %v7960_v0 = vand.u32 2147483648, %v14335_v32 }
 0x935   : > { %v7922_v20 = vmul.f32 %v11157_v49, %v7921_v21  ;;  %v7524_v4 = vpop.f32.mrf.mxu2  ;;  %v7958_v17 = vand.u32 2147483647, %v14335_v32  ;;  %vm7954_vm3 = vweird.f32 %v14335_v32 }
 0x936   : > { %v7525_v6 = vadd.f32 %v7524_v4, %v7476_v62  ;;  %v7723_v9 = vsel %vm7659_vm15, %v7621_v44, %v7691_v42  ;;  %v7573_v3 = vpop.f32.mrf.mxu3  ;;  %v7961_v36 = vor.u32 1.1754944e-38, %v7960_v0 }
 0x937   : > { %v7923_v24 = vadd.f32 %v11157_v49, %v7922_v20  ;;  %v11161_v10 = vpop.eup %11160  ;;  %v10408_v50 = vmul.f32 -1.442695, %v7723_v9  ;;  %v7478_v25 = vpop.f32.mrf.mxu1  ;;  %vm7959_vm7 = vcmp.eq.f32.partialorder %v7958_v17, 8.507059e+37 }
 0x938   : > { %v7574_v15 = vadd.f32 %v7573_v3, %v7525_v6  ;;  %v14340_v60 = vadd.f32 1.0, %v11161_v10  ;;  %v7625_v29 = vpop.f32.mrf.mxu0  ;;  %v7479_v63 = vadd.f32 %v7478_v25, %v14285_v30 }
 0x939   : > { %v7927_v1 = vsel %vm7926_vm1, %v11157_v49, %v7923_v24  ;;  %11164 = vpow2.f32 %v10408_v50 }
 0x93a   : > { %v11163_v2 = vpop.eup %11162  ;;  %v7932_v58 = vsel %vm7929_vm4, %v7931_v35, %v7927_v1  ;;  %v7623_v14 = vadd.f32 %v7622_v7, %v7574_v15  ;;  %11166 = vrcp.f32 %v14340_v60  ;;  %v7990_v46 = vand.u32 2147483648, %v14340_v60 }
 0x93b   : > { %8357 = vst [vmem:[%s14072_s14 + $0x18] sm:$0xff] %v7932_v58  ;;  %v7950_v40 = vmul.f32 %v11163_v2, %v14335_v32  ;;  %vm7955_vm6 = vweird.f32 %v11163_v2  ;;  %v7988_v11 = vand.u32 2147483647, %v14340_v60  ;;  %vm7984_vm10 = vweird.f32 %v14340_v60 }
 0x93c   : > { %vm7661_vm5 = vcmp.gt.f32.partialorder %v7623_v14, 0.0  ;;  %v7693_v41 = vmul.f32 0.2, %v7623_v14  ;;  %vm7956_vm2 = vmor %vm7954_vm3, %vm7955_vm6  ;;  %v7991_v6 = vor.u32 1.1754944e-38, %v7990_v46 }
 0x93d   : > { %v7951_v37 = vsub.f32 1.0, %v7950_v40  ;;  %v7527_v43 = vpop.f32.mrf.mxu2  ;;  %vm7989_vm12 = vcmp.eq.f32.partialorder %v7988_v11, 8.507059e+37 }
 0x93e   : > { %v7725_v51 = vsel %vm7661_vm5, %v7623_v14, %v7693_v41  ;;  %v7528_v22 = vadd.f32 %v7527_v43, %v7479_v63  ;;  %v7576_v55 = vpop.f32.mrf.mxu3 }
 0x93f   : > { %v7952_v23 = vmul.f32 %v11163_v2, %v7951_v37  ;;  %v10410_v52 = vmul.f32 -1.442695, %v7725_v51  ;;  %v11165_v28 = vpop.eup %11164  ;;  %v7480_v53 = vpop.f32.mrf.mxu1 }
 0x940   : > { %v7577_v34 = vadd.f32 %v7576_v55, %v7528_v22  ;;  %v11167_v39 = vpop.eup %11166  ;;  %v14349_v30 = vadd.f32 1.0, %v11165_v28  ;;  %v7627_v48 = vpop.f32.mrf.mxu0  ;;  %v7481_v31 = vadd.f32 %v7480_v53, %v14289_v61 }
 0x941   : > { %v7953_v57 = vadd.f32 %v11163_v2, %v7952_v23  ;;  %11168 = vpow2.f32 %v10410_v52  ;;  %v7980_v47 = vmul.f32 %v11167_v39, %v14340_v60  ;;  %vm7985_vm9 = vweird.f32 %v11167_v39 }
 0x942   : > { %v7626_v49 = vadd.f32 %v7625_v29, %v7577_v34  ;;  %11170 = vrcp.f32 %v14349_v30  ;;  %vm7986_vm11 = vmor %vm7984_vm10, %vm7985_vm9  ;;  %v8018_v25 = vand.u32 2147483647, %v14349_v30  ;;  %v8020_v1 = vand.u32 2147483648, %v14349_v30 }
 0x943   : > { %v7957_v56 = vsel %vm7956_vm2, %v11163_v2, %v7953_v57  ;;  %v7981_v18 = vsub.f32 1.0, %v7980_v47  ;;  %vm8014_vm15 = vweird.f32 %v14349_v30 }
 0x944   : > { %v7962_v38 = vsel %vm7959_vm7, %v7961_v36, %v7957_v56  ;;  %vm7663_vm8 = vcmp.gt.f32.partialorder %v7626_v49, 0.0  ;;  %v7695_v45 = vmul.f32 0.2, %v7626_v49  ;;  %vm8019_vm1 = vcmp.eq.f32.partialorder %v8018_v25, 8.507059e+37 }
 0x945   : > { %8359 = vst [vmem:[%s14072_s14 + $0x28] sm:$0xff] %v7962_v38  ;;  %v7529_v13 = vpop.f32.mrf.mxu2  ;;  %v7982_v7 = vmul.f32 %v11167_v39, %v7981_v18 }
 0x946   : > { %v7530_v32 = vadd.f32 %v7529_v13, %v7481_v31  ;;  %v7727_v21 = vsel %vm7663_vm8, %v7626_v49, %v7695_v45  ;;  %v7578_v59 = vpop.f32.mrf.mxu3 }
 0x947   : > { %v11169_v44 = vpop.eup %11168  ;;  %v7983_v33 = vadd.f32 %v11167_v39, %v7982_v7  ;;  %v10412_v61 = vmul.f32 -1.442695, %v7727_v21  ;;  %v7483_v42 = vpop.f32.mrf.mxu1 }
 0x948   : > { %v14358_v62 = vadd.f32 1.0, %v11169_v44  ;;  %v7579_v20 = vadd.f32 %v7578_v59, %v7530_v32  ;;  %v11171_v4 = vpop.eup %11170  ;;  %v7630_v24 = vpop.f32.mrf.mxu0  ;;  %v7484_v15 = vadd.f32 %v7483_v42, %v14295_v16  ;;  %v8021_v16 = vor.u32 1.1754944e-38, %v8020_v1 }
 0x949   : > { %v7987_v9 = vsel %vm7986_vm11, %v11167_v39, %v7983_v33  ;;  %v8010_v3 = vmul.f32 %v11171_v4, %v14349_v30  ;;  %vm8015_vm13 = vweird.f32 %v11171_v4 }
 0x94a   : > { %11172 = vrcp.f32 %v14358_v62  ;;  %v7992_v10 = vsel %vm7989_vm12, %v7991_v6, %v7987_v9  ;;  %v7628_v50 = vadd.f32 %v7627_v48, %v7579_v20  ;;  %vm8016_vm0 = vmor %vm8014_vm15, %vm8015_vm13  ;;  %v8050_v53 = vand.u32 2147483648, %v14358_v62 }
 0x94b   : > { %8361 = vst [vmem:[%s14072_s14 + $0x38] sm:$0xff] %v7992_v10  ;;  %v8011_v35 = vsub.f32 1.0, %v8010_v3  ;;  %11174 = vpow2.f32 %v10412_v61  ;;  %v8048_v48 = vand.u32 2147483647, %v14358_v62  ;;  %vm8044_vm6 = vweird.f32 %v14358_v62 }
 0x94c   : > { %vm7665_vm14 = vcmp.gt.f32.partialorder %v7628_v50, 0.0  ;;  %v7697_v2 = vmul.f32 0.2, %v7628_v50  ;;  %v8051_v31 = vor.u32 1.1754944e-38, %v8050_v53 }
 0x94d   : > { %v7532_v60 = vpop.f32.mrf.mxu2  ;;  %v8012_v29 = vmul.f32 %v11171_v4, %v8011_v35  ;;  %vm8049_vm2 = vcmp.eq.f32.partialorder %v8048_v48, 8.507059e+37 }
 0x94e   : > { %v7533_v58 = vadd.f32 %v7532_v60, %v7484_v15  ;;  %v7581_v14 = vpop.f32.mrf.mxu3  ;;  %v7729_v63 = vsel %vm7665_vm14, %v7628_v50, %v7697_v2 }
 0x94f   : > { %v8013_v41 = vadd.f32 %v11171_v4, %v8012_v29  ;;  %v7485_v43 = vpop.f32.mrf.mxu1  ;;  %v10414_v51 = vmul.f32 -1.442695, %v7729_v63 }
 0x950   : > { %v11173_v40 = vpop.eup %11172  ;;  %v7582_v37 = vadd.f32 %v7581_v14, %v7533_v58  ;;  %v7632_v22 = vpop.f32.mrf.mxu0  ;;  %v7486_v57 = vadd.f32 %v7485_v43, %v14299_v12 }
 0x951   : > { %v8040_v0 = vmul.f32 %v11173_v40, %v14358_v62  ;;  %v11175_v23 = vpop.eup %11174  ;;  %v8017_v17 = vsel %vm8016_vm0, %v11171_v4, %v8013_v41  ;;  %11176 = vpow2.f32 %v10414_v51  ;;  %vm8045_vm5 = vweird.f32 %v11173_v40 }
 0x952   : > { %v7631_v52 = vadd.f32 %v7630_v24, %v7582_v37  ;;  %v8022_v55 = vsel %vm8019_vm1, %v8021_v16, %v8017_v17  ;;  %v7855_v34 = vadd.f32 1.0, %v11175_v23  ;;  %vm8046_vm3 = vmor %vm8044_vm6, %vm8045_vm5 }
 0x953   : > { %v8041_v28 = vsub.f32 1.0, %v8040_v0  ;;  %8363 = vst [vmem:[%s14072_s14 + $0x48] sm:$0xff] %v8022_v55 }
 0x954   : > { %vm7667_vm4 = vcmp.gt.f32.partialorder %v7631_v52, 0.0  ;;  %v7699_v39 = vmul.f32 0.2, %v7631_v52  ;;  %11178 = vrcp.f32 %v7855_v34  ;;  %v8078_v6 = vand.u32 2147483647, %v7855_v34 }
 0x955   : > { %v8042_v30 = vmul.f32 %v11173_v40, %v8041_v28  ;;  %v7534_v36 = vpop.f32.mrf.mxu2  ;;  %v8080_v24 = vand.u32 2147483648, %v7855_v34  ;;  %vm8074_vm9 = vweird.f32 %v7855_v34 }
 0x956   : > { %v7731_v47 = vsel %vm7667_vm4, %v7631_v52, %v7699_v39  ;;  %v7535_v49 = vadd.f32 %v7534_v36, %v7486_v57  ;;  %v7583_v18 = vpop.f32.mrf.mxu3  ;;  %vm8079_vm11 = vcmp.eq.f32.partialorder %v8078_v6, 8.507059e+37 }
 0x957   : > { %v8043_v56 = vadd.f32 %v11173_v40, %v8042_v30  ;;  %v10416_v38 = vmul.f32 -1.442695, %v7731_v47  ;;  %v7488_v45 = vpop.f32.mrf.mxu1  ;;  %v11177_v13 = vpop.eup %11176 }
 0x958   : > { %v7584_v46 = vadd.f32 %v7583_v18, %v7535_v49  ;;  %v7635_v7 = vpop.f32.mrf.mxu0  ;;  %v7857_v32 = vadd.f32 1.0, %v11177_v13  ;;  %v7489_v33 = vadd.f32 %v7488_v45, %v14305_v8  ;;  %v8081_v8 = vor.u32 1.1754944e-38, %v8080_v24 }
 0x959   : > { %v8047_v12 = vsel %vm8046_vm3, %v11173_v40, %v8043_v56  ;;  %11180 = vpow2.f32 %v10416_v38 }
 0x95a   : > { %v8052_v11 = vsel %vm8049_vm2, %v8051_v31, %v8047_v12  ;;  %v7633_v44 = vadd.f32 %v7632_v22, %v7584_v46  ;;  %v11179_v21 = vpop.eup %11178  ;;  %11182 = vrcp.f32 %v7857_v32  ;;  %v8108_v37 = vand.u32 2147483647, %v7857_v32 }
 0x95b   : > { %8365 = vst [vmem:[%s14072_s14 + $0x58] sm:$0xff] %v8052_v11  ;;  %v8070_v59 = vmul.f32 %v11179_v21, %v7855_v34  ;;  %vm8075_vm8 = vweird.f32 %v11179_v21  ;;  %v8110_v16 = vand.u32 2147483648, %v7857_v32  ;;  %vm8104_vm14 = vweird.f32 %v7857_v32 }
 0x95c   : > { %vm7669_vm7 = vcmp.gt.f32.partialorder %v7633_v44, 0.0  ;;  %v7701_v62 = vmul.f32 0.2, %v7633_v44  ;;  %vm8076_vm10 = vmor %vm8074_vm9, %vm8075_vm8  ;;  %vm8109_vm0 = vcmp.eq.f32.partialorder %v8108_v37, 8.507059e+37 }
 0x95d   : > { %v7537_v61 = vpop.f32.mrf.mxu2  ;;  %v8071_v20 = vsub.f32 1.0, %v8070_v59  ;;  %v8111_v57 = vor.u32 1.1754944e-38, %v8110_v16 }
 0x95e   : > { %v7538_v42 = vadd.f32 %v7537_v61, %v7489_v33  ;;  %v7733_v9 = vsel %vm7669_vm7, %v7633_v44, %v7701_v62  ;;  %v7586_v3 = vpop.f32.mrf.mxu3 }
 0x95f   : > { %v11181_v4 = vpop.eup %11180  ;;  %v8072_v10 = vmul.f32 %v11179_v21, %v8071_v20  ;;  %v10418_v50 = vmul.f32 -1.442695, %v7733_v9  ;;  %v7490_v25 = vpop.f32.mrf.mxu1 }
 0x960   : > { %v14376_v35 = vadd.f32 1.0, %v11181_v4  ;;  %v7587_v15 = vadd.f32 %v7586_v3, %v7538_v42  ;;  %v11183_v1 = vpop.eup %11182  ;;  %v7637_v2 = vpop.f32.mrf.mxu0  ;;  %v7491_v40 = vadd.f32 %v7490_v25, %v14309_v26 }
 0x961   : > { %v8073_v60 = vadd.f32 %v11179_v21, %v8072_v10  ;;  %v8100_v29 = vmul.f32 %v11183_v1, %v7857_v32  ;;  %vm8105_vm13 = vweird.f32 %v11183_v1 }
 0x962   : > { %11184 = vrcp.f32 %v14376_v35  ;;  %v7636_v14 = vadd.f32 %v7635_v7, %v7587_v15  ;;  %vm8106_vm15 = vmor %vm8104_vm14, %vm8105_vm13  ;;  %v8138_v49 = vand.u32 2147483647, %v14376_v35  ;;  %v8140_v38 = vand.u32 2147483648, %v14376_v35 }
 0x963   : > { %11186 = vpow2.f32 %v10418_v50  ;;  %v8077_v58 = vsel %vm8076_vm10, %v11179_v21, %v8073_v60  ;;  %v8101_v63 = vsub.f32 1.0, %v8100_v29  ;;  %vm8134_vm5 = vweird.f32 %v14376_v35 }
 0x964   : > { %v8082_v41 = vsel %vm8079_vm11, %v8081_v8, %v8077_v58  ;;  %vm7671_vm12 = vcmp.gt.f32.partialorder %v7636_v14, 0.0  ;;  %v7703_v0 = vmul.f32 0.2, %v7636_v14  ;;  %v8141_v44 = vor.u32 1.1754944e-38, %v8140_v38 }
 0x965   : > { %v7539_v43 = vpop.f32.mrf.mxu2  ;;  %8367 = vst [vmem:[%s14072_s14 + $0x68] sm:$0xff] %v8082_v41  ;;  %v8102_v22 = vmul.f32 %v11183_v1, %v8101_v63  ;;  %vm8139_vm3 = vcmp.eq.f32.partialorder %v8138_v49, 8.507059e+37 }
 0x966   : > { %v7540_v51 = vadd.f32 %v7539_v43, %v7491_v40  ;;  %v7588_v23 = vpop.f32.mrf.mxu3  ;;  %v7735_v52 = vsel %vm7671_vm12, %v7636_v14, %v7703_v0 }
 0x967   : > { %v7493_v28 = vpop.f32.mrf.mxu1  ;;  %v8103_v53 = vadd.f32 %v11183_v1, %v8102_v22  ;;  %v10420_v39 = vmul.f32 -1.442695, %v7735_v52 }
 0x968   : > { %v11185_v17 = vpop.eup %11184  ;;  %v7589_v55 = vadd.f32 %v7588_v23, %v7540_v51  ;;  %v7494_v18 = vadd.f32 %v7493_v28, %v14315_v5  ;;  %v7640_v45 = vpop.f32.mrf.mxu0 }
 0x969   : > { %v11187_v34 = vpop.eup %11186  ;;  %v8130_v26 = vmul.f32 %v11185_v17, %v14376_v35  ;;  %v8107_v36 = vsel %vm8106_vm15, %v11183_v1, %v8103_v53  ;;  %11188 = vpow2.f32 %v10420_v39  ;;  %vm8135_vm1 = vweird.f32 %v11185_v17 }
 0x96a   : > { %v14382_v30 = vadd.f32 1.0, %v11187_v34  ;;  %v7638_v48 = vadd.f32 %v7637_v2, %v7589_v55  ;;  %v8112_v56 = vsel %vm8109_vm0, %v8111_v57, %v8107_v36  ;;  %vm8136_vm6 = vmor %vm8134_vm5, %vm8135_vm1 }
 0x96b   : > { %v8131_v47 = vsub.f32 1.0, %v8130_v26  ;;  %8369 = vst [vmem:[%s14072_s14 + $0x78] sm:$0xff] %v8112_v56 }
 0x96c   : > { %11190 = vrcp.f32 %v14382_v30  ;;  %vm7673_vm4 = vcmp.gt.f32.partialorder %v7638_v48, 0.0  ;;  %v7705_v46 = vmul.f32 0.2, %v7638_v48  ;;  %v8170_v35 = vand.u32 2147483648, %v14382_v30 }
 0x96d   : > { %v8132_v31 = vmul.f32 %v11185_v17, %v8131_v47  ;;  %v7542_v13 = vpop.f32.mrf.mxu2  ;;  %v8168_v25 = vand.u32 2147483647, %v14382_v30  ;;  %vm8164_vm8 = vweird.f32 %v14382_v30 }
 0x96e   : > { %v7543_v12 = vadd.f32 %v7542_v13, %v7494_v18  ;;  %v7737_v11 = vsel %vm7673_vm4, %v7638_v48, %v7705_v46  ;;  %v7591_v32 = vpop.f32.mrf.mxu3  ;;  %v8171_v63 = vor.u32 1.1754944e-38, %v8170_v35 }
 0x96f   : > { %v8133_v7 = vadd.f32 %v11185_v17, %v8132_v31  ;;  %v10422_v21 = vmul.f32 -1.442695, %v7737_v11  ;;  %v7495_v33 = vpop.f32.mrf.mxu1  ;;  %v11189_v5 = vpop.eup %11188  ;;  %vm8169_vm10 = vcmp.eq.f32.partialorder %v8168_v25, 8.507059e+37 }
 0x970   : > { %v7592_v59 = vadd.f32 %v7591_v32, %v7543_v12  ;;  %v14390_v42 = vadd.f32 1.0, %v11189_v5  ;;  %v7496_v24 = vadd.f32 %v7495_v33, %v14319_v54  ;;  %v7642_v60 = vpop.f32.mrf.mxu0 }
 0x971   : > { %v8137_v62 = vsel %vm8136_vm6, %v11185_v17, %v8133_v7  ;;  %11192 = vpow2.f32 %v10422_v21 }
 0x972   : > { %v11191_v61 = vpop.eup %11190  ;;  %v8142_v20 = vsel %vm8139_vm3, %v8141_v44, %v8137_v62  ;;  %v7641_v4 = vadd.f32 %v7640_v45, %v7592_v59  ;;  %11194 = vrcp.f32 %v14390_v42  ;;  %v8200_v52 = vand.u32 2147483648, %v14390_v42 }
 0x973   : > { %8371 = vst [vmem:[%s14072_s14 + $0x88] sm:$0xff] %v8142_v20  ;;  %v8160_v6 = vmul.f32 %v11191_v61, %v14382_v30  ;;  %vm8165_vm7 = vweird.f32 %v11191_v61  ;;  %v8198_v34 = vand.u32 2147483647, %v14390_v42  ;;  %vm8194_vm13 = vweird.f32 %v14390_v42 }
 0x974   : > { %vm7675_vm2 = vcmp.gt.f32.partialorder %v7641_v4, 0.0  ;;  %v7707_v3 = vmul.f32 0.2, %v7641_v4  ;;  %vm8166_vm9 = vmor %vm8164_vm8, %vm8165_vm7  ;;  %v8201_v56 = vor.u32 1.1754944e-38, %v8200_v52 }
 0x975   : > { %v8161_v9 = vsub.f32 1.0, %v8160_v6  ;;  %v7544_v10 = vpop.f32.mrf.mxu2  ;;  %vm8199_vm15 = vcmp.eq.f32.partialorder %v8198_v34, 8.507059e+37 }
 0x976   : > { %v7545_v50 = vadd.f32 %v7544_v10, %v7496_v24  ;;  %v7739_v1 = vsel %vm7675_vm2, %v7641_v4, %v7707_v3  ;;  %v7593_v8 = vpop.f32.mrf.mxu3 }
 0x977   : > { %v8162_v15 = vmul.f32 %v11191_v61, %v8161_v9  ;;  %v11193_v29 = vpop.eup %11192  ;;  %v10424_v2 = vmul.f32 -1.442695, %v7739_v1  ;;  %v7498_v14 = vpop.f32.mrf.mxu1 }
 0x978   : > { %v7594_v58 = vadd.f32 %v7593_v8, %v7545_v50  ;;  %v14399_v40 = vadd.f32 1.0, %v11193_v29  ;;  %v11195_v41 = vpop.eup %11194  ;;  %v7499_v51 = vadd.f32 %v7498_v14, %v14325_v19  ;;  %v7645_v47 = vpop.f32.mrf.mxu0 }
 0x979   : > { %v8163_v54 = vadd.f32 %v11191_v61, %v8162_v15  ;;  %11196 = vpow2.f32 %v10424_v2  ;;  %v8190_v16 = vmul.f32 %v11195_v41, %v14390_v42  ;;  %vm8195_vm12 = vweird.f32 %v11195_v41 }
 0x97a   : > { %v7643_v37 = vadd.f32 %v7642_v60, %v7594_v58  ;;  %11198 = vrcp.f32 %v14399_v40  ;;  %vm8196_vm14 = vmor %vm8194_vm13, %vm8195_vm12  ;;  %v8230_v12 = vand.u32 2147483648, %v14399_v40  ;;  %v8228_v44 = vand.u32 2147483647, %v14399_v40 }
 0x97b   : > { %v8167_v43 = vsel %vm8166_vm9, %v11191_v61, %v8163_v54  ;;  %v8191_v22 = vsub.f32 1.0, %v8190_v16  ;;  %vm8224_vm4 = vweird.f32 %v14399_v40 }
 0x97c   : > { %v8172_v0 = vsel %vm8169_vm10, %v8171_v63, %v8167_v43  ;;  %vm7677_vm11 = vcmp.gt.f32.partialorder %v7643_v37, 0.0  ;;  %v7709_v23 = vmul.f32 0.2, %v7643_v37  ;;  %v8231_v42 = vor.u32 1.1754944e-38, %v8230_v12 }
 0x97d   : > { %8373 = vst [vmem:[%s14072_s14 + $0x98] sm:$0xff] %v8172_v0  ;;  %v7547_v17 = vpop.f32.mrf.mxu2  ;;  %v8192_v28 = vmul.f32 %v11195_v41, %v8191_v22  ;;  %vm8229_vm6 = vcmp.eq.f32.partialorder %v8228_v44, 8.507059e+37 }
 0x97e   : > { %v7548_v55 = vadd.f32 %v7547_v17, %v7499_v51  ;;  %v7741_v53 = vsel %vm7677_vm11, %v7643_v37, %v7709_v23  ;;  %v7596_v26 = vpop.f32.mrf.mxu3 }
 0x97f   : > { %v11197_v39 = vpop.eup %11196  ;;  %v10426_v57 = vmul.f32 -1.442695, %v7741_v53  ;;  %v8193_v36 = vadd.f32 %v11195_v41, %v8192_v28  ;;  %v7500_v49 = vpop.f32.mrf.mxu1 }
 0x980   : > { %v7597_v30 = vadd.f32 %v7596_v26, %v7548_v55  ;;  %v11199_v48 = vpop.eup %11198  ;;  %v7867_v19 = vadd.f32 1.0, %v11197_v39  ;;  %v7501_v13 = vadd.f32 %v7500_v49, %v14328_v27  ;;  %v7647_v3 = vpop.f32.mrf.mxu0 }
 0x981   : > { %v8220_v38 = vmul.f32 %v11199_v48, %v14399_v40  ;;  %11200 = vpow2.f32 %v10426_v57  ;;  %v8197_v31 = vsel %vm8196_vm14, %v11195_v41, %v8193_v36  ;;  %vm8225_vm1 = vweird.f32 %v11199_v48 }
 0x982   : > { %v7646_v18 = vadd.f32 %v7645_v47, %v7597_v30  ;;  %11202 = vrcp.f32 %v7867_v19  ;;  %v8202_v46 = vsel %vm8199_vm15, %v8201_v56, %v8197_v31  ;;  %vm8226_vm5 = vmor %vm8224_vm4, %vm8225_vm1  ;;  %v8258_v50 = vand.u32 2147483647, %v7867_v19 }
 0x983   : > { %v8221_v45 = vsub.f32 1.0, %v8220_v38  ;;  %8375 = vst [vmem:[%s14072_s14 + $0xa8] sm:$0xff] %v8202_v46  ;;  %v8260_v15 = vand.u32 2147483648, %v7867_v19  ;;  %vm8254_vm7 = vweird.f32 %v7867_v19 }
 0x984   : > { %vm7679_vm0 = vcmp.gt.f32.partialorder %v7646_v18, 0.0  ;;  %v7711_v7 = vmul.f32 0.2, %v7646_v18  ;;  %vm8259_vm9 = vcmp.eq.f32.partialorder %v8258_v50, 8.507059e+37 }
 0x985   : > { %v7549_v11 = vpop.f32.mrf.mxu2  ;;  %v8222_v32 = vmul.f32 %v11199_v48, %v8221_v45  ;;  %v8261_v58 = vor.u32 1.1754944e-38, %v8260_v15 }
 0x986   : > { %v7550_v21 = vadd.f32 %v7549_v11, %v7501_v13  ;;  %v7743_v59 = vsel %vm7679_vm0, %v7646_v18, %v7711_v7  ;;  %v7598_v33 = vpop.f32.mrf.mxu3 }
 0x987   : > { %v11201_v5 = vpop.eup %11200  ;;  %v8223_v62 = vadd.f32 %v11199_v48, %v8222_v32  ;;  %v10428_v61 = vmul.f32 -1.442695, %v7743_v59 }
 0x988   : > { %v7599_v20 = vadd.f32 %v7598_v33, %v7550_v21  ;;  %v11203_v27 = vpop.eup %11202  ;;  %v7869_v4 = vadd.f32 1.0, %v11201_v5 }
 0x989   : > { %v8227_v6 = vsel %vm8226_vm5, %v11199_v48, %v8223_v62  ;;  %v8250_v24 = vmul.f32 %v11203_v27, %v7867_v19  ;;  %11204 = vpow2.f32 %v10428_v61  ;;  %vm8255_vm3 = vweird.f32 %v11203_v27 }
 0x98a   : > { %v8232_v9 = vsel %vm8229_vm6, %v8231_v42, %v8227_v6  ;;  %11206 = vrcp.f32 %v7869_v4  ;;  %v7648_v35 = vadd.f32 %v7647_v3, %v7599_v20  ;;  %vm8256_vm8 = vmor %vm8254_vm7, %vm8255_vm3  ;;  %v8290_v43 = vand.u32 2147483648, %v7869_v4 }
 0x98b   : > { %8377 = vst [vmem:[%s14072_s14 + $0xb8] sm:$0xff] %v8232_v9  ;;  %v8251_v10 = vsub.f32 1.0, %v8250_v24  ;;  %v8288_v0 = vand.u32 2147483647, %v7869_v4  ;;  %vm8284_vm11 = vweird.f32 %v7869_v4 }
 0x98c   : > { %vm7681_vm2 = vcmp.gt.f32.partialorder %v7648_v35, 0.0  ;;  %v7713_v1 = vmul.f32 0.2, %v7648_v35  ;;  %v8291_v23 = vor.u32 1.1754944e-38, %v8290_v43 }
 0x98d   : > { %v8252_v25 = vmul.f32 %v11203_v27, %v8251_v10  ;;  %vm8289_vm13 = vcmp.eq.f32.partialorder %v8288_v0, 8.507059e+37 }
 0x98e   : > { %v7745_v29 = vsel %vm7681_vm2, %v7648_v35, %v7713_v1 }
 0x98f   : > { %v11205_v60 = vpop.eup %11204  ;;  %v8253_v8 = vadd.f32 %v11203_v27, %v8252_v25  ;;  %v10430_v54 = vmul.f32 -1.442695, %v7745_v29 }
 0x990   : > { %v11207_v2 = vpop.eup %11206  ;;  %v7871_v14 = vadd.f32 1.0, %v11205_v60 }
 0x991   : > { %v8257_v40 = vsel %vm8256_vm8, %v11203_v27, %v8253_v8  ;;  %v8280_v41 = vmul.f32 %v11207_v2, %v7869_v4  ;;  %vm8285_vm10 = vweird.f32 %v11207_v2 }
 0x992   : > { %v8262_v63 = vsel %vm8259_vm9, %v8261_v58, %v8257_v40  ;;  %11208 = vrcp.f32 %v7871_v14  ;;  %vm8286_vm12 = vmor %vm8284_vm11, %vm8285_vm10  ;;  %v8320_v26 = vand.u32 2147483648, %v7871_v14  ;;  %v8318_v57 = vand.u32 2147483647, %v7871_v14 }
 0x993   : > { %8379 = vst [vmem:[%s14072_s14 + $0xc8] sm:$0xff] %v8262_v63  ;;  %v8281_v37 = vsub.f32 1.0, %v8280_v41  ;;  %11210 = vpow2.f32 %v10430_v54  ;;  %vm8314_vm15 = vweird.f32 %v7871_v14 }
 0x994   : > { %v8321_v48 = vor.u32 1.1754944e-38, %v8320_v26  ;;  %vm8319_vm1 = vcmp.eq.f32.partialorder %v8318_v57, 8.507059e+37 }
 0x995   : > { %v8282_v16 = vmul.f32 %v11207_v2, %v8281_v37 }
 0x997   : > { %v8283_v51 = vadd.f32 %v11207_v2, %v8282_v16 }
 0x998   : > { %v11209_v22 = vpop.eup %11208 }
 0x999   : > { %v11211_v17 = vpop.eup %11210  ;;  %v8287_v52 = vsel %vm8286_vm12, %v11207_v2, %v8283_v51  ;;  %v8310_v55 = vmul.f32 %v11209_v22, %v7871_v14  ;;  %vm8315_vm14 = vweird.f32 %v11209_v22 }
 0x99a   : > { %v8292_v28 = vsel %vm8289_vm13, %v8291_v23, %v8287_v52  ;;  %v7873_v34 = vadd.f32 1.0, %v11211_v17  ;;  %vm8316_vm0 = vmor %vm8314_vm15, %vm8315_vm14 }
 0x99b   : > { %8381 = vst [vmem:[%s14072_s14 + $0xd8] sm:$0xff] %v8292_v28  ;;  %v8311_v53 = vsub.f32 1.0, %v8310_v55 }
 0x99c   : > { %11212 = vrcp.f32 %v7873_v34  ;;  %v8350_v38 = vand.u32 2147483648, %v7873_v34  ;;  %v8348_v31 = vand.u32 2147483647, %v7873_v34  ;;  %vm8344_vm5 = vweird.f32 %v7873_v34 }
 0x99d   : > { %v8312_v39 = vmul.f32 %v11209_v22, %v8311_v53 }
 0x99e   : > { %v8351_v45 = vor.u32 1.1754944e-38, %v8350_v38  ;;  %vm8349_vm3 = vcmp.eq.f32.partialorder %v8348_v31, 8.507059e+37 }
 0x99f   : > { %v8313_v30 = vadd.f32 %v11209_v22, %v8312_v39 }
 0x9a1   : > { %v8317_v36 = vsel %vm8316_vm0, %v11209_v22, %v8313_v30 }
 0x9a2   : > { %v11213_v19 = vpop.eup %11212  ;;  %v8322_v47 = vsel %vm8319_vm1, %v8321_v48, %v8317_v36 }
 0x9a3   : > { %8383 = vst [vmem:[%s14072_s14 + $0xe8] sm:$0xff] %v8322_v47  ;;  %v8340_v49 = vmul.f32 %v11213_v19, %v7873_v34  ;;  %vm8345_vm4 = vweird.f32 %v11213_v19 }
 0x9a4   : > { %vm8346_vm6 = vmor %vm8344_vm5, %vm8345_vm4 }
 0x9a5   : > { %v8341_v56 = vsub.f32 1.0, %v8340_v49 }
 0x9a7   : > { %v8342_v18 = vmul.f32 %v11213_v19, %v8341_v56 }
 0x9a9   : > { %v8343_v46 = vadd.f32 %v11213_v19, %v8342_v18 }
 0x9ab   : > { %v8347_v13 = vsel %vm8346_vm6, %v11213_v19, %v8343_v46 }
 0x9ac   : > { %v8352_v12 = vsel %vm8349_vm3, %v8351_v45, %v8347_v13 }
 0x9ad   : > { %8385 = vst [vmem:[%s14072_s14 + $0xf8] sm:$0xff] %v8352_v12 }
 0x9ae   : > { %11634 = shalt.err (!%p11631_p8)
}
 0x9af   : > { %s11718_s16 = smov 256   ;;  %s11719_s1 = smov 16  }
 0x9b0   : > { %10922 = dma.vmem_to_hbm [thread:$0]  (%p11873_p5), %s8443_s28, 4096, %s8445_s7, %s8419_s4, %s11718_s16, %s11718_s16, %s11719_s1  }
 0x9b1 PF: > { %s14878_s26 = sld [smem:[#allocation35_spill]] }
 0x9b2   : > { %s14879_s11 = sld [smem:[#allocation32_spill]] }
 0x9b7   : > { %p10994_p9 = scmp.ge.s32.totalorder %s14878_s26, 2 }
 0x9b8   : > { %s8467_s22 = sand.u32 1, %s14879_s11  }
 0x9b9   : > { %p10965_p10 = pnand %p10994_p9, %p11877_p6  ;;  %s8468_s2 = scalar_lea.sflag [#allocation4], %s8467_s22 }
 0x9bb   : > { %p10966_p11 = pneg %p10965_p10 }
 0x9bd   : > { %11680 = dma.done.wait (%p10966_p11), %s8468_s2, 4096  }
 0x9be   : > { %11682 = vsyncadd (%p10966_p11), %s8468_s2, 4294963200  ;;  %s14881_s30 = sld [smem:[#allocation36_spill]] }
 0x9bf   : > { %s14882_s3 = sld [smem:[#allocation33_spill]] }
 0x9c0   : > { %s14883_s28 = sld [smem:[#allocation34_spill]] }
 0x9c1   : > { %s14884_s29 = sld [smem:[#allocation37_spill]] }
 0x9c4   : > { %p40_p12 = scmp.ge.s32.totalorder %s14881_s30, 4  }
 0x9c6   :  { %42 = sbr.rel (!%p40_p12) target bundleno = 25 (0x19), region = 215 }
 0x9cb   :  { %8490 = vsyncpa [#allocation3], 1 }
 0x9cc   :  { %8492 = vsyncpa [#allocation3 + $0x1], 1 }
 0x9cd   :  { %8493 = vsyncpa [#allocation6], 1 }
 0x9ce   :  { %8494 = vsyncpa [#allocation9], 1 }
 0x9cf   :  { %8495 = vsyncpa [#allocation12], 1 }
 0x9d0   :  { %8496 = vsyncpa [#allocation15], 1 }
 0x9d1   :  { %8497 = vsyncpa [#allocation18], 1 }
 0x9d2   :  { %8498 = vsyncpa [#allocation21], 1 }
 0x9d3   :  { %8499 = vsyncpa [#allocation4], 1 }
 0x9d4   :  { %8501 = vsyncpa [#allocation4 + $0x1], 1 }

</bundles_post_ra>
